<compile_context>
chip_gen: v5e
topology: v5e:2x2
jax: 0.10.0
libtpu: 0.0.40
codegen_flags: <defaults>
</compile_context>

<pallas_src>
import functools
import math

import jax
import jax.numpy as jnp
from jax.experimental import pallas as pl
from jax.experimental.pallas import tpu as pltpu


def _round_up(a: int, m: int) -> int:
    return ((a + m - 1) // m) * m


def _rff_beta_kernel(xT_ref, s_ref, wT_ref, b_ref, beta_ref, yT_ref, *,
                     dim_out_is_one: bool, use_bf16: bool):
    # xT_ref  : (dim_in,     tile_n)   transposed input tile
    # s_ref   : (dim_in,     1)        indicators, broadcast over lanes
    # wT_ref  : (dim_hidden, dim_in)   W^T (resident)
    # b_ref   : (dim_hidden, 1)        RFF phase, broadcast over lanes
    # beta_ref: (dim_hidden, 1)        if dim_out == 1   (scale pre-folded)
    #           (dim_out, dim_hidden)  otherwise         (scale pre-folded)
    # yT_ref  : (dim_out,    tile_n)   lane-dense output tile
    xs = xT_ref[...] * s_ref[...]                       # indicator gating (VPU)
    w = wT_ref[...]
    if use_bf16:                                        # MXU operands only; f32 accum
        xs = xs.astype(jnp.bfloat16)
        w = w.astype(jnp.bfloat16)
    proj = jnp.dot(w, xs, preferred_element_type=jnp.float32)   # (H, tile_n)  MXU
    h = jnp.cos(proj + b_ref[...])                      # RFF features (EUP), f32

    if dim_out_is_one:
        # (tile_n, H) x (H, 1) on the MXU wastes all but one output column; use the
        # otherwise-idle VPU/XLU slots instead: multiply + sublane reduce.
        yT_ref[...] = jnp.sum(h * beta_ref[...], axis=0, keepdims=True)
    else:
        beta = beta_ref[...]
        if use_bf16:
            beta = beta.astype(jnp.bfloat16)
            h = h.astype(jnp.bfloat16)
        yT_ref[...] = jnp.dot(beta, h, preferred_element_type=jnp.float32)


def rff_beta_forward(x, s, w, b, beta, *, tile_n=1024, use_bf16_matmul=False):
    """Pallas-accelerated RffBeta.forward (weights already sampled).

    x: (N, dim_in), s: (dim_in,), w: (dim_in, dim_hidden), b: (dim_hidden,),
    beta: (dim_hidden, dim_out)  ->  y: (N, dim_out)
    """
    N, dim_in = x.shape
    dim_in_w, dim_hidden = w.shape
    assert dim_in_w == dim_in
    dim_hidden_b, dim_out = beta.shape
    assert dim_hidden_b == dim_hidden

    f32 = jnp.float32
    bpe = 4
    scale = math.sqrt(2.0 / dim_hidden)

    # ---- N-tile selection: big lane-dense tiles (multiple of 128), capped by a VMEM
    # budget on the f32 (H, tile_n) intermediates, and split so the grid keeps >= 2
    # steps when there is enough work (pipeline overlap + v7x megacore sharding). ----
    n128 = _round_up(N, 128)
    interm_budget = 12 * 2**20                              # proj + h per tile
    tn_cap = max(128, (interm_budget // (2 * dim_hidden * bpe)) // 128 * 128)
    tn = min(_round_up(max(int(tile_n), 128), 128), n128, tn_cap)
    if n128 >= 256 and n128 // tn < 2:
        tn = _round_up(pl.cdiv(n128, 2), 128)
    N_pad = _round_up(N, tn)
    grid = (N_pad // tn,)

    # ---- Layout plumbing (outside the kernel): transposed, padded, scale folded. ----
    xT = jnp.asarray(x, f32).T                               # (dim_in, N)
    if N_pad != N:
        xT = jnp.pad(xT, ((0, 0), (0, N_pad - N)))           # ragged N -> zero pad
    s2 = jnp.asarray(s, f32).reshape(dim_in, 1)
    wT = jnp.asarray(w, f32).T                               # (dim_hidden, dim_in)
    b2 = jnp.asarray(b, f32).reshape(dim_hidden, 1)
    beta_scaled = jnp.asarray(beta, f32) * f32(scale)        # fold sqrt(2/H) into beta
    if dim_out == 1:
        beta_in = beta_scaled                                # (H, 1) lane-broadcast col
        beta_block = (dim_hidden, 1)
    else:
        beta_in = beta_scaled.T                              # (dim_out, H)
        beta_block = (dim_out, dim_hidden)

    # ---- VMEM budget (explicit; matters on v7x's 64 MiB / 32 MiB scoped default). ----
    stream_bytes = (dim_in * tn + dim_out * tn) * bpe                   # x / y tiles
    const_bytes = (dim_in * dim_hidden + dim_in + dim_hidden
                   + dim_hidden * max(dim_out, 1)) * bpe                # W, s, b, beta
    interm_bytes = 2 * dim_hidden * tn * bpe                            # proj + h
    est = 2 * stream_bytes + 2 * const_bytes + interm_bytes             # double-buffered
    vmem_limit = int(min(max(2 * est, 32 * 2**20), 48 * 2**20))

    cost = pl.CostEstimate(
        flops=(2 * N_pad * dim_in * dim_hidden          # first matmul
               + 2 * N_pad * dim_hidden * dim_out       # second matmul / reduce
               + 2 * N_pad * dim_hidden),               # bias add + gating-ish
        transcendentals=N_pad * dim_hidden,             # cos
        bytes_accessed=(N_pad * dim_in + N_pad * dim_out
                        + dim_in * dim_hidden + dim_hidden * dim_out
                        + dim_in + dim_hidden) * bpe,
    )

    yT = pl.pallas_call(
        functools.partial(_rff_beta_kernel,
                          dim_out_is_one=(dim_out == 1),
                          use_bf16=use_bf16_matmul),
        out_shape=jax.ShapeDtypeStruct((dim_out, N_pad), f32),
        grid_spec=pltpu.PrefetchScalarGridSpec(
            num_scalar_prefetch=0,
            grid=grid,
            in_specs=[
                pl.BlockSpec((dim_in, tn), lambda i: (0, i)),            # x^T tile
                pl.BlockSpec((dim_in, 1), lambda i: (0, 0)),             # s (resident)
                pl.BlockSpec((dim_hidden, dim_in), lambda i: (0, 0)),    # W^T (resident)
                pl.BlockSpec((dim_hidden, 1), lambda i: (0, 0)),         # b (resident)
                pl.BlockSpec(beta_block, lambda i: (0, 0)),              # beta (resident)
            ],
            out_specs=pl.BlockSpec((dim_out, tn), lambda i: (0, i)),     # lane-dense y^T
        ),
        compiler_params=pltpu.CompilerParams(
            dimension_semantics=("parallel",),
            vmem_limit_bytes=vmem_limit,
        ),
        cost_estimate=cost,
    )(xT, s2, wT, b2, beta_in)

    if N_pad != N:
        yT = yT[:, :N]
    return yT.T                                               # (N, dim_out)


def _reference_forward(x, s, w, b, beta):
    H = w.shape[1]
    h = math.sqrt(2.0 / H) * jnp.cos((x * s[None, :]) @ w + b[None, :])
    return h @ beta


if __name__ == "__main__":
    # Small-but-nontrivial shapes consistent with RffBeta(dim_in, dim_out, dim_hidden).
    # N=400 is deliberately not a multiple of the tile to exercise the padding path.
    N, dim_in, dim_hidden, dim_out = 400, 16, 128, 1

    key = jax.random.PRNGKey(0)
    k_x, k_w, k_b, k_s, k_beta = jax.random.split(key, 5)

    x = jax.random.normal(k_x, (N, dim_in), dtype=jnp.float32)

    # RffBetaLayer fixed random features.
    w_rff = jax.random.normal(k_w, (dim_in, dim_hidden), dtype=jnp.float32)
    b_rff = jax.random.uniform(k_b, (dim_hidden,), dtype=jnp.float32,
                               minval=0.0, maxval=2.0 * math.pi)

    # "sample_post" of the beta-prior indicators: s ~ Beta(a, b) per input dim.
    s = jax.random.beta(k_s, 2.0, 2.0, (dim_in,)).astype(jnp.float32)

    # "sample_post" of the conjugate output LinearLayer weights.
    beta_w = (jax.random.normal(k_beta, (dim_hidden, dim_out), dtype=jnp.float32)
              / math.sqrt(dim_hidden))

    # f32 path, dim_out == 1 (VPU-reduce second stage).
    y = jax.block_until_ready(rff_beta_forward(x, s, w_rff, b_rff, beta_w))
    y_ref = _reference_forward(x, s, w_rff, b_rff, beta_w)
    assert y.shape == (N, dim_out)
    assert jnp.allclose(y, y_ref, atol=1e-5, rtol=1e-5), "mismatch vs reference (f32)"

    # f32 path, dim_out > 1 (MXU second matmul, still lane-dense output).
    dim_out2 = 4
    beta_w2 = (jax.random.normal(k_beta, (dim_hidden, dim_out2), dtype=jnp.float32)
               / math.sqrt(dim_hidden))
    y2 = jax.block_until_ready(rff_beta_forward(x, s, w_rff, b_rff, beta_w2))
    y2_ref = _reference_forward(x, s, w_rff, b_rff, beta_w2)
    assert y2.shape == (N, dim_out2)
    assert jnp.allclose(y2, y2_ref, atol=1e-5, rtol=1e-5), "mismatch vs reference (dim_out>1)"

    # bf16 MXU-operand fast path (v6e/v7x), f32 accumulation — looser tolerance.
    y_bf16 = jax.block_until_ready(
        rff_beta_forward(x, s, w_rff, b_rff, beta_w, use_bf16_matmul=True))
    assert jnp.allclose(y_bf16, y_ref, atol=5e-2, rtol=5e-2), "mismatch vs reference (bf16)"

    print("KERNEL_OK")
</pallas_src>

<mosaic_0001>
module attributes {stable_mosaic.version = 11 : i64} {
  func.func @_rff_beta_kernel(%arg0: i32, %arg1: memref<16x256xf32, #tpu.memory_space<vmem>>, %arg2: memref<16x1xf32, #tpu.memory_space<vmem>>, %arg3: memref<128x16xf32, #tpu.memory_space<vmem>>, %arg4: memref<128x1xf32, #tpu.memory_space<vmem>>, %arg5: memref<128x1xf32, #tpu.memory_space<vmem>>, %arg6: memref<1x256xf32, #tpu.memory_space<vmem>>) attributes {dimension_semantics = [#tpu.dimension_semantics<parallel>], iteration_bounds = array<i64: 2>, scalar_prefetch = 0 : i64, scratch_operands = 0 : i64, tpu.core_type = #tpu.core_type<tc>, window_params = [{transform_indices = @transform_0, window_bounds = array<i64: 16, 256>}, {pipeline_mode = #tpu.pipeline_mode<synchronous>, transform_indices = @transform_1, window_bounds = array<i64: 16, 1>}, {pipeline_mode = #tpu.pipeline_mode<synchronous>, transform_indices = @transform_2, window_bounds = array<i64: 128, 16>}, {pipeline_mode = #tpu.pipeline_mode<synchronous>, transform_indices = @transform_3, window_bounds = array<i64: 128, 1>}, {pipeline_mode = #tpu.pipeline_mode<synchronous>, transform_indices = @transform_4, window_bounds = array<i64: 128, 1>}, {transform_indices = @transform_5, window_bounds = array<i64: 1, 256>}]} {
    %c0 = arith.constant 0 : index
    %c0_0 = arith.constant 0 : index
    %0 = vector.load %arg1[%c0, %c0_0] : memref<16x256xf32, #tpu.memory_space<vmem>>, vector<16x256xf32>
    %c0_1 = arith.constant 0 : index
    %c0_2 = arith.constant 0 : index
    %1 = vector.load %arg2[%c0_1, %c0_2] : memref<16x1xf32, #tpu.memory_space<vmem>>, vector<16x1xf32>
    %2 = vector.broadcast %1 : vector<16x1xf32> to vector<16x256xf32>
    %3 = arith.mulf %0, %2 : vector<16x256xf32>
    %c0_3 = arith.constant 0 : index
    %c0_4 = arith.constant 0 : index
    %4 = vector.load %arg3[%c0_3, %c0_4] : memref<128x16xf32, #tpu.memory_space<vmem>>, vector<128x16xf32>
    %cst = arith.constant dense<0.000000e+00> : vector<128x256xf32>
    %5 = tpu.matmul %4, %3, %cst {dimension_numbers = #tpu.dot_dimension_numbers<[1], [0], [0], [1], [0, 0, 1, 1], [], []>} : vector<128x16xf32>, vector<16x256xf32>, vector<128x256xf32> -> vector<128x256xf32>
    %c0_5 = arith.constant 0 : index
    %c0_6 = arith.constant 0 : index
    %6 = vector.load %arg4[%c0_5, %c0_6] : memref<128x1xf32, #tpu.memory_space<vmem>>, vector<128x1xf32>
    %7 = vector.broadcast %6 : vector<128x1xf32> to vector<128x256xf32>
    %8 = arith.addf %5, %7 : vector<128x256xf32>
    %9 = math.cos %8 : vector<128x256xf32>
    %c0_7 = arith.constant 0 : index
    %c0_8 = arith.constant 0 : index
    %10 = vector.load %arg5[%c0_7, %c0_8] : memref<128x1xf32, #tpu.memory_space<vmem>>, vector<128x1xf32>
    %11 = vector.broadcast %10 : vector<128x1xf32> to vector<128x256xf32>
    %12 = arith.mulf %9, %11 : vector<128x256xf32>
    %cst_9 = arith.constant dense<0.000000e+00> : vector<256xf32>
    %13 = vector.multi_reduction <add>, %12, %cst_9 [0] : vector<128x256xf32> to vector<256xf32>
    %14 = vector.shape_cast %13 : vector<256xf32> to vector<1x256xf32>
    %c0_10 = arith.constant 0 : index
    %c0_11 = arith.constant 0 : index
    %15 = vector.load %arg6[%c0_10, %c0_11] : memref<1x256xf32, #tpu.memory_space<vmem>>, vector<1x256xf32>
    tpu.vector_store %arg6[%c0_10, %c0_11], %14 {strides = array<i32>} : memref<1x256xf32, #tpu.memory_space<vmem>>, vector<1x256xf32>,
    return
  }
  func.func @transform_0(%arg0: i32) -> (i32, i32) {
    %c0_i32 = arith.constant 0 : i32
    %c0_i32_0 = arith.constant 0 : i32
    return %c0_i32, %arg0 : i32, i32
  }
  func.func @transform_1(%arg0: i32) -> (i32, i32) {
    %c0_i32 = arith.constant 0 : i32
    %c0_i32_0 = arith.constant 0 : i32
    %c0_i32_1 = arith.constant 0 : i32
    return %c0_i32, %c0_i32_0 : i32, i32
  }
  func.func @transform_2(%arg0: i32) -> (i32, i32) {
    %c0_i32 = arith.constant 0 : i32
    %c0_i32_0 = arith.constant 0 : i32
    %c0_i32_1 = arith.constant 0 : i32
    return %c0_i32, %c0_i32_0 : i32, i32
  }
  func.func @transform_3(%arg0: i32) -> (i32, i32) {
    %c0_i32 = arith.constant 0 : i32
    %c0_i32_0 = arith.constant 0 : i32
    %c0_i32_1 = arith.constant 0 : i32
    return %c0_i32, %c0_i32_0 : i32, i32
  }
  func.func @transform_4(%arg0: i32) -> (i32, i32) {
    %c0_i32 = arith.constant 0 : i32
    %c0_i32_0 = arith.constant 0 : i32
    %c0_i32_1 = arith.constant 0 : i32
    return %c0_i32, %c0_i32_0 : i32, i32
  }
  func.func @transform_5(%arg0: i32) -> (i32, i32) {
    %c0_i32 = arith.constant 0 : i32
    %c0_i32_0 = arith.constant 0 : i32
    return %c0_i32, %arg0 : i32, i32
  }
}

</mosaic_0001>

<bundles_post_ra>
// kernel: tpu_custom_call.1
= control target key start
LH: loop header
LB: loop body
LE: loop exit
PB: predicated region body
PF: predicated region fallthrough
CT: control target
= control target key end

     0   :  { %10 = vsyncpa [#allocation4], 0  ;;  %s12749_s0 = inlined_call_operand.vmem [shape: f32[16,512], index: 0, kind: input, shape index: {}]   ;;  %s12750_s1 = inlined_call_operand.vmem [shape: f32[16,1], index: 1, kind: input, shape index: {}]   ;;  %s12751_s2 = inlined_call_operand.vmem [shape: f32[128,16], index: 2, kind: input, shape index: {}]   ;;  %s12752_s3 = inlined_call_operand.vmem [shape: f32[128,1], index: 3, kind: input, shape index: {}]   ;;  %s12753_s4 = inlined_call_operand.vmem [shape: f32[128,1], index: 4, kind: input, shape index: {}]   ;;  %s12754_s5 = inlined_call_operand.hbm [shape: f32[1,512], index: 5, kind: output, shape index: {}]  }
   0x1   :  { %12 = vsyncpa [#allocation4 + $0x1], 0  ;;  %s6048_s18 = smov 0   ;;  %s6050_s19 = smov 0  }
   0x2   :  { %s6052_s20 = smov 0   ;;  %s6054_s21 = smov 0  }
   0x3 LB: > { %s5751_s22 = sadd.s32 4294967295, %s6009_s21   ;;  %s5752_s23 = sadd.s32 4294967294, %s6009_s21   ;;  %s6009_s21 = sphi %s6054_s21, %s13544_s21   ;;  %s6005_s20 = sphi %s6052_s20, %s13543_s20   ;;  %s6001_s19 = sphi %s6050_s19, %s13542_s19   ;;  %s5997_s18 = sphi %s6048_s18, %s13541_s18  }
   0x4   : > { %s6071_s24 = sadd.s32 1, %s6009_s21   ;;  %s25_s25 = sadd.s32 1, %s6005_s20 }
   0x5   : > { %s22_s26 = ssub.s32 %s6009_s21, %s6071_s24  ;;  %p32_p0 = scmp.ne.s32.totalorder %s6005_s20, %s6001_s19 }
   0x6   : > { %p23_p1 = scmp.eq.s32.totalorder %s22_s26, 0  ;;  %p33_p2 = scmp.eq.s32.totalorder %s6009_s21, 0 }
   0x7   : > { %p146_p3 = scmp.eq.s32.totalorder %s5751_s22, 1  ;;  %p151_p4 = scmp.ne.s32.totalorder %s6001_s19, %s5997_s18 }
   0x8   : > { %s6084_s27 = scalar_select %p23_p1, %s6005_s20, %s25_s25  }
   0x9   : > { %p34_p5 = por %p33_p2, %p32_p0  ;;  %p6086_p6 = por %p146_p3, %p32_p0 }
   0xa   : > { %p152_p7 = scmp.eq.s32.totalorder %s5752_s23, 1  ;;  %p5754_p9 = scmp.ge.s32.totalorder %s6009_s21, 2 }
   0xc   : > { %p6090_p8 = por %p152_p7, %p151_p4  ;;  %180 = sbr.rel (%p5754_p9) target bundleno = 25 (0x19), region = 32 }
  0x11   : > { %183 = sbr.rel (!%p34_p5) target bundleno = 25 (0x19), region = 36  ;;  %s185_s30 = sand.u32 (%p34_p5), 1, %s6005_s20  }
  0x12   : > { %s5893_s6 = sshll.u32 (%p34_p5), %s6009_s21, 4  ;;  %s5755_s7 = sshll.u32 (%p34_p5), %s185_s30, 5 }
  0x13   : > { %s190_s10 = scalar_lea.vmem (%p34_p5), %s12749_s0, %s5893_s6  ;;  %s187_s11 = scalar_lea.vmem (%p34_p5), [#allocation2], %s5755_s7 }
  0x14   : > { %v203_v0 = vld [vmem:[%s190_s10] sm:$0xff] (%p34_p5)  ;;  %v205_v1 = vld [vmem:[%s190_s10 + $0x8] sm:$0xff] (%p34_p5) }
  0x15   : > { %v207_v2 = vld [vmem:[%s190_s10 + $0x20] sm:$0xff] (%p34_p5)  ;;  %204 = vst [vmem:[%s187_s11] sm:$0xff] (%p34_p5), %v203_v0  ;;  %v209_v3 = vld [vmem:[%s190_s10 + $0x28] sm:$0xff] (%p34_p5) }
  0x16   : > { %206 = vst [vmem:[%s187_s11 + $0x8] sm:$0xff] %v205_v1 }
  0x17   : > { %208 = vst [vmem:[%s187_s11 + $0x10] sm:$0xff] %v207_v2 }
  0x18   : > { %210 = vst [vmem:[%s187_s11 + $0x18] sm:$0xff] %v209_v3 }
  0x19 PF: > { %p5758_p10 = scmp.ge.s32.totalorder %s6009_s21, 1  ;;  %p215_p11 = scmp.lt.s32.totalorder %s6009_s21, 3 }
  0x1b   : > { %p216_p12 = pnand %p5758_p10, %p215_p11 }
  0x1d   : > { %219 = sbr.rel (%p216_p12) target bundleno = 1552 (0x610), region = 59 }
  0x22   : > { %v256_v4 = vld [vmem:[%s12750_s1 + $0x8] sm:$0xff]  ;;  %v12758_v5 = vmov 0   ;;  %v255_v6 = vld [vmem:[%s12750_s1] sm:$0xff]  ;;  %v294_v8 = vld [vmem:[%s12752_s3 + $0x38] sm:$0xff]  ;;  %s6171_s6 = sand.u32 1, %s6001_s19   ;;  %vm383_vm0 = vcmask 130048  }
  0x23   : > { %5944 = vset.pattern.permute.xlu0 %v12758_v5  ;;  %5945 = vset.pattern.permute.xlu1 %v12758_v5  ;;  %v291_v7 = vld [vmem:[%s12752_s3 + $0x20] sm:$0xff]  ;;  %v297_v9 = vld [vmem:[%s12752_s3 + $0x50] sm:$0xff]  ;;  %v300_v10 = vld [vmem:[%s12752_s3 + $0x68] sm:$0xff]  ;;  %s5759_s11 = sshll.u32 %s6171_s6, 5  ;;  %s5760_s7 = sshll.u32 %s6171_s6, 1 }
  0x24   : > { %264 = vperm.xlu0 %5944, %v256_v4   ;;  %5946 = vset.pattern.permute.xlu2 %v12758_v5  ;;  %v5490_v11 = vld [vmem:[%s12753_s4] sm:$0xff]  ;;  %v5493_v13 = vld [vmem:[%s12753_s4 + $0x18] sm:$0xff]  ;;  %v288_v14 = vld [vmem:[%s12752_s3 + $0x8] sm:$0xff]  ;;  %s224_s12 = scalar_lea.vmem [#allocation2], %s5759_s11  ;;  %s5890_s8 = sshll.u32 %s5751_s22, 1 }
  0x25   : > { %v287_v12 = vld [vmem:[%s12752_s3] sm:$0xff]  ;;  %v289_v15 = vld [vmem:[%s12752_s3 + $0x10] sm:$0xff]  ;;  %v292_v17 = vld [vmem:[%s12752_s3 + $0x28] sm:$0xff]  ;;  %s5682_s11 = scalar_lea.hbm %s12754_s5, %s5890_s8  ;;  %s5672_s22 = scalar_lea.sflag [#allocation4], %s6171_s6 }
  0x26   : > { %305 = vperm.xlu1 %5945, %v287_v12   ;;  %315 = vperm.xlu2 %5946, %v289_v15   ;;  %v5496_v16 = vld [vmem:[%s12753_s4 + $0x30] sm:$0xff]  ;;  %v5499_v18 = vld [vmem:[%s12753_s4 + $0x48] sm:$0xff]  ;;  %v295_v19 = vld [vmem:[%s12752_s3 + $0x40] sm:$0xff]  ;;  %v12765_v15 = vmov 920167782   ;;  %s5686_s14 = sshll.u32 %s5682_s11, 4  ;;  %s5687_s14 = int_to_ptr.hbm [resolvable:$true] %s5686_s14 }
  0x27   : > { %v5502_v20 = vld [vmem:[%s12753_s4 + $0x60] sm:$0xff]  ;;  %v5505_v21 = vld [vmem:[%s12753_s4 + $0x78] sm:$0xff]  ;;  %v301_v24 = vld [vmem:[%s12752_s3 + $0x70] sm:$0xff]  ;;  %s5961_s15 = sshra.s32 %s5687_s14, 4  ;;  %s5967_s25 = scalar_lea.hbm %s12754_s5, 4  ;;  %s5962_s15 = int_to_ptr.hbm [resolvable:$true] %s5961_s15 }
  0x28   : > { %v298_v22 = vld [vmem:[%s12752_s3 + $0x58] sm:$0xff]  ;;  %v293_v25 = vld [vmem:[%s12752_s3 + $0x30] sm:$0xff]  ;;  %v5491_v26 = vld [vmem:[%s12753_s4 + $0x8] sm:$0xff]  ;;  %s5963_s16 = scalar_lea.hbm %s5962_s15, 2  ;;  %p5968_p2 = scmp.lt.s32.totalorder %s5962_s15, %s12754_s5 }
  0x29   : > { %v290_v23 = vld [vmem:[%s12752_s3 + $0x18] sm:$0xff]  ;;  %v296_v27 = vld [vmem:[%s12752_s3 + $0x48] sm:$0xff]  ;;  %v253_v28 = vld [vmem:[%s224_s12 + $0x10] sm:$0xff]  ;;  %p5964_p13 = scmp.ne.s32.totalorder %s5962_s15, %s5963_s16  ;;  %p5969_p3 = scmp.lt.s32.totalorder %s5967_s25, %s5963_s16 }
  0x2a   : > { %v254_v29 = vld [vmem:[%s224_s12 + $0x18] sm:$0xff]  ;;  %v5494_v30 = vld [vmem:[%s12753_s4 + $0x20] sm:$0xff]  ;;  %v252_v36 = vld [vmem:[%s224_s12 + $0x8] sm:$0xff] }
  0x2b   : > { %v299_v31 = vld [vmem:[%s12752_s3 + $0x60] sm:$0xff]  ;;  %v5497_v37 = vld [vmem:[%s12753_s4 + $0x38] sm:$0xff]  ;;  %v5500_v44 = vld [vmem:[%s12753_s4 + $0x50] sm:$0xff]  ;;  %p5965_p0 = pnand %p5964_p13, %p6086_p6  ;;  %p5970_p4 = por %p5969_p3, %p5968_p2 }
  0x2c   : > { %259 = vperm.xlu0 %5944, %v255_v6   ;;  %v251_v35 = vld [vmem:[%s224_s12] sm:$0xff]  ;;  %v302_v38 = vld [vmem:[%s12752_s3 + $0x78] sm:$0xff]  ;;  %v5492_v45 = vld [vmem:[%s12753_s4 + $0x10] sm:$0xff]  ;;  %s248_s12 = scalar_lea.vmem [#allocation3], %s5760_s7 }
  0x2d   : > { %v271_v42 = vld [vmem:[%s12751_s2] sm:$0xff]  ;;  %v272_v46 = vld [vmem:[%s12751_s2 + $0x8] sm:$0xff]  ;;  %v273_v50 = vld [vmem:[%s12751_s2 + $0x10] sm:$0xff]  ;;  %s5684_s13 = sshll.u32 %s248_s12, 4  ;;  %p5966_p1 = pneg %p5965_p0  ;;  %s5685_s13 = int_to_ptr.vmem [resolvable:$true] %s5684_s13 }
  0x2e   : > { %310 = vperm.xlu1 %5945, %v288_v14   ;;  %320 = vperm.xlu2 %5946, %v290_v23   ;;  %v279_v43 = vld [vmem:[%s12751_s2 + $0x40] sm:$0xff]  ;;  %v280_v47 = vld [vmem:[%s12751_s2 + $0x48] sm:$0xff]  ;;  %v281_v51 = vld [vmem:[%s12751_s2 + $0x50] sm:$0xff]  ;;  %v12761_v23 = vmov 683565275  }
  0x2f   : > { %v5503_v48 = vld [vmem:[%s12753_s4 + $0x68] sm:$0xff]  ;;  %v5498_v52 = vld [vmem:[%s12753_s4 + $0x40] sm:$0xff]  ;;  %v274_v53 = vld [vmem:[%s12751_s2 + $0x18] sm:$0xff]  ;;  %p5971_p5 = pnand %p5970_p4, %p5966_p1 }
  0x30   : > { %v5495_v49 = vld [vmem:[%s12753_s4 + $0x28] sm:$0xff]  ;;  %v282_v54 = vld [vmem:[%s12751_s2 + $0x58] sm:$0xff]  ;;  %v275_v56 = vld [vmem:[%s12751_s2 + $0x20] sm:$0xff] }
  0x31   : > { %v5501_v55 = vld [vmem:[%s12753_s4 + $0x58] sm:$0xff]  ;;  %v283_v57 = vld [vmem:[%s12751_s2 + $0x60] sm:$0xff]  ;;  %v5504_v58 = vld [vmem:[%s12753_s4 + $0x70] sm:$0xff] }
  0x32   : > { %v276_v59 = vld [vmem:[%s12751_s2 + $0x28] sm:$0xff]  ;;  %v277_v61 = vld [vmem:[%s12751_s2 + $0x30] sm:$0xff]  ;;  %v278_v63 = vld [vmem:[%s12751_s2 + $0x38] sm:$0xff] }
  0x33   : > { %v284_v60 = vld [vmem:[%s12751_s2 + $0x68] sm:$0xff]  ;;  %v285_v62 = vld [vmem:[%s12751_s2 + $0x70] sm:$0xff]  ;;  %v286_v0 = vld [vmem:[%s12751_s2 + $0x78] sm:$0xff] }
  0x34   : > { %325 = vperm.xlu0 %5944, %v291_v7  }
  0x36   : > { %330 = vperm.xlu1 %5945, %v292_v17   ;;  %335 = vperm.xlu2 %5946, %v293_v25   ;;  %v12792_v25 = vmov 2475754826  }
  0x3c   : > { %340 = vperm.xlu0 %5944, %v294_v8  }
  0x3e   : > { %345 = vperm.xlu1 %5945, %v295_v19   ;;  %350 = vperm.xlu2 %5946, %v296_v27  }
  0x44   : > { %355 = vperm.xlu0 %5944, %v297_v9  }
  0x46   : > { %360 = vperm.xlu1 %5945, %v298_v22   ;;  %365 = vperm.xlu2 %5946, %v299_v31  }
  0x4c   : > { %370 = vperm.xlu0 %5944, %v300_v10  }
  0x4e   : > { %375 = vperm.xlu1 %5945, %v301_v24   ;;  %380 = vperm.xlu2 %5946, %v302_v38  }
  0x54   : > { %5508 = vperm.xlu0 %5944, %v5490_v11  }
  0x56   : > { %5513 = vperm.xlu1 %5945, %v5491_v26   ;;  %5518 = vperm.xlu2 %5946, %v5492_v45  }
  0x5c   : > { %5523 = vperm.xlu0 %5944, %v5493_v13   ;;  %v12784_v13 = vmov 2102212464  }
  0x5e   : > { %5528 = vperm.xlu1 %5945, %v5494_v30   ;;  %5533 = vperm.xlu2 %5946, %v5495_v49  }
  0x64   : > { %5538 = vperm.xlu0 %5944, %v5496_v16  }
  0x66   : > { %5543 = vperm.xlu1 %5945, %v5497_v37   ;;  %5548 = vperm.xlu2 %5946, %v5498_v52  }
  0x6c   : > { %5553 = vperm.xlu0 %5944, %v5499_v18   ;;  %v12773_v18 = vmov 1326507024  }
  0x6e   : > { %5558 = vperm.xlu1 %5945, %v5500_v44   ;;  %5563 = vperm.xlu2 %5946, %v5501_v55  }
  0x74   : > { %5568 = vperm.xlu0 %5944, %v5502_v20  }
  0x76   : > { %5573 = vperm.xlu1 %5945, %v5503_v48   ;;  %5578 = vperm.xlu2 %5946, %v5504_v58  }
  0x7c   : > { %5583 = vperm.xlu0 %5944, %v5505_v21  }
  0x96   : > { %v265_v32 = vpop.permute.xlu0 %264 }
  0x97   : > { %v269_v33 = vmul.f32 %v265_v32, %v253_v28  ;;  %v270_v34 = vmul.f32 %v265_v32, %v254_v29  ;;  %v12763_v28 = vmov 2131351028  }
  0x98   : > { %v306_v2 = vpop.permute.xlu1 %305 }
  0x99   : > { %446 = vmatpush.msra.mxu0 %v269_v33  ;;  %5894 = vmatpush.msra.mxu2 %v269_v33 }
  0x9a   : > { %511 = vmatpush.msra.mxu1 %v270_v34  ;;  %5896 = vmatpush.msra.mxu3 %v270_v34 }
  0x9e   : > { %v260_v39 = vpop.permute.xlu0 %259 }
  0x9f   : > { %v267_v40 = vmul.f32 %v260_v39, %v251_v35  ;;  %v268_v41 = vmul.f32 %v260_v39, %v252_v36 }
  0xa1   : > { %447 = vmatpush.msra.mxu0 %v267_v40  ;;  %5895 = vmatpush.msra.mxu2 %v267_v40 }
  0xa2   : > { %512 = vmatpush.msra.mxu1 %v268_v41  ;;  %5897 = vmatpush.msra.mxu3 %v268_v41 }
  0xa3   : > { %5761 = vmatmul.msk.f32.vlgmr.msra.gmra.mxu0 %vm383_vm0, %v271_v42  ;;  %5769 = vmatmul.msk.f32.vlgmr.msra.gmra.mxu2 %vm383_vm0, %v279_v43 }
  0xa4   : > { %5777 = vmatmul.msk.f32.vlgmr.msra.gmra.mxu1 %vm383_vm0, %v271_v42  ;;  %5785 = vmatmul.msk.f32.vlgmr.msra.gmra.mxu3 %vm383_vm0, %v279_v43 }
  0xab   : > { %5762 = vmatmul.msk.f32.gmra.mxu0 %vm383_vm0, %v272_v46  ;;  %5770 = vmatmul.msk.f32.gmra.mxu2 %vm383_vm0, %v280_v47 }
  0xac   : > { %5778 = vmatmul.msk.f32.gmra.mxu1 %vm383_vm0, %v272_v46  ;;  %5786 = vmatmul.msk.f32.gmra.mxu3 %vm383_vm0, %v280_v47 }
  0xb3   : > { %5763 = vmatmul.msk.f32.gmra.mxu0 %vm383_vm0, %v273_v50  ;;  %5771 = vmatmul.msk.f32.gmra.mxu2 %vm383_vm0, %v281_v51 }
  0xb4   : > { %5779 = vmatmul.msk.f32.gmra.mxu1 %vm383_vm0, %v273_v50  ;;  %5787 = vmatmul.msk.f32.gmra.mxu3 %vm383_vm0, %v281_v51 }
  0xbb   : > { %5764 = vmatmul.msk.f32.gmra.mxu0 %vm383_vm0, %v274_v53  ;;  %5772 = vmatmul.msk.f32.gmra.mxu2 %vm383_vm0, %v282_v54 }
  0xbc   : > { %5780 = vmatmul.msk.f32.gmra.mxu1 %vm383_vm0, %v274_v53  ;;  %5788 = vmatmul.msk.f32.gmra.mxu3 %vm383_vm0, %v282_v54 }
  0xc3   : > { %5765 = vmatmul.msk.f32.gmra.mxu0 %vm383_vm0, %v275_v56  ;;  %5773 = vmatmul.msk.f32.gmra.mxu2 %vm383_vm0, %v283_v57 }
  0xc4   : > { %5781 = vmatmul.msk.f32.gmra.mxu1 %vm383_vm0, %v275_v56  ;;  %5789 = vmatmul.msk.f32.gmra.mxu3 %vm383_vm0, %v283_v57 }
  0xcb   : > { %5766 = vmatmul.msk.f32.gmra.mxu0 %vm383_vm0, %v276_v59  ;;  %5774 = vmatmul.msk.f32.gmra.mxu2 %vm383_vm0, %v284_v60 }
  0xcc   : > { %5782 = vmatmul.msk.f32.gmra.mxu1 %vm383_vm0, %v276_v59  ;;  %5790 = vmatmul.msk.f32.gmra.mxu3 %vm383_vm0, %v284_v60 }
  0xd3   : > { %5767 = vmatmul.msk.f32.gmra.mxu0 %vm383_vm0, %v277_v61  ;;  %5775 = vmatmul.msk.f32.gmra.mxu2 %vm383_vm0, %v285_v62 }
  0xd4   : > { %5783 = vmatmul.msk.f32.gmra.mxu1 %vm383_vm0, %v277_v61  ;;  %5791 = vmatmul.msk.f32.gmra.mxu3 %vm383_vm0, %v285_v62 }
  0xdb   : > { %5768 = vmatmul.msk.f32.gmra.mxu0 %vm383_vm0, %v278_v63  ;;  %5776 = vmatmul.msk.f32.gmra.mxu2 %vm383_vm0, %v286_v0 }
  0xdc   : > { %5784 = vmatmul.msk.f32.gmra.mxu1 %vm383_vm0, %v278_v63  ;;  %5792 = vmatmul.msk.f32.gmra.mxu3 %vm383_vm0, %v286_v0 }
 0x120   : > { %v449_v1 = vpop.f32.mrf.mxu0 }
 0x121   : > { %v6293_v3 = vadd.f32 %v449_v1, %v306_v2  ;;  %v514_v12 = vpop.f32.mrf.mxu1 }
 0x122   : > { %v6304_v20 = vadd.f32 %v514_v12, %v306_v2 }
 0x123   : > { %13023 = vst [vmem:[#allocation6_spill] sm:$0xff] %v6293_v3  ;;  %v565_v4 = vand.u32 2139095040, %v6293_v3  ;;  %v562_v21 = vand.u32 2147483647, %v6293_v3 }
 0x124   : > { %v719_v35 = vand.u32 2139095040, %v6304_v20 }
 0x125   : > { %v566_v6 = vshrl.u32 %v565_v4, 23  ;;  %v569_v34 = vand.u32 8388607, %v562_v21 }
 0x126   : > { %v720_v44 = vshrl.u32 %v719_v35, 23 }
 0x127   : > { %v5793_v7 = vadd.s32 4294967169, %v566_v6  ;;  %v570_v41 = vor.u32 8388608, %v569_v34 }
 0x128   : > { %v5796_v50 = vadd.s32 4294967169, %v720_v44 }
 0x129   : > { %v572_v8 = vadd.s32 1, %v5793_v7  ;;  %v6352_v49 = vshll.u32 %v570_v41, 8 }
 0x12a   : > { %v726_v54 = vadd.s32 1, %v5796_v50 }
 0x12b   : > { %vm573_vm1 = vcmp.gt.s32.totalorder %v572_v8, 0  ;;  %v611_v53 = vand.u32 65535, %v6352_v49  ;;  %v612_v59 = vshrl.u32 %v6352_v49, 16 }
 0x12c   : > { %v574_v9 = vsel %vm573_vm1, %v572_v8, 0  ;;  %vm727_vm6 = vcmp.gt.s32.totalorder %v726_v54, 0 }
 0x12d   : > { %v576_v10 = vand.u32 31, %v574_v9  ;;  %v6307_v22 = vshrl.u32 %v574_v9, 5  ;;  %v728_v62 = vsel %vm727_vm6, %v726_v54, 0  ;;  %vm564_vm6 = vcmp.lt.s32.totalorder %v6293_v3, 0 }
 0x12e   : > { %v730_v6 = vand.u32 31, %v728_v62  ;;  %v6375_v34 = vshrl.u32 %v728_v62, 5 }
 0x12f   : > { %v6296_v11 = vsub.s32 32, %v576_v10  ;;  %v588_v14 = vshll.u32 %v12784_v13, %v576_v10  ;;  %v591_v17 = vshll.u32 %v12765_v15, %v576_v10  ;;  %v579_v24 = vshll.u32 %v12761_v23, %v576_v10 }
 0x130   : > { %v582_v26 = vshll.u32 %v12792_v25, %v576_v10  ;;  %v585_v30 = vshll.u32 %v12763_v28, %v576_v10  ;;  %vm597_vm2 = vcmp.lt.s32.totalorder %v6307_v22, 4  ;;  %vm594_vm3 = vcmp.lt.s32.totalorder %v6307_v22, 1 }
 0x131   : > { %v589_v16 = vshrl.u32 %v12765_v15, %v6296_v11  ;;  %v592_v19 = vshrl.u32 %v12773_v18, %v6296_v11  ;;  %v580_v27 = vshrl.u32 %v12792_v25, %v6296_v11  ;;  %v583_v29 = vshrl.u32 %v12763_v28, %v6296_v11 }
 0x132   : > { %v586_v31 = vshrl.u32 %v12784_v13, %v6296_v11  ;;  %vm596_vm4 = vcmp.lt.s32.totalorder %v6307_v22, 3  ;;  %vm595_vm5 = vcmp.lt.s32.totalorder %v6307_v22, 2  ;;  %v739_v50 = vshll.u32 %v12763_v28, %v730_v6 }
 0x133   : > { %v590_v32 = vor.u32 %v589_v16, %v588_v14  ;;  %v593_v33 = vor.u32 %v592_v19, %v591_v17  ;;  %v6321_v36 = vor.u32 %v580_v27, %v579_v24  ;;  %v6323_v37 = vor.u32 %v583_v29, %v582_v26 }
 0x134   : > { %v6325_v38 = vor.u32 %v586_v31, %v585_v30  ;;  %v6364_v16 = vsub.s32 32, %v730_v6  ;;  %v12757_v30 = vand.u32 2147483647, %v6304_v20  ;;  %vm751_vm11 = vcmp.lt.s32.totalorder %v6375_v34, 4 }
 0x135   : > { %v603_v39 = vsel %vm597_vm2, %v590_v32, 920167782  ;;  %v607_v40 = vsel %vm597_vm2, %v593_v33, 1326507024  ;;  %v602_v42 = vsel %vm594_vm3, %v6321_v36, %v6323_v37  ;;  %vm748_vm12 = vcmp.lt.s32.totalorder %v6375_v34, 1 }
 0x136   : > { %v604_v43 = vsel %vm596_vm4, %v6325_v38, %v603_v39  ;;  %v606_v45 = vsel %vm594_vm3, %v6323_v37, %v6325_v38  ;;  %v608_v46 = vsel %vm596_vm4, %v590_v32, %v607_v40  ;;  %v743_v29 = vshrl.u32 %v12765_v15, %v6364_v16  ;;  %v6373_v32 = vpop.permute.xlu1 %310 }
 0x137   : > { %v605_v47 = vsel %vm595_vm5, %v602_v42, %v604_v43  ;;  %v609_v48 = vsel %vm595_vm5, %v606_v45, %v608_v46  ;;  %v746_v31 = vshrl.u32 %v12773_v18, %v6364_v16  ;;  %v734_v35 = vshrl.u32 %v12792_v25, %v6364_v16 }
 0x138   : > { %v636_v51 = vshrl.u32 %v605_v47, 16  ;;  %v614_v52 = vshrl.u32 %v609_v48, 16  ;;  %v635_v57 = vand.u32 65535, %v605_v47  ;;  %v613_v58 = vand.u32 65535, %v609_v48 }
 0x139   : > { %v742_v39 = vshll.u32 %v12784_v13, %v730_v6  ;;  %v737_v41 = vshrl.u32 %v12763_v28, %v6364_v16  ;;  %v740_v42 = vshrl.u32 %v12784_v13, %v6364_v16  ;;  %v745_v43 = vshll.u32 %v12765_v15, %v730_v6 }
 0x13a   : > { %v638_v55 = vmul.u32 %v636_v51, %v611_v53  ;;  %v616_v56 = vmul.u32 %v614_v52, %v611_v53  ;;  %v637_v63 = vmul.u32 %v635_v57, %v611_v53  ;;  %v6356_v0 = vmul.u32 %v635_v57, %v612_v59 }
 0x13b   : > { %v615_v1 = vmul.u32 %v613_v58, %v611_v53  ;;  %v617_v2 = vmul.u32 %v613_v58, %v612_v59  ;;  %v640_v14 = vmul.u32 %v636_v51, %v612_v59  ;;  %v618_v17 = vmul.u32 %v614_v52, %v612_v59 }
 0x13c   : > { %v641_v60 = vshll.u32 %v638_v55, 16  ;;  %v619_v61 = vshll.u32 %v616_v56, 16  ;;  %v643_v8 = vshll.u32 %v6356_v0, 16  ;;  %v642_v44 = vshrl.u32 %v638_v55, 16 }
 0x13d   : > { %v621_v9 = vshll.u32 %v617_v2, 16  ;;  %v733_v45 = vshll.u32 %v12761_v23, %v730_v6  ;;  %v744_v46 = vor.u32 %v743_v29, %v742_v39  ;;  %v620_v47 = vshrl.u32 %v616_v56, 16  ;;  %v473_v39 = vpop.f32.mrf.mxu2 }
 0x13e   : > { %vm645_vm7 = vc.u32 %v637_v63, %v641_v60  ;;  %v6358_v4 = vadd.s32 %v641_v60, %v637_v63  ;;  %vm623_vm8 = vc.u32 %v615_v1, %v619_v61  ;;  %v625_v7 = vadd.s32 %v619_v61, %v615_v1 }
 0x13f   : > { %v646_v10 = vsel %vm645_vm7, 1, %v12758_v5  ;;  %v624_v12 = vsel %vm623_vm8, 1, %v12758_v5  ;;  %v736_v48 = vshll.u32 %v12792_v25, %v730_v6  ;;  %v747_v51 = vor.u32 %v746_v31, %v745_v43  ;;  %v452_v6 = vpop.f32.mrf.mxu0 }
 0x140   : > { %vm649_vm9 = vc.u32 %v6358_v4, %v643_v8  ;;  %vm627_vm10 = vc.u32 %v625_v7, %v621_v9  ;;  %v648_v19 = vadd.s32 %v646_v10, %v640_v14  ;;  %v626_v24 = vadd.s32 %v624_v12, %v618_v17  ;;  %v6418_v9 = vpop.permute.xlu1 %330 }
 0x141   : > { %v650_v26 = vsel %vm649_vm9, 1, %v12758_v5  ;;  %v628_v27 = vsel %vm627_vm10, 1, %v12758_v5  ;;  %v723_v53 = vand.u32 8388607, %v12757_v30  ;;  %v6390_v54 = vor.u32 %v734_v35, %v733_v45  ;;  %13024 = vst [vmem:[#allocation7_spill] sm:$0xff] %v6418_v9 }
 0x142   : > { %v652_v33 = vadd.s32 %v650_v26, %v648_v19  ;;  %v630_v40 = vadd.s32 %v628_v27, %v626_v24  ;;  %v6392_v58 = vor.u32 %v737_v41, %v736_v48  ;;  %v6394_v59 = vor.u32 %v740_v42, %v739_v50 }
 0x143   : > { %v578_v55 = vshrl.u32 %v12761_v23, %v6296_v11  ;;  %v644_v56 = vshrl.u32 %v6356_v0, 16  ;;  %v757_v60 = vsel %vm751_vm11, %v744_v46, 920167782  ;;  %v622_v61 = vshrl.u32 %v617_v2, 16 }
 0x144   : > { %v653_v52 = vadd.s32 %v652_v33, %v642_v44  ;;  %v631_v57 = vadd.s32 %v630_v40, %v620_v47  ;;  %v761_v62 = vsel %vm751_vm11, %v747_v51, 1326507024  ;;  %v599_v63 = vsel %vm597_vm2, %v6325_v38, 2102212464 }
 0x145   : > { %vm750_vm13 = vcmp.lt.s32.totalorder %v6375_v34, 3  ;;  %v724_v0 = vor.u32 8388608, %v723_v53  ;;  %v756_v2 = vsel %vm748_vm12, %v6390_v54, %v6392_v58  ;;  %v598_v38 = vsel %vm594_vm3, %v578_v55, %v6321_v36 }
 0x146   : > { %v654_v1 = vadd.s32 %v653_v52, %v644_v56  ;;  %v6409_v11 = vadd.s32 %v631_v57, %v622_v61  ;;  %v758_v7 = vsel %vm750_vm13, %v6394_v59, %v757_v60  ;;  %v760_v10 = vsel %vm748_vm12, %v6392_v58, %v6394_v59 }
 0x147   : > { %v762_v12 = vsel %vm750_vm13, %v744_v46, %v761_v62  ;;  %v600_v14 = vsel %vm596_vm4, %v6323_v37, %v599_v63  ;;  %v6433_v17 = vadd.s32 %v6358_v4, %v643_v8  ;;  %vm749_vm14 = vcmp.lt.s32.totalorder %v6375_v34, 2 }
 0x148   : > { %v6437_v19 = vadd.f32 %v452_v6, %v6373_v32  ;;  %v658_v36 = vadd.s32 1, %v654_v1  ;;  %v759_v24 = vsel %vm749_vm14, %v756_v2, %v758_v7  ;;  %v763_v26 = vsel %vm749_vm14, %v760_v10, %v762_v12  ;;  %v6454_v43 = vpop.permute.xlu1 %345 }
 0x149   : > { %vm657_vm15 = vc.u32 %v6409_v11, %v6433_v17  ;;  %v6445_v27 = vshll.u32 %v724_v0, 8  ;;  %v601_v37 = vsel %vm595_vm5, %v598_v38, %v600_v14  ;;  %v790_v4 = vshrl.u32 %v759_v24, 16 }
 0x14a   : > { %13025 = vst [vmem:[#allocation8_spill] sm:$0xff] %v6437_v19  ;;  %v873_v8 = vand.u32 2139095040, %v6437_v19  ;;  %v659_v29 = vsel %vm657_vm15, %v658_v36, %v654_v1  ;;  %v768_v31 = vshrl.u32 %v763_v26, 16  ;;  %v655_v33 = vmul.u32 %v6352_v49, %v601_v37  ;;  %v517_v1 = vpop.f32.mrf.mxu1 }
 0x14b   : > { %v765_v35 = vand.u32 65535, %v6445_v27  ;;  %v789_v22 = vand.u32 65535, %v759_v24  ;;  %v6459_v45 = vadd.f32 %v473_v39, %v6454_v43  ;;  %v767_v46 = vand.u32 65535, %v763_v26  ;;  %v6481_v24 = vpop.permute.xlu2 %315 }
 0x14c   : > { %v660_v40 = vadd.s32 %v659_v29, %v655_v33  ;;  %v874_v42 = vshrl.u32 %v873_v8, 23  ;;  %v766_v50 = vshrl.u32 %v6445_v27, 16  ;;  %v6476_v12 = vadd.f32 %v517_v1, %v6373_v32  ;;  %13028 = vst [vmem:[#allocation11_spill] sm:$0xff] %v6481_v24 }
 0x14d   : > { %v6452_v41 = vmul.u32 %v790_v4, %v765_v35  ;;  %v6456_v44 = vmul.u32 %v768_v31, %v765_v35  ;;  %13026 = vst [vmem:[#allocation9_spill] sm:$0xff] %v6459_v45  ;;  %v791_v52 = vmul.u32 %v789_v22, %v765_v35  ;;  %v3029_v53 = vand.u32 2139095040, %v6459_v45 }
 0x14e   : > { %v661_v47 = vadd.s32 536870912, %v660_v40  ;;  %v5799_v49 = vadd.s32 4294967169, %v874_v42  ;;  %v769_v57 = vmul.u32 %v767_v46, %v765_v35  ;;  %v6465_v55 = vmul.u32 %v767_v46, %v766_v50  ;;  %13027 = vst [vmem:[#allocation10_spill] sm:$0xff] %v6476_v12 }
 0x14f   : > { %v795_v48 = vshll.u32 %v6452_v41, 16  ;;  %v773_v51 = vshll.u32 %v6456_v44, 16  ;;  %v6467_v56 = vmul.u32 %v789_v22, %v766_v50  ;;  %v3030_v6 = vshrl.u32 %v3029_v53, 23 }
 0x150   : > { %v662_v60 = vshrl.u32 %v661_v47, 30  ;;  %v880_v61 = vadd.s32 1, %v5799_v49  ;;  %v775_v0 = vshll.u32 %v6465_v55, 16  ;;  %v772_v14 = vmul.u32 %v768_v31, %v766_v50 }
 0x151   : > { %vm799_vm0 = vc.u32 %v791_v52, %v795_v48  ;;  %vm777_vm1 = vc.u32 %v769_v57, %v773_v51  ;;  %v779_v62 = vadd.s32 %v773_v51, %v769_v57  ;;  %v6469_v63 = vadd.s32 %v795_v48, %v791_v52 }
 0x152   : > { %v797_v2 = vshll.u32 %v6467_v56, 16  ;;  %v800_v7 = vsel %vm799_vm0, 1, %v12758_v5  ;;  %v663_v38 = vshll.u32 %v662_v60, 30  ;;  %v778_v10 = vsel %vm777_vm1, 1, %v12758_v5 }
 0x153   : > { %vm881_vm2 = vcmp.gt.s32.totalorder %v880_v61, 0  ;;  %vm781_vm3 = vc.u32 %v779_v62, %v775_v0  ;;  %v794_v36 = vmul.u32 %v790_v4, %v766_v50  ;;  %v5841_v26 = vadd.s32 4294967169, %v3030_v6 }
 0x154   : > { %vm803_vm4 = vc.u32 %v6469_v63, %v797_v2  ;;  %v780_v37 = vadd.s32 %v778_v10, %v772_v14  ;;  %v882_v29 = vsel %vm881_vm2, %v880_v61, 0  ;;  %v6483_v33 = vsub.s32 %v660_v40, %v663_v38 }
 0x155   : > { %v802_v8 = vadd.s32 %v800_v7, %v794_v36  ;;  %v782_v35 = vsel %vm781_vm3, 1, %v12758_v5  ;;  %v804_v32 = vsel %vm803_vm4, 1, %v12758_v5  ;;  %v1027_v31 = vand.u32 2139095040, %v6476_v12 }
 0x156   : > { %v753_v4 = vsel %vm751_vm11, %v6394_v59, 2102212464  ;;  %v732_v39 = vshrl.u32 %v12761_v23, %v6364_v16  ;;  %v3036_v42 = vadd.s32 1, %v5841_v26  ;;  %v884_v22 = vand.u32 31, %v882_v29 }
 0x157   : > { %v784_v46 = vadd.s32 %v782_v35, %v780_v37  ;;  %v806_v47 = vadd.s32 %v804_v32, %v802_v8  ;;  %v12755_v40 = vand.u32 2147483647, %v6459_v45  ;;  %v666_v48 = vsub.s32 0, %v6483_v33 }
 0x158   : > { %v752_v49 = vsel %vm748_vm12, %v732_v39, %v6390_v54  ;;  %v754_v50 = vsel %vm750_vm13, %v6392_v58, %v753_v4  ;;  %v1028_v59 = vshrl.u32 %v1027_v31, 23  ;;  %vm665_vm5 = vcmp.lt.s32.totalorder %v6483_v33, 0 }
 0x159   : > { %v686_v16 = vsub.s32 4, %v662_v60  ;;  %v774_v51 = vshrl.u32 %v6456_v44, 16  ;;  %v796_v52 = vshrl.u32 %v6452_v41, 16  ;;  %vm3037_vm7 = vcmp.gt.s32.totalorder %v3036_v42, 0  ;;  %v6517_v44 = vpop.permute.xlu2 %320 }
 0x15a   : > { %v6505_v53 = vsub.s32 32, %v884_v22  ;;  %vm6509_vm8 = vcmp.le.f32.partialorder %v562_v21, 0.7853982  ;;  %v13029_v54 = vmov 0  ;;  %v6515_v58 = vsel %vm749_vm14, %v752_v49, %v754_v50  ;;  %13032 = vst [vmem:[#allocation13_spill] sm:$0xff] %v6517_v44 }
 0x15b   : > { %v13030_v54 = vsel %vm6509_vm8, 4294967295, %v13029_v54  ;;  %v785_v57 = vadd.s32 %v784_v46, %v774_v51  ;;  %v807_v61 = vadd.s32 %v806_v47, %v796_v52  ;;  %v6521_v41 = vadd.s32 %v6433_v17, %v6409_v11 }
 0x15c   : > { %13031 = vst [vmem:[#allocation12_spill] sm:$0xff] %v13030_v54  ;;  %v667_v62 = vsel %vm665_vm5, %v666_v48, %v6483_v33  ;;  %v776_v1 = vshrl.u32 %v6465_v55, 16  ;;  %v5802_v21 = vadd.s32 4294967169, %v1028_v59  ;;  %v687_v6 = vsel %vm564_vm6, %v686_v16, %v662_v60  ;;  %v538_v16 = vpop.f32.mrf.mxu3 }
 0x15d   : > { %v798_v34 = vshrl.u32 %v6467_v56, 16  ;;  %v3033_v0 = vand.u32 8388607, %v12755_v40  ;;  %v3038_v7 = vsel %vm3037_vm7, %v3036_v42, 0  ;;  %v896_v38 = vshll.u32 %v12784_v13, %v884_v22 }
 0x15e   : > { %v897_v11 = vshrl.u32 %v12765_v15, %v6505_v53  ;;  %v899_v17 = vshll.u32 %v12765_v15, %v884_v22  ;;  %v900_v55 = vshrl.u32 %v12773_v18, %v6505_v53  ;;  %v668_v10 = vclz %v667_v62 }
 0x15f   : > { %v786_v14 = vadd.s32 %v785_v57, %v776_v1  ;;  %v808_v36 = vadd.s32 %v807_v61, %v798_v34  ;;  %v12756_v60 = vand.u32 2147483647, %v6437_v19  ;;  %v6537_v26 = vshrl.u32 %v882_v29, 5 }
 0x160   : > { %v887_v37 = vshll.u32 %v12761_v23, %v884_v22  ;;  %v888_v8 = vshrl.u32 %v12792_v25, %v6505_v53  ;;  %v1034_v35 = vadd.s32 1, %v5802_v21  ;;  %v890_v32 = vshll.u32 %v12792_v25, %v884_v22 }
 0x161   : > { %v891_v31 = vshrl.u32 %v12763_v28, %v6505_v53  ;;  %v893_v4 = vshll.u32 %v12763_v28, %v884_v22  ;;  %v894_v39 = vshrl.u32 %v12784_v13, %v6505_v53  ;;  %v805_v29 = vadd.s32 %v6469_v63, %v797_v2 }
 0x162   : > { %v3034_v42 = vor.u32 8388608, %v3033_v0  ;;  %v898_v46 = vor.u32 %v897_v11, %v896_v38  ;;  %v901_v47 = vor.u32 %v900_v55, %v899_v17  ;;  %v5794_v48 = vadd.s32 4294967294, %v668_v10 }
 0x163   : > { %v809_v49 = vmul.u32 %v6445_v27, %v6515_v58  ;;  %v812_v50 = vadd.s32 1, %v808_v36  ;;  %v3040_v59 = vand.u32 31, %v3038_v7  ;;  %v689_v22 = vsel %vm6509_vm8, 0, %v687_v6  ;;  %v6564_v27 = vpop.permute.xlu2 %335 }
 0x164   : > { %vm811_vm9 = vc.u32 %v786_v14, %v805_v29  ;;  %v877_v51 = vand.u32 8388607, %v12756_v60  ;;  %v6557_v56 = vor.u32 %v888_v8, %v887_v37  ;;  %v6559_v63 = vor.u32 %v891_v31, %v890_v32  ;;  %13033 = vst [vmem:[#allocation14_spill] sm:$0xff] %v6564_v27 }
 0x165   : > { %v6561_v2 = vor.u32 %v894_v39, %v893_v4  ;;  %vm905_vm10 = vcmp.lt.s32.totalorder %v6537_v26, 4  ;;  %vm1035_vm11 = vcmp.gt.s32.totalorder %v1034_v35, 0  ;;  %v6566_v52 = vshll.u32 %v3034_v42, 8 }
 0x166   : > { %v6569_v58 = vadd.f32 %v538_v16, %v6454_v43  ;;  %v911_v57 = vsel %vm905_vm10, %v898_v46, 920167782  ;;  %v915_v61 = vsel %vm905_vm10, %v901_v47, 1326507024  ;;  %vm5795_vm12 = vcmp.lt.s32.totalorder %v5794_v48, 0 }
 0x167   : > { %13034 = vst [vmem:[#allocation15_spill] sm:$0xff] %v6566_v52  ;;  %v6575_v62 = vand.u32 3, %v689_v22  ;;  %v813_v1 = vsel %vm811_vm9, %v812_v50, %v808_v36  ;;  %v3041_v21 = vsub.s32 32, %v3040_v59  ;;  %v878_v6 = vor.u32 8388608, %v877_v51  ;;  %v476_v50 = vpop.f32.mrf.mxu2 }
 0x168   : > { %13035 = vst [vmem:[#allocation16_spill] sm:$0xff] %v6569_v58  ;;  %vm902_vm13 = vcmp.lt.s32.totalorder %v6537_v26, 1  ;;  %vm904_vm14 = vcmp.lt.s32.totalorder %v6537_v26, 3  ;;  %v1036_v34 = vsel %vm1035_vm11, %v1034_v35, 0  ;;  %v6592_v17 = vshrl.u32 %v3038_v7, 5 }
 0x169   : > { %13036 = vst [vmem:[#allocation17_spill] sm:$0xff] %v6575_v62  ;;  %v910_v43 = vsel %vm902_vm13, %v6557_v56, %v6559_v63  ;;  %v912_v0 = vsel %vm904_vm14, %v6561_v2, %v911_v57  ;;  %v914_v38 = vsel %vm902_vm13, %v6559_v63, %v6561_v2  ;;  %v916_v11 = vsel %vm904_vm14, %v898_v46, %v915_v61 }
 0x16a   : > { %v6595_v55 = vand.u32 65535, %v6566_v52  ;;  %v6598_v10 = vshrl.u32 %v6566_v52, 16  ;;  %v6602_v37 = vsel %vm5795_vm12, 0, %v5794_v48  ;;  %v6604_v8 = vadd.s32 %v805_v29, %v786_v14 }
 0x16b   : > { %vm903_vm15 = vcmp.lt.s32.totalorder %v6537_v26, 2  ;;  %v1038_v35 = vand.u32 31, %v1036_v34  ;;  %v6607_v32 = vadd.s32 %v813_v1, %v809_v49  ;;  %v3043_v7 = vshll.u32 %v12761_v23, %v3040_v59  ;;  %v6638_v61 = vpop.permute.xlu2 %350 }
 0x16c   : > { %13037 = vst [vmem:[#allocation18_spill] sm:$0xff] %v6595_v55  ;;  %v6612_v31 = vsel %vm903_vm15, %v910_v43, %v912_v0  ;;  %v6616_v4 = vsel %vm903_vm15, %v914_v38, %v916_v11  ;;  %v3044_v39 = vshrl.u32 %v12792_v25, %v3041_v21  ;;  %v3046_v14 = vshll.u32 %v12792_v25, %v3040_v59 }
 0x16d   : > { %13038 = vst [vmem:[#allocation19_spill] sm:$0xff] %v6598_v10  ;;  %v6621_v29 = vshll.u32 %v12763_v28, %v3040_v59  ;;  %v6623_v42 = vshll.u32 %v878_v6, 8  ;;  %v672_v46 = vsub.s32 32, %v6602_v37  ;;  %v676_v47 = vsub.s32 4294967266, %v6602_v37 }
 0x16e   : > { %13039 = vst [vmem:[#allocation20_spill] sm:$0xff] %v6604_v8  ;;  %v3047_v48 = vshrl.u32 %v12763_v28, %v3041_v21  ;;  %v6629_v49 = vshll.u32 %v12784_v13, %v3040_v59  ;;  %v6632_v16 = vshll.u32 %v12765_v15, %v3040_v59  ;;  %v922_v22 = vshrl.u32 %v6616_v4, 16 }
 0x16f   : > { %v12760_v51 = vshrl.u32 %v6612_v31, 16  ;;  %v6636_v57 = vsub.s32 32, %v1038_v35  ;;  %v815_v6 = vadd.s32 536870912, %v6607_v32  ;;  %v6644_v43 = vshrl.u32 %v12761_v23, %v3041_v21 }
 0x170   : > { %v12767_v0 = vand.u32 2147483647, %v6476_v12  ;;  %v6647_v59 = vor.u32 %v3044_v39, %v3043_v7  ;;  %v6650_v38 = vshrl.u32 %v12784_v13, %v3041_v21  ;;  %v919_v11 = vand.u32 65535, %v6623_v42 }
 0x171   : > { %v6654_v40 = vadd.f32 %v476_v50, %v6638_v61  ;;  %v6657_v60 = vshrl.u32 %v6521_v41, %v672_v46  ;;  %v6659_v36 = vadd.s32 127, %v676_v47  ;;  %v6661_v30 = vor.u32 %v3047_v48, %v3046_v14 }
 0x172   : > { %v3053_v1 = vshrl.u32 %v12765_v15, %v3041_v21  ;;  %v6665_v7 = vshrl.u32 %v12773_v18, %v3041_v21  ;;  %v6667_v39 = vmul.u32 %v922_v22, %v919_v11  ;;  %v6671_v5 = vmul.u32 %v12760_v51, %v919_v11 }
 0x173   : > { %13040 = vst [vmem:[#allocation21_spill] sm:$0xff] %v6654_v40  ;;  %v1051_v50 = vshrl.u32 %v12765_v15, %v6636_v57  ;;  %v6675_v41 = vshrl.u32 %v815_v6, 30  ;;  %v920_v46 = vshrl.u32 %v6623_v42, 16  ;;  %v921_v14 = vand.u32 65535, %v6616_v4 }
 0x174   : > { %v1031_v47 = vand.u32 8388607, %v12767_v0  ;;  %v943_v21 = vand.u32 65535, %v6612_v31  ;;  %v1050_v48 = vshll.u32 %v12784_v13, %v1038_v35  ;;  %v1054_v51 = vshrl.u32 %v12773_v18, %v6636_v57 }
 0x175   : > { %v3337_v23 = vand.u32 2139095040, %v6654_v40  ;;  %v6686_v28 = vshrl.u32 %v1036_v34, 5  ;;  %v1042_v6 = vshrl.u32 %v12792_v25, %v6636_v57  ;;  %v13041_v15 = vmov 2131351028  }
 0x176   : > { %v1045_v4 = vshrl.u32 %v13041_v15, %v6636_v57  ;;  %v1048_v0 = vshrl.u32 %v12784_v13, %v6636_v57  ;;  %v927_v27 = vshll.u32 %v6667_v39, 16  ;;  %v949_v9 = vshll.u32 %v6671_v5, 16 }
 0x177   : > { %v1052_v44 = vor.u32 %v1051_v50, %v1050_v48  ;;  %v13042_v45 = vmov 920167782   ;;  %v6697_v24 = vmul.u32 %v921_v14, %v920_v46  ;;  %v13043_v34 = vmov 683565275  }
 0x178   : > { %v1053_v18 = vshll.u32 %v13042_v45, %v1038_v35  ;;  %v1041_v12 = vshll.u32 %v13043_v34, %v1038_v35  ;;  %v1044_v19 = vshll.u32 %v12792_v25, %v1038_v35  ;;  %v1047_v62 = vshll.u32 %v13041_v15, %v1038_v35 }
 0x179   : > { %v923_v10 = vmul.u32 %v921_v14, %v919_v11  ;;  %v945_v8 = vmul.u32 %v943_v21, %v919_v11  ;;  %v6702_v52 = vmul.u32 %v943_v21, %v920_v46  ;;  %vm1059_vm0 = vcmp.lt.s32.totalorder %v6686_v28, 4 }
 0x17a   : > { %v1055_v13 = vor.u32 %v1054_v51, %v1053_v18  ;;  %v6704_v55 = vor.u32 %v1042_v6, %v1041_v12  ;;  %v6706_v54 = vor.u32 %v1045_v4, %v1044_v19  ;;  %v6708_v50 = vor.u32 %v1048_v0, %v1047_v62 }
 0x17b   : > { %v933_v48 = vadd.s32 %v927_v27, %v923_v10  ;;  %vm953_vm1 = vc.u32 %v945_v8, %v949_v9  ;;  %v6711_v3 = vadd.s32 %v949_v9, %v945_v8  ;;  %v1065_v35 = vsel %vm1059_vm0, %v1052_v44, 920167782 }
 0x17c   : > { %v929_v11 = vshll.u32 %v6697_v24, 16  ;;  %vm931_vm2 = vc.u32 %v923_v10, %v927_v27  ;;  %v1032_v14 = vor.u32 8388608, %v1031_v47  ;;  %v3338_v18 = vshrl.u32 %v3337_v23, 23 }
 0x17d   : > { %v951_v12 = vshll.u32 %v6702_v52, 16  ;;  %vm1056_vm3 = vcmp.lt.s32.totalorder %v6686_v28, 1  ;;  %vm1058_vm4 = vcmp.lt.s32.totalorder %v6686_v28, 3  ;;  %v1069_v19 = vsel %vm1059_vm0, %v1055_v13, 1326507024 }
 0x17e   : > { %v926_v62 = vmul.u32 %v922_v22, %v920_v46  ;;  %v13044_v9 = vmov 0   ;;  %v1064_v51 = vsel %vm1056_vm3, %v6704_v55, %v6706_v54  ;;  %v1066_v23 = vsel %vm1058_vm4, %v6708_v50, %v1065_v35 }
 0x17f   : > { %v954_v8 = vsel %vm953_vm1, 1, %v13044_v9  ;;  %v932_v27 = vsel %vm931_vm2, 1, %v13044_v9  ;;  %vm6730_vm5 = vc.u32 %v933_v48, %v929_v11  ;;  %v13047_v13 = vshrl.u32 %v6612_v31, 16 }
 0x180   : > { %vm957_vm7 = vc.u32 %v6711_v3, %v951_v12  ;;  %vm12791_vm9 = vcmp.lt.s32.totalorder %v6304_v20, 0  ;;  %vm12790_vm11 = vcmp.lt.s32.totalorder %v6686_v28, 2  ;;  %v1068_v0 = vsel %vm1056_vm3, %v6706_v54, %v6708_v50 }
 0x181   : > { %v948_v22 = vmul.u32 %v13047_v13, %v920_v46  ;;  %v1070_v47 = vsel %vm1058_vm4, %v1052_v44, %v1069_v19  ;;  %v5847_v21 = vadd.s32 4294967169, %v3338_v18  ;;  %v6749_v31 = vor.u32 %v6650_v38, %v6621_v29 }
 0x182   : > { %v6752_v46 = vor.u32 %v3053_v1, %v6629_v49  ;;  %v6756_v4 = vsel %vm12790_vm11, %v1064_v51, %v1066_v23  ;;  %v13048_v48 = vshll.u32 %v6483_v33, %v6602_v37  ;;  %v934_v44 = vadd.s32 %v932_v27, %v926_v62 }
 0x183   : > { %v956_v6 = vadd.s32 %v954_v8, %v948_v22  ;;  %v958_v11 = vsel %vm957_vm7, 1, %v13044_v9  ;;  %v6765_v18 = vshll.u32 %v1032_v14, 8  ;;  %v678_v29 = vshll.u32 %v6659_v36, 23 }
 0x184   : > { %v6762_v35 = vor.u32 %v6657_v60, %v13048_v48  ;;  %vm3061_vm12 = vcmp.lt.s32.totalorder %v6592_v17, 4  ;;  %v936_v49 = vsel %vm6730_vm5, 1, %v13044_v9  ;;  %v6774_v1 = vsel %vm12790_vm11, %v1068_v0, %v1070_v47 }
 0x185   : > { %v13049_v33 = vand.u32 2147483647, %v6304_v20  ;;  %v3057_v37 = vor.u32 %v6665_v7, %v6632_v16  ;;  %vm3058_vm2 = vcmp.lt.s32.totalorder %v6592_v17, 1  ;;  %v1098_v36 = vshrl.u32 %v6756_v4, 16 }
 0x186   : > { %v3344_v38 = vadd.s32 1, %v5847_v21  ;;  %v817_v14 = vshll.u32 %v6675_v41, 30  ;;  %v840_v19 = vsub.s32 4, %v6675_v41  ;;  %vm3060_vm5 = vcmp.lt.s32.totalorder %v6592_v17, 3 }
 0x187   : > { %vm6778_vm1 = vcmp.le.f32.partialorder %v13049_v33, 0.7853982  ;;  %v960_v62 = vadd.s32 %v958_v11, %v956_v6  ;;  %v3063_v8 = vsel %vm3061_vm12, %v6749_v31, 2102212464  ;;  %v938_v51 = vadd.s32 %v936_v49, %v934_v44 }
 0x188   : > { %v1073_v23 = vand.u32 65535, %v6765_v18  ;;  %v1076_v27 = vshrl.u32 %v6774_v1, 16  ;;  %v679_v10 = vor.u32 4788187, %v678_v29  ;;  %v682_v13 = vcvt.s32.f32 %v6762_v35 }
 0x189   : > { %vm3059_vm7 = vcmp.lt.s32.totalorder %v6592_v17, 2  ;;  %v950_v22 = vshrl.u32 %v6671_v5, 16  ;;  %v3062_v0 = vsel %vm3058_vm2, %v6644_v43, %v6647_v59  ;;  %v928_v47 = vshrl.u32 %v6667_v39, 16  ;;  %v13058_v17 = vld [vmem:[#allocation6_spill] sm:$0xff] }
 0x18a   : > { %v6804_v21 = vmul.u32 %v1098_v36, %v1073_v23  ;;  %vm3345_vm11 = vcmp.gt.s32.totalorder %v3344_v38, 0  ;;  %v6807_v6 = vsub.s32 %v6607_v32, %v817_v14  ;;  %v841_v48 = vsel %vm12791_vm9, %v840_v19, %v6675_v41 }
 0x18b   : > { %v3064_v5 = vsel %vm3060_vm5, %v6661_v30, %v3063_v8  ;;  %v961_v35 = vadd.s32 %v960_v62, %v950_v22  ;;  %v3066_v43 = vsel %vm3058_vm2, %v6647_v59, %v6661_v30  ;;  %v939_v39 = vadd.s32 %v938_v51, %v928_v47 }
 0x18c   : > { %v6819_v44 = vmul.u32 %v1076_v27, %v1073_v23  ;;  %v1097_v32 = vand.u32 65535, %v6756_v4  ;;  %v680_v11 = vand.u32 2147483647, %v679_v10  ;;  %v3067_v41 = vsel %vm3061_vm12, %v6752_v46, 920167782 }
 0x18d   : > { %v952_v29 = vshrl.u32 %v6702_v52, 16  ;;  %v3346_v49 = vsel %vm3345_vm11, %v3344_v38, 0  ;;  %v886_v33 = vshrl.u32 %v13043_v34, %v6505_v53  ;;  %v930_v14 = vshrl.u32 %v6697_v24, 16 }
 0x18e   : > { %v1075_v59 = vand.u32 65535, %v6774_v1  ;;  %v1103_v19 = vshll.u32 %v6804_v21, 16  ;;  %v843_v62 = vsel %vm6778_vm1, 0, %v841_v48  ;;  %v907_v8 = vsel %vm905_vm10, %v6561_v2, 2102212464 }
 0x18f   : > { %v962_v51 = vadd.s32 %v961_v35, %v952_v29  ;;  %v1074_v10 = vshrl.u32 %v6765_v18, 16  ;;  %v6837_v38 = vadd.s32 %v939_v39, %v930_v14  ;;  %v1081_v53 = vshll.u32 %v6819_v44, 16 }
 0x190   : > { %v1099_v22 = vmul.u32 %v1097_v32, %v1073_v23  ;;  %v3348_v24 = vand.u32 31, %v3346_v49  ;;  %v820_v1 = vsub.s32 0, %v6807_v6  ;;  %v6843_v47 = vsel %vm3059_vm7, %v3062_v0, %v3064_v5 }
 0x191   : > { %13052 = vst [vmem:[#allocation22_spill] sm:$0xff] %v6843_v47  ;;  %v3068_v48 = vsel %vm3060_vm5, %v6749_v31, %v3067_v41  ;;  %v6848_v2 = vmul.u32 %v1097_v32, %v1074_v10  ;;  %v906_v35 = vsel %vm902_vm13, %v886_v33, %v6557_v56  ;;  %v6856_v39 = vadd.s32 %v6711_v3, %v951_v12 }
 0x192   : > { %v1077_v29 = vmul.u32 %v1075_v59, %v1073_v23  ;;  %vm1107_vm10 = vc.u32 %v1099_v22, %v1103_v19  ;;  %vm819_vm11 = vcmp.lt.s32.totalorder %v6807_v6, 0  ;;  %v908_v0 = vsel %vm904_vm14, %v6559_v63, %v907_v8 }
 0x193   : > { %v966_v5 = vadd.s32 1, %v962_v51  ;;  %v6862_v32 = vmul.u32 %v1075_v59, %v1074_v10  ;;  %v6864_v41 = vadd.s32 %v1103_v19, %v1099_v22  ;;  %v6866_v14 = vand.u32 3, %v843_v62 }
 0x194   : > { %vm965_vm13 = vc.u32 %v6837_v38, %v6856_v39  ;;  %vm1085_vm9 = vc.u32 %v1077_v29, %v1081_v53  ;;  %v6870_v3 = vsub.s32 32, %v3348_v24  ;;  %v6872_v56 = vmul.f32 %v682_v13, %v680_v11 }
 0x195   : > { %13053 = vst [vmem:[#allocation23_spill] sm:$0xff] %v6866_v14  ;;  %v1087_v52 = vadd.s32 %v1081_v53, %v1077_v29  ;;  %v12794_v12 = vshll.u32 %v6848_v2, 16  ;;  %v1108_v63 = vsel %vm1107_vm10, 1, %v13044_v9  ;;  %v6878_v23 = vsel %vm3059_vm7, %v3066_v43, %v3068_v48 }
 0x196   : > { %13054 = vst [vmem:[#allocation24_spill] sm:$0xff] %v6878_v23  ;;  %v909_v33 = vsel %vm903_vm15, %v906_v35, %v908_v0  ;;  %v1102_v59 = vmul.u32 %v1098_v36, %v1074_v10  ;;  %v12795_v19 = vand.u32 2147483647, %v6654_v40  ;;  %v967_v62 = vsel %vm965_vm13, %v966_v5, %v962_v51 }
 0x197   : > { %v1083_v13 = vshll.u32 %v6862_v32, 16  ;;  %v1086_v11 = vsel %vm1085_vm9, 1, %v13044_v9  ;;  %vm1111_vm14 = vc.u32 %v6864_v41, %v12794_v12  ;;  %v1080_v8 = vmul.u32 %v1076_v27, %v1074_v10  ;;  %v541_v12 = vpop.f32.mrf.mxu3 }
 0x198   : > { %v1110_v43 = vadd.s32 %v1108_v63, %v1102_v59  ;;  %v13055_v53 = vmov 2102212464   ;;  %v3361_v26 = vshrl.u32 %v13042_v45, %v6870_v3  ;;  %v6893_v4 = vshrl.u32 %v3346_v49, 5 }
 0x199   : > { %v3360_v22 = vshll.u32 %v13055_v53, %v3348_v24  ;;  %vm1089_vm15 = vc.u32 %v1087_v52, %v1083_v13  ;;  %v3363_v36 = vshll.u32 %v13042_v45, %v3348_v24  ;;  %v13056_v51 = vmov 1326507024  }
 0x19a   : > { %v3364_v48 = vshrl.u32 %v13056_v51, %v6870_v3  ;;  %v1088_v35 = vadd.s32 %v1086_v11, %v1080_v8  ;;  %v1112_v29 = vsel %vm1111_vm14, 1, %v13044_v9  ;;  %v3351_v0 = vshll.u32 %v13043_v34, %v3348_v24 }
 0x19b   : > { %v3354_v27 = vshll.u32 %v12792_v25, %v3348_v24  ;;  %v3352_v10 = vshrl.u32 %v12792_v25, %v6870_v3  ;;  %v3355_v5 = vshrl.u32 %v13041_v15, %v6870_v3  ;;  %v3357_v49 = vshll.u32 %v13041_v15, %v3348_v24 }
 0x19c   : > { %v3358_v52 = vshrl.u32 %v13055_v53, %v6870_v3  ;;  %v3070_v63 = vsel %vm3058_vm2, %v6661_v30, %v6749_v31  ;;  %v963_v59 = vmul.u32 %v6623_v42, %v909_v33  ;;  %v1090_v13 = vsel %vm1089_vm15, 1, %v13044_v9 }
 0x19d   : > { %v3362_v11 = vor.u32 %v3361_v26, %v3360_v22  ;;  %v3071_v8 = vsel %vm3061_vm12, %v3057_v37, 1326507024  ;;  %v3341_v24 = vand.u32 8388607, %v12795_v19  ;;  %v3365_v25 = vor.u32 %v3364_v48, %v3363_v36 }
 0x19e   : > { %vm3369_vm9 = vcmp.lt.s32.totalorder %v6893_v4, 4  ;;  %v821_v30 = vsel %vm819_vm11, %v820_v1, %v6807_v6  ;;  %v6925_v42 = vadd.s32 %v967_v62, %v963_v59  ;;  %v1104_v31 = vshrl.u32 %v6804_v21, 16 }
 0x19f   : > { %v1114_v33 = vadd.s32 %v1112_v29, %v1110_v43  ;;  %v1092_v16 = vadd.s32 %v1090_v13, %v1088_v35  ;;  %v6928_v7 = vor.u32 %v3352_v10, %v3351_v0  ;;  %v6930_v37 = vor.u32 %v3355_v5, %v3354_v27 }
 0x1a0   : > { %v6932_v22 = vor.u32 %v3358_v52, %v3357_v49  ;;  %vm3366_vm12 = vcmp.lt.s32.totalorder %v6893_v4, 1  ;;  %vm3368_vm2 = vcmp.lt.s32.totalorder %v6893_v4, 3  ;;  %v3375_v26 = vsel %vm3369_vm9, %v3362_v11, 920167782 }
 0x1a1   : > { %v6939_v1 = vadd.f32 %v541_v12, %v6638_v61  ;;  %v684_v21 = vxor.u32 2147483648, %v6872_v56  ;;  %v1082_v62 = vshrl.u32 %v6819_v44, 16  ;;  %v3342_v43 = vor.u32 8388608, %v3341_v24 }
 0x1a2   : > { %v3379_v36 = vsel %vm3369_vm9, %v3365_v25, 1326507024  ;;  %v822_v48 = vclz %v821_v30  ;;  %v3072_v35 = vsel %vm3060_vm5, %v6752_v46, %v3071_v8  ;;  %v969_v29 = vadd.s32 536870912, %v6925_v42 }
 0x1a3   : > { %13057 = vst [vmem:[#allocation25_spill] sm:$0xff] %v6939_v1  ;;  %v1115_v0 = vadd.s32 %v1114_v33, %v1104_v31  ;;  %v1093_v27 = vadd.s32 %v1092_v16, %v1082_v62  ;;  %vm3367_vm10 = vcmp.lt.s32.totalorder %v6893_v4, 2  ;;  %v3374_v61 = vsel %vm3366_vm12, %v6928_v7, %v6930_v37 }
 0x1a4   : > { %v3376_v25 = vsel %vm3368_vm2, %v6932_v22, %v3375_v26  ;;  %v1106_v44 = vshrl.u32 %v6848_v2, 16  ;;  %v3378_v46 = vsel %vm3366_vm12, %v6930_v37, %v6932_v22  ;;  %v3380_v12 = vsel %vm3368_vm2, %v3362_v11, %v3379_v36 }
 0x1a5   : > { %v3491_v10 = vand.u32 2139095040, %v6939_v1  ;;  %v6967_v5 = vsel %vm3059_vm7, %v3070_v63, %v3072_v35  ;;  %v3183_v49 = vand.u32 2139095040, %v6569_v58  ;;  %v1084_v52 = vshrl.u32 %v6862_v32, 16 }
 0x1a6   : > { %v6971_v59 = vshll.u32 %v3342_v43, 8  ;;  %v1040_v13 = vshrl.u32 %v13043_v34, %v6636_v57  ;;  %v1061_v8 = vsel %vm1059_vm0, %v6708_v50, 2102212464  ;;  %v1116_v11 = vadd.s32 %v1115_v0, %v1106_v44  ;;  %v13063_v44 = vld [vmem:[#allocation18_spill] sm:$0xff] }
 0x1a7   : > { %v6980_v24 = vsel %vm3367_vm10, %v3374_v61, %v3376_v25  ;;  %v685_v63 = vsel %vm564_vm6, %v684_v21, %v6872_v56  ;;  %v5797_v30 = vadd.s32 4294967294, %v822_v48  ;;  %v6985_v32 = vadd.s32 %v1093_v27, %v1084_v52 }
 0x1a8   : > { %v6989_v31 = vsel %vm3367_vm10, %v3378_v46, %v3380_v12  ;;  %v12797_v57 = vshrl.u32 %v6878_v23, 16  ;;  %v6992_v33 = vshrl.u32 %v969_v29, 30  ;;  %v1060_v50 = vsel %vm1056_vm3, %v1040_v13, %v6704_v55 }
 0x1a9   : > { %v3492_v16 = vshrl.u32 %v3491_v10, 23  ;;  %v1062_v56 = vsel %vm1058_vm4, %v6706_v54, %v1061_v8  ;;  %v13060_v26 = vshll.u32 %v6848_v2, 16  ;;  %v3383_v62 = vand.u32 65535, %v6971_v59 }
 0x1aa   : > { %13059 = vst [vmem:[#allocation6_spill] sm:$0xff] %v6992_v33  ;;  %v12799_v43 = vshrl.u32 %v6980_v24, 16  ;;  %v7010_v48 = vsel %vm6509_vm8, %v13058_v17, %v685_v63  ;;  %v12796_v55 = vand.u32 65535, %v6967_v5  ;;  %v1120_v35 = vadd.s32 1, %v1116_v11 }
 0x1ab   : > { %v7003_v21 = vadd.s32 %v6864_v41, %v13060_v26  ;;  %v3386_v29 = vshrl.u32 %v6989_v31, 16  ;;  %vm5798_vm6 = vcmp.lt.s32.totalorder %v5797_v30, 0  ;;  %v3184_v2 = vshrl.u32 %v3183_v49, 23 }
 0x1ac   : > { %v12798_v41 = vshrl.u32 %v6967_v5, 16  ;;  %v971_v0 = vshll.u32 %v6992_v33, 30  ;;  %vm13062_vm3 = vcmp.lt.s32.totalorder %v6686_v28, 2  ;;  %v5850_v61 = vadd.s32 4294967169, %v3492_v16 }
 0x1ad   : > { %vm1119_vm0 = vc.u32 %v6985_v32, %v7003_v21  ;;  %v1063_v27 = vsel %vm13062_vm3, %v1060_v50, %v1062_v56  ;;  %v7023_v25 = vmul.f32 %v7010_v48, %v7010_v48  ;;  %v7028_v46 = vmul.u32 %v12797_v57, %v13063_v44 }
 0x1ae   : > { %v7034_v49 = vmul.u32 %v12799_v43, %v3383_v62  ;;  %v7036_v52 = vsel %vm5798_vm6, 0, %v5797_v30  ;;  %v7041_v28 = vmul.u32 %v12796_v55, %v13063_v44  ;;  %v1121_v13 = vsel %vm1119_vm0, %v1120_v35, %v1116_v11 }
 0x1af   : > { %13064 = vst [vmem:[#allocation12_spill] sm:$0xff] %v7028_v46  ;;  %v7043_v8 = vmul.u32 %v3386_v29, %v3383_v62  ;;  %v5844_v63 = vadd.s32 4294967169, %v3184_v2  ;;  %v1117_v50 = vmul.u32 %v6765_v18, %v1063_v27  ;;  %v3384_v16 = vshrl.u32 %v6971_v59, 16 }
 0x1b0   : > { %v3407_v56 = vand.u32 65535, %v6980_v24  ;;  %v7051_v30 = vmul.u32 %v12798_v41, %v13063_v44  ;;  %v7054_v26 = vsub.s32 %v6925_v42, %v971_v0  ;;  %v3385_v36 = vand.u32 65535, %v6989_v31 }
 0x1b1   : > { %v3498_v11 = vadd.s32 1, %v5850_v61  ;;  %v691_v35 = vmul.f32 -0.001358992, %v7023_v25  ;;  %v13066_v2 = vand.u32 2147483647, %v6569_v58  ;;  %v1122_v27 = vadd.s32 %v1121_v13, %v1117_v50 }
 0x1b2   : > { %v3413_v10 = vshll.u32 %v7034_v49, 16  ;;  %v698_v19 = vmul.f32 -0.00019511016, %v7023_v25  ;;  %v826_v54 = vsub.s32 32, %v7036_v52  ;;  %v827_v55 = vshll.u32 %v6807_v6, %v7036_v52 }
 0x1b3   : > { %v3187_v18 = vand.u32 8388607, %v13066_v2  ;;  %v3391_v42 = vshll.u32 %v7043_v8, 16  ;;  %v830_v31 = vsub.s32 4294967266, %v7036_v52  ;;  %v3190_v0 = vadd.s32 1, %v5844_v63 }
 0x1b4   : > { %v3409_v61 = vmul.u32 %v3407_v56, %v3383_v62  ;;  %v7067_v57 = vmul.u32 %v3407_v56, %v3384_v16  ;;  %v974_v2 = vsub.s32 0, %v7054_v26  ;;  %v3387_v13 = vmul.u32 %v3385_v36, %v3383_v62  ;;  %v13067_v56 = vld [vmem:[#allocation20_spill] sm:$0xff] }
 0x1b5   : > { %v7070_v50 = vmul.u32 %v3385_v36, %v3384_v16  ;;  %vm3499_vm8 = vcmp.gt.s32.totalorder %v3498_v11, 0  ;;  %vm973_vm4 = vcmp.lt.s32.totalorder %v7054_v26, 0  ;;  %v1123_v41 = vadd.s32 536870912, %v1122_v27 }
 0x1b6   : > { %vm3417_vm5 = vc.u32 %v3409_v61, %v3413_v10  ;;  %v7073_v43 = vadd.s32 %v3413_v10, %v3409_v61  ;;  %v692_v6 = vadd.f32 0.041655596, %v691_v35  ;;  %vm3395_vm7 = vc.u32 %v3387_v13, %v3391_v42 }
 0x1b7   : > { %v3397_v52 = vadd.s32 %v3391_v42, %v3387_v13  ;;  %v699_v63 = vadd.f32 0.008332121, %v698_v19  ;;  %v828_v47 = vshrl.u32 %v13067_v56, %v826_v54  ;;  %v12810_v12 = vshll.u32 %v7067_v57, 16 }
 0x1b8   : > { %v3500_v62 = vsel %vm3499_vm8, %v3498_v11, 0  ;;  %vm3191_vm11 = vcmp.gt.s32.totalorder %v3190_v0, 0  ;;  %v975_v36 = vsel %vm973_vm4, %v974_v2, %v7054_v26  ;;  %v3393_v40 = vshll.u32 %v7070_v50, 16 }
 0x1b9   : > { %v3418_v33 = vsel %vm3417_vm5, 1, %v13044_v9  ;;  %v7081_v10 = vshrl.u32 %v1123_v41, 30  ;;  %v3396_v35 = vsel %vm3395_vm7, 1, %v13044_v9  ;;  %v13069_v61 = vshrl.u32 %v6980_v24, 16 }
 0x1ba   : > { %vm3421_vm13 = vc.u32 %v7073_v43, %v12810_v12  ;;  %v831_v19 = vadd.s32 127, %v830_v31  ;;  %v3390_v54 = vmul.u32 %v3386_v29, %v3384_v16  ;;  %vm3399_vm14 = vc.u32 %v3397_v52, %v3393_v40 }
 0x1bb   : > { %13068 = vst [vmem:[#allocation20_spill] sm:$0xff] %v7081_v10  ;;  %v3412_v42 = vmul.u32 %v13069_v61, %v3384_v16  ;;  %v3502_v11 = vand.u32 31, %v3500_v62  ;;  %v693_v2 = vmul.f32 %v692_v6, %v7023_v25  ;;  %v700_v13 = vmul.f32 %v699_v63, %v7023_v25  ;;  %v13070_v61 = vld [vmem:[#allocation19_spill] sm:$0xff] }
 0x1bc   : > { %v3188_v56 = vor.u32 8388608, %v3187_v18  ;;  %v3192_v58 = vsel %vm3191_vm11, %v3190_v0, 0  ;;  %v976_v14 = vclz %v975_v36  ;;  %v3398_v44 = vadd.s32 %v3396_v35, %v3390_v54 }
 0x1bd   : > { %v3420_v41 = vadd.s32 %v3418_v33, %v3412_v42  ;;  %v3422_v24 = vsel %vm3421_vm13, 1, %v13044_v9  ;;  %v13071_v46 = vshrl.u32 %v6967_v5, 16  ;;  %v13073_v40 = vshrl.u32 %v6878_v23, 16 }
 0x1be   : > { %v1125_v16 = vshll.u32 %v7081_v10, 30  ;;  %v3400_v33 = vsel %vm3399_vm14, 1, %v13044_v9  ;;  %v7105_v18 = vor.u32 %v828_v47, %v827_v55  ;;  %v832_v31 = vshll.u32 %v831_v19, 23 }
 0x1bf   : > { %v7096_v12 = vmul.u32 %v13071_v46, %v13070_v61  ;;  %v7101_v29 = vmul.u32 %v13073_v40, %v13070_v61  ;;  %v13075_v0 = vshll.u32 %v7051_v30, 16  ;;  %v7112_v52 = vsub.s32 32, %v3502_v11 }
 0x1c0   : > { %v7114_v46 = vshrl.u32 %v3192_v58, 5  ;;  %v7116_v63 = vand.u32 31, %v3192_v58  ;;  %v7118_v36 = vshll.u32 %v3188_v56, 8  ;;  %v3424_v35 = vadd.s32 %v3422_v24, %v3420_v41 }
 0x1c1   : > { %13072 = vst [vmem:[#allocation19_spill] sm:$0xff] %v7096_v12  ;;  %v7110_v6 = vadd.s32 %v13075_v0, %v7041_v28  ;;  %v694_v42 = vadd.f32 -0.4999988, %v693_v2  ;;  %v701_v54 = vadd.f32 -0.16666654, %v700_v13  ;;  %v5800_v40 = vadd.s32 4294967294, %v976_v14 }
 0x1c2   : > { %13074 = vst [vmem:[#allocation26_spill] sm:$0xff] %v7101_v29  ;;  %v3402_v47 = vadd.s32 %v3400_v33, %v3398_v44  ;;  %v7120_v55 = vsub.s32 %v1122_v27, %v1125_v16  ;;  %v3350_v19 = vshrl.u32 %v13043_v34, %v6870_v3  ;;  %v3414_v0 = vshrl.u32 %v7034_v49, 16 }
 0x1c3   : > { %13076 = vst [vmem:[#allocation27_spill] sm:$0xff] %v7110_v6  ;;  %v3371_v58 = vsel %vm3369_vm9, %v6932_v22, 2102212464  ;;  %v3392_v56 = vshrl.u32 %v7043_v8, 16  ;;  %v3514_v2 = vshll.u32 %v13055_v53, %v3502_v11  ;;  %v3515_v14 = vshrl.u32 %v13042_v45, %v7112_v52 }
 0x1c4   : > { %v3425_v44 = vadd.s32 %v3424_v35, %v3414_v0  ;;  %v7133_v27 = vshrl.u32 %v3500_v62, 5  ;;  %v3517_v3 = vshll.u32 %v13042_v45, %v3502_v11  ;;  %v3518_v49 = vshrl.u32 %v13056_v51, %v7112_v52 }
 0x1c5   : > { %v3403_v13 = vadd.s32 %v3402_v47, %v3392_v56  ;;  %v3416_v41 = vshrl.u32 %v7067_v57, 16  ;;  %v3505_v22 = vshll.u32 %v13043_v34, %v3502_v11  ;;  %v13077_v24 = vmov 2475754826  }
 0x1c6   : > { %v3508_v8 = vshll.u32 %v13077_v24, %v3502_v11  ;;  %v3506_v16 = vshrl.u32 %v13077_v24, %v7112_v52  ;;  %v3509_v33 = vshrl.u32 %v13041_v15, %v7112_v52  ;;  %v3511_v62 = vshll.u32 %v13041_v15, %v3502_v11 }
 0x1c7   : > { %v3512_v35 = vshrl.u32 %v13055_v53, %v7112_v52  ;;  %v833_v0 = vor.u32 4788187, %v832_v31  ;;  %v836_v47 = vcvt.s32.f32 %v7105_v18  ;;  %v3394_v56 = vshrl.u32 %v7070_v50, 16  ;;  %v7160_v18 = vpop.permute.xlu0 %325 }
 0x1c8   : > { %v3516_v10 = vor.u32 %v3515_v14, %v3514_v2  ;;  %vm5801_vm15 = vcmp.lt.s32.totalorder %v5800_v40, 0  ;;  %v3426_v29 = vadd.s32 %v3425_v44, %v3416_v41  ;;  %v3519_v12 = vor.u32 %v3518_v49, %v3517_v3  ;;  %13078 = vst [vmem:[#allocation28_spill] sm:$0xff] %v7160_v18 }
 0x1c9   : > { %vm3523_vm9 = vcmp.lt.s32.totalorder %v7133_v27, 4  ;;  %v1128_v6 = vsub.s32 0, %v7120_v55  ;;  %v3370_v11 = vsel %vm3366_vm12, %v3350_v19, %v6928_v7  ;;  %v3372_v31 = vsel %vm3368_vm2, %v6930_v37, %v3371_v58 }
 0x1ca   : > { %v7158_v23 = vadd.s32 %v3403_v13, %v3394_v56  ;;  %v13079_v50 = vand.u32 2147483647, %v6939_v1  ;;  %v7164_v14 = vor.u32 %v3506_v16, %v3505_v22  ;;  %v7166_v44 = vor.u32 %v3509_v33, %v3508_v8 }
 0x1cb   : > { %v7168_v3 = vor.u32 %v3512_v35, %v3511_v62  ;;  %v13080_v49 = vshll.u32 %v7067_v57, 16  ;;  %vm3520_vm12 = vcmp.lt.s32.totalorder %v7133_v27, 1  ;;  %vm3522_vm2 = vcmp.lt.s32.totalorder %v7133_v27, 3 }
 0x1cc   : > { %v3495_v2 = vand.u32 8388607, %v13079_v50  ;;  %v3529_v37 = vsel %vm3523_vm9, %v3516_v10, 920167782  ;;  %v834_v19 = vand.u32 2147483647, %v833_v0  ;;  %v3528_v8 = vsel %vm3520_vm12, %v7164_v14, %v7166_v44 }
 0x1cd   : > { %v7173_v7 = vadd.s32 %v7073_v43, %v13080_v49  ;;  %vm1127_vm6 = vcmp.lt.s32.totalorder %v7120_v55, 0  ;;  %v3430_v58 = vadd.s32 1, %v3426_v29  ;;  %v3533_v13 = vsel %vm3523_vm9, %v3519_v12, 1326507024 }
 0x1ce   : > { %v3195_v41 = vsub.s32 32, %v7116_v63  ;;  %v7184_v57 = vsel %vm5801_vm15, 0, %v5800_v40  ;;  %v3373_v43 = vsel %vm3367_vm10, %v3370_v11, %v3372_v31  ;;  %v3496_v22 = vor.u32 8388608, %v3495_v2 }
 0x1cf   : > { %vm3429_vm0 = vc.u32 %v7158_v23, %v7173_v7  ;;  %vm3521_vm3 = vcmp.lt.s32.totalorder %v7133_v27, 2  ;;  %v3530_v12 = vsel %vm3522_vm2, %v7168_v3, %v3529_v37  ;;  %v3197_v40 = vshll.u32 %v13043_v34, %v7116_v63  ;;  %v7231_v49 = vpop.permute.xlu0 %340 }
 0x1d0   : > { %v1129_v4 = vsel %vm1127_vm6, %v1128_v6, %v7120_v55  ;;  %v3532_v16 = vsel %vm3520_vm12, %v7166_v44, %v7168_v3  ;;  %v3534_v33 = vsel %vm3522_vm2, %v3516_v10, %v3533_v13  ;;  %v695_v62 = vmul.f32 %v694_v42, %v7023_v25  ;;  %13081 = vst [vmem:[#allocation29_spill] sm:$0xff] %v7231_v49 }
 0x1d1   : > { %v702_v35 = vmul.f32 %v701_v54, %v7023_v25  ;;  %v837_v0 = vmul.f32 %v836_v47, %v834_v19  ;;  %v3431_v56 = vsel %vm3429_vm0, %v3430_v58, %v3426_v29  ;;  %v3200_v11 = vshll.u32 %v13077_v24, %v7116_v63 }
 0x1d2   : > { %v984_v31 = vsub.s32 4294967266, %v7184_v57  ;;  %v3427_v6 = vmul.u32 %v6971_v59, %v3373_v43  ;;  %v7215_v50 = vsel %vm3521_vm3, %v3528_v8, %v3530_v12  ;;  %v3198_v2 = vshrl.u32 %v13077_v24, %v3195_v41 }
 0x1d3   : > { %v1130_v10 = vclz %v1129_v4  ;;  %v7220_v42 = vsel %vm3521_vm3, %v3532_v16, %v3534_v33  ;;  %v7222_v25 = vshll.u32 %v3496_v22, 8  ;;  %v3201_v29 = vshrl.u32 %v13041_v15, %v3195_v41 }
 0x1d4   : > { %v3203_v54 = vshll.u32 %v13041_v15, %v7116_v63  ;;  %v3206_v59 = vshll.u32 %v13055_v53, %v7116_v63  ;;  %v7229_v47 = vadd.s32 %v3431_v56, %v3427_v6  ;;  %v7233_v37 = vadd.f32 1.0, %v695_v62  ;;  %v13082_v62 = vld [vmem:[#allocation17_spill] sm:$0xff] }
 0x1d5   : > { %v703_v19 = vadd.f32 1.0, %v702_v35  ;;  %v838_v58 = vxor.u32 2147483648, %v837_v0  ;;  %v3196_v43 = vshrl.u32 %v13043_v34, %v3195_v41  ;;  %v3204_v22 = vshrl.u32 %v13055_v53, %v3195_v41 }
 0x1d6   : > { %v985_v8 = vadd.s32 127, %v984_v31  ;;  %v7239_v4 = vor.u32 %v3198_v2, %v3197_v40  ;;  %v3207_v16 = vshrl.u32 %v13042_v45, %v3195_v41  ;;  %v5803_v33 = vadd.s32 4294967294, %v1130_v10 }
 0x1d7   : > { %v3537_v56 = vand.u32 65535, %v7222_v25  ;;  %vm711_vm10 = vcmp.eq.s32.totalorder %v13082_v62, 2  ;;  %v7244_v35 = vor.u32 %v3201_v29, %v3200_v11  ;;  %v7248_v6 = vshll.u32 %v13042_v45, %v7116_v63 }
 0x1d8   : > { %v980_v13 = vsub.s32 32, %v7184_v57  ;;  %v3433_v31 = vadd.s32 536870912, %v7229_v47  ;;  %v704_v40 = vmul.f32 %v703_v19, %v7010_v48  ;;  %v712_v2 = vxor.u32 2147483648, %v7233_v37 }
 0x1d9   : > { %vm13083_vm8 = vcmp.lt.s32.totalorder %v6304_v20, 0  ;;  %v13084_v12 = vshrl.u32 %v7215_v50, 16  ;;  %v7260_v11 = vor.u32 %v3204_v22, %v3203_v54  ;;  %v964_v63 = vadd.s32 %v6856_v39, %v6837_v38 }
 0x1da   : > { %v839_v10 = vsel %vm13083_vm8, %v838_v58, %v837_v0  ;;  %v986_v29 = vshll.u32 %v985_v8, 23  ;;  %v13085_v18 = vshrl.u32 %v7220_v42, 16  ;;  %v7268_v48 = vor.u32 %v3207_v16, %v3206_v59 }
 0x1db   : > { %v7258_v49 = vmul.u32 %v13084_v12, %v3537_v56  ;;  %v7271_v19 = vshrl.u32 %v13056_v51, %v3195_v41  ;;  %vm5804_vm4 = vcmp.lt.s32.totalorder %v5803_v33, 0  ;;  %v3561_v0 = vand.u32 65535, %v7215_v50  ;;  %v7291_v12 = vpop.permute.xlu0 %355 }
 0x1dc   : > { %v7266_v1 = vmul.u32 %v13085_v18, %v3537_v56  ;;  %v7277_v54 = vsel %vm6778_vm1, %v6304_v20, %v839_v10  ;;  %v982_v58 = vshrl.u32 %v964_v63, %v980_v13  ;;  %v7279_v38 = vshrl.u32 %v3433_v31, 30  ;;  %13087 = vst [vmem:[#allocation30_spill] sm:$0xff] %v7291_v12 }
 0x1dd   : > { %v3539_v39 = vand.u32 65535, %v7220_v42  ;;  %vm708_vm5 = vcmp.eq.s32.totalorder %v13082_v62, 0  ;;  %v709_v18 = vxor.u32 2147483648, %v704_v40  ;;  %vm3212_vm7 = vcmp.lt.s32.totalorder %v7114_v46, 1 }
 0x1de   : > { %13086 = vst [vmem:[#allocation17_spill] sm:$0xff] %v7279_v38  ;;  %v3538_v41 = vshrl.u32 %v7222_v25, 16  ;;  %v3567_v59 = vshll.u32 %v7258_v49, 16  ;;  %v981_v22 = vshll.u32 %v7054_v26, %v7184_v57  ;;  %v987_v60 = vor.u32 4788187, %v986_v29 }
 0x1df   : > { %v7288_v8 = vsel %vm5804_vm4, 0, %v5803_v33  ;;  %v3545_v13 = vshll.u32 %v7266_v1, 16  ;;  %v7295_v16 = vmul.f32 %v7277_v54, %v7277_v54  ;;  %vm3215_vm1 = vcmp.lt.s32.totalorder %v7114_v46, 4 }
 0x1e0   : > { %v3563_v31 = vmul.u32 %v3561_v0, %v3537_v56  ;;  %v7298_v10 = vmul.u32 %v3561_v0, %v3538_v41  ;;  %vm3213_vm11 = vcmp.lt.s32.totalorder %v7114_v46, 2  ;;  %v983_v63 = vor.u32 %v982_v58, %v981_v22 }
 0x1e1   : > { %v3435_v26 = vshll.u32 %v7279_v38, 30  ;;  %v3541_v57 = vmul.u32 %v3539_v39, %v3537_v56  ;;  %v7302_v33 = vmul.u32 %v3539_v39, %v3538_v41  ;;  %v713_v29 = vsel %vm711_vm10, %v712_v2, %v704_v40 }
 0x1e2   : > { %v1138_v12 = vsub.s32 4294967266, %v7288_v8  ;;  %vm3571_vm13 = vc.u32 %v3563_v31, %v3567_v59  ;;  %v7307_v15 = vadd.s32 %v3567_v59, %v3563_v31  ;;  %vm707_vm14 = vcmp.lt.s32.totalorder %v13082_v62, 2 }
 0x1e3   : > { %vm3214_vm15 = vcmp.lt.s32.totalorder %v7114_v46, 3  ;;  %v988_v0 = vand.u32 2147483647, %v987_v60  ;;  %vm3549_vm6 = vc.u32 %v3541_v57, %v3545_v13  ;;  %v3551_v58 = vadd.s32 %v3545_v13, %v3541_v57 }
 0x1e4   : > { %v852_v22 = vmul.f32 -0.00019511016, %v7295_v16  ;;  %v3216_v56 = vsel %vm3212_vm7, %v3196_v43, %v7239_v4  ;;  %v3217_v40 = vsel %vm3215_vm1, %v7260_v11, 2102212464  ;;  %v12824_v2 = vshll.u32 %v7298_v10, 16 }
 0x1e5   : > { %v990_v39 = vcvt.s32.f32 %v983_v63  ;;  %v7320_v59 = vsub.s32 %v7229_v47, %v3435_v26  ;;  %v3547_v60 = vshll.u32 %v7302_v33, 16  ;;  %v3572_v13 = vsel %vm3571_vm13, 1, %v13044_v9 }
 0x1e6   : > { %vm705_vm0 = vweird.f32 %v13058_v17  ;;  %v1139_v31 = vadd.s32 127, %v1138_v12  ;;  %v3550_v57 = vsel %vm3549_vm6, 1, %v13044_v9  ;;  %v13088_v43 = vshrl.u32 %v7215_v50, 16 }
 0x1e7   : > { %vm3575_vm10 = vc.u32 %v7307_v15, %v12824_v2  ;;  %v710_v47 = vsel %vm708_vm5, %v7233_v37, %v709_v18  ;;  %v991_v63 = vmul.f32 %v990_v39, %v988_v0  ;;  %v13089_v26 = vshrl.u32 %v7220_v42, 16  ;;  %v7345_v42 = vpop.permute.xlu0 %370 }
 0x1e8   : > { %v3566_v38 = vmul.u32 %v13088_v43, %v3538_v41  ;;  %vm3553_vm8 = vc.u32 %v3551_v58, %v3547_v60  ;;  %v3218_v12 = vsel %vm3214_vm15, %v7244_v35, %v3217_v40  ;;  %v3221_v50 = vsel %vm3215_vm1, %v7268_v48, 920167782  ;;  %13090 = vst [vmem:[#allocation31_spill] sm:$0xff] %v7345_v42 }
 0x1e9   : > { %v3544_v24 = vmul.u32 %v13089_v26, %v3538_v41  ;;  %v1134_v43 = vsub.s32 32, %v7288_v8  ;;  %v853_v51 = vadd.f32 0.008332121, %v852_v22  ;;  %v3438_v45 = vsub.s32 0, %v7320_v59 }
 0x1ea   : > { %v3574_v2 = vadd.s32 %v3572_v13, %v3566_v38  ;;  %v3576_v18 = vsel %vm3575_vm10, 1, %v13044_v9  ;;  %v1118_v41 = vadd.s32 %v7003_v21, %v6985_v32  ;;  %v1140_v0 = vshll.u32 %v1139_v31, 23 }
 0x1eb   : > { %v3552_v37 = vadd.s32 %v3550_v57, %v3544_v24  ;;  %vm3437_vm4 = vcmp.lt.s32.totalorder %v7320_v59, 0  ;;  %v3554_v58 = vsel %vm3553_vm8, 1, %v13044_v9  ;;  %v845_v40 = vmul.f32 -0.001358992, %v7295_v16 }
 0x1ec   : > { %v3211_v38 = vor.u32 %v7271_v19, %v7248_v6  ;;  %v3220_v24 = vsel %vm3212_vm7, %v7239_v4, %v7244_v35  ;;  %v992_v22 = vxor.u32 2147483648, %v991_v63  ;;  %v714_v39 = vsel %vm707_vm14, %v710_v47, %v713_v29  ;;  %v13091_v4 = vld [vmem:[#allocation8_spill] sm:$0xff] }
 0x1ed   : > { %v7362_v32 = vsel %vm3213_vm11, %v3216_v56, %v3218_v12  ;;  %v1136_v21 = vshrl.u32 %v1118_v41, %v1134_v43  ;;  %v3578_v60 = vadd.s32 %v3576_v18, %v3574_v2  ;;  %v854_v13 = vmul.f32 %v853_v51, %v7295_v16 }
 0x1ee   : > { %v3222_v6 = vsel %vm3214_vm15, %v7260_v11, %v3221_v50  ;;  %v3439_v19 = vsel %vm3437_vm4, %v3438_v45, %v7320_v59  ;;  %v3556_v31 = vadd.s32 %v3554_v58, %v3552_v37  ;;  %vm872_vm5 = vcmp.lt.s32.totalorder %v13091_v4, 0 }
 0x1ef   : > { %v1135_v62 = vshll.u32 %v7120_v55, %v7288_v8  ;;  %v1141_v29 = vor.u32 4788187, %v1140_v0  ;;  %v3568_v56 = vshrl.u32 %v7258_v49, 16  ;;  %v715_v2 = vsel %vm705_vm0, nan, %v714_v39  ;;  %v7407_v58 = vpop.permute.xlu0 %5508 }
 0x1f0   : > { %v846_v57 = vadd.f32 0.041655596, %v845_v40  ;;  %v993_v51 = vsel %vm872_vm5, %v992_v22, %v991_v63  ;;  %v3546_v47 = vshrl.u32 %v7266_v1, 16  ;;  %v3225_v45 = vsel %vm3215_vm1, %v3211_v38, 1326507024 }
 0x1f1   : > { %v1137_v26 = vor.u32 %v1136_v21, %v1135_v62  ;;  %v3440_v12 = vclz %v3439_v19  ;;  %v3579_v50 = vadd.s32 %v3578_v60, %v3568_v56  ;;  %v7382_v55 = vsel %vm3213_vm11, %v3220_v24, %v3222_v6 }
 0x1f2   : > { %v3224_v17 = vsel %vm3212_vm7, %v7244_v35, %v7260_v11  ;;  %v13092_v49 = vand.u32 2147483647, %v13091_v4  ;;  %v3557_v1 = vadd.s32 %v3556_v31, %v3546_v47  ;;  %v855_v63 = vadd.f32 -0.16666654, %v854_v13 }
 0x1f3   : > { %v1142_v37 = vand.u32 2147483647, %v1141_v29  ;;  %v3570_v18 = vshrl.u32 %v7298_v10, 16  ;;  %v847_v41 = vmul.f32 %v846_v57, %v7295_v16  ;;  %v3226_v35 = vsel %vm3214_vm15, %v7268_v48, %v3225_v45 }
 0x1f4   : > { %vm7390_vm13 = vcmp.le.f32.partialorder %v13092_v49, 0.7853982  ;;  %v3504_v11 = vshrl.u32 %v13043_v34, %v7112_v52  ;;  %v3548_v0 = vshrl.u32 %v7302_v33, 16  ;;  %v1144_v40 = vcvt.s32.f32 %v1137_v26  ;;  %v13102_v49 = vld [vmem:[#allocation18_spill] sm:$0xff] }
 0x1f5   : > { %v7397_v43 = vsel %vm7390_vm13, %v13091_v4, %v993_v51  ;;  %v5848_v38 = vadd.s32 4294967294, %v3440_v12  ;;  %v3525_v24 = vsel %vm3523_vm9, %v7168_v3, 2102212464  ;;  %v3580_v22 = vadd.s32 %v3579_v50, %v3570_v18 }
 0x1f6   : > { %v7413_v39 = vmul.f32 %v7407_v58, %v715_v2  ;;  %v13096_v21 = vshll.u32 %v7051_v30, 16  ;;  %v7423_v52 = vand.u32 65535, %v7118_v36  ;;  %v7427_v33 = vmul.f32 %v7397_v43, %v7397_v43 }
 0x1f7   : > { %v7429_v60 = vadd.s32 %v3557_v1, %v3548_v0  ;;  %v856_v3 = vmul.f32 %v855_v63, %v7295_v16  ;;  %v7434_v13 = vsel %vm3213_vm11, %v3224_v17, %v3226_v35  ;;  %v1145_v6 = vmul.f32 %v1144_v40, %v1142_v37  ;;  %v13103_v1 = vld [vmem:[#allocation24_spill] sm:$0xff]  ;;  %v13107_v40 = vld [vmem:[#allocation23_spill] sm:$0xff] }
 0x1f8   : > { %13095 = vst [vmem:[#allocation8_spill] sm:$0xff] %v7413_v39  ;;  %vm7418_vm7 = vc.u32 %v7041_v28, %v13096_v21  ;;  %v7437_v28 = vshrl.u32 %v7118_v36, 16  ;;  %v3524_v31 = vsel %vm3520_vm12, %v3504_v11, %v7164_v14  ;;  %v3526_v62 = vsel %vm3522_vm2, %v7166_v44, %v3525_v24  ;;  %v13100_v14 = vld [vmem:[#allocation12_spill] sm:$0xff]  ;;  %v13106_v11 = vld [vmem:[#allocation10_spill] sm:$0xff] }
 0x1f9   : > { %v13099_v29 = vshll.u32 %v7298_v10, 16  ;;  %v848_v56 = vadd.f32 -0.4999988, %v847_v41  ;;  %v3254_v2 = vshrl.u32 %v7382_v55, 16  ;;  %vm5849_vm9 = vcmp.lt.s32.totalorder %v5848_v38, 0 }
 0x1fa   : > { %v3584_v57 = vadd.s32 1, %v3580_v22  ;;  %v12828_v51 = vand.u32 65535, %v7434_v13  ;;  %v1006_v47 = vmul.f32 -0.00019511016, %v7427_v33  ;;  %v3105_v45 = vshll.u32 %v13100_v14, 16 }
 0x1fb   : > { %v7449_v46 = vadd.s32 %v7307_v15, %v13099_v29  ;;  %v857_v44 = vadd.f32 1.0, %v856_v3  ;;  %v12829_v10 = vshrl.u32 %v7434_v13, 16  ;;  %v1146_v26 = vxor.u32 2147483648, %v1145_v6 }
 0x1fc   : > { %v3527_v15 = vsel %vm3521_vm3, %v3524_v31, %v3526_v62  ;;  %v7460_v12 = vsel %vm5849_vm9, 0, %v5848_v38  ;;  %v13101_v50 = vand.u32 65535, %v6967_v5  ;;  %v13104_v63 = vand.u32 65535, %v13103_v1  ;;  %v455_v5 = vpop.f32.mrf.mxu0 }
 0x1fd   : > { %vm3583_vm12 = vc.u32 %v7429_v60, %v7449_v46  ;;  %v849_v35 = vmul.f32 %v848_v56, %v7295_v16  ;;  %vm1026_vm2 = vcmp.lt.s32.totalorder %v13106_v11, 0  ;;  %vm862_vm3 = vcmp.eq.s32.totalorder %v13107_v40, 0 }
 0x1fe   : > { %v7465_v17 = vmul.u32 %v13101_v50, %v13070_v61  ;;  %v3101_v37 = vmul.u32 %v13104_v63, %v13102_v49  ;;  %v13105_v18 = vmov %v13104_v63  ;;  %v3585_v0 = vsel %vm3583_vm12, %v3584_v57, %v3580_v22 }
 0x1ff   : > { %v7473_v41 = vmul.u32 %v13105_v18, %v13070_v61  ;;  %v1007_v38 = vadd.f32 0.008332121, %v1006_v47  ;;  %v3581_v24 = vmul.u32 %v7222_v25, %v3527_v15  ;;  %v858_v61 = vmul.f32 %v857_v44, %v7277_v54  ;;  %v13108_v25 = vld [vmem:[#allocation11_spill] sm:$0xff] }
 0x200   : > { %vm3109_vm1 = vc.u32 %v3101_v37, %v3105_v45  ;;  %v7481_v21 = vadd.s32 %v3105_v45, %v3101_v37  ;;  %v7485_v3 = vmul.u32 %v3254_v2, %v7423_v52  ;;  %v1147_v16 = vsel %vm1026_vm2, %v1146_v26, %v1145_v6  ;;  %v13113_v15 = vld [vmem:[#allocation27_spill] sm:$0xff] }
 0x201   : > { %v3448_v31 = vsub.s32 4294967266, %v7460_v12  ;;  %v7490_v22 = vadd.s32 %v3585_v0, %v3581_v24  ;;  %v3085_v62 = vshll.u32 %v7465_v17, 16  ;;  %v12827_v29 = vshll.u32 %v7473_v41, 16  ;;  %v13114_v37 = vld [vmem:[#allocation19_spill] sm:$0xff] }
 0x202   : > { %v7495_v56 = vadd.f32 %v455_v5, %v13108_v25  ;;  %v850_v57 = vadd.f32 1.0, %v849_v35  ;;  %vm865_vm11 = vcmp.eq.s32.totalorder %v13107_v40, 2  ;;  %v999_v54 = vmul.f32 -0.001358992, %v7427_v33  ;;  %v13115_v35 = vld [vmem:[#allocation26_spill] sm:$0xff] }
 0x203   : > { %v3088_v6 = vsel %vm7418_vm7, 1, %v13044_v9  ;;  %v3110_v47 = vsel %vm3109_vm1, 1, %v13044_v9  ;;  %vm861_vm14 = vcmp.lt.s32.totalorder %v13107_v40, 2  ;;  %v1008_v45 = vmul.f32 %v1007_v38, %v7427_v33 }
 0x204   : > { %13109 = vst [vmem:[#allocation12_spill] sm:$0xff] %v7495_v56  ;;  %v13110_v44 = vand.u32 2147483647, %v13106_v11  ;;  %vm3091_vm6 = vc.u32 %v13113_v15, %v3085_v62  ;;  %vm3113_vm0 = vc.u32 %v7481_v21, %v12827_v29  ;;  %v863_v48 = vxor.u32 2147483648, %v858_v61 }
 0x205   : > { %v7518_v50 = vmul.u32 %v12829_v10, %v7423_v52  ;;  %v3449_v1 = vadd.s32 127, %v3448_v31  ;;  %v3587_v63 = vadd.s32 536870912, %v7490_v22  ;;  %v3090_v18 = vadd.s32 %v3088_v6, %v13114_v37  ;;  %v13116_v10 = vld [vmem:[#allocation6_spill] sm:$0xff] }
 0x206   : > { %vm7507_vm15 = vcmp.le.f32.partialorder %v13110_v44, 0.7853982  ;;  %v3112_v0 = vadd.s32 %v3110_v47, %v13115_v35  ;;  %v1181_v5 = vand.u32 2139095040, %v7495_v56  ;;  %v1000_v38 = vadd.f32 0.041655596, %v999_v54 }
 0x207   : > { %v7523_v49 = vsel %vm7507_vm15, %v13106_v11, %v1147_v16  ;;  %v3444_v24 = vsub.s32 32, %v7460_v12  ;;  %v3092_v62 = vsel %vm3091_vm6, 1, %v13044_v9  ;;  %v3114_v44 = vsel %vm3113_vm0, 1, %v13044_v9 }
 0x208   : > { %vm859_vm10 = vweird.f32 %v6304_v20  ;;  %v866_v16 = vxor.u32 2147483648, %v850_v57  ;;  %v3233_v31 = vmul.u32 %v12828_v51, %v7423_v52  ;;  %v7537_v6 = vmul.u32 %v3254_v2, %v7437_v28 }
 0x209   : > { %v1009_v47 = vadd.f32 -0.16666654, %v1008_v45  ;;  %v864_v54 = vsel %vm862_vm3, %v850_v57, %v863_v48  ;;  %v7543_v15 = vmul.f32 %v7523_v49, %v7523_v49  ;;  %v3428_v37 = vadd.s32 %v7173_v7, %v7158_v23 }
 0x20a   : > { %v3450_v35 = vshll.u32 %v3449_v1, 23  ;;  %v7547_v27 = vshrl.u32 %v3587_v63, 30  ;;  %v3094_v19 = vadd.s32 %v3092_v62, %v3090_v18  ;;  %v3116_v29 = vadd.s32 %v3114_v44, %v3112_v0 }
 0x20b   : > { %v1182_v51 = vshrl.u32 %v1181_v5, 23  ;;  %v3237_v2 = vshll.u32 %v7518_v50, 16  ;;  %v994_v45 = vsub.s32 4, %v13116_v10  ;;  %v1001_v42 = vmul.f32 %v1000_v38, %v7427_v33 }
 0x20c   : > { %v3446_v57 = vshrl.u32 %v3428_v37, %v3444_v24  ;;  %v867_v48 = vsel %vm865_vm11, %v866_v16, %v858_v61  ;;  %v1010_v39 = vmul.f32 %v1009_v47, %v7427_v33  ;;  %v3084_v23 = vshrl.u32 %v7051_v30, 16 }
 0x20d   : > { %v3106_v7 = vshrl.u32 %v13100_v14, 16  ;;  %v868_v1 = vsel %vm861_vm14, %v864_v54, %v867_v48  ;;  %v1160_v63 = vmul.f32 -0.00019511016, %v7543_v15  ;;  %v3445_v18 = vshll.u32 %v7320_v59, %v7460_v12 }
 0x20e   : > { %v3451_v0 = vor.u32 4788187, %v3450_v35  ;;  %v3589_v5 = vshll.u32 %v7547_v27, 30  ;;  %v3095_v38 = vadd.s32 %v3094_v19, %v3084_v23  ;;  %v5805_v61 = vadd.s32 4294967169, %v1182_v51 }
 0x20f   : > { %v3117_v24 = vadd.s32 %v3116_v29, %v3106_v7  ;;  %v13117_v62 = vshrl.u32 %v7434_v13, 16  ;;  %v995_v14 = vsel %vm872_vm5, %v994_v45, %v13116_v10  ;;  %v1002_v40 = vadd.f32 -0.4999988, %v1001_v42  ;;  %v13120_v45 = vld [vmem:[#allocation20_spill] sm:$0xff] }
 0x210   : > { %v3447_v44 = vor.u32 %v3446_v57, %v3445_v18  ;;  %v1011_v16 = vadd.f32 1.0, %v1010_v39  ;;  %v1153_v59 = vmul.f32 -0.001358992, %v7543_v15  ;;  %v3086_v12 = vshrl.u32 %v7465_v17, 16 }
 0x211   : > { %v7566_v30 = vmul.u32 %v13117_v62, %v7437_v28  ;;  %v3108_v19 = vshrl.u32 %v7473_v41, 16  ;;  %v869_v51 = vsel %vm859_vm10, nan, %v868_v1  ;;  %vm7576_vm8 = vc.u32 %v3233_v31, %v3237_v2 }
 0x212   : > { %v3243_v47 = vadd.s32 %v3237_v2, %v3233_v31  ;;  %v1161_v54 = vadd.f32 0.008332121, %v1160_v63  ;;  %v3452_v37 = vand.u32 2147483647, %v3451_v0  ;;  %v7581_v42 = vsub.s32 %v7490_v22, %v3589_v5 }
 0x213   : > { %v7583_v39 = vadd.s32 %v3095_v38, %v3086_v12  ;;  %v3118_v10 = vadd.s32 %v3117_v24, %v3108_v19  ;;  %v1188_v35 = vadd.s32 1, %v5805_v61  ;;  %v997_v17 = vsel %vm7390_vm13, 0, %v995_v14  ;;  %v13125_v61 = vld [vmem:[#allocation21_spill] sm:$0xff] }
 0x214   : > { %v1148_v20 = vsub.s32 4, %v13120_v45  ;;  %v3454_v57 = vcvt.s32.f32 %v3447_v44  ;;  %v3259_v48 = vshll.u32 %v7485_v3, 16  ;;  %v1003_v23 = vmul.f32 %v1002_v40, %v7427_v33 }
 0x215   : > { %v1012_v31 = vmul.f32 %v1011_v16, %v7397_v43  ;;  %v1154_v2 = vadd.f32 0.041655596, %v1153_v59  ;;  %v13121_v22 = vshll.u32 %v7473_v41, 16  ;;  %v1162_v1 = vmul.f32 %v1161_v54, %v7543_v15 }
 0x216   : > { %v3455_v63 = vmul.f32 %v3454_v57, %v3452_v37  ;;  %v13122_v8 = vand.u32 65535, %v7382_v55  ;;  %v3592_v43 = vsub.s32 0, %v7581_v42  ;;  %v3122_v33 = vadd.s32 1, %v3118_v10  ;;  %v13130_v57 = vld [vmem:[#allocation22_spill] sm:$0xff] }
 0x217   : > { %v7594_v7 = vadd.s32 %v7481_v21, %v13121_v22  ;;  %vm1189_vm5 = vcmp.gt.s32.totalorder %v1188_v35, 0  ;;  %vm3591_vm13 = vcmp.lt.s32.totalorder %v7581_v42, 0  ;;  %v13124_v41 = vand.u32 65535, %v7434_v13 }
 0x218   : > { %v3255_v18 = vmul.u32 %v13122_v8, %v7423_v52  ;;  %v13123_v0 = vmov %v13122_v8  ;;  %v7617_v55 = vmul.f32 %v7407_v58, %v869_v51  ;;  %v1004_v38 = vadd.f32 1.0, %v1003_v23 }
 0x219   : > { %v7603_v5 = vmul.u32 %v13123_v0, %v7437_v28  ;;  %vm3121_vm4 = vc.u32 %v7583_v39, %v7594_v7  ;;  %v7612_v21 = vmul.u32 %v13124_v41, %v7437_v28  ;;  %v1014_v24 = vand.u32 3, %v997_v17  ;;  %v7656_v0 = vpop.permute.xlu1 %360 }
 0x21a   : > { %vm3263_vm7 = vc.u32 %v3255_v18, %v3259_v48  ;;  %v7614_v52 = vadd.s32 %v3259_v48, %v3255_v18  ;;  %vm3336_vm9 = vcmp.lt.s32.totalorder %v13125_v61, 0  ;;  %v1149_v62 = vsel %vm1026_vm2, %v1148_v20, %v13120_v45  ;;  %v13129_v20 = vld [vmem:[#allocation15_spill] sm:$0xff]  ;;  %13132 = vst [vmem:[#allocation18_spill] sm:$0xff] %v7656_v0 }
 0x21b   : > { %v1155_v14 = vmul.f32 %v1154_v2, %v7543_v15  ;;  %v13126_v13 = vand.u32 2147483647, %v13125_v61  ;;  %v3261_v40 = vshll.u32 %v7603_v5, 16  ;;  %v1190_v58 = vsel %vm1189_vm5, %v1188_v35, 0 }
 0x21c   : > { %v1163_v44 = vadd.f32 -0.16666654, %v1162_v1  ;;  %v3593_v16 = vsel %vm3591_vm13, %v3592_v43, %v7581_v42  ;;  %v3123_v59 = vsel %vm3121_vm4, %v3122_v33, %v3118_v10  ;;  %v3264_v12 = vsel %vm3263_vm7, 1, %v13044_v9  ;;  %v520_v33 = vpop.f32.mrf.mxu1 }
 0x21d   : > { %vm7626_vm12 = vcmp.le.f32.partialorder %v13126_v13, 0.7853982  ;;  %v1017_v19 = vxor.u32 2147483648, %v1012_v31  ;;  %v3456_v51 = vxor.u32 2147483648, %v3455_v63  ;;  %v3239_v54 = vshll.u32 %v7612_v21, 16 }
 0x21e   : > { %vm3267_vm2 = vc.u32 %v7614_v52, %v3261_v40  ;;  %v1020_v37 = vxor.u32 2147483648, %v1004_v38  ;;  %v1151_v35 = vsel %vm7507_vm15, 0, %v1149_v62  ;;  %v3242_v17 = vsel %vm7576_vm8, 1, %v13044_v9 }
 0x21f   : > { %v1192_v45 = vand.u32 31, %v1190_v58  ;;  %v3594_v10 = vclz %v3593_v16  ;;  %v13131_v48 = vmul.u32 %v13129_v20, %v13130_v57  ;;  %vm3245_vm3 = vc.u32 %v3243_v47, %v3239_v54 }
 0x220   : > { %v3266_v2 = vadd.s32 %v3264_v12, %v7537_v6  ;;  %vm1016_vm1 = vcmp.eq.s32.totalorder %v1014_v24, 0  ;;  %v1156_v22 = vadd.f32 -0.4999988, %v1155_v14  ;;  %v1164_v1 = vmul.f32 %v1163_v44, %v7543_v15 }
 0x221   : > { %v7648_v23 = vadd.s32 %v3123_v59, %v13131_v48  ;;  %v3268_v26 = vsel %vm3267_vm2, 1, %v13044_v9  ;;  %vm1015_vm11 = vcmp.lt.s32.totalorder %v1014_v24, 2  ;;  %v1018_v8 = vsel %vm1016_vm1, %v1004_v38, %v1017_v19 }
 0x222   : > { %v3457_v29 = vsel %vm3336_vm9, %v3456_v51, %v3455_v63  ;;  %v3244_v18 = vadd.s32 %v3242_v17, %v7566_v30  ;;  %vm1019_vm14 = vcmp.eq.s32.totalorder %v1014_v24, 2  ;;  %v7658_v43 = vand.u32 3, %v1151_v35 }
 0x223   : > { %v3246_v6 = vsel %vm3245_vm3, 1, %v13044_v9  ;;  %v7661_v47 = vsub.s32 32, %v1192_v45  ;;  %v1021_v41 = vsel %vm1019_vm14, %v1020_v37, %v1012_v31  ;;  %v5851_v62 = vadd.s32 4294967294, %v3594_v10 }
 0x224   : > { %v3125_v14 = vadd.s32 536870912, %v7648_v23  ;;  %v3270_v38 = vadd.s32 %v3268_v26, %v3266_v2  ;;  %v7664_v13 = vsel %vm1015_vm11, %v1018_v8, %v1021_v41  ;;  %v1157_v63 = vmul.f32 %v1156_v22, %v7543_v15 }
 0x225   : > { %v1165_v30 = vadd.f32 1.0, %v1164_v1  ;;  %v7670_v24 = vsel %vm7626_vm12, %v13125_v61, %v3457_v29  ;;  %v3238_v44 = vshrl.u32 %v7518_v50, 16  ;;  %v3248_v16 = vadd.s32 %v3246_v6, %v3244_v18 }
 0x226   : > { %v3260_v59 = vshrl.u32 %v7485_v3, 16  ;;  %v7675_v31 = vadd.f32 %v520_v33, %v13108_v25  ;;  %v1204_v12 = vshll.u32 %v13055_v53, %v1192_v45  ;;  %v13134_v19 = vmov 920167782  }
 0x227   : > { %v1205_v51 = vshrl.u32 %v13134_v19, %v7661_v47  ;;  %v1207_v15 = vshll.u32 %v13134_v19, %v1192_v45  ;;  %v13135_v54 = vmov 1326507024   ;;  %vm5852_vm15 = vcmp.lt.s32.totalorder %v5851_v62, 0 }
 0x228   : > { %13133 = vst [vmem:[#allocation24_spill] sm:$0xff] %v7675_v31  ;;  %v1208_v37 = vshrl.u32 %v13135_v54, %v7661_v47  ;;  %v7683_v35 = vshrl.u32 %v3125_v14, 30  ;;  %v3262_v50 = vshrl.u32 %v7603_v5, 16  ;;  %v3271_v17 = vadd.s32 %v3270_v38, %v3260_v59 }
 0x229   : > { %v12831_v3 = vand.u32 2147483647, %v7495_v56  ;;  %v7687_v25 = vshrl.u32 %v1190_v58, 5  ;;  %v1195_v10 = vshll.u32 %v13043_v34, %v1192_v45  ;;  %v13136_v20 = vmov 2475754826  }
 0x22a   : > { %v1198_v57 = vshll.u32 %v13136_v20, %v1192_v45  ;;  %v1196_v48 = vshrl.u32 %v13136_v20, %v7661_v47  ;;  %v13137_v2 = vmov 2131351028   ;;  %v1202_v26 = vshrl.u32 %v13055_v53, %v7661_v47 }
 0x22b   : > { %v1199_v22 = vshrl.u32 %v13137_v2, %v7661_v47  ;;  %v1201_v1 = vshll.u32 %v13137_v2, %v1192_v45  ;;  %vm1013_vm6 = vweird.f32 %v13091_v4  ;;  %v3249_v8 = vadd.s32 %v3248_v16, %v3238_v44  ;;  %v7706_v45 = vpop.permute.xlu1 %375 }
 0x22c   : > { %v1206_v58 = vor.u32 %v1205_v51, %v1204_v12  ;;  %v1209_v29 = vor.u32 %v1208_v37, %v1207_v15  ;;  %v1335_v18 = vand.u32 2139095040, %v7675_v31  ;;  %v1158_v6 = vadd.f32 1.0, %v1157_v63  ;;  %13138 = vst [vmem:[#allocation10_spill] sm:$0xff] %v7706_v45 }
 0x22d   : > { %v1166_v33 = vmul.f32 %v1165_v30, %v7523_v49  ;;  %v7703_v41 = vmul.f32 %v7670_v24, %v7670_v24  ;;  %v3127_v14 = vshll.u32 %v7683_v35, 30  ;;  %v7709_v38 = vsel %vm5852_vm15, 0, %v5851_v62 }
 0x22e   : > { %v3240_v44 = vshrl.u32 %v7612_v21, 16  ;;  %v3272_v16 = vadd.s32 %v3271_v17, %v3262_v50  ;;  %v1185_v59 = vand.u32 8388607, %v12831_v3  ;;  %v7714_v63 = vor.u32 %v1196_v48, %v1195_v10 }
 0x22f   : > { %v7716_v49 = vor.u32 %v1199_v22, %v1198_v57  ;;  %v7718_v30 = vor.u32 %v1202_v26, %v1201_v1  ;;  %vm1213_vm0 = vcmp.lt.s32.totalorder %v7687_v25, 4  ;;  %v1336_v51 = vshrl.u32 %v1335_v18, 23 }
 0x230   : > { %v7721_v12 = vadd.s32 %v3249_v8, %v3240_v44  ;;  %v1219_v62 = vsel %vm1213_vm0, %v1206_v58, 920167782  ;;  %v1223_v21 = vsel %vm1213_vm0, %v1209_v29, 1326507024  ;;  %v3463_v15 = vmul.f32 -0.001358992, %v7703_v41 }
 0x231   : > { %v3602_v37 = vsub.s32 4294967266, %v7709_v38  ;;  %v7730_v50 = vsub.s32 %v7648_v23, %v3127_v14  ;;  %v7735_v17 = vadd.s32 %v7614_v52, %v3261_v40  ;;  %v3276_v10 = vadd.s32 1, %v3272_v16  ;;  %v13139_v8 = vld [vmem:[#allocation17_spill] sm:$0xff] }
 0x232   : > { %v1186_v57 = vor.u32 8388608, %v1185_v59  ;;  %vm1210_vm10 = vcmp.lt.s32.totalorder %v7687_v25, 1  ;;  %vm1212_vm8 = vcmp.lt.s32.totalorder %v7687_v25, 3  ;;  %vm1169_vm4 = vcmp.lt.s32.totalorder %v7658_v43, 2 }
 0x233   : > { %v1218_v48 = vsel %vm1210_vm10, %v7714_v63, %v7716_v49  ;;  %v1220_v23 = vsel %vm1212_vm8, %v7718_v30, %v1219_v62  ;;  %v1222_v5 = vsel %vm1210_vm10, %v7716_v49, %v7718_v30  ;;  %v1224_v52 = vsel %vm1212_vm8, %v1206_v58, %v1223_v21  ;;  %v5514_v21 = vpop.permute.xlu1 %5513 }
 0x234   : > { %vm1170_vm5 = vcmp.eq.s32.totalorder %v7658_v43, 0  ;;  %v3470_v40 = vmul.f32 -0.00019511016, %v7703_v41  ;;  %vm3275_vm13 = vc.u32 %v7721_v12, %v7735_v17  ;;  %v5808_v22 = vadd.s32 4294967169, %v1336_v51 }
 0x235   : > { %v1023_v1 = vsel %vm1013_vm6, nan, %v7664_v13  ;;  %v1174_v26 = vxor.u32 2147483648, %v1158_v6  ;;  %v3458_v29 = vsub.s32 4, %v13139_v8  ;;  %vm1211_vm7 = vcmp.lt.s32.totalorder %v7687_v25, 2 }
 0x236   : > { %v1171_v58 = vxor.u32 2147483648, %v1166_v33  ;;  %v3603_v18 = vadd.s32 127, %v3602_v37  ;;  %v7764_v14 = vsel %vm1211_vm7, %v1218_v48, %v1220_v23  ;;  %v7768_v44 = vsel %vm1211_vm7, %v1222_v5, %v1224_v52 }
 0x237   : > { %vm1167_vm2 = vweird.f32 %v13106_v11  ;;  %v3464_v59 = vadd.f32 0.041655596, %v3463_v15  ;;  %v3130_v4 = vsub.s32 0, %v7730_v50  ;;  %v3277_v13 = vsel %vm3275_vm13, %v3276_v10, %v3272_v16 }
 0x238   : > { %v7772_v62 = vshll.u32 %v1186_v57, 8  ;;  %v3471_v51 = vadd.f32 0.008332121, %v3470_v40  ;;  %v3598_v37 = vsub.s32 32, %v7709_v38  ;;  %vm3129_vm3 = vcmp.lt.s32.totalorder %v7730_v50, 0 }
 0x239   : > { %v1342_v48 = vadd.s32 1, %v5808_v22  ;;  %v5588_v23 = vmul.f32 %v5514_v21, %v1023_v1  ;;  %vm1173_vm1 = vcmp.eq.s32.totalorder %v7658_v43, 2  ;;  %v1230_v5 = vshrl.u32 %v7768_v44, 16 }
 0x23a   : > { %v1172_v15 = vsel %vm1170_vm5, %v1158_v6, %v1171_v58  ;;  %v3582_v16 = vadd.s32 %v7449_v46, %v7429_v60  ;;  %v3604_v10 = vshll.u32 %v3603_v18, 23  ;;  %v13140_v57 = vmul.u32 %v7118_v36, %v7362_v32  ;;  %v13141_v46 = vld [vmem:[#allocation8_spill] sm:$0xff]  ;;  %v13143_v32 = vld [vmem:[#allocation25_spill] sm:$0xff] }
 0x23b   : > { %v1175_v22 = vsel %vm1173_vm1, %v1174_v26, %v1166_v33  ;;  %v3459_v1 = vsel %vm3336_vm9, %v3458_v29, %v13139_v8  ;;  %v3131_v3 = vsel %vm3129_vm3, %v3130_v4, %v7730_v50  ;;  %v1227_v52 = vand.u32 65535, %v7772_v62 }
 0x23c   : > { %v7786_v40 = vadd.s32 %v3277_v13, %v13140_v57  ;;  %v3465_v6 = vmul.f32 %v3464_v59, %v7703_v41  ;;  %v3472_v58 = vmul.f32 %v3471_v51, %v7703_v41  ;;  %v3600_v60 = vshrl.u32 %v3582_v16, %v3598_v37 }
 0x23d   : > { %vm1343_vm11 = vcmp.gt.s32.totalorder %v1342_v48, 0  ;;  %v7796_v18 = vadd.f32 %v5588_v23, %v13141_v46  ;;  %v1176_v36 = vsel %vm1169_vm4, %v1172_v15, %v1175_v22  ;;  %vm3490_vm14 = vcmp.lt.s32.totalorder %v13143_v32, 0 }
 0x23e   : > { %v7801_v33 = vmul.u32 %v1230_v5, %v1227_v52  ;;  %v13144_v26 = vshrl.u32 %v7764_v14, 16  ;;  %v3599_v29 = vshll.u32 %v7581_v42, %v7709_v38  ;;  %v3605_v59 = vor.u32 4788187, %v3604_v10 }
 0x23f   : > { %13142 = vst [vmem:[#allocation23_spill] sm:$0xff] %v7796_v18  ;;  %v3132_v4 = vclz %v3131_v3  ;;  %v3279_v13 = vadd.s32 536870912, %v7786_v40  ;;  %v3461_v51 = vsel %vm7626_vm12, 0, %v3459_v1  ;;  %v1229_v43 = vand.u32 65535, %v7768_v44 }
 0x240   : > { %v7805_v8 = vmul.u32 %v13144_v26, %v1227_v52  ;;  %v1251_v37 = vand.u32 65535, %v7764_v14  ;;  %v1344_v23 = vsel %vm1343_vm11, %v1342_v48, 0  ;;  %v1177_v15 = vsel %vm1167_vm2, nan, %v1176_v36 }
 0x241   : > { %v3466_v16 = vadd.f32 -0.4999988, %v3465_v6  ;;  %v3473_v57 = vadd.f32 -0.16666654, %v3472_v58  ;;  %v3601_v22 = vor.u32 %v3600_v60, %v3599_v29  ;;  %v3612_v42 = vsub.s32 4, %v7547_v27 }
 0x242   : > { %v1228_v3 = vshrl.u32 %v7772_v62, 16  ;;  %v1235_v38 = vshll.u32 %v7801_v33, 16  ;;  %v1257_v28 = vshll.u32 %v7805_v8, 16  ;;  %v3606_v10 = vand.u32 2147483647, %v3605_v59 }
 0x243   : > { %v5842_v1 = vadd.s32 4294967294, %v3132_v4  ;;  %v7820_v44 = vshrl.u32 %v3279_v13, 30  ;;  %v1346_v46 = vand.u32 31, %v1344_v23  ;;  %v1231_v48 = vmul.u32 %v1229_v43, %v1227_v52 }
 0x244   : > { %v7822_v26 = vmul.u32 %v1229_v43, %v1228_v3  ;;  %v1253_v11 = vmul.u32 %v1251_v37, %v1227_v52  ;;  %v7824_v6 = vmul.u32 %v1251_v37, %v1228_v3  ;;  %v7826_v58 = vmul.f32 %v5514_v21, %v1177_v15 }
 0x245   : > { %13145 = vst [vmem:[#allocation11_spill] sm:$0xff] %v7820_v44  ;;  %v3474_v60 = vmul.f32 %v3473_v57, %v7703_v41  ;;  %v7829_v36 = vand.u32 3, %v3461_v51  ;;  %v3608_v29 = vcvt.s32.f32 %v3601_v22  ;;  %vm1239_vm9 = vc.u32 %v1231_v48, %v1235_v38  ;;  %v479_v51 = vpop.f32.mrf.mxu2 }
 0x246   : > { %v1241_v45 = vadd.s32 %v1235_v38, %v1231_v48  ;;  %vm1261_vm12 = vc.u32 %v1253_v11, %v1257_v28  ;;  %v7831_v59 = vadd.s32 %v1257_v28, %v1253_v11  ;;  %v7834_v4 = vmul.f32 %v3466_v16, %v7703_v41  ;;  %v13148_v38 = vld [vmem:[#allocation30_spill] sm:$0xff] }
 0x247   : > { %v7839_v52 = vsel %vm3490_vm14, %v3612_v42, %v7547_v27  ;;  %v3281_v21 = vshll.u32 %v7820_v44, 30  ;;  %v7842_v13 = vsub.s32 32, %v1346_v46  ;;  %v3609_v43 = vmul.f32 %v3608_v29, %v3606_v10 }
 0x248   : > { %vm5843_vm15 = vcmp.lt.s32.totalorder %v5842_v1, 0  ;;  %v1237_v37 = vshll.u32 %v7822_v26, 16  ;;  %v12833_v15 = vshll.u32 %v7824_v6, 16  ;;  %v7846_v57 = vadd.f32 1.0, %v3474_v60 }
 0x249   : > { %13146 = vst [vmem:[#allocation27_spill] sm:$0xff] %v7842_v13  ;;  %v1234_v41 = vmul.u32 %v1230_v5, %v1228_v3  ;;  %v1240_v16 = vsel %vm1239_vm9, 1, %v13044_v9  ;;  %v1262_v22 = vsel %vm1261_vm12, 1, %v13044_v9  ;;  %v13147_v27 = vshrl.u32 %v7764_v14, 16 }
 0x24a   : > { %vm1243_vm6 = vc.u32 %v1241_v45, %v1237_v37  ;;  %vm1265_vm4 = vc.u32 %v7831_v59, %v12833_v15  ;;  %v7856_v28 = vadd.f32 %v479_v51, %v13148_v38  ;;  %v7858_v10 = vsel %vm5843_vm15, 0, %v5842_v1 }
 0x24b   : > { %v1256_v42 = vmul.u32 %v13147_v27, %v1228_v3  ;;  %v7861_v48 = vsub.s32 %v7786_v40, %v3281_v21  ;;  %v1362_v45 = vshrl.u32 %v13135_v54, %v7842_v13  ;;  %v3610_v11 = vxor.u32 2147483648, %v3609_v43 }
 0x24c   : > { %13149 = vst [vmem:[#allocation19_spill] sm:$0xff] %v7856_v28  ;;  %v1242_v14 = vadd.s32 %v1240_v16, %v1234_v41  ;;  %v1359_v60 = vshrl.u32 %v13134_v19, %v7842_v13  ;;  %v1244_v29 = vsel %vm1243_vm6, 1, %v13044_v9  ;;  %v1266_v51 = vsel %vm1265_vm4, 1, %v13044_v9 }
 0x24d   : > { %v1264_v3 = vadd.s32 %v1262_v22, %v1256_v42  ;;  %v7870_v1 = vshrl.u32 %v1344_v23, 5  ;;  %v1361_v40 = vshll.u32 %v13134_v19, %v1346_v46  ;;  %v1353_v21 = vshrl.u32 %v13137_v2, %v7842_v13 }
 0x24e   : > { %v1356_v37 = vshrl.u32 %v13055_v53, %v7842_v13  ;;  %v1358_v41 = vshll.u32 %v13055_v53, %v1346_v46  ;;  %v3645_v16 = vand.u32 2139095040, %v7856_v28  ;;  %vm3283_vm5 = vcmp.lt.s32.totalorder %v7861_v48, 0 }
 0x24f   : > { %v3284_v22 = vsub.s32 0, %v7861_v48  ;;  %v1350_v23 = vshrl.u32 %v13136_v20, %v7842_v13  ;;  %v1363_v27 = vor.u32 %v1362_v45, %v1361_v40  ;;  %v13150_v42 = vand.u32 2147483647, %v13143_v32 }
 0x250   : > { %v1268_v5 = vadd.s32 %v1266_v51, %v1264_v3  ;;  %v1352_v18 = vshll.u32 %v13136_v20, %v1346_v46  ;;  %v1355_v0 = vshll.u32 %v13137_v2, %v1346_v46  ;;  %v1360_v56 = vor.u32 %v1359_v60, %v1358_v41 }
 0x251   : > { %vm7885_vm13 = vcmp.le.f32.partialorder %v13150_v42, 0.7853982  ;;  %v1246_v44 = vadd.s32 %v1244_v29, %v1242_v14  ;;  %v1258_v61 = vshrl.u32 %v7805_v8, 16  ;;  %v13153_v53 = vand.u32 2147483647, %v7675_v31 }
 0x252   : > { %v1349_v45 = vshll.u32 %v13043_v34, %v1346_v46  ;;  %v7895_v40 = vor.u32 %v1353_v21, %v1352_v18  ;;  %v7897_v42 = vor.u32 %v1356_v37, %v1355_v0  ;;  %vm1367_vm2 = vcmp.lt.s32.totalorder %v7870_v1, 4 }
 0x253   : > { %v1339_v38 = vand.u32 8388607, %v13153_v53  ;;  %v3646_v3 = vshrl.u32 %v3645_v16, 23  ;;  %v3140_v51 = vsub.s32 4294967266, %v7858_v10  ;;  %v1236_v13 = vshrl.u32 %v7801_v33, 16 }
 0x254   : > { %v7902_v60 = vor.u32 %v1350_v23, %v1349_v45  ;;  %v1377_v8 = vsel %vm1367_vm2, %v1363_v27, 1326507024  ;;  %v3611_v53 = vsel %vm3490_vm14, %v3610_v11, %v3609_v43  ;;  %v3285_v0 = vsel %vm3283_vm5, %v3284_v22, %v7861_v48 }
 0x255   : > { %v1269_v18 = vadd.s32 %v1268_v5, %v1258_v61  ;;  %v1373_v46 = vsel %vm1367_vm2, %v1360_v56, 920167782  ;;  %v1247_v14 = vadd.s32 %v1246_v44, %v1236_v13  ;;  %v1260_v29 = vshrl.u32 %v7824_v6, 16 }
 0x256   : > { %vm1364_vm3 = vcmp.lt.s32.totalorder %v7870_v1, 1  ;;  %vm1366_vm1 = vcmp.lt.s32.totalorder %v7870_v1, 3  ;;  %v1340_v33 = vor.u32 8388608, %v1339_v38  ;;  %v5853_v61 = vadd.s32 4294967169, %v3646_v3 }
 0x257   : > { %v1376_v43 = vsel %vm1364_vm3, %v7895_v40, %v7897_v42  ;;  %v1378_v11 = vsel %vm1366_vm1, %v1360_v56, %v1377_v8  ;;  %v1194_v5 = vshrl.u32 %v13043_v34, %v7661_v47  ;;  %v1238_v44 = vshrl.u32 %v7822_v26, 16 }
 0x258   : > { %v1372_v13 = vsel %vm1364_vm3, %v7902_v60, %v7895_v40  ;;  %v1374_v38 = vsel %vm1366_vm1, %v7897_v42, %v1373_v46  ;;  %v3468_v21 = vadd.f32 1.0, %v7834_v4  ;;  %v1215_v56 = vsel %vm1213_vm0, %v7718_v30, 2102212464 }
 0x259   : > { %v1270_v37 = vadd.s32 %v1269_v18, %v1260_v29  ;;  %vm1365_vm11 = vcmp.lt.s32.totalorder %v7870_v1, 2  ;;  %v7940_v47 = vsel %vm7885_vm13, %v13143_v32, %v3611_v53  ;;  %v3286_v26 = vclz %v3285_v0 }
 0x25a   : > { %v7942_v41 = vadd.s32 %v1247_v14, %v1238_v44  ;;  %v7946_v16 = vsel %vm1365_vm11, %v1376_v43, %v1378_v11  ;;  %vm3480_vm14 = vcmp.eq.s32.totalorder %v7829_v36, 0  ;;  %vm3483_vm9 = vcmp.eq.s32.totalorder %v7829_v36, 2 }
 0x25b   : > { %v3141_v30 = vadd.s32 127, %v3140_v51  ;;  %v7952_v4 = vsel %vm1365_vm11, %v1372_v13, %v1374_v38  ;;  %v7954_v22 = vshll.u32 %v1340_v33, 8  ;;  %v3652_v23 = vadd.s32 1, %v5853_v61 }
 0x25c   : > { %v3476_v27 = vmul.f32 %v7846_v57, %v7670_v24  ;;  %v1214_v45 = vsel %vm1210_vm10, %v1194_v5, %v7714_v63  ;;  %v1216_v3 = vsel %vm1212_vm8, %v7716_v49, %v1215_v56  ;;  %v13154_v51 = vshll.u32 %v7824_v6, 16 }
 0x25d   : > { %v7971_v53 = vmul.f32 %v7940_v47, %v7940_v47  ;;  %v3136_v0 = vsub.s32 32, %v7858_v10  ;;  %v1274_v24 = vadd.s32 1, %v1270_v37  ;;  %v1384_v57 = vshrl.u32 %v7946_v16, 16 }
 0x25e   : > { %v7967_v8 = vadd.s32 %v7831_v59, %v13154_v51  ;;  %vm3479_vm0 = vcmp.lt.s32.totalorder %v7829_v36, 2  ;;  %v3120_v63 = vadd.s32 %v7594_v7, %v7583_v39  ;;  %v5845_v49 = vadd.s32 4294967294, %v3286_v26 }
 0x25f   : > { %v1406_v6 = vshrl.u32 %v7952_v4, 16  ;;  %v3142_v59 = vshll.u32 %v3141_v30, 23  ;;  %v1217_v18 = vsel %vm1211_vm7, %v1214_v45, %v1216_v3  ;;  %v1381_v46 = vand.u32 65535, %v7954_v22 }
 0x260   : > { %vm1273_vm10 = vc.u32 %v7942_v41, %v7967_v8  ;;  %vm3653_vm8 = vcmp.gt.s32.totalorder %v3652_v23, 0  ;;  %v7986_v14 = vadd.f32 %v7826_v58, %v7617_v55  ;;  %v3481_v29 = vxor.u32 2147483648, %v3476_v27 }
 0x261   : > { %v3484_v33 = vxor.u32 2147483648, %v3468_v21  ;;  %v3615_v39 = vsel %vm7885_vm13, 0, %v7839_v52  ;;  %v3617_v7 = vmul.f32 -0.001358992, %v7971_v53  ;;  %v3138_v43 = vshrl.u32 %v3120_v63, %v3136_v0 }
 0x262   : > { %13155 = vst [vmem:[#allocation26_spill] sm:$0xff] %v7986_v14  ;;  %v1275_v11 = vsel %vm1273_vm10, %v1274_v24, %v1270_v37  ;;  %v7994_v25 = vmul.u32 %v1384_v57, %v1381_v46  ;;  %vm5846_vm7 = vcmp.lt.s32.totalorder %v5845_v49, 0  ;;  %v1271_v61 = vmul.u32 %v7772_v62, %v1217_v18 }
 0x263   : > { %v7999_v55 = vmul.u32 %v1406_v6, %v1381_v46  ;;  %v3654_v58 = vsel %vm3653_vm8, %v3652_v23, 0  ;;  %v8001_v5 = vand.u32 3, %v3615_v39  ;;  %v3137_v52 = vshll.u32 %v7730_v50, %v7858_v10 }
 0x264   : > { %v3143_v15 = vor.u32 4788187, %v3142_v59  ;;  %v1383_v44 = vand.u32 65535, %v7946_v16  ;;  %v3482_v13 = vsel %vm3480_vm14, %v3468_v21, %v3481_v29  ;;  %v3485_v38 = vsel %vm3483_vm9, %v3484_v33, %v3476_v27 }
 0x265   : > { %v8010_v62 = vadd.s32 %v1275_v11, %v1271_v61  ;;  %v1405_v56 = vand.u32 65535, %v7952_v4  ;;  %v3139_v37 = vor.u32 %v3138_v43, %v3137_v52  ;;  %v8013_v26 = vsel %vm5846_vm7, 0, %v5845_v49  ;;  %v544_v52 = vpop.f32.mrf.mxu3 }
 0x266   : > { %v1389_v30 = vshll.u32 %v7994_v25, 16  ;;  %v3656_v23 = vand.u32 31, %v3654_v58  ;;  %v3618_v50 = vadd.f32 0.041655596, %v3617_v7  ;;  %v3624_v10 = vmul.f32 -0.00019511016, %v7971_v53 }
 0x267   : > { %v1382_v45 = vshrl.u32 %v7954_v22, 16  ;;  %v1411_v21 = vshll.u32 %v7999_v55, 16  ;;  %v8021_v27 = vsel %vm3479_vm0, %v3482_v13, %v3485_v38  ;;  %v3144_v3 = vand.u32 2147483647, %v3143_v15 }
 0x268   : > { %v1385_v0 = vmul.u32 %v1383_v44, %v1381_v46  ;;  %v3294_v24 = vsub.s32 4294967266, %v8013_v26  ;;  %v1277_v63 = vadd.s32 536870912, %v8010_v62  ;;  %v1407_v49 = vmul.u32 %v1405_v56, %v1381_v46 }
 0x269   : > { %v8026_v59 = vmul.u32 %v1405_v56, %v1382_v45  ;;  %v3146_v18 = vcvt.s32.f32 %v3139_v37  ;;  %v8028_v29 = vmul.u32 %v1383_v44, %v1382_v45  ;;  %v8030_v33 = vsub.s32 32, %v3656_v23 }
 0x26a   : > { %vm1393_vm12 = vc.u32 %v1385_v0, %v1389_v30  ;;  %v8033_v36 = vmul.f32 %v3618_v50, %v7971_v53  ;;  %v8035_v39 = vadd.f32 0.008332121, %v3624_v10  ;;  %v3274_v7 = vadd.s32 %v7735_v17, %v7721_v12  ;;  %v13157_v10 = vld [vmem:[#allocation30_spill] sm:$0xff] }
 0x26b   : > { %v8039_v43 = vadd.s32 %v1411_v21, %v1407_v49  ;;  %v8041_v11 = vmul.f32 %v3146_v18, %v3144_v3  ;;  %v3290_v46 = vsub.s32 32, %v8013_v26  ;;  %v1395_v61 = vadd.s32 %v1389_v30, %v1385_v0 }
 0x26c   : > { %vm1415_vm15 = vc.u32 %v1407_v49, %v1411_v21  ;;  %v3295_v15 = vadd.s32 127, %v3294_v24  ;;  %v8044_v44 = vshrl.u32 %v1277_v63, 30  ;;  %v1394_v13 = vsel %vm1393_vm12, 1, %v13044_v9 }
 0x26d   : > { %v12842_v38 = vshll.u32 %v8026_v59, 16  ;;  %v1388_v56 = vmul.u32 %v1384_v57, %v1382_v45  ;;  %v1391_v12 = vshll.u32 %v8028_v29, 16  ;;  %v12850_v17 = vand.u32 2147483647, %v7856_v28 }
 0x26e   : > { %13156 = vst [vmem:[#allocation6_spill] sm:$0xff] %v8044_v44  ;;  %v3672_v37 = vshrl.u32 %v13135_v54, %v8030_v33  ;;  %v1416_v30 = vsel %vm1415_vm15, 1, %v13044_v9  ;;  %v3669_v50 = vshrl.u32 %v13134_v19, %v8030_v33  ;;  %v8061_v21 = vadd.f32 %v544_v52, %v13157_v10 }
 0x26f   : > { %vm1419_vm6 = vc.u32 %v8039_v43, %v12842_v38  ;;  %v1396_v16 = vadd.s32 %v1394_v13, %v1388_v56  ;;  %vm8063_vm4 = vc.u32 %v1395_v61, %v1391_v12  ;;  %v1410_v3 = vmul.u32 %v1406_v6, %v1382_v45  ;;  %v13162_v6 = vld [vmem:[#allocation9_spill] sm:$0xff] }
 0x270   : > { %13158 = vst [vmem:[#allocation20_spill] sm:$0xff] %v8061_v21  ;;  %v3671_v0 = vshll.u32 %v13134_v19, %v3656_v23  ;;  %v8070_v24 = vshrl.u32 %v3654_v58, 5  ;;  %v3663_v63 = vshrl.u32 %v13137_v2, %v8030_v33  ;;  %v13161_v49 = vmov 2102212464  }
 0x271   : > { %v3666_v18 = vshrl.u32 %v13161_v49, %v8030_v33  ;;  %v3668_v52 = vshll.u32 %v13161_v49, %v3656_v23  ;;  %v1418_v13 = vadd.s32 %v1416_v30, %v1410_v3  ;;  %v1420_v61 = vsel %vm1419_vm6, 1, %v13044_v9 }
 0x272   : > { %v3660_v56 = vshrl.u32 %v13136_v20, %v8030_v33  ;;  %v3673_v4 = vor.u32 %v3672_v37, %v3671_v0  ;;  %vm3028_vm5 = vcmp.lt.s32.totalorder %v13162_v6, 0  ;;  %v3662_v58 = vshll.u32 %v13136_v20, %v3656_v23 }
 0x273   : > { %v3665_v45 = vshll.u32 %v13137_v2, %v3656_v23  ;;  %v3670_v12 = vor.u32 %v3669_v50, %v3668_v52  ;;  %v3799_v10 = vand.u32 2139095040, %v8061_v21  ;;  %v3148_v51 = vxor.u32 2147483648, %v8041_v11 }
 0x274   : > { %v1279_v38 = vshll.u32 %v8044_v44, 30  ;;  %v1398_v30 = vsel %vm8063_vm4, 1, %v13044_v9  ;;  %v3659_v3 = vshll.u32 %v13043_v34, %v3656_v23  ;;  %v3649_v37 = vand.u32 8388607, %v12850_v17 }
 0x275   : > { %v8092_v0 = vor.u32 %v3663_v63, %v3662_v58  ;;  %v8094_v14 = vor.u32 %v3666_v18, %v3665_v45  ;;  %vm3677_vm13 = vcmp.lt.s32.totalorder %v8070_v24, 4  ;;  %v3292_v50 = vshrl.u32 %v3274_v7, %v3290_v46  ;;  %v13163_v7 = vld [vmem:[#allocation21_spill] sm:$0xff] }
 0x276   : > { %v1422_v52 = vadd.s32 %v1420_v61, %v1418_v13  ;;  %v8097_v31 = vor.u32 %v3660_v56, %v3659_v3  ;;  %v3687_v44 = vsel %vm3677_vm13, %v3673_v4, 1326507024  ;;  %v3296_v57 = vshll.u32 %v3295_v15, 23 }
 0x277   : > { %v1400_v32 = vadd.s32 %v1398_v30, %v1396_v16  ;;  %v3683_v23 = vsel %vm3677_vm13, %v3670_v12, 920167782  ;;  %v3800_v28 = vshrl.u32 %v3799_v10, 23  ;;  %v8104_v63 = vsub.s32 %v8010_v62, %v1279_v38 }
 0x278   : > { %v1412_v18 = vshrl.u32 %v7999_v55, 16  ;;  %vm3674_vm14 = vcmp.lt.s32.totalorder %v8070_v24, 1  ;;  %vm3676_vm9 = vcmp.lt.s32.totalorder %v8070_v24, 3  ;;  %vm3477_vm0 = vweird.f32 %v13163_v7 }
 0x279   : > { %v13164_v46 = vand.u32 2147483647, %v13162_v6  ;;  %v1390_v16 = vshrl.u32 %v7994_v25, 16  ;;  %v3650_v13 = vor.u32 8388608, %v3649_v37  ;;  %v3686_v55 = vsel %vm3674_vm14, %v8092_v0, %v8094_v14 }
 0x27a   : > { %v3688_v62 = vsel %vm3676_vm9, %v3670_v12, %v3687_v44  ;;  %v3291_v38 = vshll.u32 %v7861_v48, %v8013_v26  ;;  %v1423_v61 = vadd.s32 %v1422_v52, %v1412_v18  ;;  %v3682_v56 = vsel %vm3674_vm14, %v8097_v31, %v8092_v0 }
 0x27b   : > { %vm8112_vm10 = vcmp.le.f32.partialorder %v13164_v46, 0.7853982  ;;  %v3684_v25 = vsel %vm3676_vm9, %v8094_v14, %v3683_v23  ;;  %v3297_v4 = vor.u32 4788187, %v3296_v57  ;;  %v1401_v58 = vadd.s32 %v1400_v32, %v1390_v16 }
 0x27c   : > { %vm3675_vm8 = vcmp.lt.s32.totalorder %v8070_v24, 2  ;;  %v5856_v45 = vadd.s32 4294967169, %v3800_v28  ;;  %v3149_v44 = vsel %vm3028_vm5, %v3148_v51, %v8041_v11  ;;  %v3293_v48 = vor.u32 %v3292_v50, %v3291_v38  ;;  %v13167_v51 = vld [vmem:[#allocation27_spill] sm:$0xff]  ;;  %v13168_v50 = vld [vmem:[#allocation16_spill] sm:$0xff] }
 0x27d   : > { %v1414_v26 = vshrl.u32 %v8026_v59, 16  ;;  %v8139_v12 = vsel %vm3675_vm8, %v3686_v55, %v3688_v62  ;;  %v1282_v10 = vsub.s32 0, %v8104_v63  ;;  %v1392_v30 = vshrl.u32 %v8028_v29, 16 }
 0x27e   : > { %v8145_v32 = vsel %vm3675_vm8, %v3682_v56, %v3684_v25  ;;  %v8147_v28 = vshll.u32 %v3650_v13, 8  ;;  %vm1281_vm7 = vcmp.lt.s32.totalorder %v8104_v63, 0  ;;  %v1348_v11 = vshrl.u32 %v13043_v34, %v13167_v51 }
 0x27f   : > { %v1369_v3 = vsel %vm1367_vm2, %v7897_v42, 2102212464  ;;  %v1424_v37 = vadd.s32 %v1423_v61, %v1414_v26  ;;  %vm3182_vm12 = vcmp.lt.s32.totalorder %v13168_v50, 0  ;;  %v3298_v52 = vand.u32 2147483647, %v3297_v4 }
 0x280   : > { %v8156_v29 = vadd.s32 %v1401_v58, %v1392_v30  ;;  %v3694_v57 = vshrl.u32 %v8139_v12, 16  ;;  %v3806_v23 = vadd.s32 1, %v5856_v45  ;;  %v3626_v18 = vmul.f32 %v8035_v39, %v7971_v53 }
 0x281   : > { %v3300_v46 = vcvt.s32.f32 %v3293_v48  ;;  %v1368_v16 = vsel %vm1364_vm3, %v1348_v11, %v7902_v60  ;;  %v3716_v13 = vshrl.u32 %v8145_v32, 16  ;;  %v1283_v42 = vsel %vm1281_vm7, %v1282_v10, %v8104_v63 }
 0x282   : > { %v1370_v55 = vsel %vm1366_vm1, %v7895_v40, %v1369_v3  ;;  %v13169_v62 = vshll.u32 %v8026_v59, 16  ;;  %v3691_v39 = vand.u32 65535, %v8147_v28  ;;  %v8178_v61 = vsel %vm3477_vm0, nan, %v8021_v27 }
 0x283   : > { %13171 = vst [vmem:[#allocation22_spill] sm:$0xff] %v8178_v61  ;;  %v13172_v60 = vsub.s32 4, %v7683_v35  ;;  %v8188_v40 = vsel %vm8112_vm10, %v13162_v6, %v3149_v44  ;;  %v13173_v59 = vand.u32 2147483647, %v13168_v50  ;;  %v1428_v7 = vadd.s32 1, %v1424_v37 }
 0x284   : > { %v8172_v38 = vadd.s32 %v8039_v43, %v13169_v62  ;;  %v3301_v27 = vmul.f32 %v3300_v46, %v3298_v52  ;;  %v8200_v25 = vmul.u32 %v3694_v57, %v3691_v39  ;;  %vm3807_vm1 = vcmp.gt.s32.totalorder %v3806_v23, 0 }
 0x285   : > { %v3151_v56 = vsel %vm3028_vm5, %v13172_v60, %v7683_v35  ;;  %vm8192_vm2 = vcmp.le.f32.partialorder %v13173_v59, 0.7853982  ;;  %v13176_v35 = vld [vmem:[#allocation11_spill] sm:$0xff]  ;;  %v1284_v58 = vclz %v1283_v42  ;;  %v1371_v45 = vsel %vm1365_vm11, %v1368_v16, %v1370_v55 }
 0x286   : > { %13170 = vst [vmem:[#allocation15_spill] sm:$0xff] %v8172_v38  ;;  %vm1427_vm3 = vc.u32 %v8156_v29, %v8172_v38  ;;  %v3304_v4 = vsub.s32 4, %v13176_v35  ;;  %v8207_v44 = vmul.u32 %v3716_v13, %v3691_v39  ;;  %v3620_v48 = vadd.f32 -0.4999988, %v8033_v36 }
 0x287   : > { %v3627_v26 = vadd.f32 -0.16666654, %v3626_v18  ;;  %v3153_v10 = vsel %vm8112_vm10, 0, %v3151_v56  ;;  %v3693_v30 = vand.u32 65535, %v8139_v12  ;;  %v8215_v51 = vmul.f32 %v8188_v40, %v8188_v40 }
 0x288   : > { %v1429_v11 = vsel %vm1427_vm3, %v1428_v7, %v1424_v37  ;;  %v3715_v1 = vand.u32 65535, %v8145_v32  ;;  %v3808_v3 = vsel %vm3807_vm1, %v3806_v23, 0  ;;  %v3302_v52 = vxor.u32 2147483648, %v3301_v27 }
 0x289   : > { %v1425_v46 = vmul.u32 %v7954_v22, %v1371_v45  ;;  %v3692_v16 = vshrl.u32 %v8147_v28, 16  ;;  %v3699_v36 = vshll.u32 %v8200_v25, 16  ;;  %v8221_v18 = vand.u32 3, %v3153_v10 }
 0x28a   : > { %v8226_v15 = vsel %vm3182_vm12, %v3304_v4, %v13176_v35  ;;  %v5806_v42 = vadd.s32 4294967294, %v1284_v58  ;;  %v3721_v37 = vshll.u32 %v8207_v44, 16  ;;  %v3695_v23 = vmul.u32 %v3693_v30, %v3691_v39 }
 0x28b   : > { %13177 = vst [vmem:[#allocation17_spill] sm:$0xff] %v8221_v18  ;;  %v8229_v55 = vadd.s32 %v1429_v11, %v1425_v46  ;;  %v8231_v62 = vmul.u32 %v3693_v30, %v3692_v16  ;;  %v3810_v22 = vand.u32 31, %v3808_v3  ;;  %v3621_v60 = vmul.f32 %v3620_v48, %v7971_v53 }
 0x28c   : > { %v3628_v56 = vmul.f32 %v3627_v26, %v7971_v53  ;;  %v3717_v59 = vmul.u32 %v3715_v1, %v3691_v39  ;;  %v8235_v7 = vmul.u32 %v3715_v1, %v3692_v16  ;;  %v3155_v45 = vmul.f32 -0.001358992, %v8215_v51 }
 0x28d   : > { %v3303_v35 = vsel %vm3182_vm12, %v3302_v52, %v3301_v27  ;;  %v3705_v58 = vadd.s32 %v3699_v36, %v3695_v23  ;;  %v3162_v10 = vmul.f32 -0.00019511016, %v8215_v51  ;;  %vm5807_vm11 = vcmp.lt.s32.totalorder %v5806_v42, 0 }
 0x28e   : > { %vm3703_vm15 = vc.u32 %v3695_v23, %v3699_v36  ;;  %v8244_v48 = vadd.s32 %v3721_v37, %v3717_v59  ;;  %v1431_v53 = vadd.s32 536870912, %v8229_v55  ;;  %v3701_v39 = vshll.u32 %v8231_v62, 16 }
 0x28f   : > { %vm3725_vm6 = vc.u32 %v3717_v59, %v3721_v37  ;;  %v8248_v26 = vsub.s32 32, %v3810_v22  ;;  %v8250_v30 = vadd.f32 1.0, %v3621_v60  ;;  %v8252_v27 = vadd.f32 1.0, %v3628_v56 }
 0x290   : > { %v8257_v11 = vsel %vm8192_vm2, %v13168_v50, %v3303_v35  ;;  %v12851_v1 = vshll.u32 %v8235_v7, 16  ;;  %v8260_v52 = vadd.f32 0.041655596, %v3155_v45  ;;  %v8262_v46 = vsel %vm5807_vm11, 0, %v5806_v42  ;;  %v458_v50 = vpop.f32.mrf.mxu0 }
 0x291   : > { %13178 = vst [vmem:[#allocation8_spill] sm:$0xff] %v8248_v26  ;;  %v3704_v36 = vsel %vm3703_vm15, 1, %v13044_v9  ;;  %vm3707_vm4 = vc.u32 %v3705_v58, %v3701_v39  ;;  %v8265_v37 = vadd.f32 0.008332121, %v3162_v10  ;;  %v3698_v23 = vmul.u32 %v3694_v57, %v3692_v16 }
 0x292   : > { %v3726_v60 = vsel %vm3725_vm6, 1, %v13044_v9  ;;  %vm3729_vm5 = vc.u32 %v8244_v48, %v12851_v1  ;;  %v8275_v56 = vmul.f32 %v8257_v11, %v8257_v11  ;;  %v8277_v42 = vshrl.u32 %v1431_v53, 30 }
 0x293   : > { %v3720_v59 = vmul.u32 %v3716_v13, %v3692_v16  ;;  %v3823_v45 = vshrl.u32 %v13134_v19, %v8248_v26  ;;  %v1292_v12 = vsub.s32 4294967266, %v8262_v46  ;;  %v3706_v57 = vadd.s32 %v3704_v36, %v3698_v23 }
 0x294   : > { %13179 = vst [vmem:[#allocation30_spill] sm:$0xff] %v8277_v42  ;;  %v3708_v35 = vsel %vm3707_vm4, 1, %v13044_v9  ;;  %v3730_v39 = vsel %vm3729_vm5, 1, %v13044_v9  ;;  %v3814_v53 = vshrl.u32 %v13136_v20, %v8248_v26  ;;  %v3822_v17 = vshll.u32 %v13161_v49, %v3810_v22 }
 0x295   : > { %v3728_v10 = vadd.s32 %v3726_v60, %v3720_v59  ;;  %v8290_v32 = vshrl.u32 %v3808_v3, 5  ;;  %v3817_v13 = vshrl.u32 %v13137_v2, %v8248_v26  ;;  %v3820_v16 = vshrl.u32 %v13161_v49, %v8248_v26 }
 0x296   : > { %v3826_v36 = vshrl.u32 %v13135_v54, %v8248_v26  ;;  %v3316_v23 = vmul.f32 -0.00019511016, %v8275_v56  ;;  %v1433_v60 = vshll.u32 %v8277_v42, 30  ;;  %v3813_v59 = vshll.u32 %v13043_v34, %v3810_v22 }
 0x297   : > { %v3824_v4 = vor.u32 %v3823_v45, %v3822_v17  ;;  %v1293_v1 = vadd.s32 127, %v1292_v12  ;;  %v3816_v3 = vshll.u32 %v13136_v20, %v3810_v22  ;;  %v3819_v58 = vshll.u32 %v13137_v2, %v3810_v22 }
 0x298   : > { %v3825_v61 = vshll.u32 %v13134_v19, %v3810_v22  ;;  %v3710_v6 = vadd.s32 %v3708_v35, %v3706_v57  ;;  %v3732_v18 = vadd.s32 %v3730_v39, %v3728_v10  ;;  %v13180_v49 = vand.u32 2147483647, %v8061_v21  ;;  %v13181_v57 = vld [vmem:[#allocation13_spill] sm:$0xff] }
 0x299   : > { %v8306_v54 = vor.u32 %v3814_v53, %v3813_v59  ;;  %v8308_v38 = vor.u32 %v3817_v13, %v3816_v3  ;;  %v8310_v42 = vor.u32 %v3820_v16, %v3819_v58  ;;  %vm3831_vm0 = vcmp.lt.s32.totalorder %v8290_v32, 4 }
 0x29a   : > { %v3803_v26 = vand.u32 8388607, %v13180_v49  ;;  %v3827_v17 = vor.u32 %v3826_v36, %v3825_v61  ;;  %v8314_v45 = vsub.s32 %v8229_v55, %v1433_v60  ;;  %v3722_v22 = vshrl.u32 %v8207_v44, 16 }
 0x29b   : > { %v3837_v12 = vsel %vm3831_vm0, %v3824_v4, 920167782  ;;  %v8320_v35 = vadd.f32 %v458_v50, %v13181_v57  ;;  %v1272_v49 = vadd.s32 %v7967_v8, %v7942_v41  ;;  %v1288_v58 = vsub.s32 32, %v8262_v46 }
 0x29c   : > { %v1294_v10 = vshll.u32 %v1293_v1, 23  ;;  %v3700_v61 = vshrl.u32 %v8200_v25, 16  ;;  %v3733_v39 = vadd.s32 %v3732_v18, %v3722_v22  ;;  %v3804_v53 = vor.u32 8388608, %v3803_v26 }
 0x29d   : > { %13182 = vst [vmem:[#allocation21_spill] sm:$0xff] %v8320_v35  ;;  %vm3828_vm10 = vcmp.lt.s32.totalorder %v8290_v32, 1  ;;  %vm3830_vm7 = vcmp.lt.s32.totalorder %v8290_v32, 3  ;;  %v3841_v8 = vsel %vm3831_vm0, %v3827_v17, 1326507024  ;;  %v1436_v25 = vsub.s32 0, %v8314_v45 }
 0x29e   : > { %v3711_v44 = vadd.s32 %v3710_v6, %v3700_v61  ;;  %v3836_v50 = vsel %vm3828_vm10, %v8306_v54, %v8308_v38  ;;  %v3838_v41 = vsel %vm3830_vm7, %v8310_v42, %v3837_v12  ;;  %v3658_v18 = vshrl.u32 %v13043_v34, %v8030_v33 }
 0x29f   : > { %v3724_v55 = vshrl.u32 %v8235_v7, 16  ;;  %v1489_v6 = vand.u32 2139095040, %v8320_v35  ;;  %vm1435_vm12 = vcmp.lt.s32.totalorder %v8314_v45, 0  ;;  %v3679_v26 = vsel %vm3677_vm13, %v8094_v14, 2102212464 }
 0x2a0   : > { %v3702_v1 = vshrl.u32 %v8231_v62, 16  ;;  %vm3829_vm3 = vcmp.lt.s32.totalorder %v8290_v32, 2  ;;  %v3840_v33 = vsel %vm3828_vm10, %v8308_v38, %v8310_v42  ;;  %v3842_v36 = vsel %vm3830_vm7, %v3824_v4, %v3841_v8 }
 0x2a1   : > { %v3734_v13 = vadd.s32 %v3733_v39, %v3724_v55  ;;  %v8350_v16 = vsel %vm3829_vm3, %v3836_v50, %v3838_v41  ;;  %v3164_v14 = vmul.f32 %v8265_v37, %v8215_v51  ;;  %v3317_v60 = vadd.f32 0.008332121, %v3316_v23 }
 0x2a2   : > { %v8360_v62 = vadd.s32 %v3711_v44, %v3702_v1  ;;  %v8362_v59 = vshll.u32 %v3804_v53, 8  ;;  %v1290_v3 = vshrl.u32 %v1272_v49, %v1288_v58  ;;  %v1437_v17 = vsel %vm1435_vm12, %v1436_v25, %v8314_v45 }
 0x2a3   : > { %v3678_v22 = vsel %vm3674_vm14, %v3658_v18, %v8097_v31  ;;  %v1490_v12 = vshrl.u32 %v1489_v6, 23  ;;  %v3680_v4 = vsel %vm3676_vm9, %v8092_v0, %v3679_v26  ;;  %v13183_v61 = vshll.u32 %v8235_v7, 16 }
 0x2a4   : > { %v8378_v23 = vsel %vm3829_vm3, %v3840_v33, %v3842_v36  ;;  %v3870_v49 = vshrl.u32 %v8350_v16, 16  ;;  %v3309_v58 = vmul.f32 -0.001358992, %v8275_v56  ;;  %v1289_v31 = vshll.u32 %v8104_v63, %v8262_v46 }
 0x2a5   : > { %v8374_v37 = vadd.s32 %v8244_v48, %v13183_v61  ;;  %v1295_v39 = vor.u32 4788187, %v1294_v10  ;;  %v3738_v53 = vadd.s32 1, %v3734_v13  ;;  %vm3637_vm13 = vcmp.eq.s32.totalorder %v8001_v5, 2  ;;  %v8423_v61 = vpop.permute.xlu2 %365 }
 0x2a6   : > { %v3318_v0 = vmul.f32 %v3317_v60, %v8275_v56  ;;  %v1438_v7 = vclz %v1437_v17  ;;  %v3845_v48 = vand.u32 65535, %v8362_v59  ;;  %v1291_v44 = vor.u32 %v1290_v3, %v1289_v31  ;;  %v13185_v3 = vld [vmem:[#allocation12_spill] sm:$0xff]  ;;  %13186 = vst [vmem:[#allocation27_spill] sm:$0xff] %v8423_v61 }
 0x2a7   : > { %vm3737_vm14 = vc.u32 %v8360_v62, %v8374_v37  ;;  %v3681_v50 = vsel %vm3675_vm8, %v3678_v22, %v3680_v4  ;;  %v3848_v41 = vshrl.u32 %v8378_v23, 16  ;;  %v5811_v8 = vadd.s32 4294967169, %v1490_v12 }
 0x2a8   : > { %v8394_v63 = vmul.f32 %v8252_v27, %v7940_v47  ;;  %v3157_v46 = vmul.f32 %v8260_v52, %v8215_v51  ;;  %v13184_v10 = vsel %vm8192_vm2, 0, %v8226_v15  ;;  %v8406_v24 = vmul.u32 %v3870_v49, %v3845_v48 }
 0x2a9   : > { %v8402_v25 = vand.u32 3, %v13184_v10  ;;  %v3638_v18 = vxor.u32 2147483648, %v8250_v30  ;;  %v3165_v55 = vadd.f32 -0.16666654, %v3164_v14  ;;  %v1296_v6 = vand.u32 2147483647, %v1295_v39 }
 0x2aa   : > { %v3739_v26 = vsel %vm3737_vm14, %v3738_v53, %v3734_v13  ;;  %v3310_v47 = vadd.f32 0.041655596, %v3309_v58  ;;  %v5809_v27 = vadd.s32 4294967294, %v1438_v7  ;;  %v3735_v1 = vmul.u32 %v8147_v28, %v3681_v50 }
 0x2ab   : > { %v3869_v52 = vand.u32 65535, %v8350_v16  ;;  %v3319_v43 = vadd.f32 -0.16666654, %v3318_v0  ;;  %v1298_v33 = vcvt.s32.f32 %v1291_v44  ;;  %v8413_v15 = vmul.u32 %v3848_v41, %v3845_v48 }
 0x2ac   : > { %v1496_v36 = vadd.s32 1, %v5811_v8  ;;  %v3158_v60 = vadd.f32 -0.4999988, %v3157_v46  ;;  %vm1180_vm9 = vcmp.lt.s32.totalorder %v13185_v3, 0  ;;  %v8416_v17 = vadd.s32 %v3739_v26, %v3735_v1 }
 0x2ad   : > { %v3846_v13 = vshrl.u32 %v8362_v59, 16  ;;  %v3875_v14 = vshll.u32 %v8406_v24, 16  ;;  %v3635_v28 = vxor.u32 2147483648, %v8394_v63  ;;  %v3166_v22 = vmul.f32 %v3165_v55, %v8215_v51 }
 0x2ae   : > { %v1299_v12 = vmul.f32 %v1298_v33, %v1296_v6  ;;  %v3847_v4 = vand.u32 65535, %v8378_v23  ;;  %v3311_v58 = vmul.f32 %v3310_v47, %v8275_v56  ;;  %vm5810_vm8 = vcmp.lt.s32.totalorder %v5809_v27, 0 }
 0x2af   : > { %v3871_v31 = vmul.u32 %v3869_v52, %v3845_v48  ;;  %v8426_v39 = vmul.u32 %v3869_v52, %v3846_v13  ;;  %v8431_v53 = vsel %vm3637_vm13, %v3638_v18, %v8394_v63  ;;  %v3320_v0 = vmul.f32 %v3319_v43, %v8275_v56 }
 0x2b0   : > { %v13187_v7 = vand.u32 2147483647, %v13185_v3  ;;  %v3853_v50 = vshll.u32 %v8413_v15, 16  ;;  %vm1497_vm1 = vcmp.gt.s32.totalorder %v1496_v36, 0  ;;  %vm3634_vm11 = vcmp.eq.s32.totalorder %v8001_v5, 0 }
 0x2b1   : > { %v3159_v8 = vmul.f32 %v3158_v60, %v8215_v51  ;;  %v3741_v46 = vadd.s32 536870912, %v8416_v17  ;;  %vm3879_vm15 = vc.u32 %v3871_v31, %v3875_v14  ;;  %v8444_v63 = vadd.s32 %v3875_v14, %v3871_v31 }
 0x2b2   : > { %vm8436_vm2 = vcmp.le.f32.partialorder %v13187_v7, 0.7853982  ;;  %v1300_v10 = vxor.u32 2147483648, %v1299_v12  ;;  %v8446_v18 = vsel %vm5810_vm8, 0, %v5809_v27  ;;  %v3849_v55 = vmul.u32 %v3847_v4, %v3845_v48 }
 0x2b3   : > { %v8448_v6 = vmul.u32 %v3847_v4, %v3846_v13  ;;  %v3167_v26 = vadd.f32 1.0, %v3166_v22  ;;  %v3312_v47 = vadd.f32 -0.4999988, %v3311_v58  ;;  %v12861_v1 = vshll.u32 %v8426_v39, 16 }
 0x2b4   : > { %v1498_v52 = vsel %vm1497_vm1, %v1496_v36, 0  ;;  %v3321_v43 = vadd.f32 1.0, %v3320_v0  ;;  %vm3857_vm6 = vc.u32 %v3849_v55, %v3853_v50  ;;  %v3859_v33 = vadd.s32 %v3853_v50, %v3849_v55  ;;  %v8476_v50 = vpop.permute.xlu2 %380  ;;  %v13191_v55 = vld [vmem:[#allocation15_spill] sm:$0xff] }
 0x2b5   : > { %v3880_v51 = vsel %vm3879_vm15, 1, %v13044_v9  ;;  %v1446_v60 = vsub.s32 4294967266, %v8446_v18  ;;  %v8453_v14 = vshrl.u32 %v3741_v46, 30  ;;  %v3874_v27 = vmul.u32 %v3870_v49, %v3846_v13  ;;  %13190 = vst [vmem:[#allocation11_spill] sm:$0xff] %v8476_v50 }
 0x2b6   : > { %vm3883_vm4 = vc.u32 %v8444_v63, %v12861_v1  ;;  %v8460_v48 = vadd.f32 1.0, %v3159_v8  ;;  %v1301_v36 = vsel %vm1180_vm9, %v1300_v10, %v1299_v12  ;;  %v3855_v22 = vshll.u32 %v8448_v6, 16 }
 0x2b7   : > { %v1500_v4 = vand.u32 31, %v1498_v52  ;;  %v8466_v58 = vmul.f32 %v3167_v26, %v8188_v40  ;;  %v3313_v31 = vmul.f32 %v3312_v47, %v8275_v56  ;;  %v3858_v16 = vsel %vm3857_vm6, 1, %v13044_v9 }
 0x2b8   : > { %v3882_v49 = vadd.s32 %v3880_v51, %v3874_v27  ;;  %v8471_v0 = vmul.f32 %v3321_v43, %v8257_v11  ;;  %v3852_v7 = vmul.u32 %v3848_v41, %v3846_v13  ;;  %vm3861_vm5 = vc.u32 %v3859_v33, %v3855_v22  ;;  %v523_v33 = vpop.f32.mrf.mxu1  ;;  %v8506_v27 = vpop.permute.xlu0 %5523 }
 0x2b9   : > { %v3884_v12 = vsel %vm3883_vm4, 1, %v13044_v9  ;;  %v8481_v40 = vsel %vm8436_vm2, %v13185_v3, %v1301_v36  ;;  %v1442_v56 = vsub.s32 32, %v8446_v18  ;;  %v1447_v8 = vadd.s32 127, %v1446_v60  ;;  %13192 = vst [vmem:[#allocation13_spill] sm:$0xff] %v8506_v27 }
 0x2ba   : > { %v3743_v46 = vshll.u32 %v8453_v14, 30  ;;  %v8488_v11 = vsel %vm3634_vm11, %v8250_v30, %v3635_v28  ;;  %v3860_v41 = vadd.s32 %v3858_v16, %v3852_v7  ;;  %v8491_v13 = vsub.s32 32, %v1500_v4 }
 0x2bb   : > { %v1426_v26 = vadd.s32 %v13191_v55, %v8156_v29  ;;  %v3862_v47 = vsel %vm3861_vm5, 1, %v13044_v9  ;;  %v3886_v43 = vadd.s32 %v3884_v12, %v3882_v49  ;;  %v8497_v51 = vadd.f32 1.0, %v3313_v31 }
 0x2bc   : > { %v8502_v30 = vmul.f32 %v8481_v40, %v8481_v40  ;;  %v1443_v28 = vshll.u32 %v8314_v45, %v8446_v18  ;;  %v1448_v22 = vshll.u32 %v1447_v8, 23  ;;  %v8509_v29 = vsub.s32 %v8416_v17, %v3743_v46  ;;  %v8537_v10 = vpop.permute.xlu2 %5518 }
 0x2bd   : > { %v1444_v36 = vshrl.u32 %v1426_v26, %v1442_v56  ;;  %v3876_v16 = vshrl.u32 %v8406_v24, 16  ;;  %v3864_v31 = vadd.s32 %v3862_v47, %v3860_v41  ;;  %v13193_v49 = vmov 2102212464   ;;  %v13196_v47 = vld [vmem:[#allocation17_spill] sm:$0xff]  ;;  %13197 = vst [vmem:[#allocation15_spill] sm:$0xff] %v8537_v10  ;;  %v13198_v56 = vld [vmem:[#allocation8_spill] sm:$0xff] }
 0x2be   : > { %v1512_v7 = vshll.u32 %v13193_v49, %v1500_v4  ;;  %v1513_v12 = vshrl.u32 %v13134_v19, %v8491_v13  ;;  %v8516_v55 = vadd.f32 %v523_v33, %v13181_v57  ;;  %v3854_v45 = vshrl.u32 %v8413_v15, 16 }
 0x2bf   : > { %v3887_v18 = vadd.s32 %v3886_v43, %v3876_v16  ;;  %v8520_v8 = vshrl.u32 %v1498_v52, 5  ;;  %v1503_v17 = vshll.u32 %v13043_v34, %v1500_v4  ;;  %v1506_v24 = vshll.u32 %v13136_v20, %v1500_v4 }
 0x2c0   : > { %13194 = vst [vmem:[#allocation12_spill] sm:$0xff] %v8516_v55  ;;  %v1515_v46 = vshll.u32 %v13134_v19, %v1500_v4  ;;  %v13195_v41 = vmov 1326507024   ;;  %vm3172_vm12 = vcmp.eq.s32.totalorder %v13196_v47, 0  ;;  %v1504_v57 = vshrl.u32 %v13136_v20, %v8491_v13 }
 0x2c1   : > { %v1516_v26 = vshrl.u32 %v13195_v41, %v8491_v13  ;;  %v1507_v15 = vshrl.u32 %v13137_v2, %v8491_v13  ;;  %v1509_v52 = vshll.u32 %v13137_v2, %v1500_v4  ;;  %v1510_v43 = vshrl.u32 %v13193_v49, %v8491_v13 }
 0x2c2   : > { %v3865_v33 = vadd.s32 %v3864_v31, %v3854_v45  ;;  %v3878_v16 = vshrl.u32 %v8426_v39, 16  ;;  %v1514_v23 = vor.u32 %v1513_v12, %v1512_v7  ;;  %v1643_v60 = vand.u32 2139095040, %v8516_v55 }
 0x2c3   : > { %vm3745_vm13 = vcmp.lt.s32.totalorder %v8509_v29, 0  ;;  %v3746_v1 = vsub.s32 0, %v8509_v29  ;;  %v3812_v50 = vshrl.u32 %v13043_v34, %v13198_v56  ;;  %v3833_v4 = vsel %vm3831_vm0, %v8310_v42, 2102212464 }
 0x2c4   : > { %vm3326_vm14 = vcmp.eq.s32.totalorder %v8402_v25, 0  ;;  %v3856_v31 = vshrl.u32 %v8448_v6, 16  ;;  %v3888_v7 = vadd.s32 %v3887_v18, %v3878_v16  ;;  %v13199_v12 = vand.u32 2147483647, %v8320_v35  ;;  %v8562_v16 = vpop.permute.xlu0 %5538  ;;  %v8615_v32 = vpop.permute.xlu2 %5533 }
 0x2c5   : > { %v1517_v27 = vor.u32 %v1516_v26, %v1515_v46  ;;  %v8550_v61 = vor.u32 %v1504_v57, %v1503_v17  ;;  %v8552_v10 = vor.u32 %v1507_v15, %v1506_v24  ;;  %v8554_v21 = vor.u32 %v1510_v43, %v1509_v52  ;;  %13200 = vst [vmem:[#allocation17_spill] sm:$0xff] %v8562_v16  ;;  %v13204_v15 = vld [vmem:[#allocation9_spill] sm:$0xff]  ;;  %v13205_v52 = vld [vmem:[#allocation16_spill] sm:$0xff] }
 0x2c6   : > { %v1493_v45 = vand.u32 8388607, %v13199_v12  ;;  %vm1521_vm8 = vcmp.lt.s32.totalorder %v8520_v8, 4  ;;  %vm3633_vm1 = vcmp.lt.s32.totalorder %v8001_v5, 2  ;;  %v1449_v42 = vor.u32 4788187, %v1448_v22 }
 0x2c7   : > { %v8558_v56 = vadd.s32 %v3865_v33, %v3856_v31  ;;  %v1527_v6 = vsel %vm1521_vm8, %v1514_v23, 920167782  ;;  %v1644_v18 = vshrl.u32 %v1643_v60, 23  ;;  %vm3175_vm0 = vcmp.eq.s32.totalorder %v13196_v47, 2  ;;  %13206 = vst [vmem:[#allocation8_spill] sm:$0xff] %v8615_v32 }
 0x2c8   : > { %v1445_v17 = vor.u32 %v1444_v36, %v1443_v28  ;;  %v3747_v24 = vsel %vm3745_vm13, %v3746_v1, %v8509_v29  ;;  %v3832_v46 = vsel %vm3828_vm10, %v3812_v50, %v8306_v54  ;;  %v3834_v22 = vsel %vm3830_vm7, %v8308_v38, %v3833_v4 }
 0x2c9   : > { %vm3171_vm11 = vcmp.lt.s32.totalorder %v13196_v47, 2  ;;  %v13201_v60 = vshll.u32 %v8426_v39, 16  ;;  %vm1518_vm15 = vcmp.lt.s32.totalorder %v8520_v8, 1  ;;  %vm1520_vm6 = vcmp.lt.s32.totalorder %v8520_v8, 3 }
 0x2ca   : > { %v1531_v1 = vsel %vm1521_vm8, %v1517_v27, 1326507024  ;;  %v3892_v28 = vadd.s32 1, %v3888_v7  ;;  %v1494_v54 = vor.u32 8388608, %v1493_v45  ;;  %v1526_v38 = vsel %vm1518_vm15, %v8550_v61, %v8552_v10 }
 0x2cb   : > { %v8578_v26 = vadd.s32 %v8444_v63, %v13201_v60  ;;  %v1528_v39 = vsel %vm1520_vm6, %v8554_v21, %v1527_v6  ;;  %v13202_v63 = vld [vmem:[#allocation25_spill] sm:$0xff]  ;;  %v13203_v50 = vxor.u32 2147483648, %v8466_v58  ;;  %v1450_v27 = vand.u32 2147483647, %v1449_v42 }
 0x2cc   : > { %vm3631_vm10 = vweird.f32 %v13202_v63  ;;  %v5814_v57 = vadd.s32 4294967169, %v1644_v18  ;;  %vm3169_vm4 = vweird.f32 %v13204_v15  ;;  %vm3323_vm5 = vweird.f32 %v13205_v52 }
 0x2cd   : > { %v3174_v36 = vsel %vm3172_vm12, %v8460_v48, %v13203_v50  ;;  %vm3891_vm7 = vc.u32 %v8558_v56, %v8578_v26  ;;  %v3835_v43 = vsel %vm3829_vm3, %v3832_v46, %v3834_v22  ;;  %vm1519_vm13 = vcmp.lt.s32.totalorder %v8520_v8, 2  ;;  %v5554_v50 = vpop.permute.xlu0 %5553 }
 0x2ce   : > { %v1530_v33 = vsel %vm1518_vm15, %v8552_v10, %v8554_v21  ;;  %v1532_v4 = vsel %vm1520_vm6, %v1514_v23, %v1531_v1  ;;  %v3330_v31 = vxor.u32 2147483648, %v8497_v51  ;;  %v1452_v12 = vcvt.s32.f32 %v1445_v17 }
 0x2cf   : > { %v3748_v45 = vclz %v3747_v24  ;;  %v8613_v42 = vsel %vm1519_vm13, %v1526_v38, %v1528_v39  ;;  %v13207_v6 = vxor.u32 2147483648, %v8471_v0  ;;  %v1314_v46 = vmul.f32 -0.00019511016, %v8502_v30 }
 0x2d0   : > { %v3893_v22 = vsel %vm3891_vm7, %v3892_v28, %v3888_v7  ;;  %v8623_v23 = vshll.u32 %v1494_v54, 8  ;;  %v1453_v60 = vmul.f32 %v1452_v12, %v1450_v27  ;;  %v3889_v17 = vmul.u32 %v8362_v59, %v3835_v43  ;;  %v13209_v27 = vld [vmem:[#allocation22_spill] sm:$0xff] }
 0x2d1   : > { %v3328_v18 = vsel %vm3326_vm14, %v8497_v51, %v13207_v6  ;;  %v8628_v24 = vsel %vm1519_vm13, %v1530_v33, %v1532_v4  ;;  %v1650_v1 = vadd.s32 1, %v5814_v57  ;;  %v3640_v38 = vsel %vm3633_vm1, %v8488_v11, %v8431_v53 }
 0x2d2   : > { %vm3325_vm3 = vcmp.lt.s32.totalorder %v8402_v25, 2  ;;  %vm3329_vm12 = vcmp.eq.s32.totalorder %v8402_v25, 2  ;;  %v12868_v51 = vshrl.u32 %v8613_v42, 16  ;;  %v13208_v7 = vxor.u32 2147483648, %v8460_v48 }
 0x2d3   : > { %v3331_v28 = vsel %vm3329_vm12, %v3330_v31, %v8471_v0  ;;  %v5854_v54 = vadd.s32 4294967294, %v3748_v45  ;;  %v8643_v39 = vadd.s32 %v3893_v22, %v3889_v17  ;;  %v1535_v25 = vand.u32 65535, %v8623_v23  ;;  %v13211_v0 = vld [vmem:[#allocation24_spill] sm:$0xff]  ;;  %v13216_v22 = vld [vmem:[#allocation6_spill] sm:$0xff] }
 0x2d4   : > { %v3177_v59 = vsel %vm3175_vm0, %v13208_v7, %v8466_v58  ;;  %v3332_v53 = vsel %vm3325_vm3, %v3328_v18, %v3331_v28  ;;  %v1538_v11 = vshrl.u32 %v8628_v24, 16  ;;  %v8650_v57 = vmul.f32 %v5554_v50, %v13209_v27 }
 0x2d5   : > { %v3178_v5 = vsel %vm3171_vm11, %v3174_v36, %v3177_v59  ;;  %v1315_v48 = vadd.f32 0.008332121, %v1314_v46  ;;  %v1454_v43 = vxor.u32 2147483648, %v1453_v60  ;;  %vm1651_vm14 = vcmp.gt.s32.totalorder %v1650_v1, 0 }
 0x2d6   : > { %13210 = vst [vmem:[#allocation25_spill] sm:$0xff] %v8650_v57  ;;  %v3641_v58 = vsel %vm3631_vm10, nan, %v3640_v38  ;;  %v13212_v33 = vand.u32 2147483647, %v13211_v0  ;;  %vm1334_vm0 = vcmp.lt.s32.totalorder %v13211_v0, 0  ;;  %v8663_v47 = vmul.u32 %v12868_v51, %v1535_v25  ;;  %v5549_v38 = vpop.permute.xlu2 %5548 }
 0x2d7   : > { %v3179_v36 = vsel %vm3169_vm4, nan, %v3178_v5  ;;  %v3333_v31 = vsel %vm3323_vm5, nan, %v3332_v53  ;;  %vm5855_vm11 = vcmp.lt.s32.totalorder %v5854_v54, 0  ;;  %v3895_v63 = vadd.s32 536870912, %v8643_v39 }
 0x2d8   : > { %vm8656_vm1 = vcmp.le.f32.partialorder %v13212_v33, 0.7853982  ;;  %v1307_v12 = vmul.f32 -0.001358992, %v8502_v30  ;;  %v8671_v45 = vmul.u32 %v1538_v11, %v1535_v25  ;;  %v1559_v6 = vand.u32 65535, %v8613_v42 }
 0x2d9   : > { %v1652_v18 = vsel %vm1651_vm14, %v1650_v1, 0  ;;  %v8674_v46 = vmul.f32 %v5554_v50, %v3641_v58  ;;  %v1302_v17 = vsub.s32 4, %v13216_v22  ;;  %v1316_v15 = vmul.f32 %v1315_v48, %v8502_v30 }
 0x2da   : > { %v1455_v52 = vsel %vm1334_vm0, %v1454_v43, %v1453_v60  ;;  %v8680_v7 = vsel %vm5855_vm11, 0, %v5854_v54  ;;  %v1536_v59 = vshrl.u32 %v8623_v23, 16  ;;  %v1537_v28 = vand.u32 65535, %v8628_v24 }
 0x2db   : > { %13215 = vst [vmem:[#allocation9_spill] sm:$0xff] %v8674_v46  ;;  %v1565_v5 = vshll.u32 %v8663_v47, 16  ;;  %v8685_v53 = vmul.f32 %v5549_v38, %v3179_v36  ;;  %v8687_v1 = vmul.f32 %v5549_v38, %v3333_v31  ;;  %v8689_v50 = vshrl.u32 %v3895_v63, 30 }
 0x2dc   : > { %v1654_v27 = vand.u32 31, %v1652_v18  ;;  %v1308_v48 = vadd.f32 0.041655596, %v1307_v12  ;;  %v1543_v58 = vshll.u32 %v8671_v45, 16  ;;  %v1561_v60 = vmul.u32 %v1559_v6, %v1535_v25 }
 0x2dd   : > { %13217 = vst [vmem:[#allocation16_spill] sm:$0xff] %v8685_v53  ;;  %v8692_v43 = vmul.u32 %v1559_v6, %v1536_v59  ;;  %v8697_v54 = vsel %vm1180_vm9, %v1302_v17, %v13216_v22  ;;  %v1317_v24 = vadd.f32 -0.16666654, %v1316_v15  ;;  %v8702_v33 = vsel %vm8656_vm1, %v13211_v0, %v1455_v52 }
 0x2de   : > { %13218 = vst [vmem:[#allocation22_spill] sm:$0xff] %v8687_v1  ;;  %v3752_v36 = vsub.s32 32, %v8680_v7  ;;  %v3756_v31 = vsub.s32 4294967266, %v8680_v7  ;;  %v1539_v63 = vmul.u32 %v1537_v28, %v1535_v25  ;;  %v8706_v12 = vmul.u32 %v1537_v28, %v1536_v59 }
 0x2df   : > { %13219 = vst [vmem:[#allocation24_spill] sm:$0xff] %v8689_v50  ;;  %v8708_v6 = vadd.s32 %v1565_v5, %v1561_v60  ;;  %v3736_v38 = vadd.s32 %v8374_v37, %v8360_v62  ;;  %v3897_v22 = vshll.u32 %v8689_v50, 30  ;;  %vm1569_vm9 = vc.u32 %v1561_v60, %v1565_v5 }
 0x2e0   : > { %v8713_v17 = vsub.s32 32, %v1654_v27  ;;  %v8719_v52 = vmul.f32 %v1308_v48, %v8502_v30  ;;  %v1549_v25 = vadd.s32 %v1543_v58, %v1539_v63  ;;  %v12869_v28 = vshll.u32 %v8692_v43, 16 }
 0x2e1   : > { %v8723_v51 = vmul.f32 %v1317_v24, %v8502_v30  ;;  %v8727_v62 = vmul.f32 %v8702_v33, %v8702_v33  ;;  %v3754_v37 = vshrl.u32 %v3736_v38, %v3752_v36  ;;  %vm1547_vm10 = vc.u32 %v1539_v63, %v1543_v58 }
 0x2e2   : > { %v3757_v5 = vadd.s32 127, %v3756_v31  ;;  %v1545_v60 = vshll.u32 %v8706_v12, 16  ;;  %v1570_v15 = vsel %vm1569_vm9, 1, %v13044_v9  ;;  %vm1573_vm7 = vc.u32 %v8708_v6, %v12869_v28 }
 0x2e3   : > { %v8735_v48 = vsub.s32 %v8643_v39, %v3897_v22  ;;  %v13220_v24 = vshrl.u32 %v8613_v42, 16  ;;  %v1667_v58 = vshrl.u32 %v13134_v19, %v8713_v17  ;;  %v1542_v36 = vmul.u32 %v1538_v11, %v1536_v59 }
 0x2e4   : > { %v1548_v31 = vsel %vm1547_vm10, 1, %v13044_v9  ;;  %vm1551_vm4 = vc.u32 %v1549_v25, %v1545_v60  ;;  %v1670_v63 = vshrl.u32 %v13195_v41, %v8713_v17  ;;  %v1574_v28 = vsel %vm1573_vm7, 1, %v13044_v9 }
 0x2e5   : > { %v1564_v46 = vmul.u32 %v13220_v24, %v1536_v59  ;;  %v8746_v39 = vshrl.u32 %v1652_v18, 5  ;;  %v1666_v42 = vshll.u32 %v13193_v49, %v1654_v27  ;;  %v1658_v22 = vshrl.u32 %v13136_v20, %v8713_v17 }
 0x2e6   : > { %v1661_v24 = vshrl.u32 %v13137_v2, %v8713_v17  ;;  %v1664_v11 = vshrl.u32 %v13193_v49, %v8713_v17  ;;  %v1669_v59 = vshll.u32 %v13134_v19, %v1654_v27  ;;  %v3758_v25 = vshll.u32 %v3757_v5, 23 }
 0x2e7   : > { %v1572_v38 = vadd.s32 %v1570_v15, %v1564_v46  ;;  %v1550_v60 = vadd.s32 %v1548_v31, %v1542_v36  ;;  %v1552_v46 = vsel %vm1551_vm4, 1, %v13044_v9  ;;  %v1668_v15 = vor.u32 %v1667_v58, %v1666_v42 }
 0x2e8   : > { %v1657_v18 = vshll.u32 %v13043_v34, %v1654_v27  ;;  %v1660_v1 = vshll.u32 %v13136_v20, %v1654_v27  ;;  %v1663_v57 = vshll.u32 %v13137_v2, %v1654_v27  ;;  %v1671_v53 = vor.u32 %v1670_v63, %v1669_v59 }
 0x2e9   : > { %v3753_v16 = vshll.u32 %v8509_v29, %v8680_v7  ;;  %v3900_v32 = vsub.s32 0, %v8735_v48  ;;  %v1576_v35 = vadd.s32 %v1574_v28, %v1572_v38  ;;  %v13221_v50 = vand.u32 2147483647, %v8516_v55 }
 0x2ea   : > { %v8765_v36 = vor.u32 %v1658_v22, %v1657_v18  ;;  %v8767_v31 = vor.u32 %v1661_v24, %v1660_v1  ;;  %v8769_v58 = vor.u32 %v1664_v11, %v1663_v57  ;;  %vm1675_vm5 = vcmp.lt.s32.totalorder %v8746_v39, 4 }
 0x2eb   : > { %v1647_v5 = vand.u32 8388607, %v13221_v50  ;;  %v1468_v27 = vmul.f32 -0.00019511016, %v8727_v62  ;;  %vm3899_vm3 = vcmp.lt.s32.totalorder %v8735_v48, 0  ;;  %v1554_v63 = vadd.s32 %v1552_v46, %v1550_v60 }
 0x2ec   : > { %v1681_v29 = vsel %vm1675_vm5, %v1668_v15, 920167782  ;;  %v3755_v7 = vor.u32 %v3754_v37, %v3753_v16  ;;  %v3759_v28 = vor.u32 4788187, %v3758_v25  ;;  %v1566_v50 = vshrl.u32 %v8663_v47, 16 }
 0x2ed   : > { %v1685_v1 = vsel %vm1675_vm5, %v1671_v53, 1326507024  ;;  %v1544_v57 = vshrl.u32 %v8671_v45, 16  ;;  %v1648_v38 = vor.u32 8388608, %v1647_v5  ;;  %vm1672_vm12 = vcmp.lt.s32.totalorder %v8746_v39, 1 }
 0x2ee   : > { %vm1674_vm14 = vcmp.lt.s32.totalorder %v8746_v39, 3  ;;  %v3901_v42 = vsel %vm3899_vm3, %v3900_v32, %v8735_v48  ;;  %v1577_v22 = vadd.s32 %v1576_v35, %v1566_v50  ;;  %v1680_v16 = vsel %vm1672_vm12, %v8765_v36, %v8767_v31 }
 0x2ef   : > { %v1682_v47 = vsel %vm1674_vm14, %v8769_v58, %v1681_v29  ;;  %v1469_v53 = vadd.f32 0.008332121, %v1468_v27  ;;  %v1555_v37 = vadd.s32 %v1554_v63, %v1544_v57  ;;  %v1684_v45 = vsel %vm1672_vm12, %v8767_v31, %v8769_v58  ;;  %v482_v27 = vpop.f32.mrf.mxu2 }
 0x2f0   : > { %v1686_v32 = vsel %vm1674_vm14, %v1668_v15, %v1685_v1  ;;  %v3760_v35 = vand.u32 2147483647, %v3759_v28  ;;  %v1502_v24 = vshrl.u32 %v13043_v34, %v8491_v13  ;;  %v1568_v11 = vshrl.u32 %v8692_v43, 16 }
 0x2f1   : > { %vm1673_vm11 = vcmp.lt.s32.totalorder %v8746_v39, 2  ;;  %v3762_v59 = vcvt.s32.f32 %v3755_v7  ;;  %v3902_v25 = vclz %v3901_v42  ;;  %v1546_v60 = vshrl.u32 %v8706_v12, 16 }
 0x2f2   : > { %v8803_v46 = vsel %vm1673_vm11, %v1680_v16, %v1682_v47  ;;  %v1523_v15 = vsel %vm1521_vm8, %v8554_v21, 2102212464  ;;  %v1578_v18 = vadd.s32 %v1577_v22, %v1568_v11  ;;  %v8810_v13 = vsel %vm1673_vm11, %v1684_v45, %v1686_v32  ;;  %v13228_v45 = vld [vmem:[#allocation30_spill] sm:$0xff]  ;;  %v13229_v32 = vld [vmem:[#allocation19_spill] sm:$0xff] }
 0x2f3   : > { %v8812_v5 = vshll.u32 %v1648_v38, 8  ;;  %v1310_v63 = vadd.f32 -0.4999988, %v8719_v52  ;;  %v1319_v12 = vadd.f32 1.0, %v8723_v51  ;;  %v13222_v29 = vsel %vm8436_vm2, 0, %v8697_v54  ;;  %v13226_v38 = vld [vmem:[#allocation18_spill] sm:$0xff] }
 0x2f4   : > { %v8820_v7 = vand.u32 3, %v13222_v29  ;;  %v8822_v28 = vadd.s32 %v1555_v37, %v1546_v60  ;;  %v1461_v21 = vmul.f32 -0.001358992, %v8727_v62  ;;  %v3763_v50 = vmul.f32 %v3762_v59, %v3760_v35 }
 0x2f5   : > { %v1522_v1 = vsel %vm1518_vm15, %v1502_v24, %v8550_v61  ;;  %v1714_v57 = vshrl.u32 %v8803_v46, 16  ;;  %v1524_v51 = vsel %vm1520_vm6, %v8552_v10, %v1523_v15  ;;  %v13224_v44 = vshll.u32 %v8692_v43, 16 }
 0x2f6   : > { %13223 = vst [vmem:[#allocation6_spill] sm:$0xff] %v8822_v28  ;;  %v1692_v52 = vshrl.u32 %v8810_v13, 16  ;;  %v8839_v42 = vadd.f32 %v482_v27, %v13226_v38  ;;  %v1470_v22 = vmul.f32 %v1469_v53, %v8727_v62  ;;  %v5857_v16 = vadd.s32 4294967294, %v3902_v25 }
 0x2f7   : > { %v8835_v54 = vadd.s32 %v8708_v6, %v13224_v44  ;;  %v1582_v61 = vadd.s32 1, %v1578_v18  ;;  %v1689_v47 = vand.u32 65535, %v8812_v5  ;;  %v1311_v37 = vmul.f32 %v1310_v63, %v8502_v30 }
 0x2f8   : > { %13227 = vst [vmem:[#allocation18_spill] sm:$0xff] %v8839_v42  ;;  %v1456_v10 = vsub.s32 4, %v13228_v45  ;;  %v13230_v43 = vand.u32 2147483647, %v13229_v32  ;;  %v1320_v35 = vmul.f32 %v1319_v12, %v8481_v40  ;;  %v3764_v53 = vxor.u32 2147483648, %v3763_v50 }
 0x2f9   : > { %13225 = vst [vmem:[#allocation32_spill] sm:$0xff] %v8835_v54  ;;  %vm1581_vm8 = vc.u32 %v8822_v28, %v8835_v54  ;;  %v1525_v24 = vsel %vm1519_vm13, %v1522_v1, %v1524_v51  ;;  %v8858_v30 = vmul.u32 %v1714_v57, %v1689_v47  ;;  %vm1324_vm15 = vcmp.eq.s32.totalorder %v8820_v7, 0 }
 0x2fa   : > { %vm8847_vm2 = vcmp.le.f32.partialorder %v13230_v43, 0.7853982  ;;  %v1462_v11 = vadd.f32 0.041655596, %v1461_v21  ;;  %vm3644_vm6 = vcmp.lt.s32.totalorder %v13229_v32, 0  ;;  %v8864_v59 = vmul.u32 %v1692_v52, %v1689_v47 }
 0x2fb   : > { %v3953_v25 = vand.u32 2139095040, %v8839_v42  ;;  %v1471_v40 = vadd.f32 -0.16666654, %v1470_v22  ;;  %vm5858_vm9 = vcmp.lt.s32.totalorder %v5857_v16, 0  ;;  %v1583_v60 = vsel %vm1581_vm8, %v1582_v61, %v1578_v18 }
 0x2fc   : > { %v1713_v8 = vand.u32 65535, %v8803_v46  ;;  %v1312_v15 = vadd.f32 1.0, %v1311_v37  ;;  %v1457_v27 = vsel %vm1334_vm0, %v1456_v10, %v13228_v45  ;;  %v1579_v63 = vmul.u32 %v8623_v23, %v1525_v24 }
 0x2fd   : > { %v1691_v12 = vand.u32 65535, %v8810_v13  ;;  %v1325_v29 = vxor.u32 2147483648, %v1320_v35  ;;  %v3765_v21 = vsel %vm3644_vm6, %v3764_v53, %v3763_v50  ;;  %v1690_v1 = vshrl.u32 %v8812_v5, 16 }
 0x2fe   : > { %v1719_v51 = vshll.u32 %v8858_v30, 16  ;;  %vm1327_vm13 = vcmp.eq.s32.totalorder %v8820_v7, 2  ;;  %v8878_v18 = vsel %vm5858_vm9, 0, %v5857_v16  ;;  %v8880_v44 = vadd.s32 %v1583_v60, %v1579_v63 }
 0x2ff   : > { %v1697_v22 = vshll.u32 %v8864_v59, 16  ;;  %v3954_v61 = vshrl.u32 %v3953_v25, 23  ;;  %v1463_v23 = vmul.f32 %v1462_v11, %v8727_v62  ;;  %v1472_v37 = vmul.f32 %v1471_v40, %v8727_v62 }
 0x300   : > { %v1715_v45 = vmul.u32 %v1713_v8, %v1689_v47  ;;  %v8885_v10 = vmul.u32 %v1713_v8, %v1690_v1  ;;  %vm1323_vm0 = vcmp.lt.s32.totalorder %v8820_v7, 2  ;;  %v1328_v50 = vxor.u32 2147483648, %v1312_v15 }
 0x301   : > { %v1459_v43 = vsel %vm8656_vm1, 0, %v1457_v27  ;;  %v1693_v16 = vmul.u32 %v1691_v12, %v1689_v47  ;;  %v8890_v53 = vmul.u32 %v1691_v12, %v1690_v1  ;;  %v8895_v24 = vsel %vm8847_vm2, %v13229_v32, %v3765_v21 }
 0x302   : > { %v3910_v11 = vsub.s32 4294967266, %v8878_v18  ;;  %vm1723_vm10 = vc.u32 %v1715_v45, %v1719_v51  ;;  %v8898_v25 = vadd.s32 %v1719_v51, %v1715_v45  ;;  %v1585_v40 = vadd.s32 536870912, %v8880_v44 }
 0x303   : > { %vm1701_vm7 = vc.u32 %v1693_v16, %v1697_v22  ;;  %v1703_v60 = vadd.s32 %v1697_v22, %v1693_v16  ;;  %v5859_v8 = vadd.s32 4294967169, %v3954_v61  ;;  %vm1321_vm1 = vweird.f32 %v13185_v3 }
 0x304   : > { %v1326_v4 = vsel %vm1324_vm15, %v1312_v15, %v1325_v29  ;;  %v1464_v47 = vadd.f32 -0.4999988, %v1463_v23  ;;  %v1473_v27 = vadd.f32 1.0, %v1472_v37  ;;  %v12879_v63 = vshll.u32 %v8885_v10, 16  ;;  %v547_v29 = vpop.f32.mrf.mxu3 }
 0x305   : > { %v8907_v12 = vmul.f32 %v8895_v24, %v8895_v24  ;;  %v3906_v21 = vsub.s32 32, %v8878_v18  ;;  %v1699_v51 = vshll.u32 %v8890_v53, 16  ;;  %v1724_v22 = vsel %vm1723_vm10, 1, %v13044_v9 }
 0x306   : > { %v3911_v61 = vadd.s32 127, %v3910_v11  ;;  %v1702_v45 = vsel %vm1701_vm7, 1, %v13044_v9  ;;  %v1718_v15 = vmul.u32 %v1714_v57, %v1690_v1  ;;  %vm1727_vm4 = vc.u32 %v8898_v25, %v12879_v63 }
 0x307   : > { %v8918_v23 = vshrl.u32 %v1585_v40, 30  ;;  %v1696_v37 = vmul.u32 %v1692_v52, %v1690_v1  ;;  %vm1705_vm3 = vc.u32 %v1703_v60, %v1699_v51  ;;  %v3960_v16 = vadd.s32 1, %v5859_v8 }
 0x308   : > { %v1329_v11 = vsel %vm1327_vm13, %v1328_v50, %v1320_v35  ;;  %v1465_v55 = vmul.f32 %v1464_v47, %v8727_v62  ;;  %v8925_v54 = vand.u32 3, %v1459_v43  ;;  %v1726_v46 = vadd.s32 %v1724_v22, %v1718_v15 }
 0x309   : > { %v3890_v57 = vadd.s32 %v8578_v26, %v8558_v56  ;;  %v1704_v63 = vadd.s32 %v1702_v45, %v1696_v37  ;;  %v1728_v40 = vsel %vm1727_vm4, 1, %v13044_v9  ;;  %v8931_v28 = vadd.f32 %v547_v29, %v13226_v38 }
 0x30a   : > { %v1330_v13 = vsel %vm1323_vm0, %v1326_v4, %v1329_v11  ;;  %v3778_v52 = vmul.f32 -0.00019511016, %v8907_v12  ;;  %v3912_v35 = vshll.u32 %v3911_v61, 23  ;;  %v1706_v62 = vsel %vm1705_vm3, 1, %v13044_v9 }
 0x30b   : > { %13233 = vst [vmem:[#allocation30_spill] sm:$0xff] %v8931_v28  ;;  %v1474_v1 = vmul.f32 %v1473_v27, %v8702_v33  ;;  %v3908_v50 = vshrl.u32 %v3890_v57, %v3906_v21  ;;  %v1587_v43 = vshll.u32 %v8918_v23, 30  ;;  %vm3961_vm8 = vcmp.gt.s32.totalorder %v3960_v16, 0 }
 0x30c   : > { %v1466_v56 = vadd.f32 1.0, %v1465_v55  ;;  %vm1478_vm15 = vcmp.eq.s32.totalorder %v8925_v54, 0  ;;  %v3771_v26 = vmul.f32 -0.001358992, %v8907_v12  ;;  %v1730_v38 = vadd.s32 %v1728_v40, %v1726_v46 }
 0x30d   : > { %v1331_v7 = vsel %vm1321_vm1, nan, %v1330_v13  ;;  %v3907_v60 = vshll.u32 %v8735_v48, %v8878_v18  ;;  %v1708_v8 = vadd.s32 %v1706_v62, %v1704_v63  ;;  %v4107_v4 = vand.u32 2139095040, %v8931_v28 }
 0x30e   : > { %v3779_v33 = vadd.f32 0.008332121, %v3778_v52  ;;  %v3913_v47 = vor.u32 4788187, %v3912_v35  ;;  %v1720_v27 = vshrl.u32 %v8858_v30, 16  ;;  %v3962_v21 = vsel %vm3961_vm8, %v3960_v16, 0 }
 0x30f   : > { %v1479_v55 = vxor.u32 2147483648, %v1474_v1  ;;  %v3909_v51 = vor.u32 %v3908_v50, %v3907_v60  ;;  %v8948_v22 = vsub.s32 %v8880_v44, %v1587_v43  ;;  %v1698_v61 = vshrl.u32 %v8864_v59, 16  ;;  %v13234_v35 = vld [vmem:[#allocation20_spill] sm:$0xff] }
 0x310   : > { %v1482_v3 = vxor.u32 2147483648, %v1466_v56  ;;  %v3766_v45 = vsub.s32 4, %v8453_v14  ;;  %v3772_v15 = vadd.f32 0.041655596, %v3771_v26  ;;  %v1731_v48 = vadd.s32 %v1730_v38, %v1720_v27 }
 0x311   : > { %v1677_v18 = vsel %vm1675_vm5, %v8769_v58, 2102212464  ;;  %v1709_v63 = vadd.s32 %v1708_v8, %v1698_v61  ;;  %v3964_v29 = vand.u32 31, %v3962_v21  ;;  %v4108_v30 = vshrl.u32 %v4107_v4, 23  ;;  %v13236_v8 = vld [vmem:[#allocation15_spill] sm:$0xff] }
 0x312   : > { %v3780_v37 = vmul.f32 %v3779_v33, %v8907_v12  ;;  %v3914_v16 = vand.u32 2147483647, %v3913_v47  ;;  %v1656_v44 = vshrl.u32 %v13043_v34, %v8713_v17  ;;  %v1722_v59 = vshrl.u32 %v8885_v10, 16 }
 0x313   : > { %v1480_v11 = vsel %vm1478_vm15, %v1466_v56, %v1479_v55  ;;  %v3916_v46 = vcvt.s32.f32 %v3909_v51  ;;  %v1590_v57 = vsub.s32 0, %v8948_v22  ;;  %v1700_v40 = vshrl.u32 %v8890_v53, 16 }
 0x314   : > { %vm1589_vm5 = vcmp.lt.s32.totalorder %v8948_v22, 0  ;;  %v1676_v58 = vsel %vm1672_vm12, %v1656_v44, %v8765_v36  ;;  %v1678_v17 = vsel %vm1674_vm14, %v8767_v31, %v1677_v18  ;;  %v1732_v13 = vadd.s32 %v1731_v48, %v1722_v59  ;;  %v13240_v59 = vld [vmem:[#allocation24_spill] sm:$0xff] }
 0x315   : > { %v3773_v52 = vmul.f32 %v3772_v15, %v8907_v12  ;;  %vm3798_vm9 = vcmp.lt.s32.totalorder %v13234_v35, 0  ;;  %v8972_v62 = vadd.s32 %v1709_v63, %v1700_v40  ;;  %v8974_v50 = vsub.s32 32, %v3964_v29 }
 0x316   : > { %v5862_v53 = vadd.s32 4294967169, %v4108_v30  ;;  %vm1477_vm13 = vcmp.lt.s32.totalorder %v8925_v54, 2  ;;  %vm1481_vm0 = vcmp.eq.s32.totalorder %v8925_v54, 2  ;;  %v3781_v43 = vadd.f32 -0.16666654, %v3780_v37 }
 0x317   : > { %v3917_v36 = vmul.f32 %v3916_v46, %v3914_v16  ;;  %v1483_v56 = vsel %vm1481_vm0, %v1482_v3, %v1474_v1  ;;  %v1591_v26 = vsel %vm1589_vm5, %v1590_v57, %v8948_v22  ;;  %v1679_v31 = vsel %vm1673_vm11, %v1676_v58, %v1678_v17 }
 0x318   : > { %v13235_v38 = vshll.u32 %v8885_v10, 16  ;;  %v5590_v4 = vmul.f32 %v13236_v8, %v1331_v7  ;;  %v1484_v33 = vsel %vm1477_vm13, %v1480_v11, %v1483_v56  ;;  %v8990_v54 = vsel %vm3644_vm6, %v3766_v45, %v8453_v14 }
 0x319   : > { %v1736_v47 = vadd.s32 1, %v1732_v13  ;;  %vm1475_vm12 = vweird.f32 %v13211_v0  ;;  %v3774_v1 = vadd.f32 -0.4999988, %v3773_v52  ;;  %v13237_v39 = vand.u32 2147483647, %v13234_v35 }
 0x31a   : > { %v8984_v60 = vadd.s32 %v8898_v25, %v13235_v38  ;;  %v3977_v10 = vshrl.u32 %v13134_v19, %v8974_v50  ;;  %v4114_v25 = vadd.s32 1, %v5862_v53  ;;  %v3782_v14 = vmul.f32 %v3781_v43, %v8907_v12 }
 0x31b   : > { %vm8995_vm14 = vcmp.le.f32.partialorder %v13237_v39, 0.7853982  ;;  %v3918_v7 = vxor.u32 2147483648, %v3917_v36  ;;  %v1592_v55 = vclz %v1591_v26  ;;  %v1733_v51 = vmul.u32 %v8812_v5, %v1679_v31 }
 0x31c   : > { %vm1735_vm11 = vc.u32 %v8972_v62, %v8984_v60  ;;  %v12881_v61 = vand.u32 2147483647, %v8839_v42  ;;  %v3968_v3 = vshrl.u32 %v13136_v20, %v8974_v50  ;;  %v3971_v45 = vshrl.u32 %v13137_v2, %v8974_v50 }
 0x31d   : > { %v3976_v15 = vshll.u32 %v13193_v49, %v3964_v29  ;;  %v1737_v48 = vsel %vm1735_vm11, %v1736_v47, %v1732_v13  ;;  %v9011_v18 = vshrl.u32 %v3962_v21, 5  ;;  %v3974_v63 = vshrl.u32 %v13193_v49, %v8974_v50 }
 0x31e   : > { %v3980_v30 = vshrl.u32 %v13195_v41, %v8974_v50  ;;  %v3967_v5 = vshll.u32 %v13043_v34, %v3964_v29  ;;  %v3970_v37 = vshll.u32 %v13136_v20, %v3964_v29  ;;  %vm4115_vm6 = vcmp.gt.s32.totalorder %v4114_v25, 0 }
 0x31f   : > { %v3978_v16 = vor.u32 %v3977_v10, %v3976_v15  ;;  %v3919_v44 = vsel %vm3798_vm9, %v3918_v7, %v3917_v36  ;;  %v3920_v11 = vsub.s32 4, %v13240_v59  ;;  %v3973_v21 = vshll.u32 %v13137_v2, %v3964_v29 }
 0x320   : > { %v3979_v46 = vshll.u32 %v13134_v19, %v3964_v29  ;;  %v9024_v57 = vadd.s32 %v1737_v48, %v1733_v51  ;;  %v3957_v40 = vand.u32 8388607, %v12881_v61  ;;  %v9028_v58 = vor.u32 %v3968_v3, %v3967_v5 }
 0x321   : > { %v9030_v17 = vor.u32 %v3971_v45, %v3970_v37  ;;  %v9032_v13 = vor.u32 %v3974_v63, %v3973_v21  ;;  %vm3985_vm10 = vcmp.lt.s32.totalorder %v9011_v18, 4  ;;  %v4116_v53 = vsel %vm4115_vm6, %v4114_v25, 0  ;;  %v13245_v63 = vld [vmem:[#allocation26_spill] sm:$0xff] }
 0x322   : > { %v3981_v52 = vor.u32 %v3980_v30, %v3979_v46  ;;  %v3775_v43 = vmul.f32 %v3774_v1, %v8907_v12  ;;  %v3783_v36 = vadd.f32 1.0, %v3782_v14  ;;  %v5812_v56 = vadd.s32 4294967294, %v1592_v55  ;;  %v13242_v14 = vld [vmem:[#allocation23_spill] sm:$0xff]  ;;  %v13248_v46 = vld [vmem:[#allocation6_spill] sm:$0xff] }
 0x323   : > { %v3991_v29 = vsel %vm3985_vm10, %v3978_v16, 920167782  ;;  %v1485_v26 = vsel %vm1475_vm12, nan, %v1484_v33  ;;  %v3769_v31 = vsel %vm8847_vm2, 0, %v8990_v54  ;;  %v3921_v38 = vsel %vm3798_vm9, %v3920_v11, %v13240_v59 }
 0x324   : > { %v9049_v12 = vsel %vm8995_vm14, %v13234_v35, %v3919_v44  ;;  %v3958_v47 = vor.u32 8388608, %v3957_v40  ;;  %vm3982_vm7 = vcmp.lt.s32.totalorder %v9011_v18, 1  ;;  %vm3984_vm1 = vcmp.lt.s32.totalorder %v9011_v18, 3  ;;  %v13249_v40 = vld [vmem:[#allocation32_spill] sm:$0xff] }
 0x325   : > { %13241 = vst [vmem:[#allocation19_spill] sm:$0xff] %v9049_v12  ;;  %v4118_v0 = vand.u32 31, %v4116_v53  ;;  %v1739_v33 = vadd.s32 536870912, %v9024_v57  ;;  %v3990_v6 = vsel %vm3982_vm7, %v9028_v58, %v9030_v17  ;;  %v3992_v54 = vsel %vm3984_vm1, %v9032_v13, %v3991_v29 }
 0x326   : > { %v3995_v1 = vsel %vm3985_vm10, %v3981_v52, 1326507024  ;;  %v5591_v39 = vmul.f32 %v13236_v8, %v1485_v26  ;;  %v9064_v10 = vadd.f32 1.0, %v3775_v43  ;;  %v9067_v25 = vmul.f32 %v3783_v36, %v8895_v24 }
 0x327   : > { %vm5813_vm2 = vcmp.lt.s32.totalorder %v5812_v56, 0  ;;  %v9070_v7 = vadd.f32 %v13242_v14, %v5590_v4  ;;  %v3923_v55 = vsel %vm8995_vm14, 0, %v3921_v38  ;;  %v9076_v51 = vmul.f32 %v9049_v12, %v9049_v12 }
 0x328   : > { %vm3983_vm4 = vcmp.lt.s32.totalorder %v9011_v18, 2  ;;  %v3994_v24 = vsel %vm3982_vm7, %v9030_v17, %v9032_v13  ;;  %v3996_v4 = vsel %vm3984_vm1, %v3978_v16, %v3995_v1  ;;  %v9089_v27 = vsub.s32 32, %v4118_v0 }
 0x329   : > { %13243 = vst [vmem:[#allocation15_spill] sm:$0xff] %v9070_v7  ;;  %v9081_v8 = vsel %vm3983_vm4, %v3990_v6, %v3992_v54  ;;  %v9091_v3 = vand.u32 3, %v3769_v31  ;;  %v9093_v45 = vsel %vm5813_vm2, 0, %v5812_v56  ;;  %v9095_v15 = vshrl.u32 %v1739_v33, 30 }
 0x32a   : > { %v9097_v48 = vshll.u32 %v3958_v47, 8  ;;  %v9100_v30 = vadd.f32 %v13245_v63, %v5591_v39  ;;  %v9104_v44 = vand.u32 3, %v3923_v55  ;;  %v9107_v16 = vmul.f32 -0.001358992, %v9076_v51  ;;  %v461_v47 = vpop.f32.mrf.mxu0 }
 0x32b   : > { %13244 = vst [vmem:[#allocation24_spill] sm:$0xff] %v9095_v15  ;;  %v9110_v59 = vmul.f32 -0.00019511016, %v9076_v51  ;;  %v9114_v11 = vsel %vm3983_vm4, %v3994_v24, %v3996_v4  ;;  %v12882_v21 = vshrl.u32 %v9081_v8, 16  ;;  %v1580_v52 = vadd.s32 %v13249_v40, %v13248_v46  ;;  %v13250_v40 = vld [vmem:[#allocation28_spill] sm:$0xff] }
 0x32c   : > { %13246 = vst [vmem:[#allocation23_spill] sm:$0xff] %v9100_v30  ;;  %v1596_v43 = vsub.s32 32, %v9093_v45  ;;  %v4131_v56 = vshrl.u32 %v13134_v19, %v9089_v27  ;;  %v1600_v29 = vsub.s32 4294967266, %v9093_v45  ;;  %v1741_v26 = vshll.u32 %v9095_v15, 30 }
 0x32d   : > { %13247 = vst [vmem:[#allocation26_spill] sm:$0xff] %v9104_v44  ;;  %v3999_v31 = vand.u32 65535, %v9097_v48  ;;  %v12884_v38 = vand.u32 2147483647, %v8931_v28  ;;  %v12883_v33 = vshrl.u32 %v9114_v11, 16  ;;  %v4122_v6 = vshrl.u32 %v13136_v20, %v9089_v27 }
 0x32e   : > { %v4130_v54 = vshll.u32 %v13193_v49, %v4118_v0  ;;  %v4134_v1 = vshrl.u32 %v13195_v41, %v9089_v27  ;;  %v9138_v14 = vshrl.u32 %v4116_v53, 5  ;;  %v4125_v55 = vshrl.u32 %v13137_v2, %v9089_v27 }
 0x32f   : > { %v9136_v39 = vmul.u32 %v12882_v21, %v3999_v31  ;;  %v4128_v24 = vshrl.u32 %v13193_v49, %v9089_v27  ;;  %v4121_v4 = vshll.u32 %v13043_v34, %v4118_v0  ;;  %v4133_v46 = vshll.u32 %v13134_v19, %v4118_v0 }
 0x330   : > { %v4132_v63 = vor.u32 %v4131_v56, %v4130_v54  ;;  %v9147_v61 = vadd.f32 %v461_v47, %v13250_v40  ;;  %v1598_v37 = vshrl.u32 %v1580_v52, %v1596_v43  ;;  %v4023_v5 = vand.u32 65535, %v9081_v8 }
 0x331   : > { %v4124_v53 = vshll.u32 %v13136_v20, %v4118_v0  ;;  %v4127_v36 = vshll.u32 %v13137_v2, %v4118_v0  ;;  %v9154_v21 = vmul.u32 %v12883_v33, %v3999_v31  ;;  %v4111_v30 = vand.u32 8388607, %v12884_v38 }
 0x332   : > { %13251 = vst [vmem:[#allocation6_spill] sm:$0xff] %v9147_v61  ;;  %v9158_v56 = vor.u32 %v4122_v6, %v4121_v4  ;;  %v4135_v54 = vor.u32 %v4134_v1, %v4133_v46  ;;  %vm4139_vm3 = vcmp.lt.s32.totalorder %v9138_v14, 4  ;;  %v1797_v52 = vand.u32 2139095040, %v9147_v61 }
 0x333   : > { %v9160_v7 = vor.u32 %v4125_v55, %v4124_v53  ;;  %v9162_v47 = vor.u32 %v4128_v24, %v4127_v36  ;;  %v9167_v0 = vsub.s32 %v9024_v57, %v1741_v26  ;;  %v4000_v43 = vshrl.u32 %v9097_v48, 16 }
 0x334   : > { %v4029_v33 = vshll.u32 %v9136_v39, 16  ;;  %v4145_v6 = vsel %vm4139_vm3, %v4132_v63, 920167782  ;;  %v1601_v4 = vadd.s32 127, %v1600_v29  ;;  %v4001_v1 = vand.u32 65535, %v9114_v11 }
 0x335   : > { %v4025_v55 = vmul.u32 %v4023_v5, %v3999_v31  ;;  %v1798_v36 = vshrl.u32 %v1797_v52, 23  ;;  %v9174_v24 = vmul.u32 %v4023_v5, %v4000_v43  ;;  %vm4136_vm8 = vcmp.lt.s32.totalorder %v9138_v14, 1 }
 0x336   : > { %vm4138_vm15 = vcmp.lt.s32.totalorder %v9138_v14, 3  ;;  %v4149_v57 = vsel %vm4139_vm3, %v4135_v54, 1326507024  ;;  %v4007_v26 = vshll.u32 %v9154_v21, 16  ;;  %v4112_v46 = vor.u32 8388608, %v4111_v30 }
 0x337   : > { %v4144_v29 = vsel %vm4136_vm8, %v9158_v56, %v9160_v7  ;;  %v4146_v5 = vsel %vm4138_vm15, %v9162_v47, %v4145_v6  ;;  %vm3788_vm5 = vcmp.eq.s32.totalorder %v9091_v3, 0  ;;  %vm3791_vm9 = vcmp.eq.s32.totalorder %v9091_v3, 2 }
 0x338   : > { %v1744_v53 = vsub.s32 0, %v9167_v0  ;;  %vm4033_vm13 = vc.u32 %v4025_v55, %v4029_v33  ;;  %v9191_v54 = vadd.s32 %v4029_v33, %v4025_v55  ;;  %v5817_v52 = vadd.s32 4294967169, %v1798_v36 }
 0x339   : > { %v4003_v30 = vmul.u32 %v4001_v1, %v3999_v31  ;;  %vm4137_vm0 = vcmp.lt.s32.totalorder %v9138_v14, 2  ;;  %v4148_v38 = vsel %vm4136_vm8, %v9160_v7, %v9162_v47  ;;  %v4150_v6 = vsel %vm4138_vm15, %v4132_v63, %v4149_v57 }
 0x33a   : > { %vm1743_vm12 = vcmp.lt.s32.totalorder %v9167_v0, 0  ;;  %v9201_v28 = vmul.u32 %v4001_v1, %v4000_v43  ;;  %v12892_v42 = vshll.u32 %v9174_v24, 16  ;;  %v9206_v33 = vsel %vm4137_vm0, %v4144_v29, %v4146_v5 }
 0x33b   : > { %vm9208_vm14 = vc.u32 %v4003_v30, %v4007_v26  ;;  %v13254_v55 = vshrl.u32 %v9081_v8, 16  ;;  %v4034_v35 = vsel %vm4033_vm13, 1, %v13044_v9  ;;  %v9215_v63 = vshll.u32 %v4112_v46, 8 }
 0x33c   : > { %v4013_v57 = vadd.s32 %v4007_v26, %v4003_v30  ;;  %vm4037_vm11 = vc.u32 %v9191_v54, %v12892_v42  ;;  %v9222_v1 = vsel %vm4137_vm0, %v4148_v38, %v4150_v6  ;;  %v1804_v29 = vadd.s32 1, %v5817_v52 }
 0x33d   : > { %v4028_v36 = vmul.u32 %v13254_v55, %v4000_v43  ;;  %13255 = vst [vmem:[#allocation32_spill] sm:$0xff] %v9215_v63  ;;  %v3926_v5 = vadd.f32 0.041655596, %v9107_v16  ;;  %v3933_v15 = vadd.f32 0.008332121, %v9110_v59  ;;  %v1745_v8 = vsel %vm1743_vm12, %v1744_v53, %v9167_v0 }
 0x33e   : > { %v13256_v26 = vshll.u32 %v8948_v22, %v9093_v45  ;;  %v1602_v30 = vshll.u32 %v1601_v4, 23  ;;  %v4009_v42 = vshll.u32 %v9201_v28, 16  ;;  %v4012_v38 = vsel %vm9208_vm14, 1, %v13044_v9 }
 0x33f   : > { %v4036_v44 = vadd.s32 %v4034_v35, %v4028_v36  ;;  %v4038_v16 = vsel %vm4037_vm11, 1, %v13044_v9  ;;  %v4153_v59 = vand.u32 65535, %v9215_v63  ;;  %v4156_v53 = vshrl.u32 %v9222_v1, 16 }
 0x340   : > { %v1599_v46 = vor.u32 %v1598_v37, %v13256_v26  ;;  %v1746_v52 = vclz %v1745_v8  ;;  %v13257_v6 = vshrl.u32 %v9114_v11, 16  ;;  %vm4015_vm6 = vc.u32 %v4013_v57, %v4009_v42 }
 0x341   : > { %vm1805_vm2 = vcmp.gt.s32.totalorder %v1804_v29, 0  ;;  %v13258_v22 = vxor.u32 2147483648, %v9067_v25  ;;  %v13259_v45 = vxor.u32 2147483648, %v9064_v10  ;;  %v3927_v4 = vmul.f32 %v3926_v5, %v9076_v51 }
 0x342   : > { %v4006_v55 = vmul.u32 %v13257_v6, %v4000_v43  ;;  %v13260_v11 = vshrl.u32 %v9206_v33, 16  ;;  %v9260_v43 = vmul.f32 %v3933_v15, %v9076_v51  ;;  %v1603_v31 = vor.u32 4788187, %v1602_v30 }
 0x343   : > { %v9245_v35 = vsel %vm3788_vm5, %v9064_v10, %v13258_v22  ;;  %v9252_v37 = vsel %vm3791_vm9, %v13259_v45, %v9067_v25  ;;  %v4040_v57 = vadd.s32 %v4038_v16, %v4036_v44  ;;  %v4016_v8 = vsel %vm4015_vm6, 1, %v13044_v9 }
 0x344   : > { %v9257_v42 = vmul.u32 %v13260_v11, %v4153_v59  ;;  %v4014_v36 = vadd.s32 %v4012_v38, %v4006_v55  ;;  %v9263_v26 = vmul.u32 %v4156_v53, %v4153_v59  ;;  %v4177_v10 = vand.u32 65535, %v9206_v33 }
 0x345   : > { %v1806_v25 = vsel %vm1805_vm2, %v1804_v29, 0  ;;  %v1606_v6 = vcvt.s32.f32 %v1599_v46  ;;  %v5815_v22 = vadd.s32 4294967294, %v1746_v52  ;;  %v3966_v5 = vshrl.u32 %v13043_v34, %v8974_v50 }
 0x346   : > { %v4030_v45 = vshrl.u32 %v9136_v39, 16  ;;  %v3987_v15 = vsel %vm3985_vm10, %v9032_v13, 2102212464  ;;  %v4154_v44 = vshrl.u32 %v9215_v63, 16  ;;  %v4155_v55 = vand.u32 65535, %v9222_v1 }
 0x347   : > { %v4183_v30 = vshll.u32 %v9257_v42, 16  ;;  %v1604_v38 = vand.u32 2147483647, %v1603_v31  ;;  %v4018_v16 = vadd.s32 %v4016_v8, %v4014_v36  ;;  %v1808_v46 = vand.u32 31, %v1806_v25 }
 0x348   : > { %v4041_v29 = vadd.s32 %v4040_v57, %v4030_v45  ;;  %v3986_v50 = vsel %vm3982_vm7, %v3966_v5, %v9028_v58  ;;  %v4161_v39 = vshll.u32 %v9263_v26, 16  ;;  %v4179_v52 = vmul.u32 %v4177_v10, %v4153_v59 }
 0x349   : > { %v9279_v11 = vmul.u32 %v4177_v10, %v4154_v44  ;;  %vm5816_vm10 = vcmp.lt.s32.totalorder %v5815_v22, 0  ;;  %v3988_v13 = vsel %vm3984_vm1, %v9030_v17, %v3987_v15  ;;  %v4008_v1 = vshrl.u32 %v9154_v21, 16 }
 0x34a   : > { %v4032_v31 = vshrl.u32 %v9174_v24, 16  ;;  %v4157_v36 = vmul.u32 %v4155_v55, %v4153_v59  ;;  %v9286_v57 = vmul.u32 %v4155_v55, %v4154_v44  ;;  %vm4187_vm5 = vc.u32 %v4179_v52, %v4183_v30  ;;  %v526_v55 = vpop.f32.mrf.mxu1 }
 0x34b   : > { %v9288_v8 = vadd.s32 %v4183_v30, %v4179_v52  ;;  %v9290_v58 = vadd.f32 -0.4999988, %v3927_v4  ;;  %v4019_v5 = vadd.s32 %v4018_v16, %v4008_v1  ;;  %v9292_v45 = vsub.s32 32, %v1808_v46 }
 0x34c   : > { %v4042_v10 = vadd.s32 %v4041_v29, %v4032_v31  ;;  %v9294_v12 = vmul.f32 %v1606_v6, %v1604_v38  ;;  %v9296_v63 = vsel %vm5816_vm10, 0, %v5815_v22  ;;  %v4167_v17 = vadd.s32 %v4161_v39, %v4157_v36 }
 0x34d   : > { %13261 = vst [vmem:[#allocation28_spill] sm:$0xff] %v9292_v45  ;;  %v12896_v21 = vshll.u32 %v9279_v11, 16  ;;  %v3989_v59 = vsel %vm3983_vm4, %v3986_v50, %v3988_v13  ;;  %v4010_v15 = vshrl.u32 %v9201_v28, 16  ;;  %vm4165_vm7 = vc.u32 %v4157_v36, %v4161_v39 }
 0x34e   : > { %v4188_v4 = vsel %vm4187_vm5, 1, %v13044_v9  ;;  %v13262_v30 = vshll.u32 %v9174_v24, 16  ;;  %v4163_v6 = vshll.u32 %v9286_v57, 16  ;;  %v13263_v22 = vshrl.u32 %v9206_v33, 16 }
 0x34f   : > { %vm4191_vm1 = vc.u32 %v9288_v8, %v12896_v21  ;;  %v9314_v18 = vadd.s32 %v4019_v5, %v4010_v15  ;;  %v4046_v28 = vadd.s32 1, %v4042_v10  ;;  %v4160_v29 = vmul.u32 %v4156_v53, %v4154_v44 }
 0x350   : > { %v9306_v16 = vadd.s32 %v9191_v54, %v13262_v30  ;;  %v4182_v38 = vmul.u32 %v13263_v22, %v4154_v44  ;;  %v1821_v50 = vshrl.u32 %v13134_v19, %v9292_v45  ;;  %v4166_v24 = vsel %vm4165_vm7, 1, %v13044_v9 }
 0x351   : > { %vm4169_vm4 = vc.u32 %v4167_v17, %v4163_v6  ;;  %v9320_v39 = vadd.f32 %v526_v55, %v13250_v40  ;;  %v4192_v33 = vsel %vm4191_vm1, 1, %v13044_v9  ;;  %v12898_v52 = vand.u32 2147483647, %v9147_v61 }
 0x352   : > { %v4190_v54 = vadd.s32 %v4188_v4, %v4182_v38  ;;  %v1820_v13 = vshll.u32 %v13193_v49, %v1808_v46  ;;  %v1824_v1 = vshrl.u32 %v13195_v41, %v9292_v45  ;;  %v9327_v53 = vshrl.u32 %v1806_v25, 5  ;;  %v13265_v4 = vld [vmem:[#allocation21_spill] sm:$0xff] }
 0x353   : > { %13264 = vst [vmem:[#allocation33_spill] sm:$0xff] %v9320_v39  ;;  %v1812_v44 = vshrl.u32 %v13136_v20, %v9292_v45  ;;  %v1815_v31 = vshrl.u32 %v13137_v2, %v9292_v45  ;;  %v1818_v40 = vshrl.u32 %v13193_v49, %v9292_v45  ;;  %v4168_v36 = vadd.s32 %v4166_v24, %v4160_v29 }
 0x354   : > { %v4170_v5 = vsel %vm4169_vm4, 1, %v13044_v9  ;;  %v1822_v17 = vor.u32 %v1821_v50, %v1820_v13  ;;  %v1823_v15 = vshll.u32 %v13134_v19, %v1808_v46  ;;  %vm3787_vm9 = vcmp.lt.s32.totalorder %v9091_v3, 2 }
 0x355   : > { %vm1488_vm13 = vcmp.lt.s32.totalorder %v13265_v4, 0  ;;  %v1811_v25 = vshll.u32 %v13043_v34, %v1808_v46  ;;  %v1814_v55 = vshll.u32 %v13136_v20, %v1808_v46  ;;  %v1817_v30 = vshll.u32 %v13137_v2, %v1808_v46 }
 0x356   : > { %v1951_v6 = vand.u32 2139095040, %v9320_v39  ;;  %vm4045_vm12 = vc.u32 %v9314_v18, %v9306_v16  ;;  %v4194_v22 = vadd.s32 %v4192_v33, %v4190_v54  ;;  %v1801_v38 = vand.u32 8388607, %v12898_v52 }
 0x357   : > { %v1825_v29 = vor.u32 %v1824_v1, %v1823_v15  ;;  %v9347_v50 = vor.u32 %v1812_v44, %v1811_v25  ;;  %v9349_v24 = vor.u32 %v1815_v31, %v1814_v55  ;;  %v9351_v13 = vor.u32 %v1818_v40, %v1817_v30 }
 0x358   : > { %vm1829_vm14 = vcmp.lt.s32.totalorder %v9327_v53, 4  ;;  %v1608_v46 = vxor.u32 2147483648, %v9294_v12  ;;  %v1754_v21 = vsub.s32 4294967266, %v9296_v63  ;;  %v4172_v45 = vadd.s32 %v4170_v5, %v4168_v36 }
 0x359   : > { %v1835_v54 = vsel %vm1829_vm14, %v1822_v17, 920167782  ;;  %v4043_v33 = vmul.u32 %v9097_v48, %v3989_v59  ;;  %v4047_v52 = vsel %vm4045_vm12, %v4046_v28, %v4042_v10  ;;  %v4184_v1 = vshrl.u32 %v9257_v42, 16 }
 0x35a   : > { %v1952_v44 = vshrl.u32 %v1951_v6, 23  ;;  %v13266_v31 = vand.u32 2147483647, %v13265_v4  ;;  %v4162_v15 = vshrl.u32 %v9263_v26, 16  ;;  %vm1826_vm6 = vcmp.lt.s32.totalorder %v9327_v53, 1 }
 0x35b   : > { %vm1828_vm2 = vcmp.lt.s32.totalorder %v9327_v53, 3  ;;  %v1839_v36 = vsel %vm1829_vm14, %v1825_v29, 1326507024  ;;  %v4195_v48 = vadd.s32 %v4194_v22, %v4184_v1  ;;  %v1802_v10 = vor.u32 8388608, %v1801_v38 }
 0x35c   : > { %vm9362_vm11 = vcmp.le.f32.partialorder %v13266_v31, 0.7853982  ;;  %v1834_v42 = vsel %vm1826_vm6, %v9347_v50, %v9349_v24  ;;  %v1836_v59 = vsel %vm1828_vm2, %v9351_v13, %v1835_v54  ;;  %v3935_v26 = vadd.f32 -0.16666654, %v9260_v43 }
 0x35d   : > { %v9379_v28 = vadd.s32 %v4047_v52, %v4043_v33  ;;  %v4173_v5 = vadd.s32 %v4172_v45, %v4162_v15  ;;  %v4186_v25 = vshrl.u32 %v9279_v11, 16  ;;  %vm1827_vm10 = vcmp.lt.s32.totalorder %v9327_v53, 2 }
 0x35e   : > { %v1838_v55 = vsel %vm1826_vm6, %v9349_v24, %v9351_v13  ;;  %v1840_v30 = vsel %vm1828_vm2, %v1822_v17, %v1839_v36  ;;  %v5820_v6 = vadd.s32 4294967169, %v1952_v44  ;;  %v3794_v43 = vsel %vm3787_vm9, %v9245_v35, %v9252_v37 }
 0x35f   : > { %v1609_v45 = vsel %vm1488_vm13, %v1608_v46, %v9294_v12  ;;  %v4164_v52 = vshrl.u32 %v9286_v57, 16  ;;  %v9399_v22 = vsel %vm1827_vm10, %v1834_v42, %v1836_v59  ;;  %v1755_v38 = vadd.s32 127, %v1754_v21 }
 0x360   : > { %v4141_v17 = vsel %vm4139_vm3, %v9162_v47, 2102212464  ;;  %v4196_v29 = vadd.s32 %v4195_v48, %v4186_v25  ;;  %v9404_v54 = vshll.u32 %v1802_v10, 8  ;;  %vm3785_vm5 = vweird.f32 %v13229_v32 }
 0x361   : > { %v4049_v3 = vadd.s32 536870912, %v9379_v28  ;;  %v4120_v12 = vshrl.u32 %v13043_v34, %v9089_v27  ;;  %v9410_v35 = vadd.s32 %v4173_v5, %v4164_v52  ;;  %v9414_v37 = vsel %vm1827_vm10, %v1838_v55, %v1840_v30 }
 0x362   : > { %v3929_v57 = vmul.f32 %v9290_v58, %v9076_v51  ;;  %v3936_v47 = vmul.f32 %v3935_v26, %v9076_v51  ;;  %v1868_v21 = vshrl.u32 %v9399_v22, 16  ;;  %v1958_v46 = vadd.s32 1, %v5820_v6  ;;  %v13271_v6 = vld [vmem:[#allocation32_spill] sm:$0xff] }
 0x363   : > { %v1750_v33 = vsub.s32 32, %v9296_v63  ;;  %v4140_v27 = vsel %vm4136_vm8, %v4120_v12, %v9158_v56  ;;  %v4142_v1 = vsel %vm4138_vm15, %v9160_v7, %v4141_v17  ;;  %v13269_v44 = vshll.u32 %v9279_v11, 16 }
 0x364   : > { %v9435_v51 = vsel %vm9362_vm11, %v13265_v4, %v1609_v45  ;;  %v4200_v58 = vadd.s32 1, %v4196_v29  ;;  %v1843_v15 = vand.u32 65535, %v9404_v54  ;;  %v1846_v36 = vshrl.u32 %v9414_v37, 16 }
 0x365   : > { %v9430_v31 = vadd.s32 %v9288_v8, %v13269_v44  ;;  %v1734_v56 = vadd.s32 %v8984_v60, %v8972_v62  ;;  %v1756_v48 = vshll.u32 %v1755_v38, 23  ;;  %v9441_v7 = vshrl.u32 %v4049_v3, 30 }
 0x366   : > { %v9445_v11 = vadd.f32 1.0, %v3929_v57  ;;  %v4143_v8 = vsel %vm4137_vm0, %v4140_v27, %v4142_v1  ;;  %v9451_v10 = vmul.u32 %v1868_v21, %v1843_v15  ;;  %vm1959_vm8 = vcmp.gt.s32.totalorder %v1958_v46, 0 }
 0x367   : > { %13270 = vst [vmem:[#allocation21_spill] sm:$0xff] %v9441_v7  ;;  %vm4199_vm3 = vc.u32 %v9410_v35, %v9430_v31  ;;  %v3937_v42 = vadd.f32 1.0, %v3936_v47  ;;  %v1610_v59 = vsub.s32 4, %v8918_v23  ;;  %v9456_v62 = vmul.f32 %v9435_v51, %v9435_v51 }
 0x368   : > { %v1752_v60 = vshrl.u32 %v1734_v56, %v1750_v33  ;;  %v1751_v26 = vshll.u32 %v9167_v0, %v9296_v63  ;;  %v4201_v5 = vsel %vm4199_vm3, %v4200_v58, %v4196_v29  ;;  %v9462_v14 = vmul.u32 %v1846_v36, %v1843_v15  ;;  %v13272_v29 = vld [vmem:[#allocation19_spill] sm:$0xff] }
 0x369   : > { %v1867_v25 = vand.u32 65535, %v9399_v22  ;;  %v1757_v55 = vor.u32 4788187, %v1756_v48  ;;  %v4051_v30 = vshll.u32 %v9441_v7, 30  ;;  %v4197_v45 = vmul.u32 %v13271_v6, %v4143_v8 }
 0x36a   : > { %v1960_v52 = vsel %vm1959_vm8, %v1958_v46, 0  ;;  %v9469_v38 = vsel %vm3785_vm5, nan, %v3794_v43  ;;  %v1844_v17 = vshrl.u32 %v9404_v54, 16  ;;  %v1845_v0 = vand.u32 65535, %v9414_v37 }
 0x36b   : > { %v1873_v63 = vshll.u32 %v9451_v10, 16  ;;  %v9475_v3 = vmul.f32 %v3937_v42, %v13272_v29  ;;  %v1622_v12 = vmul.f32 -0.00019511016, %v9456_v62  ;;  %v1753_v57 = vor.u32 %v1752_v60, %v1751_v26 }
 0x36c   : > { %v9478_v47 = vadd.s32 %v4201_v5, %v4197_v45  ;;  %v1851_v46 = vshll.u32 %v9462_v14, 16  ;;  %v1869_v33 = vmul.u32 %v1867_v25, %v1843_v15  ;;  %v9481_v32 = vmul.u32 %v1867_v25, %v1844_v17 }
 0x36d   : > { %v1962_v43 = vand.u32 31, %v1960_v52  ;;  %v9487_v1 = vsel %vm1488_vm13, %v1610_v59, %v8918_v23  ;;  %v1758_v44 = vand.u32 2147483647, %v1757_v55  ;;  %v9490_v58 = vsub.s32 %v9379_v28, %v4051_v30 }
 0x36e   : > { %v1847_v56 = vmul.u32 %v1845_v0, %v1843_v15  ;;  %v9492_v48 = vmul.u32 %v1845_v0, %v1844_v17  ;;  %vm1877_vm15 = vc.u32 %v1869_v33, %v1873_v63  ;;  %v9494_v8 = vadd.s32 %v1873_v63, %v1869_v33  ;;  %v9505_v15 = vpop.permute.xlu1 %5528  ;;  %v13277_v33 = vld [vmem:[#allocation12_spill] sm:$0xff] }
 0x36f   : > { %v1615_v42 = vmul.f32 -0.001358992, %v9456_v62  ;;  %v1623_v60 = vadd.f32 0.008332121, %v1622_v12  ;;  %v1760_v26 = vcvt.s32.f32 %v1753_v57  ;;  %v4203_v5 = vadd.s32 536870912, %v9478_v47  ;;  %13275 = vst [vmem:[#allocation32_spill] sm:$0xff] %v9505_v15 }
 0x370   : > { %vm9498_vm0 = vc.u32 %v1847_v56, %v1851_v46  ;;  %v1857_v23 = vadd.s32 %v1851_v46, %v1847_v56  ;;  %v12899_v28 = vshll.u32 %v9481_v32, 16  ;;  %v9503_v59 = vsub.s32 32, %v1962_v43 }
 0x371   : > { %v1761_v30 = vmul.f32 %v1760_v26, %v1758_v44  ;;  %v4054_v6 = vsub.s32 0, %v9490_v58  ;;  %v1878_v45 = vsel %vm1877_vm15, 1, %v13044_v9  ;;  %vm4053_vm7 = vcmp.lt.s32.totalorder %v9490_v58, 0 }
 0x372   : > { %v1853_v0 = vshll.u32 %v9492_v48, 16  ;;  %v1872_v63 = vmul.u32 %v1868_v21, %v1844_v17  ;;  %vm1881_vm1 = vc.u32 %v9494_v8, %v12899_v28  ;;  %v1616_v29 = vadd.f32 0.041655596, %v1615_v42 }
 0x373   : > { %v1624_v12 = vmul.f32 %v1623_v60, %v9456_v62  ;;  %v9518_v57 = vshrl.u32 %v4203_v5, 30  ;;  %v1856_v46 = vsel %vm9498_vm0, 1, %v13044_v9  ;;  %vm1642_vm4 = vcmp.lt.s32.totalorder %v13277_v33, 0 }
 0x374   : > { %v1850_v44 = vmul.u32 %v1846_v36, %v1844_v17  ;;  %vm1859_vm9 = vc.u32 %v1857_v23, %v1853_v0  ;;  %v1880_v22 = vadd.s32 %v1878_v45, %v1872_v63  ;;  %v1975_v21 = vshrl.u32 %v13134_v19, %v9503_v59 }
 0x375   : > { %13276 = vst [vmem:[#allocation19_spill] sm:$0xff] %v9518_v57  ;;  %v1762_v56 = vxor.u32 2147483648, %v1761_v30  ;;  %v4055_v42 = vsel %vm4053_vm7, %v4054_v6, %v9490_v58  ;;  %v1882_v60 = vsel %vm1881_vm1, 1, %v13044_v9  ;;  %v9531_v25 = vshrl.u32 %v1960_v52, 5 }
 0x376   : > { %v1858_v5 = vadd.s32 %v1856_v46, %v1850_v44  ;;  %v1974_v27 = vshll.u32 %v13193_v49, %v1962_v43  ;;  %v1978_v37 = vshrl.u32 %v13195_v41, %v9503_v59  ;;  %v1860_v36 = vsel %vm1859_vm9, 1, %v13044_v9 }
 0x377   : > { %v1966_v17 = vshrl.u32 %v13136_v20, %v9503_v59  ;;  %v1969_v23 = vshrl.u32 %v13137_v2, %v9503_v59  ;;  %v1972_v6 = vshrl.u32 %v13193_v49, %v9503_v59  ;;  %v4205_v45 = vshll.u32 %v9518_v57, 30 }
 0x378   : > { %v1884_v52 = vadd.s32 %v1882_v60, %v1880_v22  ;;  %v1976_v0 = vor.u32 %v1975_v21, %v1974_v27  ;;  %v1977_v63 = vshll.u32 %v13134_v19, %v1962_v43  ;;  %v4056_v46 = vclz %v4055_v42  ;;  %v9557_v42 = vpop.permute.xlu1 %5543 }
 0x379   : > { %v1965_v44 = vshll.u32 %v13043_v34, %v1962_v43  ;;  %v1968_v55 = vshll.u32 %v13136_v20, %v1962_v43  ;;  %v1971_v28 = vshll.u32 %v13137_v2, %v1962_v43  ;;  %v13278_v26 = vand.u32 2147483647, %v13277_v33  ;;  %13282 = vst [vmem:[#allocation12_spill] sm:$0xff] %v9557_v42 }
 0x37a   : > { %v1862_v61 = vadd.s32 %v1860_v36, %v1858_v5  ;;  %v1874_v57 = vshrl.u32 %v9451_v10, 16  ;;  %v13281_v27 = vand.u32 2147483647, %v9320_v39  ;;  %v1979_v21 = vor.u32 %v1978_v37, %v1977_v63 }
 0x37b   : > { %vm9550_vm13 = vcmp.le.f32.partialorder %v13278_v26, 0.7853982  ;;  %v9559_v60 = vor.u32 %v1966_v17, %v1965_v44  ;;  %v9561_v7 = vor.u32 %v1969_v23, %v1968_v55  ;;  %v9563_v43 = vor.u32 %v1972_v6, %v1971_v28  ;;  %v13284_v44 = vld [vmem:[#allocation27_spill] sm:$0xff] }
 0x37c   : > { %v1955_v22 = vand.u32 8388607, %v13281_v27  ;;  %vm1983_vm12 = vcmp.lt.s32.totalorder %v9531_v25, 4  ;;  %v9567_v26 = vsub.s32 %v9478_v47, %v4205_v45  ;;  %v1852_v5 = vshrl.u32 %v9462_v14, 16  ;;  %v485_v47 = vpop.f32.mrf.mxu2 }
 0x37d   : > { %v1885_v10 = vadd.s32 %v1884_v52, %v1874_v57  ;;  %v1989_v36 = vsel %vm1983_vm12, %v1976_v0, 920167782  ;;  %v1617_v37 = vmul.f32 %v1616_v29, %v9456_v62  ;;  %v1625_v63 = vadd.f32 -0.16666654, %v1624_v12  ;;  %v13283_v57 = vld [vmem:[#allocation26_spill] sm:$0xff] }
 0x37e   : > { %v1763_v55 = vsel %vm1642_vm4, %v1762_v56, %v1761_v30  ;;  %v1876_v28 = vshrl.u32 %v9481_v32, 16  ;;  %v1863_v17 = vadd.s32 %v1862_v61, %v1852_v5  ;;  %vm1980_vm5 = vcmp.lt.s32.totalorder %v9531_v25, 1 }
 0x37f   : > { %vm1982_vm3 = vcmp.lt.s32.totalorder %v9531_v25, 3  ;;  %v1993_v14 = vsel %vm1983_vm12, %v1979_v21, 1326507024  ;;  %vm3942_vm8 = vcmp.eq.s32.totalorder %v13283_v57, 0  ;;  %vm3945_vm15 = vcmp.eq.s32.totalorder %v13283_v57, 2 }
 0x380   : > { %v5860_v29 = vadd.s32 4294967294, %v4056_v46  ;;  %v1956_v12 = vor.u32 8388608, %v1955_v22  ;;  %v1988_v30 = vsel %vm1980_vm5, %v9559_v60, %v9561_v7  ;;  %v1990_v61 = vsel %vm1982_vm3, %v9563_v43, %v1989_v36  ;;  %v13286_v22 = vld [vmem:[#allocation28_spill] sm:$0xff] }
 0x381   : > { %v4208_v56 = vsub.s32 0, %v9567_v26  ;;  %v1831_v23 = vsel %vm1829_vm14, %v9351_v13, 2102212464  ;;  %v1854_v6 = vshrl.u32 %v9492_v48, 16  ;;  %v1886_v45 = vadd.s32 %v1885_v10, %v1876_v28 }
 0x382   : > { %vm1981_vm0 = vcmp.lt.s32.totalorder %v9531_v25, 2  ;;  %v1992_v52 = vsel %vm1980_vm5, %v9561_v7, %v9563_v43  ;;  %v1994_v46 = vsel %vm1982_vm3, %v1976_v0, %v1993_v14  ;;  %v9602_v27 = vadd.f32 %v485_v47, %v13284_v44  ;;  %v9636_v14 = vpop.permute.xlu1 %5558 }
 0x383   : > { %vm4207_vm7 = vcmp.lt.s32.totalorder %v9567_v26, 0  ;;  %v1810_v13 = vshrl.u32 %v13043_v34, %v13286_v22  ;;  %v9607_v48 = vadd.s32 %v1863_v17, %v1854_v6  ;;  %v9611_v21 = vsel %vm1981_vm0, %v1988_v30, %v1990_v61 }
 0x384   : > { %13285 = vst [vmem:[#allocation26_spill] sm:$0xff] %v9602_v27  ;;  %vm3941_vm14 = vcmp.lt.s32.totalorder %v13283_v57, 2  ;;  %v1618_v5 = vadd.f32 -0.4999988, %v1617_v37  ;;  %v9617_v0 = vsel %vm9550_vm13, %v13277_v33, %v1763_v55  ;;  %vm5861_vm1 = vcmp.lt.s32.totalorder %v5860_v29, 0 }
 0x385   : > { %13287 = vst [vmem:[#allocation27_spill] sm:$0xff] %v9607_v48  ;;  %v9619_v10 = vshll.u32 %v1956_v12, 8  ;;  %v1830_v36 = vsel %vm1826_vm6, %v1810_v13, %v9347_v50  ;;  %v1832_v28 = vsel %vm1828_vm2, %v9349_v24, %v1831_v23  ;;  %v13289_v17 = vshll.u32 %v9481_v32, 16 }
 0x386   : > { %13288 = vst [vmem:[#allocation28_spill] sm:$0xff] %v9617_v0  ;;  %v9634_v55 = vsel %vm1981_vm0, %v1992_v52, %v1994_v46  ;;  %v4209_v47 = vsel %vm4207_vm7, %v4208_v56, %v9567_v26  ;;  %v1890_v12 = vadd.s32 1, %v1886_v45  ;;  %v12907_v50 = vshrl.u32 %v9611_v21, 16 }
 0x387   : > { %v9630_v37 = vadd.s32 %v9494_v8, %v13289_v17  ;;  %v4261_v30 = vand.u32 2139095040, %v9602_v27  ;;  %v9643_v24 = vmul.f32 %v9636_v14, %v9469_v38  ;;  %v1626_v32 = vmul.f32 %v1625_v63, %v9456_v62 }
 0x388   : > { %v9648_v8 = vmul.f32 %v9617_v0, %v9617_v0  ;;  %v9652_v61 = vsel %vm5861_vm1, 0, %v5860_v29  ;;  %v1833_v56 = vsel %vm1827_vm10, %v1830_v36, %v1832_v28  ;;  %v1997_v23 = vand.u32 65535, %v9619_v10 }
 0x389   : > { %13290 = vst [vmem:[#allocation34_spill] sm:$0xff] %v9630_v37  ;;  %vm1889_vm6 = vc.u32 %v9607_v48, %v9630_v37  ;;  %v12908_v6 = vshrl.u32 %v9634_v55, 16  ;;  %v13292_v38 = vxor.u32 2147483648, %v9475_v3  ;;  %v13293_v52 = vxor.u32 2147483648, %v9445_v11 }
 0x38a   : > { %13291 = vst [vmem:[#allocation35_spill] sm:$0xff] %v9643_v24  ;;  %v1613_v53 = vsel %vm9362_vm11, 0, %v9487_v1  ;;  %v4210_v46 = vclz %v4209_v47  ;;  %v1619_v22 = vmul.f32 %v1618_v5, %v9456_v62  ;;  %v1891_v13 = vsel %vm1889_vm6, %v1890_v12, %v1886_v45 }
 0x38b   : > { %v3944_v63 = vsel %vm3942_vm8, %v9445_v11, %v13292_v38  ;;  %v3947_v29 = vsel %vm3945_vm15, %v13293_v52, %v9475_v3  ;;  %v9674_v36 = vmul.u32 %v12907_v50, %v1997_v23  ;;  %v4262_v28 = vshrl.u32 %v4261_v30, 23  ;;  %v13294_v30 = vld [vmem:[#allocation24_spill] sm:$0xff] }
 0x38c   : > { %v1627_v17 = vadd.f32 1.0, %v1626_v32  ;;  %v1776_v38 = vmul.f32 -0.00019511016, %v9648_v8  ;;  %v4064_v11 = vsub.s32 4294967266, %v9652_v61  ;;  %v1887_v3 = vmul.u32 %v9404_v54, %v1833_v56 }
 0x38d   : > { %v9679_v52 = vand.u32 3, %v1613_v53  ;;  %v1769_v40 = vmul.f32 -0.001358992, %v9648_v8  ;;  %v9684_v62 = vmul.u32 %v12908_v6, %v1997_v23  ;;  %v2021_v1 = vand.u32 65535, %v9611_v21 }
 0x38e   : > { %v3948_v45 = vsel %vm3941_vm14, %v3944_v63, %v3947_v29  ;;  %v5863_v5 = vadd.s32 4294967294, %v4210_v46  ;;  %v9689_v47 = vadd.s32 %v1891_v13, %v1887_v3  ;;  %v1999_v12 = vand.u32 65535, %v9634_v55  ;;  %v13295_v3 = vld [vmem:[#allocation20_spill] sm:$0xff] }
 0x38f   : > { %v1764_v54 = vsub.s32 4, %v13294_v30  ;;  %v1998_v32 = vshrl.u32 %v9619_v10, 16  ;;  %v2027_v56 = vshll.u32 %v9674_v36, 16  ;;  %v5865_v53 = vadd.s32 4294967169, %v4262_v28 }
 0x390   : > { %v9695_v50 = vadd.f32 1.0, %v1619_v22  ;;  %v9698_v6 = vmul.f32 %v1627_v17, %v9435_v51  ;;  %v1777_v24 = vadd.f32 0.008332121, %v1776_v38  ;;  %v4065_v57 = vadd.s32 127, %v4064_v11 }
 0x391   : > { %v1770_v63 = vadd.f32 0.041655596, %v1769_v40  ;;  %v2005_v29 = vshll.u32 %v9684_v62, 16  ;;  %v2023_v46 = vmul.u32 %v2021_v1, %v1997_v23  ;;  %v9701_v13 = vmul.u32 %v2021_v1, %v1998_v32 }
 0x392   : > { %vm3939_vm11 = vweird.f32 %v13295_v3  ;;  %v4060_v42 = vsub.s32 32, %v9652_v61  ;;  %vm5864_vm2 = vcmp.lt.s32.totalorder %v5863_v5, 0  ;;  %v1893_v28 = vadd.s32 536870912, %v9689_v47 }
 0x393   : > { %v2001_v22 = vmul.u32 %v1999_v12, %v1997_v23  ;;  %v9706_v39 = vmul.u32 %v1999_v12, %v1998_v32  ;;  %vm2031_vm10 = vc.u32 %v2023_v46, %v2027_v56  ;;  %v9708_v51 = vadd.s32 %v2027_v56, %v2023_v46 }
 0x394   : > { %v4268_v17 = vadd.s32 1, %v5865_v53  ;;  %vm1632_vm9 = vcmp.eq.s32.totalorder %v9679_v52, 0  ;;  %v1633_v38 = vxor.u32 2147483648, %v9698_v6  ;;  %v1778_v11 = vmul.f32 %v1777_v24, %v9648_v8 }
 0x395   : > { %v4044_v40 = vadd.s32 %v9306_v16, %v9314_v18  ;;  %v4066_v1 = vshll.u32 %v4065_v57, 23  ;;  %v9715_v37 = vsel %vm5864_vm2, 0, %v5863_v5  ;;  %vm2009_vm8 = vc.u32 %v2001_v22, %v2005_v29 }
 0x396   : > { %v2011_v23 = vadd.s32 %v2005_v29, %v2001_v22  ;;  %v12914_v12 = vshll.u32 %v9701_v13, 16  ;;  %v1771_v56 = vmul.f32 %v1770_v63, %v9648_v8  ;;  %v9719_v53 = vshrl.u32 %v1893_v28, 30 }
 0x397   : > { %v4062_v46 = vshrl.u32 %v4044_v40, %v4060_v42  ;;  %v2032_v48 = vsel %vm2031_vm10, 1, %v13044_v9  ;;  %vm1631_vm15 = vcmp.lt.s32.totalorder %v9679_v52, 2  ;;  %v2007_v24 = vshll.u32 %v9706_v39, 16 }
 0x398   : > { %13296 = vst [vmem:[#allocation24_spill] sm:$0xff] %v9719_v53  ;;  %v13297_v16 = vshrl.u32 %v9611_v21, 16  ;;  %vm2035_vm7 = vc.u32 %v9708_v51, %v12914_v12  ;;  %vm4269_vm14 = vcmp.gt.s32.totalorder %v4268_v17, 0  ;;  %v4061_v5 = vshll.u32 %v9490_v58, %v9652_v61 }
 0x399   : > { %v4067_v42 = vor.u32 4788187, %v4066_v1  ;;  %v4218_v57 = vsub.s32 4294967266, %v9715_v37  ;;  %v2010_v63 = vsel %vm2009_vm8, 1, %v13044_v9  ;;  %v1779_v29 = vadd.f32 -0.16666654, %v1778_v11 }
 0x39a   : > { %v2026_v18 = vmul.u32 %v13297_v16, %v1998_v32  ;;  %v13298_v28 = vshrl.u32 %v9634_v55, 16  ;;  %vm2013_vm1 = vc.u32 %v2011_v23, %v2007_v24  ;;  %v4063_v40 = vor.u32 %v4062_v46, %v4061_v5 }
 0x39b   : > { %v1895_v16 = vshll.u32 %v9719_v53, 30  ;;  %v2036_v12 = vsel %vm2035_vm7, 1, %v13044_v9  ;;  %v4270_v0 = vsel %vm4269_vm14, %v4268_v17, 0  ;;  %v3949_v58 = vsel %vm3939_vm11, nan, %v3948_v45 }
 0x39c   : > { %v2004_v22 = vmul.u32 %v13298_v28, %v1998_v32  ;;  %v2034_v21 = vadd.s32 %v2032_v48, %v2026_v18  ;;  %vm1635_vm6 = vcmp.eq.s32.totalorder %v9679_v52, 2  ;;  %v1636_v61 = vxor.u32 2147483648, %v9695_v50 }
 0x39d   : > { %v9744_v55 = vsel %vm1642_vm4, %v1764_v54, %v13294_v30  ;;  %v4068_v48 = vand.u32 2147483647, %v4067_v42  ;;  %v4219_v32 = vadd.s32 127, %v4218_v57  ;;  %v2014_v11 = vsel %vm2013_vm1, 1, %v13044_v9 }
 0x39e   : > { %v2012_v1 = vadd.s32 %v2010_v63, %v2004_v22  ;;  %v1634_v17 = vsel %vm1632_vm9, %v9695_v50, %v1633_v38  ;;  %v1772_v3 = vadd.f32 -0.4999988, %v1771_v56  ;;  %v2038_v45 = vadd.s32 %v2036_v12, %v2034_v21  ;;  %v550_v38 = vpop.f32.mrf.mxu3 }
 0x39f   : > { %v4272_v23 = vand.u32 31, %v4270_v0  ;;  %v9751_v46 = vmul.f32 %v9636_v14, %v3949_v58  ;;  %v1780_v24 = vmul.f32 %v1779_v29, %v9648_v8  ;;  %v4070_v18 = vcvt.s32.f32 %v4063_v40  ;;  %v13301_v40 = vld [vmem:[#allocation18_spill] sm:$0xff] }
 0x3a0   : > { %v9755_v30 = vsub.s32 %v9689_v47, %v1895_v16  ;;  %v1637_v54 = vsel %vm1635_vm6, %v1636_v61, %v9698_v6  ;;  %v1767_v5 = vsel %vm9550_vm13, 0, %v9744_v55  ;;  %v2016_v42 = vadd.s32 %v2014_v11, %v2012_v1 }
 0x3a1   : > { %13299 = vst [vmem:[#allocation20_spill] sm:$0xff] %v9751_v46  ;;  %v2028_v50 = vshrl.u32 %v9674_v36, 16  ;;  %v9764_v14 = vsel %vm1631_vm15, %v1634_v17, %v1637_v54  ;;  %v4071_v12 = vmul.f32 %v4070_v18, %v4068_v48  ;;  %v4214_v56 = vsub.s32 32, %v9715_v37 }
 0x3a2   : > { %v4220_v57 = vshll.u32 %v4219_v32, 23  ;;  %v9768_v47 = vmul.f32 %v1772_v3, %v9648_v8  ;;  %v2006_v6 = vshrl.u32 %v9684_v62, 16  ;;  %v9771_v29 = vsub.s32 32, %v4272_v23 }
 0x3a3   : > { %v2039_v63 = vadd.s32 %v2038_v45, %v2028_v50  ;;  %v9773_v28 = vadd.f32 1.0, %v1780_v24  ;;  %v4198_v36 = vadd.s32 %v9430_v31, %v9410_v35  ;;  %v1898_v52 = vsub.s32 0, %v9755_v30 }
 0x3a4   : > { %v9779_v22 = vadd.f32 %v550_v38, %v13284_v44  ;;  %vm1897_vm4 = vcmp.lt.s32.totalorder %v9755_v30, 0  ;;  %v1985_v8 = vsel %vm1983_vm12, %v9563_v43, 2102212464  ;;  %v2017_v62 = vadd.s32 %v2016_v42, %v2006_v6 }
 0x3a5   : > { %v2030_v21 = vshrl.u32 %v9701_v13, 16  ;;  %vm3952_vm11 = vcmp.lt.s32.totalorder %v13301_v40, 0  ;;  %v4072_v16 = vxor.u32 2147483648, %v4071_v12  ;;  %v4216_v58 = vshrl.u32 %v4198_v36, %v4214_v56 }
 0x3a6   : > { %13300 = vst [vmem:[#allocation36_spill] sm:$0xff] %v9779_v22  ;;  %v9787_v61 = vor.u32 4788187, %v4220_v57  ;;  %v1964_v35 = vshrl.u32 %v13043_v34, %v9503_v59  ;;  %v2008_v31 = vshrl.u32 %v9706_v39, 16  ;;  %v4285_v1 = vshrl.u32 %v13134_v19, %v9771_v29 }
 0x3a7   : > { %v2040_v44 = vadd.s32 %v2039_v63, %v2030_v21  ;;  %v4288_v43 = vshrl.u32 %v13195_v41, %v9771_v29  ;;  %v1899_v48 = vsel %vm1897_vm4, %v1898_v52, %v9755_v30  ;;  %v1986_v11 = vsel %vm1982_vm3, %v9561_v7, %v1985_v8 }
 0x3a8   : > { %v1984_v32 = vsel %vm1980_vm5, %v1964_v35, %v9559_v60  ;;  %v4415_v59 = vand.u32 2139095040, %v9779_v22  ;;  %v9804_v39 = vadd.s32 %v2017_v62, %v2008_v31  ;;  %v12916_v17 = vand.u32 2147483647, %v9602_v27 }
 0x3a9   : > { %v4284_v3 = vshll.u32 %v13193_v49, %v4272_v23  ;;  %v4287_v45 = vshll.u32 %v13134_v19, %v4272_v23  ;;  %v9809_v24 = vshrl.u32 %v4270_v0, 5  ;;  %v4276_v18 = vshrl.u32 %v13136_v20, %v9771_v29 }
 0x3aa   : > { %v4279_v60 = vshrl.u32 %v13137_v2, %v9771_v29  ;;  %v4282_v7 = vshrl.u32 %v13193_v49, %v9771_v29  ;;  %v13302_v54 = vshll.u32 %v9701_v13, 16  ;;  %v2044_v50 = vadd.s32 1, %v2040_v44 }
 0x3ab   : > { %v4286_v38 = vor.u32 %v4285_v1, %v4284_v3  ;;  %v4289_v56 = vor.u32 %v4288_v43, %v4287_v45  ;;  %v4275_v0 = vshll.u32 %v13043_v34, %v4272_v23  ;;  %v4278_v57 = vshll.u32 %v13136_v20, %v4272_v23 }
 0x3ac   : > { %v9820_v42 = vadd.s32 %v9708_v51, %v13302_v54  ;;  %v4281_v6 = vshll.u32 %v13137_v2, %v4272_v23  ;;  %v4416_v63 = vshrl.u32 %v4415_v59, 23  ;;  %vm1629_vm12 = vweird.f32 %v13265_v4 }
 0x3ad   : > { %v4215_v36 = vshll.u32 %v9567_v26, %v9715_v37  ;;  %v1987_v13 = vsel %vm1981_vm0, %v1984_v32, %v1986_v11  ;;  %v4265_v51 = vand.u32 8388607, %v12916_v17  ;;  %v9834_v52 = vor.u32 %v4276_v18, %v4275_v0 }
 0x3ae   : > { %vm2043_vm5 = vc.u32 %v9804_v39, %v9820_v42  ;;  %v9836_v8 = vor.u32 %v4279_v60, %v4278_v57  ;;  %v9838_v23 = vor.u32 %v4282_v7, %v4281_v6  ;;  %vm4293_vm3 = vcmp.lt.s32.totalorder %v9809_v24, 4 }
 0x3af   : > { %v4073_v26 = vsel %vm3952_vm11, %v4072_v16, %v4071_v12  ;;  %v1900_v37 = vclz %v1899_v48  ;;  %v4299_v25 = vsel %vm4293_vm3, %v4286_v38, 920167782  ;;  %v4303_v62 = vsel %vm4293_vm3, %v4289_v56, 1326507024  ;;  %v13304_v48 = vld [vmem:[#allocation21_spill] sm:$0xff] }
 0x3b0   : > { %v4217_v21 = vor.u32 %v4216_v58, %v4215_v36  ;;  %v4222_v35 = vand.u32 2147483647, %v9787_v61  ;;  %v2045_v31 = vsel %vm2043_vm5, %v2044_v50, %v2040_v44  ;;  %v5868_v1 = vadd.s32 4294967169, %v4416_v63  ;;  %v13303_v61 = vld [vmem:[#allocation28_spill] sm:$0xff] }
 0x3b1   : > { %v2041_v43 = vmul.u32 %v9619_v10, %v1987_v13  ;;  %v4266_v32 = vor.u32 8388608, %v4265_v51  ;;  %vm4290_vm0 = vcmp.lt.s32.totalorder %v9809_v24, 1  ;;  %vm4292_vm2 = vcmp.lt.s32.totalorder %v9809_v24, 3  ;;  %v13309_v51 = vld [vmem:[#allocation30_spill] sm:$0xff] }
 0x3b2   : > { %v4298_v12 = vsel %vm4290_vm0, %v9834_v52, %v9836_v8  ;;  %v4300_v16 = vsel %vm4292_vm2, %v9838_v23, %v4299_v25  ;;  %v4302_v58 = vsel %vm4290_vm0, %v9836_v8, %v9838_v23  ;;  %v4304_v10 = vsel %vm4292_vm2, %v4286_v38, %v4303_v62 }
 0x3b3   : > { %v1782_v44 = vmul.f32 %v9773_v28, %v13303_v61  ;;  %v4074_v11 = vsub.s32 4, %v13304_v48  ;;  %v5818_v59 = vadd.s32 4294967294, %v1900_v37  ;;  %v9867_v3 = vadd.s32 %v2045_v31, %v2041_v43 }
 0x3b4   : > { %v13305_v45 = vand.u32 2147483647, %v13301_v40  ;;  %v4224_v60 = vcvt.s32.f32 %v4217_v21  ;;  %vm4291_vm9 = vcmp.lt.s32.totalorder %v9809_v24, 2  ;;  %v4422_v7 = vadd.s32 1, %v5868_v1  ;;  %v529_v24 = vpop.f32.mrf.mxu1 }
 0x3b5   : > { %v1774_v54 = vadd.f32 1.0, %v9768_v47  ;;  %v9884_v50 = vsel %vm4291_vm9, %v4298_v12, %v4300_v16  ;;  %v9888_v38 = vsel %vm4291_vm9, %v4302_v58, %v4304_v10  ;;  %v1639_v56 = vsel %vm1629_vm12, nan, %v9764_v14  ;;  %v13314_v58 = vld [vmem:[#allocation15_spill] sm:$0xff] }
 0x3b6   : > { %vm9871_vm10 = vcmp.le.f32.partialorder %v13305_v45, 0.7853982  ;;  %v1784_v47 = vand.u32 3, %v1767_v5  ;;  %v4225_v0 = vmul.f32 %v4224_v60, %v4222_v35  ;;  %v9897_v57 = vshll.u32 %v4266_v32, 8  ;;  %v13308_v5 = vld [vmem:[#allocation13_spill] sm:$0xff] }
 0x3b7   : > { %v9880_v28 = vsel %vm9871_vm10, %v13301_v40, %v4073_v26  ;;  %v1787_v6 = vxor.u32 2147483648, %v1782_v44  ;;  %v4075_v63 = vsel %vm3952_vm11, %v4074_v11, %v13304_v48  ;;  %vm5819_vm8 = vcmp.lt.s32.totalorder %v5818_v59, 0 }
 0x3b8   : > { %v2047_v36 = vadd.s32 536870912, %v9867_v3  ;;  %v9905_v4 = vmul.f32 %v9880_v28, %v9880_v28  ;;  %v12918_v15 = vshrl.u32 %v9888_v38, 16  ;;  %v12917_v55 = vshrl.u32 %v9884_v50, 16 }
 0x3b9   : > { %vm4423_vm13 = vcmp.gt.s32.totalorder %v4422_v7, 0  ;;  %v5592_v14 = vmul.f32 %v13308_v5, %v1639_v56  ;;  %v1790_v13 = vxor.u32 2147483648, %v1774_v54  ;;  %v13310_v26 = vand.u32 2147483647, %v13309_v51 }
 0x3ba   : > { %vm4106_vm7 = vcmp.lt.s32.totalorder %v13309_v51, 0  ;;  %vm1783_vm14 = vweird.f32 %v13277_v33  ;;  %vm1786_vm1 = vcmp.eq.s32.totalorder %v1784_v47, 0  ;;  %v4226_v25 = vxor.u32 2147483648, %v4225_v0 }
 0x3bb   : > { %vm9912_vm15 = vcmp.le.f32.partialorder %v13310_v26, 0.7853982  ;;  %v9918_v62 = vsel %vm5819_vm8, 0, %v5818_v59  ;;  %v4307_v21 = vand.u32 65535, %v9897_v57  ;;  %vm1789_vm6 = vcmp.eq.s32.totalorder %v1784_v47, 2 }
 0x3bc   : > { %v4077_v35 = vsel %vm9871_vm10, 0, %v4075_v63  ;;  %v9923_v31 = vshrl.u32 %v2047_v36, 30  ;;  %v4424_v1 = vsel %vm4423_vm13, %v4422_v7, 0  ;;  %v1788_v43 = vsel %vm1786_vm1, %v1774_v54, %v1787_v6 }
 0x3bd   : > { %v4079_v32 = vmul.f32 -0.001358992, %v9905_v4  ;;  %v9928_v12 = vmul.u32 %v12918_v15, %v4307_v21  ;;  %v9932_v16 = vmul.u32 %v12917_v55, %v4307_v21  ;;  %v9935_v10 = vadd.f32 %v13314_v58, %v5592_v14  ;;  %v13318_v58 = vld [vmem:[#allocation27_spill] sm:$0xff] }
 0x3be   : > { %13313 = vst [vmem:[#allocation28_spill] sm:$0xff] %v9923_v31  ;;  %vm1785_vm4 = vcmp.lt.s32.totalorder %v1784_v47, 2  ;;  %v1791_v61 = vsel %vm1789_vm6, %v1790_v13, %v1782_v44  ;;  %v1908_v48 = vsub.s32 4294967266, %v9918_v62  ;;  %v4227_v11 = vsel %vm4106_vm7, %v4226_v25, %v4225_v0 }
 0x3bf   : > { %13315 = vst [vmem:[#allocation21_spill] sm:$0xff] %v9935_v10  ;;  %v4309_v59 = vand.u32 65535, %v9888_v38  ;;  %v4331_v45 = vand.u32 65535, %v9884_v50  ;;  %v4426_v18 = vand.u32 31, %v4424_v1  ;;  %v1792_v60 = vsel %vm1785_vm4, %v1788_v43, %v1791_v61  ;;  %v13319_v61 = vld [vmem:[#allocation34_spill] sm:$0xff] }
 0x3c0   : > { %v4086_v7 = vmul.f32 -0.00019511016, %v9905_v4  ;;  %v9943_v54 = vand.u32 3, %v4077_v35  ;;  %v2049_v56 = vshll.u32 %v9923_v31, 30  ;;  %v4080_v6 = vadd.f32 0.041655596, %v4079_v32 }
 0x3c1   : > { %v4308_v44 = vshrl.u32 %v9897_v57, 16  ;;  %v4315_v47 = vshll.u32 %v9928_v12, 16  ;;  %v4337_v63 = vshll.u32 %v9932_v16, 16  ;;  %v9952_v0 = vsel %vm9912_vm15, %v13309_v51, %v4227_v11 }
 0x3c2   : > { %13316 = vst [vmem:[#allocation13_spill] sm:$0xff] %v9943_v54  ;;  %v1904_v36 = vsub.s32 32, %v9918_v62  ;;  %v1909_v14 = vadd.s32 127, %v1908_v48  ;;  %v12919_v13 = vand.u32 2147483647, %v9779_v22  ;;  %v4311_v26 = vmul.u32 %v4309_v59, %v4307_v21  ;;  %v464_v54 = vpop.f32.mrf.mxu0 }
 0x3c3   : > { %13317 = vst [vmem:[#allocation15_spill] sm:$0xff] %v9952_v0  ;;  %v4333_v25 = vmul.u32 %v4331_v45, %v4307_v21  ;;  %v9956_v35 = vmul.u32 %v4331_v45, %v4308_v44  ;;  %v9958_v43 = vsub.s32 32, %v4426_v18  ;;  %v9962_v32 = vsel %vm1783_vm14, nan, %v1792_v60 }
 0x3c4   : > { %v1888_v17 = vadd.s32 %v13319_v61, %v13318_v58  ;;  %v9967_v11 = vsub.s32 %v9867_v3, %v2049_v56  ;;  %v9969_v55 = vmul.u32 %v4309_v59, %v4308_v44  ;;  %v9972_v48 = vmul.f32 %v4080_v6, %v9905_v4 }
 0x3c5   : > { %v4087_v21 = vadd.f32 0.008332121, %v4086_v7  ;;  %vm4319_vm11 = vc.u32 %v4311_v26, %v4315_v47  ;;  %v9974_v45 = vadd.s32 %v4337_v63, %v4333_v25  ;;  %v9978_v33 = vmul.f32 %v9952_v0, %v9952_v0 }
 0x3c6   : > { %v1905_v60 = vshll.u32 %v9755_v30, %v9918_v62  ;;  %v1906_v58 = vshrl.u32 %v1888_v17, %v1904_v36  ;;  %vm4341_vm12 = vc.u32 %v4333_v25, %v4337_v63  ;;  %v1910_v3 = vshll.u32 %v1909_v14, 23 }
 0x3c7   : > { %v12920_v59 = vshll.u32 %v9956_v35, 16  ;;  %v4419_v56 = vand.u32 8388607, %v12919_v13  ;;  %v4439_v7 = vshrl.u32 %v13134_v19, %v9958_v43  ;;  %v2052_v6 = vsub.s32 0, %v9967_v11 }
 0x3c8   : > { %v4317_v61 = vshll.u32 %v9969_v55, 16  ;;  %v4320_v15 = vsel %vm4319_vm11, 1, %v13044_v9  ;;  %v4321_v46 = vadd.s32 %v4315_v47, %v4311_v26  ;;  %v4342_v30 = vsel %vm4341_vm12, 1, %v13044_v9 }
 0x3c9   : > { %vm9994_vm5 = vc.u32 %v9974_v45, %v12920_v59  ;;  %v4438_v62 = vshll.u32 %v13193_v49, %v4426_v18  ;;  %v4442_v63 = vshrl.u32 %v13195_v41, %v9958_v43  ;;  %v10001_v36 = vshrl.u32 %v4424_v1, 5 }
 0x3ca   : > { %v4430_v14 = vshrl.u32 %v13136_v20, %v9958_v43  ;;  %v4433_v47 = vshrl.u32 %v13137_v2, %v9958_v43  ;;  %v4436_v26 = vshrl.u32 %v13193_v49, %v9958_v43  ;;  %v13322_v25 = vshrl.u32 %v9888_v38, 16 }
 0x3cb   : > { %v13323_v59 = vshrl.u32 %v9884_v50, 16  ;;  %v4440_v22 = vor.u32 %v4439_v7, %v4438_v62  ;;  %v4441_v40 = vshll.u32 %v13134_v19, %v4426_v18  ;;  %vm4323_vm10 = vc.u32 %v4321_v46, %v4317_v61  ;;  %v13324_v7 = vld [vmem:[#allocation7_spill] sm:$0xff] }
 0x3cc   : > { %v4314_v13 = vmul.u32 %v13322_v25, %v4308_v44  ;;  %v4429_v1 = vshll.u32 %v13043_v34, %v4426_v18  ;;  %v4432_v27 = vshll.u32 %v13136_v20, %v4426_v18  ;;  %v4435_v31 = vshll.u32 %v13137_v2, %v4426_v18 }
 0x3cd   : > { %v4336_v10 = vmul.u32 %v13323_v59, %v4308_v44  ;;  %v4346_v38 = vsel %vm9994_vm5, 1, %v13044_v9  ;;  %v4443_v25 = vor.u32 %v4442_v63, %v4441_v40  ;;  %vm4447_vm8 = vcmp.lt.s32.totalorder %v10001_v36, 4 }
 0x3ce   : > { %v4322_v53 = vadd.s32 %v4320_v15, %v4314_v13  ;;  %v10020_v50 = vor.u32 %v4430_v14, %v4429_v1  ;;  %v10022_v44 = vor.u32 %v4433_v47, %v4432_v27  ;;  %v10024_v59 = vor.u32 %v4436_v26, %v4435_v31 }
 0x3cf   : > { %v4344_v0 = vadd.s32 %v4342_v30, %v4336_v10  ;;  %v1911_v46 = vor.u32 4788187, %v1910_v3  ;;  %vm2051_vm13 = vcmp.lt.s32.totalorder %v9967_v11, 0  ;;  %v4324_v15 = vsel %vm4323_vm10, 1, %v13044_v9 }
 0x3d0   : > { %v4453_v10 = vsel %vm4447_vm8, %v4440_v22, 920167782  ;;  %v4088_v18 = vmul.f32 %v4087_v21, %v9905_v4  ;;  %v1907_v40 = vor.u32 %v1906_v58, %v1905_v60  ;;  %v4420_v13 = vor.u32 8388608, %v4419_v56 }
 0x3d1   : > { %v10033_v61 = vadd.f32 %v464_v54, %v13324_v7  ;;  %v4348_v27 = vadd.s32 %v4346_v38, %v4344_v0  ;;  %vm4444_vm14 = vcmp.lt.s32.totalorder %v10001_v36, 1  ;;  %vm4446_vm1 = vcmp.lt.s32.totalorder %v10001_v36, 3 }
 0x3d2   : > { %v4457_v31 = vsel %vm4447_vm8, %v4443_v25, 1326507024  ;;  %v2053_v3 = vsel %vm2051_vm13, %v2052_v6, %v9967_v11  ;;  %v4326_v30 = vadd.s32 %v4324_v15, %v4322_v53  ;;  %v4452_v21 = vsel %vm4444_vm14, %v10020_v50, %v10022_v44 }
 0x3d3   : > { %13325 = vst [vmem:[#allocation27_spill] sm:$0xff] %v10033_v61  ;;  %v4454_v54 = vsel %vm4446_vm1, %v10024_v59, %v4453_v10  ;;  %v4233_v0 = vmul.f32 -0.001358992, %v9978_v33  ;;  %v1912_v60 = vand.u32 2147483647, %v1911_v46  ;;  %v4338_v58 = vshrl.u32 %v9932_v16, 16 }
 0x3d4   : > { %v2105_v56 = vand.u32 2139095040, %v10033_v61  ;;  %v4316_v17 = vshrl.u32 %v9928_v12, 16  ;;  %vm4445_vm6 = vcmp.lt.s32.totalorder %v10001_v36, 2  ;;  %v4456_v53 = vsel %vm4444_vm14, %v10022_v44, %v10024_v59  ;;  %v13326_v12 = vld [vmem:[#allocation6_spill] sm:$0xff]  ;;  %v13341_v36 = vld [vmem:[#allocation15_spill] sm:$0xff] }
 0x3d5   : > { %v4458_v6 = vsel %vm4446_vm1, %v4440_v22, %v4457_v31  ;;  %v1914_v62 = vcvt.s32.f32 %v1907_v40  ;;  %v2054_v63 = vclz %v2053_v3  ;;  %v4349_v14 = vadd.s32 %v4348_v27, %v4338_v58 }
 0x3d6   : > { %v10060_v16 = vsel %vm4445_vm6, %v4452_v21, %v4454_v54  ;;  %v4082_v47 = vadd.f32 -0.4999988, %v9972_v48  ;;  %vm1796_vm4 = vcmp.lt.s32.totalorder %v13326_v12, 0  ;;  %v4327_v26 = vadd.s32 %v4326_v30, %v4316_v17 }
 0x3d7   : > { %v10064_v1 = vshll.u32 %v4420_v13, 8  ;;  %v2106_v38 = vshrl.u32 %v2105_v56, 23  ;;  %v4089_v25 = vadd.f32 -0.16666654, %v4088_v18  ;;  %v1915_v46 = vmul.f32 %v1914_v62, %v1912_v60  ;;  %v13330_v56 = vld [vmem:[#allocation19_spill] sm:$0xff] }
 0x3d8   : > { %v4340_v15 = vshrl.u32 %v9956_v35, 16  ;;  %v10069_v22 = vsel %vm4445_vm6, %v4456_v53, %v4458_v6  ;;  %v4234_v10 = vadd.f32 0.041655596, %v4233_v0  ;;  %v4240_v40 = vmul.f32 -0.00019511016, %v9978_v33 }
 0x3d9   : > { %v4318_v27 = vshrl.u32 %v9969_v55, 16  ;;  %v4486_v48 = vshrl.u32 %v10060_v16, 16  ;;  %v5821_v31 = vadd.s32 4294967294, %v2054_v63  ;;  %v4274_v13 = vshrl.u32 %v13043_v34, %v9771_v29 }
 0x3da   : > { %v4295_v18 = vsel %vm4293_vm3, %v9838_v23, 2102212464  ;;  %v4350_v3 = vadd.s32 %v4349_v14, %v4340_v15  ;;  %v13327_v30 = vand.u32 2147483647, %v13326_v12  ;;  %v4461_v55 = vand.u32 65535, %v10064_v1 }
 0x3db   : > { %v10085_v54 = vadd.s32 %v4327_v26, %v4318_v27  ;;  %v12932_v0 = vshrl.u32 %v10069_v22, 16  ;;  %v5823_v60 = vadd.s32 4294967169, %v2106_v38  ;;  %v4083_v29 = vmul.f32 %v4082_v47, %v9905_v4 }
 0x3dc   : > { %vm10081_vm11 = vcmp.le.f32.partialorder %v13327_v30, 0.7853982  ;;  %v4090_v58 = vmul.f32 %v4089_v25, %v9905_v4  ;;  %v4228_v23 = vsub.s32 4, %v13330_v56  ;;  %v1916_v17 = vxor.u32 2147483648, %v1915_v46 }
 0x3dd   : > { %v4294_v53 = vsel %vm4290_vm0, %v4274_v13, %v9834_v52  ;;  %v4296_v6 = vsel %vm4292_vm2, %v9836_v8, %v4295_v18  ;;  %v13331_v62 = vshll.u32 %v9956_v35, 16  ;;  %v10105_v14 = vmul.u32 %v4486_v48, %v4461_v55 }
 0x3de   : > { %v4235_v4 = vmul.f32 %v4234_v10, %v9978_v33  ;;  %v4241_v47 = vadd.f32 0.008332121, %v4240_v40  ;;  %vm5822_vm3 = vcmp.lt.s32.totalorder %v5821_v31, 0  ;;  %v4354_v26 = vadd.s32 1, %v4350_v3 }
 0x3df   : > { %v10101_v63 = vadd.s32 %v9974_v45, %v13331_v62  ;;  %v10112_v52 = vmul.u32 %v12932_v0, %v4461_v55  ;;  %v4485_v8 = vand.u32 65535, %v10060_v16  ;;  %v2112_v35 = vadd.s32 1, %v5823_v60 }
 0x3e0   : > { %v10115_v45 = vadd.f32 1.0, %v4083_v29  ;;  %v10120_v38 = vsel %vm4106_vm7, %v4228_v23, %v13330_v56  ;;  %v1917_v25 = vsel %vm1796_vm4, %v1916_v17, %v1915_v46  ;;  %v4297_v15 = vsel %vm4291_vm9, %v4294_v53, %v4296_v6 }
 0x3e1   : > { %vm4353_vm0 = vc.u32 %v10085_v54, %v10101_v63  ;;  %v2057_v10 = vsel %vm5822_vm3, 0, %v5821_v31  ;;  %v4462_v40 = vshrl.u32 %v10064_v1, 16  ;;  %v4463_v27 = vand.u32 65535, %v10069_v22 }
 0x3e2   : > { %v4491_v13 = vshll.u32 %v10105_v14, 16  ;;  %v4091_v18 = vadd.f32 1.0, %v4090_v58  ;;  %v4236_v30 = vadd.f32 -0.4999988, %v4235_v4  ;;  %v4242_v60 = vmul.f32 %v4241_v47, %v9978_v33 }
 0x3e3   : > { %v4355_v29 = vsel %vm4353_vm0, %v4354_v26, %v4350_v3  ;;  %v4469_v56 = vshll.u32 %v10112_v52, 16  ;;  %v4487_v23 = vmul.u32 %v4485_v8, %v4461_v55  ;;  %v10131_v62 = vmul.u32 %v4485_v8, %v4462_v40 }
 0x3e4   : > { %vm2113_vm2 = vcmp.gt.s32.totalorder %v2112_v35, 0  ;;  %v10136_v46 = vsel %vm10081_vm11, %v13326_v12, %v1917_v25  ;;  %v2058_v31 = vsub.s32 32, %v2057_v10  ;;  %v2062_v17 = vsub.s32 4294967266, %v2057_v10 }
 0x3e5   : > { %v4351_v58 = vmul.u32 %v9897_v57, %v4297_v15  ;;  %v4465_v53 = vmul.u32 %v4463_v27, %v4461_v55  ;;  %v10139_v6 = vmul.u32 %v4463_v27, %v4462_v40  ;;  %vm4495_vm9 = vc.u32 %v4487_v23, %v4491_v13 }
 0x3e6   : > { %v10141_v3 = vadd.s32 %v4491_v13, %v4487_v23  ;;  %v2042_v4 = vadd.s32 %v9820_v42, %v9804_v39  ;;  %v2114_v26 = vsel %vm2113_vm2, %v2112_v35, 0  ;;  %v10148_v8 = vadd.f32 %v529_v24, %v13324_v7 }
 0x3e7   : > { %v10145_v47 = vadd.s32 %v4355_v29, %v4351_v58  ;;  %v4243_v25 = vadd.f32 -0.16666654, %v4242_v60  ;;  %vm4473_vm7 = vc.u32 %v4465_v53, %v4469_v56  ;;  %v4475_v0 = vadd.s32 %v4469_v56, %v4465_v53 }
 0x3e8   : > { %13332 = vst [vmem:[#allocation34_spill] sm:$0xff] %v10148_v8  ;;  %v12933_v57 = vshll.u32 %v10131_v62, 16  ;;  %v10153_v55 = vmul.f32 %v10136_v46, %v10136_v46  ;;  %v2060_v15 = vshrl.u32 %v2042_v4, %v2058_v31  ;;  %v2063_v27 = vadd.s32 127, %v2062_v17 }
 0x3e9   : > { %v4496_v13 = vsel %vm4495_vm9, 1, %v13044_v9  ;;  %v4471_v39 = vshll.u32 %v10139_v6, 16  ;;  %v4490_v42 = vmul.u32 %v4486_v48, %v4462_v40  ;;  %v2116_v7 = vand.u32 31, %v2114_v26 }
 0x3ea   : > { %vm4499_vm12 = vc.u32 %v10141_v3, %v12933_v57  ;;  %v2059_v35 = vshll.u32 %v9967_v11, %v2057_v10  ;;  %v4357_v60 = vadd.s32 536870912, %v10145_v47  ;;  %v4474_v29 = vsel %vm4473_vm7, 1, %v13044_v9 }
 0x3eb   : > { %v2259_v56 = vand.u32 2139095040, %v10148_v8  ;;  %v4244_v23 = vmul.f32 %v4243_v25, %v9978_v33  ;;  %v13333_v24 = vshrl.u32 %v10069_v22, 16  ;;  %vm4477_vm5 = vc.u32 %v4475_v0, %v4471_v39 }
 0x3ec   : > { %v4498_v16 = vadd.s32 %v4496_v13, %v4490_v42  ;;  %v1923_v48 = vmul.f32 -0.001358992, %v10153_v55  ;;  %v10170_v17 = vor.u32 %v2060_v15, %v2059_v35  ;;  %v2064_v58 = vshll.u32 %v2063_v27, 23 }
 0x3ed   : > { %v4468_v31 = vmul.u32 %v13333_v24, %v4462_v40  ;;  %v4500_v11 = vsel %vm4499_vm12, 1, %v13044_v9  ;;  %v10175_v10 = vmul.f32 %v13308_v5, %v9962_v32  ;;  %v10180_v22 = vsub.s32 32, %v2116_v7 }
 0x3ee   : > { %v10183_v0 = vmul.f32 %v4091_v18, %v9880_v28  ;;  %v10185_v40 = vshrl.u32 %v4357_v60, 30  ;;  %v4478_v25 = vsel %vm4477_vm5, 1, %v13044_v9  ;;  %v2260_v15 = vshrl.u32 %v2259_v56, 23 }
 0x3ef   : > { %13334 = vst [vmem:[#allocation7_spill] sm:$0xff] %v10175_v10  ;;  %v4476_v4 = vadd.s32 %v4474_v29, %v4468_v31  ;;  %v10190_v5 = vmul.f32 %v4236_v30, %v9978_v33  ;;  %v10192_v32 = vadd.f32 1.0, %v4244_v23  ;;  %v4502_v13 = vadd.s32 %v4500_v11, %v4498_v16 }
 0x3f0   : > { %13335 = vst [vmem:[#allocation19_spill] sm:$0xff] %v10185_v40  ;;  %v10194_v39 = vadd.f32 0.041655596, %v1923_v48  ;;  %v1930_v42 = vmul.f32 -0.00019511016, %v10153_v55  ;;  %v2068_v28 = vcvt.s32.f32 %v10170_v17  ;;  %v4428_v18 = vshrl.u32 %v13043_v34, %v9958_v43 }
 0x3f1   : > { %v2065_v35 = vor.u32 4788187, %v2064_v58  ;;  %v4480_v60 = vadd.s32 %v4478_v25, %v4476_v4  ;;  %v4492_v29 = vshrl.u32 %v10105_v14, 16  ;;  %v2129_v33 = vshrl.u32 %v13134_v19, %v10180_v22 }
 0x3f2   : > { %v4359_v30 = vshll.u32 %v10185_v40, 30  ;;  %v4449_v56 = vsel %vm4447_vm8, %v10024_v59, 2102212464  ;;  %v4470_v23 = vshrl.u32 %v10112_v52, 16  ;;  %v5826_v24 = vadd.s32 4294967169, %v2260_v15 }
 0x3f3   : > { %v4503_v31 = vadd.s32 %v4502_v13, %v4492_v29  ;;  %v12937_v16 = vand.u32 2147483647, %v10033_v61  ;;  %v2128_v43 = vshll.u32 %v13193_v49, %v2116_v7  ;;  %v2132_v14 = vshrl.u32 %v13195_v41, %v10180_v22 }
 0x3f4   : > { %v10212_v48 = vshrl.u32 %v2114_v26, 5  ;;  %v2120_v17 = vshrl.u32 %v13136_v20, %v10180_v22  ;;  %v2123_v58 = vshrl.u32 %v13137_v2, %v10180_v22  ;;  %v2126_v59 = vshrl.u32 %v13193_v49, %v10180_v22 }
 0x3f5   : > { %v4481_v52 = vadd.s32 %v4480_v60, %v4470_v23  ;;  %v4494_v11 = vshrl.u32 %v10131_v62, 16  ;;  %v2130_v4 = vor.u32 %v2129_v33, %v2128_v43  ;;  %v2131_v25 = vshll.u32 %v13134_v19, %v2116_v7 }
 0x3f6   : > { %v2119_v15 = vshll.u32 %v13043_v34, %v2116_v7  ;;  %v2122_v26 = vshll.u32 %v13136_v20, %v2116_v7  ;;  %v2125_v13 = vshll.u32 %v13137_v2, %v2116_v7  ;;  %v2266_v29 = vadd.s32 1, %v5826_v24 }
 0x3f7   : > { %v4472_v53 = vshrl.u32 %v10139_v6, 16  ;;  %v4504_v27 = vadd.s32 %v4503_v31, %v4494_v11  ;;  %v2109_v57 = vand.u32 8388607, %v12937_v16  ;;  %v2133_v40 = vor.u32 %v2132_v14, %v2131_v25  ;;  %v13337_v31 = vld [vmem:[#allocation13_spill] sm:$0xff] }
 0x3f8   : > { %v10228_v60 = vor.u32 %v2120_v17, %v2119_v15  ;;  %v10230_v23 = vor.u32 %v2123_v58, %v2122_v26  ;;  %v10232_v33 = vor.u32 %v2126_v59, %v2125_v13  ;;  %vm2137_vm10 = vcmp.lt.s32.totalorder %v10212_v48, 4  ;;  %v13342_v15 = vld [vmem:[#allocation24_spill] sm:$0xff] }
 0x3f9   : > { %v2066_v43 = vand.u32 2147483647, %v2065_v35  ;;  %v4448_v7 = vsel %vm4444_vm14, %v4428_v18, %v10020_v50  ;;  %v10238_v24 = vadd.s32 %v4481_v52, %v4472_v53  ;;  %v2143_v6 = vsel %vm2137_vm10, %v2130_v4, 920167782 }
 0x3fa   : > { %vm4099_vm8 = vcmp.eq.s32.totalorder %v13337_v31, 2  ;;  %v10244_v14 = vsub.s32 %v10145_v47, %v4359_v30  ;;  %v4450_v17 = vsel %vm4446_vm1, %v10022_v44, %v4449_v56  ;;  %v13338_v35 = vshll.u32 %v10131_v62, 16 }
 0x3fb   : > { %13336 = vst [vmem:[#allocation37_spill] sm:$0xff] %v10238_v24  ;;  %vm2267_vm13 = vcmp.gt.s32.totalorder %v2266_v29, 0  ;;  %vm4096_vm14 = vcmp.eq.s32.totalorder %v13337_v31, 0  ;;  %v2110_v50 = vor.u32 8388608, %v2109_v57  ;;  %vm2134_vm3 = vcmp.lt.s32.totalorder %v10212_v48, 1  ;;  %v13340_v57 = vld [vmem:[#allocation33_spill] sm:$0xff] }
 0x3fc   : > { %v10252_v58 = vadd.s32 %v10141_v3, %v13338_v35  ;;  %vm2136_vm0 = vcmp.lt.s32.totalorder %v10212_v48, 3  ;;  %v2147_v47 = vsel %vm2137_vm10, %v2133_v40, 1326507024  ;;  %v4508_v53 = vadd.s32 1, %v4504_v27 }
 0x3fd   : > { %v2142_v44 = vsel %vm2134_vm3, %v10228_v60, %v10230_v23  ;;  %v2144_v62 = vsel %vm2136_vm0, %v10232_v33, %v2143_v6  ;;  %v2268_v3 = vsel %vm2267_vm13, %v2266_v29, 0  ;;  %v1931_v18 = vadd.f32 0.008332121, %v1930_v42 }
 0x3fe   : > { %13339 = vst [vmem:[#allocation13_spill] sm:$0xff] %v10252_v58  ;;  %vm12949_vm1 = vcmp.lt.s32.totalorder %v13340_v57, 0  ;;  %v2069_v30 = vmul.f32 %v2068_v28, %v2066_v43  ;;  %v4451_v56 = vsel %vm4445_vm6, %v4448_v7, %v4450_v17  ;;  %vm4507_vm2 = vc.u32 %v10238_v24, %v10252_v58 }
 0x3ff   : > { %vm2135_vm9 = vcmp.lt.s32.totalorder %v10212_v48, 2  ;;  %v2146_v40 = vsel %vm2134_vm3, %v10230_v23, %v10232_v33  ;;  %v2148_v59 = vsel %vm2136_vm0, %v2130_v4, %v2147_v47  ;;  %v2270_v42 = vand.u32 31, %v2268_v3 }
 0x400   : > { %v4097_v52 = vxor.u32 2147483648, %v10183_v0  ;;  %v10280_v28 = vadd.f32 1.0, %v10190_v5  ;;  %v10284_v11 = vmul.f32 %v10192_v32, %v13341_v36  ;;  %v10288_v25 = vsel %vm2135_vm9, %v2142_v44, %v2144_v62 }
 0x401   : > { %v1918_v26 = vsub.s32 4, %v13342_v15  ;;  %v4362_v13 = vsub.s32 0, %v10244_v14  ;;  %v4509_v29 = vsel %vm4507_vm2, %v4508_v53, %v4504_v27  ;;  %v10292_v4 = vshll.u32 %v2110_v50, 8 }
 0x402   : > { %v1925_v43 = vmul.f32 %v10194_v39, %v10153_v55  ;;  %vm4361_vm6 = vcmp.lt.s32.totalorder %v10244_v14, 0  ;;  %v4505_v5 = vmul.u32 %v10064_v1, %v4451_v56  ;;  %v10300_v32 = vsel %vm2135_vm9, %v2146_v40, %v2148_v59 }
 0x403   : > { %v1932_v7 = vmul.f32 %v1931_v18, %v10153_v55  ;;  %v2070_v6 = vxor.u32 2147483648, %v2069_v30  ;;  %v12939_v17 = vshrl.u32 %v10288_v25, 16  ;;  %v10304_v35 = vsub.s32 32, %v2270_v42 }
 0x404   : > { %v13343_v27 = vxor.u32 2147483648, %v10115_v45  ;;  %v13344_v1 = vsel %vm9912_vm15, 0, %v10120_v38  ;;  %v10319_v47 = vadd.s32 %v4509_v29, %v4505_v5  ;;  %v12936_v53 = vand.u32 2147483647, %v10148_v8 }
 0x405   : > { %v10317_v50 = vand.u32 3, %v13344_v1  ;;  %v10325_v44 = vsel %vm4096_vm14, %v10115_v45, %v4097_v52  ;;  %v4363_v62 = vsel %vm4361_vm6, %v4362_v13, %v10244_v14  ;;  %v12938_v18 = vshrl.u32 %v10300_v32, 16 }
 0x406   : > { %v10311_v39 = vsel %vm4099_vm8, %v13343_v27, %v10183_v0  ;;  %v2151_v0 = vand.u32 65535, %v10292_v4  ;;  %v10335_v56 = vsel %vm1796_vm4, %v1918_v26, %v13342_v15  ;;  %v10337_v40 = vadd.f32 -0.4999988, %v1925_v43 }
 0x407   : > { %v10339_v59 = vadd.f32 -0.16666654, %v1932_v7  ;;  %v10343_v45 = vsel %vm12949_vm1, %v2070_v6, %v2069_v30  ;;  %v2283_v36 = vshrl.u32 %v13134_v19, %v10304_v35  ;;  %v4364_v13 = vclz %v4363_v62 }
 0x408   : > { %v10347_v52 = vmul.u32 %v12939_v17, %v2151_v0  ;;  %v4511_v29 = vadd.s32 536870912, %v10319_v47  ;;  %v2263_v15 = vand.u32 8388607, %v12936_v53  ;;  %v2286_v26 = vshrl.u32 %v13195_v41, %v10304_v35 }
 0x409   : > { %v10358_v30 = vmul.u32 %v12938_v18, %v2151_v0  ;;  %v2175_v43 = vand.u32 65535, %v10288_v25  ;;  %v10361_v5 = vshrl.u32 %v2268_v3, 5  ;;  %v2282_v7 = vshll.u32 %v13193_v49, %v2270_v42 }
 0x40a   : > { %v2274_v6 = vshrl.u32 %v13136_v20, %v10304_v35  ;;  %v2277_v27 = vshrl.u32 %v13137_v2, %v10304_v35  ;;  %v2280_v1 = vshrl.u32 %v13193_v49, %v10304_v35  ;;  %v2285_v62 = vshll.u32 %v13134_v19, %v2270_v42 }
 0x40b   : > { %v2152_v53 = vshrl.u32 %v10292_v4, 16  ;;  %v2153_v16 = vand.u32 65535, %v10300_v32  ;;  %v2181_v3 = vshll.u32 %v10347_v52, 16  ;;  %v2284_v37 = vor.u32 %v2283_v36, %v2282_v7 }
 0x40c   : > { %v2273_v38 = vshll.u32 %v13043_v34, %v2270_v42  ;;  %v2276_v18 = vshll.u32 %v13136_v20, %v2270_v42  ;;  %v2279_v17 = vshll.u32 %v13137_v2, %v2270_v42  ;;  %v2287_v8 = vor.u32 %v2286_v26, %v2285_v62 }
 0x40d   : > { %v10377_v61 = vshrl.u32 %v4511_v29, 30  ;;  %v2159_v10 = vshll.u32 %v10358_v30, 16  ;;  %v2177_v12 = vmul.u32 %v2175_v43, %v2151_v0  ;;  %v10380_v58 = vmul.u32 %v2175_v43, %v2152_v53 }
 0x40e   : > { %v13346_v24 = vand.u32 2147483647, %v13340_v57  ;;  %v13347_v51 = vmov 0  ;;  %v10388_v36 = vor.u32 %v2274_v6, %v2273_v38  ;;  %v10390_v7 = vor.u32 %v2277_v27, %v2276_v18 }
 0x40f   : > { %13345 = vst [vmem:[#allocation33_spill] sm:$0xff] %v10377_v61  ;;  %v10392_v20 = vor.u32 %v2280_v1, %v2279_v17  ;;  %vm12950_vm4 = vcmp.lt.s32.totalorder %v10361_v5, 4  ;;  %v5866_v42 = vadd.s32 4294967294, %v4364_v13  ;;  %v2155_v29 = vmul.u32 %v2153_v16, %v2151_v0 }
 0x410   : > { %vm10384_vm15 = vcmp.le.f32.partialorder %v13346_v24, 0.7853982  ;;  %v10395_v26 = vmul.u32 %v2153_v16, %v2152_v53  ;;  %v2297_v43 = vsel %vm12950_vm4, %v2284_v37, 920167782  ;;  %vm4095_vm7 = vcmp.lt.s32.totalorder %v13337_v31, 2 }
 0x411   : > { %v13348_v51 = vsel %vm10384_vm15, 4294967295, %v13347_v51  ;;  %vm4253_vm12 = vcmp.eq.s32.totalorder %v10317_v50, 2  ;;  %vm2185_vm5 = vc.u32 %v2177_v12, %v2181_v3  ;;  %v10401_v24 = vadd.s32 %v2181_v3, %v2177_v12 }
 0x412   : > { %13349 = vst [vmem:[#allocation15_spill] sm:$0xff] %v13348_v51  ;;  %v2264_v18 = vor.u32 8388608, %v2263_v15  ;;  %v2301_v17 = vsel %vm12950_vm4, %v2287_v8, 1326507024  ;;  %vm4250_vm8 = vcmp.eq.s32.totalorder %v10317_v50, 0  ;;  %vm2163_vm13 = vc.u32 %v2155_v29, %v2159_v10 }
 0x413   : > { %v2165_v0 = vadd.s32 %v2159_v10, %v2155_v29  ;;  %vm2288_vm14 = vcmp.lt.s32.totalorder %v10361_v5, 1  ;;  %vm2290_vm2 = vcmp.lt.s32.totalorder %v10361_v5, 3  ;;  %v4513_v16 = vshll.u32 %v10377_v61, 30 }
 0x414   : > { %v12953_v38 = vshll.u32 %v10380_v58, 16  ;;  %v2296_v12 = vsel %vm2288_vm14, %v10388_v36, %v10390_v7  ;;  %v2298_v8 = vsel %vm2290_vm2, %v10392_v20, %v2297_v43  ;;  %v2161_v13 = vshll.u32 %v10395_v26, 16 }
 0x415   : > { %v2186_v10 = vsel %vm2185_vm5, 1, %v13044_v9  ;;  %v2300_v15 = vsel %vm2288_vm14, %v10390_v7, %v10392_v20  ;;  %v2302_v6 = vsel %vm2290_vm2, %v2284_v37, %v2301_v17  ;;  %v2164_v27 = vsel %vm2163_vm13, 1, %v13044_v9 }
 0x416   : > { %v13350_v1 = vshrl.u32 %v10288_v25, 16  ;;  %vm2189_vm6 = vc.u32 %v10401_v24, %v12953_v38  ;;  %vm2289_vm1 = vcmp.lt.s32.totalorder %v10361_v5, 2  ;;  %vm5867_vm5 = vcmp.lt.s32.totalorder %v5866_v42, 0 }
 0x417   : > { %v13351_v3 = vshrl.u32 %v10300_v32, 16  ;;  %vm2167_vm4 = vc.u32 %v2165_v0, %v2161_v13  ;;  %v10436_v43 = vsel %vm2289_vm1, %v2296_v12, %v2298_v8  ;;  %v1921_v25 = vsel %vm10081_vm11, 0, %v10335_v56 }
 0x418   : > { %v2180_v62 = vmul.u32 %v13350_v1, %v2152_v53  ;;  %v10443_v17 = vsel %vm2289_vm1, %v2300_v15, %v2302_v6  ;;  %v10445_v1 = vshll.u32 %v2264_v18, 8  ;;  %v10451_v32 = vsel %vm10384_vm15, %v13340_v57, %v10343_v45  ;;  %v488_v15 = vpop.f32.mrf.mxu2 }
 0x419   : > { %v2158_v29 = vmul.u32 %v13351_v3, %v2152_v53  ;;  %13352 = vst [vmem:[#allocation24_spill] sm:$0xff] %v10451_v32  ;;  %v10454_v53 = vsub.s32 %v10319_v47, %v4513_v16  ;;  %v2190_v21 = vsel %vm2189_vm6, 1, %v13044_v9  ;;  %v1927_v56 = vmul.f32 %v10337_v40, %v10153_v55 }
 0x41a   : > { %v2188_v37 = vadd.s32 %v2186_v10, %v2180_v62  ;;  %v10459_v12 = vsel %vm5867_vm5, 0, %v5866_v42  ;;  %v2168_v18 = vsel %vm2167_vm4, 1, %v13044_v9  ;;  %v12952_v8 = vshrl.u32 %v10436_v43, 16 }
 0x41b   : > { %v2166_v0 = vadd.s32 %v2164_v27, %v2158_v29  ;;  %v10467_v45 = vsel %vm4095_vm7, %v10325_v44, %v10311_v39  ;;  %v13353_v47 = vxor.u32 2147483648, %v10280_v28  ;;  %v1934_v40 = vmul.f32 %v10339_v59, %v10153_v55 }
 0x41c   : > { %v12951_v42 = vshrl.u32 %v10443_v17, 16  ;;  %v13354_v13 = vxor.u32 2147483648, %v10284_v11  ;;  %v10488_v39 = vmul.f32 %v10451_v32, %v10451_v32  ;;  %v2192_v44 = vadd.s32 %v2190_v21, %v2188_v37  ;;  %v13355_v37 = vld [vmem:[#allocation31_spill] sm:$0xff] }
 0x41d   : > { %v10474_v16 = vsel %vm4253_vm12, %v13353_v47, %v10284_v11  ;;  %v2305_v10 = vand.u32 65535, %v10445_v1  ;;  %v10491_v6 = vand.u32 3, %v1921_v25  ;;  %v4372_v55 = vsub.s32 4294967266, %v10459_v12 }
 0x41e   : > { %v10484_v31 = vsel %vm4250_vm8, %v10280_v28, %v13354_v13  ;;  %v4516_v59 = vsub.s32 0, %v10454_v53  ;;  %v2170_v11 = vadd.s32 %v2168_v18, %v2166_v0  ;;  %v10495_v27 = vadd.f32 1.0, %v1927_v56 }
 0x41f   : > { %vm4515_vm11 = vcmp.lt.s32.totalorder %v10454_v53, 0  ;;  %v2182_v28 = vshrl.u32 %v10347_v52, 16  ;;  %v10501_v62 = vmul.u32 %v12952_v8, %v2305_v10  ;;  %v1935_v3 = vadd.f32 1.0, %v1934_v40 }
 0x420   : > { %v2160_v29 = vshrl.u32 %v10358_v30, 16  ;;  %v10506_v25 = vmul.u32 %v12951_v42, %v2305_v10  ;;  %v10509_v21 = vadd.f32 %v488_v15, %v13355_v37  ;;  %v2084_v0 = vmul.f32 -0.00019511016, %v10488_v39 }
 0x421   : > { %v4352_v56 = vadd.s32 %v10101_v63, %v10085_v54  ;;  %v2193_v52 = vadd.s32 %v2192_v44, %v2182_v28  ;;  %v2329_v18 = vand.u32 65535, %v10436_v43  ;;  %v4373_v47 = vadd.s32 127, %v4372_v55 }
 0x422   : > { %13356 = vst [vmem:[#allocation31_spill] sm:$0xff] %v10509_v21  ;;  %v4517_v40 = vsel %vm4515_vm11, %v4516_v59, %v10454_v53  ;;  %v2171_v13 = vadd.s32 %v2170_v11, %v2160_v29  ;;  %v2307_v30 = vand.u32 65535, %v10443_v17  ;;  %v2118_v42 = vshrl.u32 %v13043_v34, %v10180_v22 }
 0x423   : > { %v2184_v15 = vshrl.u32 %v10380_v58, 16  ;;  %v2306_v8 = vshrl.u32 %v10445_v1, 16  ;;  %v2335_v38 = vshll.u32 %v10501_v62, 16  ;;  %v2139_v54 = vsel %vm2137_vm10, %v10232_v33, 2102212464 }
 0x424   : > { %v2162_v63 = vshrl.u32 %v10395_v26, 16  ;;  %v2313_v44 = vshll.u32 %v10506_v25, 16  ;;  %v4569_v55 = vand.u32 2139095040, %v10509_v21  ;;  %v4518_v59 = vclz %v4517_v40 }
 0x425   : > { %v2194_v11 = vadd.s32 %v2193_v52, %v2184_v15  ;;  %v2331_v28 = vmul.u32 %v2329_v18, %v2305_v10  ;;  %v10528_v22 = vmul.u32 %v2329_v18, %v2306_v8  ;;  %v2309_v61 = vmul.u32 %v2307_v30, %v2305_v10 }
 0x426   : > { %v10530_v29 = vadd.s32 %v2171_v13, %v2162_v63  ;;  %v10532_v32 = vmul.u32 %v2307_v30, %v2306_v8  ;;  %v4570_v51 = vshrl.u32 %v4569_v55, 23  ;;  %v2138_v33 = vsel %vm2134_vm3, %v2118_v42, %v10228_v60 }
 0x427   : > { %v2140_v26 = vsel %vm2136_vm0, %v10230_v23, %v2139_v54  ;;  %vm2339_vm10 = vc.u32 %v2331_v28, %v2335_v38  ;;  %v10540_v40 = vadd.s32 %v2335_v38, %v2331_v28  ;;  %vm4249_vm4 = vcmp.lt.s32.totalorder %v10317_v50, 2 }
 0x428   : > { %v13357_v52 = vshll.u32 %v10380_v58, 16  ;;  %vm2317_vm7 = vc.u32 %v2309_v61, %v2313_v44  ;;  %v2319_v18 = vadd.s32 %v2313_v44, %v2309_v61  ;;  %v5871_v13 = vadd.s32 4294967169, %v4570_v51 }
 0x429   : > { %v4368_v30 = vsub.s32 32, %v10459_v12  ;;  %v5869_v60 = vadd.s32 4294967294, %v4518_v59  ;;  %v2198_v42 = vadd.s32 1, %v2194_v11  ;;  %v12958_v15 = vshll.u32 %v10528_v22, 16 }
 0x42a   : > { %v10546_v10 = vadd.s32 %v10401_v24, %v13357_v52  ;;  %v2315_v23 = vshll.u32 %v10532_v32, 16  ;;  %v2340_v38 = vsel %vm2339_vm10, 1, %v13044_v9  ;;  %v4576_v58 = vadd.s32 1, %v5871_v13 }
 0x42b   : > { %v2141_v24 = vsel %vm2135_vm9, %v2138_v33, %v2140_v26  ;;  %v2318_v61 = vsel %vm2317_vm7, 1, %v13044_v9  ;;  %v13358_v51 = vshrl.u32 %v10436_v43, 16  ;;  %vm2343_vm0 = vc.u32 %v10540_v40, %v12958_v15 }
 0x42c   : > { %vm2197_vm3 = vc.u32 %v10530_v29, %v10546_v10  ;;  %v4374_v63 = vshll.u32 %v4373_v47, 23  ;;  %v13359_v44 = vshrl.u32 %v10443_v17, 16  ;;  %vm2321_vm12 = vc.u32 %v2319_v18, %v2315_v23 }
 0x42d   : > { %v2334_v54 = vmul.u32 %v13358_v51, %v2306_v8  ;;  %vm4577_vm8 = vcmp.gt.s32.totalorder %v4576_v58, 0  ;;  %v1936_v59 = vmul.f32 %v1935_v3, %v10136_v46  ;;  %v2199_v28 = vsel %vm2197_vm3, %v2198_v42, %v2194_v11 }
 0x42e   : > { %v2312_v55 = vmul.u32 %v13359_v44, %v2306_v8  ;;  %v4578_v33 = vsel %vm4577_vm8, %v4576_v58, 0  ;;  %v4370_v26 = vshrl.u32 %v4352_v56, %v4368_v30  ;;  %v2195_v52 = vmul.u32 %v10292_v4, %v2141_v24  ;;  %v13360_v24 = vld [vmem:[#allocation28_spill] sm:$0xff] }
 0x42f   : > { %v2342_v48 = vadd.s32 %v2340_v38, %v2334_v54  ;;  %v2344_v13 = vsel %vm2343_vm0, 1, %v13044_v9  ;;  %v2077_v51 = vmul.f32 -0.001358992, %v10488_v39  ;;  %v2085_v15 = vadd.f32 0.008332121, %v2084_v0 }
 0x430   : > { %v2320_v43 = vadd.s32 %v2318_v61, %v2312_v55  ;;  %vm5870_vm9 = vcmp.lt.s32.totalorder %v5869_v60, 0  ;;  %v2322_v17 = vsel %vm2321_vm12, 1, %v13044_v9  ;;  %v4369_v8 = vshll.u32 %v10244_v14, %v10459_v12 }
 0x431   : > { %v4375_v47 = vor.u32 4788187, %v4374_v63  ;;  %v10571_v46 = vadd.s32 %v2199_v28, %v2195_v52  ;;  %v4580_v3 = vand.u32 31, %v4578_v33  ;;  %v10577_v4 = vsel %vm4249_vm4, %v10484_v31, %v10474_v16 }
 0x432   : > { %vm1940_vm13 = vcmp.eq.s32.totalorder %v10491_v6, 0  ;;  %v1944_v0 = vxor.u32 2147483648, %v10495_v27  ;;  %v2346_v56 = vadd.s32 %v2344_v13, %v2342_v48  ;;  %v1941_v11 = vxor.u32 2147483648, %v1936_v59 }
 0x433   : > { %v4371_v18 = vor.u32 %v4370_v26, %v4369_v8  ;;  %v10581_v30 = vsel %vm5870_vm9, 0, %v5869_v60  ;;  %v2324_v14 = vadd.s32 %v2322_v17, %v2320_v43  ;;  %vm1943_vm6 = vcmp.eq.s32.totalorder %v10491_v6, 2 }
 0x434   : > { %v2078_v12 = vadd.f32 0.041655596, %v2077_v51  ;;  %v2086_v42 = vmul.f32 %v2085_v15, %v10488_v39  ;;  %v2336_v23 = vshrl.u32 %v10501_v62, 16  ;;  %v4376_v50 = vand.u32 2147483647, %v4375_v47  ;;  %v13362_v47 = vld [vmem:[#allocation26_spill] sm:$0xff] }
 0x435   : > { %v2201_v16 = vadd.s32 536870912, %v10571_v46  ;;  %v2314_v31 = vshrl.u32 %v10506_v25, 16  ;;  %v10588_v38 = vsub.s32 32, %v4580_v3  ;;  %v10590_v58 = vsel %vm1943_vm6, %v1944_v0, %v1936_v59 }
 0x436   : > { %v2072_v60 = vsub.s32 4, %v13360_v24  ;;  %v4526_v61 = vsub.s32 4294967266, %v10581_v30  ;;  %v2347_v54 = vadd.s32 %v2346_v56, %v2336_v23  ;;  %v10597_v15 = vsel %vm1940_vm13, %v10495_v27, %v1941_v11 }
 0x437   : > { %v4378_v62 = vcvt.s32.f32 %v4371_v18  ;;  %vm13361_vm5 = vcmp.lt.s32.totalorder %v10361_v5, 4  ;;  %v2325_v25 = vadd.s32 %v2324_v14, %v2314_v31  ;;  %v10603_v44 = vmul.f32 %v2078_v12, %v10488_v39 }
 0x438   : > { %v2293_v63 = vsel %vm13361_vm5, %v10392_v20, 2102212464  ;;  %v2087_v55 = vadd.f32 -0.16666654, %v2086_v42  ;;  %v2272_v59 = vshrl.u32 %v13043_v34, %v10304_v35  ;;  %v2338_v28 = vshrl.u32 %v10528_v22, 16 }
 0x439   : > { %v4379_v48 = vmul.f32 %v4378_v62, %v4376_v50  ;;  %v10608_v26 = vshrl.u32 %v2201_v16, 30  ;;  %v2316_v27 = vshrl.u32 %v10532_v32, 16  ;;  %v4593_v52 = vshrl.u32 %v13134_v19, %v10588_v38 }
 0x43a   : > { %v4527_v43 = vadd.s32 127, %v4526_v61  ;;  %v2292_v20 = vsel %vm2288_vm14, %v2272_v59, %v10388_v36  ;;  %v2294_v13 = vsel %vm2290_vm2, %v10390_v7, %v2293_v63  ;;  %v2348_v35 = vadd.s32 %v2347_v54, %v2338_v28  ;;  %v553_v61 = vpop.f32.mrf.mxu3  ;;  %v13368_v28 = vld [vmem:[#allocation18_spill] sm:$0xff] }
 0x43b   : > { %v10619_v51 = vadd.s32 %v2325_v25, %v2316_v27  ;;  %v12959_v17 = vand.u32 2147483647, %v10509_v21  ;;  %v4592_v8 = vshll.u32 %v13193_v49, %v4580_v3  ;;  %v4596_v32 = vshrl.u32 %v13195_v41, %v10588_v38  ;;  %v13369_v27 = vld [vmem:[#allocation30_spill] sm:$0xff] }
 0x43c   : > { %vm4260_vm11 = vcmp.lt.s32.totalorder %v13362_v47, 0  ;;  %v10626_v0 = vshrl.u32 %v4578_v33, 5  ;;  %v13363_v36 = vmov 2475754826   ;;  %v4587_v7 = vshrl.u32 %v13137_v2, %v10588_v38 }
 0x43d   : > { %v4584_v56 = vshrl.u32 %v13363_v36, %v10588_v38  ;;  %v4590_v11 = vshrl.u32 %v13193_v49, %v10588_v38  ;;  %v2203_v18 = vshll.u32 %v10608_v26, 30  ;;  %v13364_v14 = vshll.u32 %v10528_v22, 16 }
 0x43e   : > { %v4594_v42 = vor.u32 %v4593_v52, %v4592_v8  ;;  %v4595_v33 = vshll.u32 %v13134_v19, %v4580_v3  ;;  %v2352_v23 = vadd.s32 1, %v2348_v35  ;;  %v4583_v50 = vshll.u32 %v13043_v34, %v4580_v3  ;;  %v13371_v8 = vld [vmem:[#allocation37_spill] sm:$0xff] }
 0x43f   : > { %v10638_v12 = vadd.s32 %v10540_v40, %v13364_v14  ;;  %v4586_v16 = vshll.u32 %v13363_v36, %v4580_v3  ;;  %v4589_v31 = vshll.u32 %v13137_v2, %v4580_v3  ;;  %vm1939_vm14 = vcmp.lt.s32.totalorder %v10491_v6, 2 }
 0x440   : > { %v13365_v54 = vand.u32 2147483647, %v13362_v47  ;;  %v2295_v40 = vsel %vm2289_vm1, %v2292_v20, %v2294_v13  ;;  %v4573_v62 = vand.u32 8388607, %v12959_v17  ;;  %v4597_v63 = vor.u32 %v4596_v32, %v4595_v33  ;;  %v13372_v32 = vld [vmem:[#allocation13_spill] sm:$0xff]  ;;  %v13373_v33 = vld [vmem:[#allocation6_spill] sm:$0xff] }
 0x441   : > { %vm2351_vm10 = vc.u32 %v10619_v51, %v10638_v12  ;;  %v10657_v3 = vor.u32 %v4584_v56, %v4583_v50  ;;  %v10659_v25 = vor.u32 %v4587_v7, %v4586_v16  ;;  %v10661_v59 = vor.u32 %v4590_v11, %v4589_v31 }
 0x442   : > { %vm10647_vm2 = vcmp.le.f32.partialorder %v13365_v54, 0.7853982  ;;  %vm4601_vm4 = vcmp.lt.s32.totalorder %v10626_v0, 4  ;;  %vm4093_vm7 = vweird.f32 %v13368_v28  ;;  %vm4247_vm3 = vweird.f32 %v13369_v27  ;;  %v5564_v27 = vpop.permute.xlu2 %5563 }
 0x443   : > { %v4380_v5 = vxor.u32 2147483648, %v4379_v48  ;;  %v4522_v52 = vsub.s32 32, %v10581_v30  ;;  %v4607_v20 = vsel %vm4601_vm4, %v4594_v42, 920167782  ;;  %v10670_v13 = vadd.f32 %v553_v61, %v13355_v37 }
 0x444   : > { %v4506_v56 = vadd.s32 %v13372_v32, %v13371_v8  ;;  %v4528_v7 = vshll.u32 %v4527_v43, 23  ;;  %v10675_v11 = vsub.s32 %v10571_v46, %v2203_v18  ;;  %v2353_v14 = vsel %vm2351_vm10, %v2352_v23, %v2348_v35 }
 0x445   : > { %13370 = vst [vmem:[#allocation28_spill] sm:$0xff] %v10670_v13  ;;  %vm1937_vm1 = vweird.f32 %v13373_v33  ;;  %v2349_v50 = vmul.u32 %v10445_v1, %v2295_v40  ;;  %vm4598_vm0 = vcmp.lt.s32.totalorder %v10626_v0, 1  ;;  %vm4600_vm12 = vcmp.lt.s32.totalorder %v10626_v0, 3 }
 0x446   : > { %v4611_v37 = vsel %vm4601_vm4, %v4597_v63, 1326507024  ;;  %v2088_v43 = vmul.f32 %v2087_v55, %v10488_v39  ;;  %v4574_v16 = vor.u32 8388608, %v4573_v62  ;;  %v4606_v46 = vsel %vm4598_vm0, %v10657_v3, %v10659_v25 }
 0x447   : > { %v4608_v35 = vsel %vm4600_vm12, %v10661_v59, %v4607_v20  ;;  %v4381_v1 = vsel %vm4260_vm11, %v4380_v5, %v4379_v48  ;;  %v4524_v18 = vshrl.u32 %v4506_v56, %v4522_v52  ;;  %v10696_v23 = vadd.s32 %v2353_v14, %v2349_v50 }
 0x448   : > { %v4723_v31 = vand.u32 2139095040, %v10670_v13  ;;  %v2206_v55 = vsub.s32 0, %v10675_v11  ;;  %vm4599_vm8 = vcmp.lt.s32.totalorder %v10626_v0, 2  ;;  %v4610_v61 = vsel %vm4598_vm0, %v10659_v25, %v10661_v59 }
 0x449   : > { %v4612_v54 = vsel %vm4600_vm12, %v4594_v42, %v4611_v37  ;;  %v4523_v48 = vshll.u32 %v10454_v53, %v10581_v30  ;;  %v4529_v40 = vor.u32 4788187, %v4528_v7  ;;  %vm2205_vm9 = vcmp.lt.s32.totalorder %v10675_v11, 0 }
 0x44a   : > { %v10712_v62 = vsel %vm4599_vm8, %v4606_v46, %v4608_v35  ;;  %v1946_v63 = vsel %vm1939_vm14, %v10597_v15, %v10590_v58  ;;  %vm13374_vm13 = vcmp.lt.s32.totalorder %v13340_v57, 0  ;;  %v10726_v53 = vsel %vm10647_vm2, %v13362_v47, %v4381_v1 }
 0x44b   : > { %v2073_v42 = vsel %vm13374_vm13, %v2072_v60, %v13360_v24  ;;  %v10728_v30 = vshll.u32 %v4574_v16, 8  ;;  %v4525_v5 = vor.u32 %v4524_v18, %v4523_v48  ;;  %v2355_v52 = vadd.s32 536870912, %v10696_v23 }
 0x44c   : > { %v10733_v6 = vsel %vm4599_vm8, %v4610_v61, %v4612_v54  ;;  %v4724_v58 = vshrl.u32 %v4723_v31, 23  ;;  %v4103_v15 = vsel %vm4093_vm7, nan, %v10467_v45  ;;  %v4257_v24 = vsel %vm4247_vm3, nan, %v10577_v4  ;;  %v13382_v54 = vld [vmem:[#allocation24_spill] sm:$0xff] }
 0x44d   : > { %v2207_v60 = vsel %vm2205_vm9, %v2206_v55, %v10675_v11  ;;  %v12961_v20 = vshrl.u32 %v10712_v62, 16  ;;  %v2075_v32 = vsel %vm10384_vm15, 0, %v2073_v42  ;;  %v2080_v56 = vadd.f32 -0.4999988, %v10603_v44  ;;  %v13377_v44 = vld [vmem:[#allocation7_spill] sm:$0xff] }
 0x44e   : > { %v2089_v7 = vadd.f32 1.0, %v2088_v43  ;;  %v4530_v14 = vand.u32 2147483647, %v4529_v40  ;;  %v1947_v50 = vsel %vm1937_vm1, nan, %v1946_v63  ;;  %v10750_v45 = vmul.f32 %v10726_v53, %v10726_v53  ;;  %v13378_v43 = vld [vmem:[#allocation23_spill] sm:$0xff]  ;;  %v13383_v63 = vld [vmem:[#allocation32_spill] sm:$0xff] }
 0x44f   : > { %v4615_v4 = vand.u32 65535, %v10728_v30  ;;  %v12960_v28 = vshrl.u32 %v10733_v6, 16  ;;  %v4532_v37 = vcvt.s32.f32 %v4525_v5  ;;  %v2208_v16 = vclz %v2207_v60  ;;  %v13384_v5 = vld [vmem:[#allocation36_spill] sm:$0xff] }
 0x450   : > { %v10754_v46 = vshrl.u32 %v2355_v52, 30  ;;  %v5874_v35 = vadd.s32 4294967169, %v4724_v58  ;;  %v10758_v1 = vadd.f32 %v13378_v43, %v13377_v44  ;;  %v10760_v33 = vmul.f32 %v5564_v27, %v4103_v15 }
 0x451   : > { %v10762_v18 = vand.u32 3, %v2075_v32  ;;  %v10766_v31 = vmul.u32 %v12961_v20, %v4615_v4  ;;  %v10768_v55 = vmul.f32 %v5564_v27, %v4257_v24  ;;  %v2081_v61 = vmul.f32 %v2080_v56, %v10488_v39 }
 0x452   : > { %13376 = vst [vmem:[#allocation18_spill] sm:$0xff] %v10754_v46  ;;  %v2090_v48 = vmul.f32 %v2089_v7, %v13382_v54  ;;  %v4533_v40 = vmul.f32 %v4532_v37, %v4530_v14  ;;  %v5594_v42 = vmul.f32 %v13383_v63, %v1947_v50  ;;  %vm4414_vm15 = vcmp.lt.s32.totalorder %v13384_v5, 0  ;;  %v13388_v37 = vld [vmem:[#allocation19_spill] sm:$0xff] }
 0x453   : > { %13379 = vst [vmem:[#allocation30_spill] sm:$0xff] %v10758_v1  ;;  %v10776_v52 = vmul.u32 %v12960_v28, %v4615_v4  ;;  %v4639_v58 = vand.u32 65535, %v10712_v62  ;;  %v4394_v15 = vmul.f32 -0.00019511016, %v10750_v45  ;;  %v5824_v60 = vadd.s32 4294967294, %v2208_v16 }
 0x454   : > { %13380 = vst [vmem:[#allocation37_spill] sm:$0xff] %v10760_v33  ;;  %v2357_v24 = vshll.u32 %v10754_v46, 30  ;;  %v4730_v8 = vadd.s32 1, %v5874_v35  ;;  %vm2094_vm6 = vcmp.eq.s32.totalorder %v10762_v18, 0  ;;  %v13385_v39 = vand.u32 2147483647, %v13384_v5 }
 0x455   : > { %13381 = vst [vmem:[#allocation13_spill] sm:$0xff] %v10768_v55  ;;  %v4616_v56 = vshrl.u32 %v10728_v30, 16  ;;  %v4617_v7 = vand.u32 65535, %v10733_v6  ;;  %v4645_v14 = vshll.u32 %v10766_v31, 16  ;;  %v2082_v50 = vadd.f32 1.0, %v2081_v61  ;;  %v13389_v35 = vld [vmem:[#allocation21_spill] sm:$0xff] }
 0x456   : > { %vm10784_vm5 = vcmp.le.f32.partialorder %v13385_v39, 0.7853982  ;;  %v2095_v27 = vxor.u32 2147483648, %v2090_v48  ;;  %v4382_v16 = vsub.s32 4, %v13388_v37  ;;  %v4534_v44 = vxor.u32 2147483648, %v4533_v40 }
 0x457   : > { %v10793_v43 = vadd.f32 %v13389_v35, %v5594_v42  ;;  %vm2097_vm14 = vcmp.eq.s32.totalorder %v10762_v18, 2  ;;  %v4623_v54 = vshll.u32 %v10776_v52, 16  ;;  %v4641_v39 = vmul.u32 %v4639_v58, %v4615_v4 }
 0x458   : > { %v10797_v17 = vmul.u32 %v4639_v58, %v4616_v56  ;;  %vm2093_vm10 = vcmp.lt.s32.totalorder %v10762_v18, 2  ;;  %v4395_v28 = vadd.f32 0.008332121, %v4394_v15  ;;  %vm5825_vm7 = vcmp.lt.s32.totalorder %v5824_v60, 0 }
 0x459   : > { %13390 = vst [vmem:[#allocation6_spill] sm:$0xff] %v10793_v43  ;;  %v10801_v61 = vsub.s32 %v10696_v23, %v2357_v24  ;;  %vm4731_vm3 = vcmp.gt.s32.totalorder %v4730_v8, 0  ;;  %v4619_v20 = vmul.u32 %v4617_v7, %v4615_v4  ;;  %v10803_v55 = vmul.u32 %v4617_v7, %v4616_v56 }
 0x45a   : > { %vm4649_vm1 = vc.u32 %v4641_v39, %v4645_v14  ;;  %v10805_v42 = vadd.s32 %v4645_v14, %v4641_v39  ;;  %v2096_v35 = vsel %vm2094_vm6, %v2082_v50, %v2095_v27  ;;  %v2098_v33 = vxor.u32 2147483648, %v2082_v50 }
 0x45b   : > { %v4383_v58 = vsel %vm4260_vm11, %v4382_v16, %v13388_v37  ;;  %v4535_v15 = vsel %vm4414_vm15, %v4534_v44, %v4533_v40  ;;  %vm2091_vm9 = vweird.f32 %v13340_v57  ;;  %vm4627_vm13 = vc.u32 %v4619_v20, %v4623_v54 }
 0x45c   : > { %v4629_v23 = vadd.s32 %v4623_v54, %v4619_v20  ;;  %v12962_v4 = vshll.u32 %v10797_v17, 16  ;;  %v4732_v24 = vsel %vm4731_vm3, %v4730_v8, 0  ;;  %v4387_v7 = vmul.f32 -0.001358992, %v10750_v45 }
 0x45d   : > { %v4396_v14 = vmul.f32 %v4395_v28, %v10750_v45  ;;  %v10819_v50 = vsel %vm5825_vm7, 0, %v5824_v60  ;;  %v4650_v27 = vsel %vm4649_vm1, 1, %v13044_v9  ;;  %v2360_v37 = vsub.s32 0, %v10801_v61 }
 0x45e   : > { %v4625_v40 = vshll.u32 %v10803_v55, 16  ;;  %v13391_v16 = vshrl.u32 %v10712_v62, 16  ;;  %vm4653_vm11 = vc.u32 %v10805_v42, %v12962_v4  ;;  %v10832_v20 = vsel %vm10784_vm5, %v13384_v5, %v4535_v15 }
 0x45f   : > { %vm2359_vm6 = vcmp.lt.s32.totalorder %v10801_v61, 0  ;;  %v4628_v28 = vsel %vm4627_vm13, 1, %v13044_v9  ;;  %v4734_v60 = vand.u32 31, %v4732_v24  ;;  %v2216_v8 = vsub.s32 4294967266, %v10819_v50 }
 0x460   : > { %v4644_v44 = vmul.u32 %v13391_v16, %v4616_v56  ;;  %v13392_v54 = vshrl.u32 %v10733_v6, 16  ;;  %vm4631_vm7 = vc.u32 %v4629_v23, %v4625_v40  ;;  %v2099_v16 = vsel %vm2097_vm14, %v2098_v33, %v2090_v48 }
 0x461   : > { %v4385_v4 = vsel %vm10647_vm2, 0, %v4383_v58  ;;  %v4388_v15 = vadd.f32 0.041655596, %v4387_v7  ;;  %v4654_v43 = vsel %vm4653_vm11, 1, %v13044_v9  ;;  %v2100_v46 = vsel %vm2093_vm10, %v2096_v35, %v2099_v16 }
 0x462   : > { %v4622_v62 = vmul.u32 %v13392_v54, %v4616_v56  ;;  %v4652_v39 = vadd.s32 %v4650_v27, %v4644_v44  ;;  %v4397_v21 = vadd.f32 -0.16666654, %v4396_v14  ;;  %v2361_v1 = vsel %vm2359_vm6, %v2360_v37, %v10801_v61 }
 0x463   : > { %v10849_v6 = vmul.f32 %v10832_v20, %v10832_v20  ;;  %v2212_v56 = vsub.s32 32, %v10819_v50  ;;  %v4632_v33 = vsel %vm4631_vm7, 1, %v13044_v9  ;;  %v10853_v22 = vsub.s32 32, %v4734_v60 }
 0x464   : > { %v4630_v63 = vadd.s32 %v4628_v28, %v4622_v62  ;;  %v10855_v48 = vand.u32 3, %v4385_v4  ;;  %v2217_v58 = vadd.s32 127, %v2216_v8  ;;  %v4656_v23 = vadd.s32 %v4654_v43, %v4652_v39  ;;  %v13394_v4 = vld [vmem:[#allocation33_spill] sm:$0xff] }
 0x465   : > { %v12967_v18 = vand.u32 2147483647, %v10670_v13  ;;  %v10860_v35 = vsel %vm2091_vm9, nan, %v2100_v46  ;;  %v10863_v7 = vmul.f32 %v4388_v15, %v10750_v45  ;;  %v2196_v14 = vadd.s32 %v10546_v10, %v10530_v29 }
 0x466   : > { %13393 = vst [vmem:[#allocation15_spill] sm:$0xff] %v10860_v35  ;;  %v2362_v27 = vclz %v2361_v1  ;;  %v10868_v37 = vmul.f32 %v4397_v21, %v10750_v45  ;;  %v4536_v40 = vsub.s32 4, %v13394_v4  ;;  %v4634_v44 = vadd.s32 %v4632_v33, %v4630_v63 }
 0x467   : > { %v4646_v43 = vshrl.u32 %v10766_v31, 16  ;;  %v4541_v28 = vmul.f32 -0.001358992, %v10849_v6  ;;  %v4548_v57 = vmul.f32 -0.00019511016, %v10849_v6  ;;  %v2214_v46 = vshrl.u32 %v2196_v14, %v2212_v56 }
 0x468   : > { %v4750_v8 = vshrl.u32 %v13195_v41, %v10853_v22  ;;  %v2218_v54 = vshll.u32 %v2217_v58, 23  ;;  %v4624_v29 = vshrl.u32 %v10776_v52, 16  ;;  %v4727_v21 = vand.u32 8388607, %v12967_v18 }
 0x469   : > { %v4657_v10 = vadd.s32 %v4656_v23, %v4646_v43  ;;  %v5827_v1 = vadd.s32 4294967294, %v2362_v27  ;;  %v4648_v63 = vshrl.u32 %v10797_v17, 16  ;;  %v4747_v31 = vshrl.u32 %v13134_v19, %v10853_v22 }
 0x46a   : > { %v4749_v62 = vshll.u32 %v13134_v19, %v4734_v60  ;;  %v4635_v39 = vadd.s32 %v4634_v44, %v4624_v29  ;;  %v10883_v16 = vshrl.u32 %v4732_v24, 5  ;;  %v4741_v15 = vshrl.u32 %v13137_v2, %v10853_v22 }
 0x46b   : > { %v4744_v52 = vshrl.u32 %v13193_v49, %v10853_v22  ;;  %v4603_v56 = vsel %vm4601_vm4, %v10661_v59, 2102212464  ;;  %v4626_v33 = vshrl.u32 %v10803_v55, 16  ;;  %v4746_v58 = vshll.u32 %v13193_v49, %v4734_v60 }
 0x46c   : > { %v4751_v23 = vor.u32 %v4750_v8, %v4749_v62  ;;  %v4658_v14 = vadd.s32 %v4657_v10, %v4648_v63  ;;  %v4738_v24 = vshrl.u32 %v13363_v36, %v10853_v22  ;;  %v4740_v27 = vshll.u32 %v13363_v36, %v4734_v60  ;;  %v467_v10 = vpop.f32.mrf.mxu0 }
 0x46d   : > { %v4743_v44 = vshll.u32 %v13137_v2, %v4734_v60  ;;  %vm5828_vm2 = vcmp.lt.s32.totalorder %v5827_v1, 0  ;;  %v4582_v43 = vshrl.u32 %v13043_v34, %v10588_v38  ;;  %v4737_v29 = vshll.u32 %v13043_v34, %v4734_v60 }
 0x46e   : > { %v4748_v59 = vor.u32 %v4747_v31, %v4746_v58  ;;  %v10901_v18 = vadd.s32 %v4635_v39, %v4626_v33  ;;  %v10903_v55 = vor.u32 %v4741_v15, %v4740_v27  ;;  %vm4755_vm4 = vcmp.lt.s32.totalorder %v10883_v16, 4 }
 0x46f   : > { %v10905_v8 = vor.u32 %v4744_v52, %v4743_v44  ;;  %v2219_v63 = vor.u32 4788187, %v2218_v54  ;;  %v4602_v62 = vsel %vm4598_vm0, %v4582_v43, %v10657_v3  ;;  %v4604_v38 = vsel %vm4600_vm12, %v10659_v25, %v4603_v56  ;;  %v13398_v25 = vld [vmem:[#allocation14_spill] sm:$0xff] }
 0x470   : > { %13395 = vst [vmem:[#allocation7_spill] sm:$0xff] %v10901_v18  ;;  %v4765_v60 = vsel %vm4755_vm4, %v4751_v23, 1326507024  ;;  %v2365_v31 = vsel %vm5828_vm2, 0, %v5827_v1  ;;  %v13396_v39 = vshll.u32 %v10797_v17, 16  ;;  %v4662_v52 = vadd.s32 1, %v4658_v14 }
 0x471   : > { %v10921_v33 = vor.u32 %v4738_v24, %v4737_v29  ;;  %vm4752_vm14 = vcmp.lt.s32.totalorder %v10883_v16, 1  ;;  %vm4754_vm0 = vcmp.lt.s32.totalorder %v10883_v16, 3  ;;  %v4761_v3 = vsel %vm4755_vm4, %v4748_v59, 920167782 }
 0x472   : > { %v10919_v15 = vadd.s32 %v10805_v42, %v13396_v39  ;;  %v10928_v54 = vadd.f32 %v467_v10, %v13398_v25  ;;  %v4728_v17 = vor.u32 8388608, %v4727_v21  ;;  %v4764_v42 = vsel %vm4752_vm14, %v10903_v55, %v10905_v8 }
 0x473   : > { %v4766_v1 = vsel %vm4754_vm0, %v4748_v59, %v4765_v60  ;;  %v4542_v56 = vadd.f32 0.041655596, %v4541_v28  ;;  %v2213_v58 = vshll.u32 %v10675_v11, %v10819_v50  ;;  %v2370_v23 = vsub.s32 4294967266, %v2365_v31 }
 0x474   : > { %13397 = vst [vmem:[#allocation23_spill] sm:$0xff] %v10919_v15  ;;  %vm4661_vm12 = vc.u32 %v10901_v18, %v10919_v15  ;;  %v4605_v24 = vsel %vm4599_vm8, %v4602_v62, %v4604_v38  ;;  %v4549_v27 = vadd.f32 0.008332121, %v4548_v57  ;;  %vm4753_vm10 = vcmp.lt.s32.totalorder %v10883_v16, 2 }
 0x475   : > { %13399 = vst [vmem:[#allocation24_spill] sm:$0xff] %v10928_v54  ;;  %v4760_v21 = vsel %vm4752_vm14, %v10921_v33, %v10903_v55  ;;  %v4762_v44 = vsel %vm4754_vm0, %v10905_v8, %v4761_v3  ;;  %v2215_v28 = vor.u32 %v2214_v46, %v2213_v58  ;;  %v4663_v43 = vsel %vm4661_vm12, %v4662_v52, %v4658_v14 }
 0x476   : > { %v10952_v11 = vsel %vm4753_vm10, %v4764_v42, %v4766_v1  ;;  %v2413_v0 = vand.u32 2139095040, %v10928_v54  ;;  %v4390_v50 = vadd.f32 -0.4999988, %v10863_v7  ;;  %v2220_v57 = vand.u32 2147483647, %v2219_v63 }
 0x477   : > { %v4659_v29 = vmul.u32 %v10728_v30, %v4605_v24  ;;  %v10957_v59 = vshll.u32 %v4728_v17, 8  ;;  %v2366_v10 = vsub.s32 32, %v2365_v31  ;;  %v2371_v62 = vadd.s32 127, %v2370_v23 }
 0x478   : > { %v10961_v38 = vsel %vm4753_vm10, %v4760_v21, %v4762_v44  ;;  %v2414_v46 = vshrl.u32 %v2413_v0, 23  ;;  %v4399_v14 = vadd.f32 1.0, %v10868_v37  ;;  %v4543_v60 = vmul.f32 %v4542_v56, %v10849_v6  ;;  %v13400_v37 = vld [vmem:[#allocation27_spill] sm:$0xff] }
 0x479   : > { %v10965_v39 = vadd.s32 %v4663_v43, %v4659_v29  ;;  %v12969_v7 = vshrl.u32 %v10952_v11, 16  ;;  %v4550_v63 = vmul.f32 %v4549_v27, %v10849_v6  ;;  %v2222_v30 = vcvt.s32.f32 %v2215_v28 }
 0x47a   : > { %v2350_v52 = vadd.s32 %v10638_v12, %v10619_v51  ;;  %v5829_v3 = vadd.s32 4294967169, %v2414_v46  ;;  %v10976_v17 = vsel %vm4414_vm15, %v4536_v40, %v13394_v4  ;;  %vm2104_vm8 = vcmp.lt.s32.totalorder %v13400_v37, 0 }
 0x47b   : > { %v4769_v42 = vand.u32 65535, %v10957_v59  ;;  %v12968_v1 = vshrl.u32 %v10961_v38, 16  ;;  %v2223_v56 = vmul.f32 %v2222_v30, %v2220_v57  ;;  %v2372_v23 = vshll.u32 %v2371_v62, 23 }
 0x47c   : > { %v2368_v58 = vshrl.u32 %v2350_v52, %v2366_v10  ;;  %v2420_v24 = vadd.s32 1, %v5829_v3  ;;  %v4391_v51 = vmul.f32 %v4390_v50, %v10750_v45  ;;  %v10983_v12 = vmul.f32 %v4399_v14, %v10726_v53 }
 0x47d   : > { %v4665_v27 = vadd.s32 536870912, %v10965_v39  ;;  %v10988_v4 = vmul.u32 %v12969_v7, %v4769_v42  ;;  %v4544_v40 = vadd.f32 -0.4999988, %v4543_v60  ;;  %v4551_v21 = vadd.f32 -0.16666654, %v4550_v63 }
 0x47e   : > { %v2367_v44 = vshll.u32 %v10801_v61, %v2365_v31  ;;  %vm2421_vm15 = vcmp.gt.s32.totalorder %v2420_v24, 0  ;;  %v4771_v28 = vand.u32 65535, %v10952_v11  ;;  %v4793_v43 = vand.u32 65535, %v10961_v38 }
 0x47f   : > { %v10995_v45 = vmul.u32 %v12968_v1, %v4769_v42  ;;  %v2422_v53 = vsel %vm2421_vm15, %v2420_v24, 0  ;;  %v2224_v0 = vxor.u32 2147483648, %v2223_v56  ;;  %v10999_v57 = vor.u32 4788187, %v2372_v23 }
 0x480   : > { %v10997_v50 = vor.u32 %v2368_v58, %v2367_v44  ;;  %v2424_v29 = vand.u32 31, %v2422_v53  ;;  %v11004_v31 = vshrl.u32 %v4665_v27, 30  ;;  %v4770_v10 = vshrl.u32 %v10957_v59, 16 }
 0x481   : > { %v4777_v62 = vshll.u32 %v10988_v4, 16  ;;  %v11008_v46 = vadd.f32 1.0, %v4391_v51  ;;  %v11012_v60 = vmul.f32 %v4544_v40, %v10849_v6  ;;  %v4773_v30 = vmul.u32 %v4771_v28, %v4769_v42 }
 0x482   : > { %13401 = vst [vmem:[#allocation19_spill] sm:$0xff] %v11004_v31  ;;  %v11014_v63 = vsub.s32 32, %v2424_v29  ;;  %v11016_v52 = vmul.u32 %v4793_v43, %v4770_v10  ;;  %v4799_v3 = vshll.u32 %v10995_v45, 16  ;;  %v12974_v58 = vand.u32 2147483647, %v10928_v54 }
 0x483   : > { %v11021_v23 = vmul.f32 %v4551_v21, %v10849_v6  ;;  %v2225_v24 = vsel %vm2104_vm8, %v2224_v0, %v2223_v56  ;;  %v2374_v51 = vand.u32 2147483647, %v10999_v57  ;;  %v2376_v27 = vcvt.s32.f32 %v10997_v50  ;;  %v532_v0 = vpop.f32.mrf.mxu1 }
 0x484   : > { %v4667_v40 = vshll.u32 %v11004_v31, 30  ;;  %v11028_v44 = vmul.u32 %v4771_v28, %v4770_v10  ;;  %vm11030_vm3 = vc.u32 %v4773_v30, %v4777_v62  ;;  %v4795_v61 = vmul.u32 %v4793_v43, %v4769_v42 }
 0x485   : > { %v4783_v1 = vadd.s32 %v4777_v62, %v4773_v30  ;;  %v2428_v6 = vshrl.u32 %v13363_v36, %v11014_v63  ;;  %v2431_v56 = vshrl.u32 %v13137_v2, %v11014_v63  ;;  %v2437_v21 = vshrl.u32 %v13134_v19, %v11014_v63 }
 0x486   : > { %v11041_v28 = vadd.s32 %v4799_v3, %v4795_v61  ;;  %v2417_v57 = vand.u32 8388607, %v12974_v58  ;;  %v2427_v42 = vshll.u32 %v13043_v34, %v2424_v29  ;;  %v2430_v43 = vshll.u32 %v13363_v36, %v2424_v29 }
 0x487   : > { %v2434_v62 = vshrl.u32 %v13193_v49, %v11014_v63  ;;  %v2436_v30 = vshll.u32 %v13193_v49, %v2424_v29  ;;  %v2440_v7 = vshrl.u32 %v13195_v41, %v11014_v63  ;;  %vm4803_vm1 = vc.u32 %v4795_v61, %v4799_v3 }
 0x488   : > { %v11052_v13 = vshrl.u32 %v2422_v53, 5  ;;  %v2433_v50 = vshll.u32 %v13137_v2, %v2424_v29  ;;  %v11056_v54 = vadd.f32 %v532_v0, %v13398_v25  ;;  %v13405_v58 = vand.u32 2147483647, %v13400_v37 }
 0x489   : > { %v13406_v31 = vmov 0  ;;  %v11064_v5 = vor.u32 %v2428_v6, %v2427_v42  ;;  %v11066_v35 = vor.u32 %v2431_v56, %v2430_v43  ;;  %v2438_v15 = vor.u32 %v2437_v21, %v2436_v30 }
 0x48a   : > { %13404 = vst [vmem:[#allocation21_spill] sm:$0xff] %v11056_v54  ;;  %vm11060_vm9 = vcmp.le.f32.partialorder %v13405_v58, 0.7853982  ;;  %v2439_v61 = vshll.u32 %v13134_v19, %v2424_v29  ;;  %v11070_v53 = vsub.s32 %v10965_v39, %v4667_v40  ;;  %v13409_v3 = vshrl.u32 %v10952_v11, 16 }
 0x48b   : > { %v13407_v31 = vsel %vm11060_vm9, 4294967295, %v13406_v31  ;;  %v4779_v0 = vshll.u32 %v11028_v44, 16  ;;  %v2418_v18 = vor.u32 8388608, %v2417_v57  ;;  %v4804_v58 = vsel %vm4803_vm1, 1, %v13044_v9 }
 0x48c   : > { %13408 = vst [vmem:[#allocation33_spill] sm:$0xff] %v13407_v31  ;;  %v4776_v25 = vmul.u32 %v13409_v3, %v4770_v10  ;;  %v13410_v47 = vshll.u32 %v11016_v52, 16  ;;  %v11079_v6 = vor.u32 %v2434_v62, %v2433_v50  ;;  %v2441_v56 = vor.u32 %v2440_v7, %v2439_v61 }
 0x48d   : > { %v4782_v39 = vsel %vm11030_vm3, 1, %v13044_v9  ;;  %v13411_v29 = vshrl.u32 %v10961_v38, 16  ;;  %vm2442_vm11 = vcmp.lt.s32.totalorder %v11052_v13, 1  ;;  %vm2445_vm6 = vcmp.lt.s32.totalorder %v11052_v13, 4 }
 0x48e   : > { %vm4807_vm13 = vc.u32 %v11041_v28, %v13410_v47  ;;  %vm11088_vm7 = vc.u32 %v4783_v1, %v4779_v0  ;;  %v2450_v47 = vsel %vm2442_vm11, %v11064_v5, %v11066_v35  ;;  %v2451_v7 = vsel %vm2445_vm6, %v2438_v15, 920167782 }
 0x48f   : > { %v4798_v11 = vmul.u32 %v13411_v29, %v4770_v10  ;;  %v2567_v14 = vand.u32 2139095040, %v11056_v54  ;;  %v4808_v10 = vsel %vm4807_vm13, 1, %v13044_v9  ;;  %vm12983_vm2 = vcmp.lt.s32.totalorder %v11052_v13, 3 }
 0x490   : > { %v11101_v21 = vshll.u32 %v2418_v18, 8  ;;  %vm12982_vm12 = vcmp.lt.s32.totalorder %v11052_v13, 2  ;;  %v2452_v1 = vsel %vm12983_vm2, %v11079_v6, %v2451_v7  ;;  %v2454_v50 = vsel %vm2442_vm11, %v11066_v35, %v11079_v6 }
 0x491   : > { %v4806_v38 = vadd.s32 %v4804_v58, %v4798_v11  ;;  %v2455_v57 = vsel %vm2445_vm6, %v2441_v56, 1326507024  ;;  %v4670_v42 = vsub.s32 0, %v11070_v53  ;;  %v4784_v43 = vadd.s32 %v4782_v39, %v4776_v25 }
 0x492   : > { %v2453_v18 = vsel %vm12982_vm12, %v2450_v47, %v2452_v1  ;;  %v2456_v62 = vsel %vm12983_vm2, %v2438_v15, %v2455_v57  ;;  %vm4669_vm15 = vcmp.lt.s32.totalorder %v11070_v53, 0  ;;  %v4786_v30 = vsel %vm11088_vm7, 1, %v13044_v9 }
 0x493   : > { %v2457_v61 = vsel %vm12982_vm12, %v2454_v50, %v2456_v62  ;;  %v2568_v3 = vshrl.u32 %v2567_v14, 23  ;;  %v11127_v25 = vsel %vm11060_vm9, %v13400_v37, %v2225_v24  ;;  %v11129_v0 = vmul.f32 %v2376_v27, %v2374_v51 }
 0x494   : > { %v4810_v58 = vadd.s32 %v4808_v10, %v4806_v38  ;;  %v2483_v56 = vand.u32 65535, %v2453_v18  ;;  %v2459_v15 = vand.u32 65535, %v11101_v21  ;;  %v2461_v39 = vand.u32 65535, %v2457_v61 }
 0x495   : > { %v2462_v29 = vshrl.u32 %v2457_v61, 16  ;;  %v2484_v11 = vshrl.u32 %v2453_v18, 16  ;;  %v4671_v40 = vsel %vm4669_vm15, %v4670_v42, %v11070_v53  ;;  %v4736_v47 = vshrl.u32 %v13043_v34, %v10853_v22 }
 0x496   : > { %v4788_v7 = vadd.s32 %v4786_v30, %v4784_v43  ;;  %v2460_v14 = vshrl.u32 %v11101_v21, 16  ;;  %v4757_v24 = vsel %vm4755_vm4, %v10905_v8, 2102212464  ;;  %v4800_v51 = vshrl.u32 %v10995_v45, 16 }
 0x497   : > { %v11140_v27 = vmul.u32 %v2462_v29, %v2459_v15  ;;  %v5832_v38 = vadd.s32 4294967169, %v2568_v3  ;;  %v4778_v10 = vshrl.u32 %v10988_v4, 16  ;;  %v11145_v50 = vmul.u32 %v2484_v11, %v2459_v15 }
 0x498   : > { %v11143_v1 = vmul.u32 %v2461_v39, %v2460_v14  ;;  %v11147_v57 = vmul.u32 %v2483_v56, %v2460_v14  ;;  %v4672_v22 = vclz %v4671_v40  ;;  %v4811_v42 = vadd.s32 %v4810_v58, %v4800_v51 }
 0x499   : > { %v2463_v43 = vmul.u32 %v2461_v39, %v2459_v15  ;;  %v2467_v18 = vshll.u32 %v11140_v27, 16  ;;  %v4780_v8 = vshrl.u32 %v11028_v44, 16  ;;  %v4789_v62 = vadd.s32 %v4788_v7, %v4778_v10  ;;  %v13414_v7 = vld [vmem:[#allocation34_spill] sm:$0xff] }
 0x49a   : > { %v2485_v45 = vmul.u32 %v2483_v56, %v2459_v15  ;;  %v2489_v30 = vshll.u32 %v11145_v50, 16  ;;  %vm4404_vm4 = vcmp.eq.s32.totalorder %v10855_v48, 0  ;;  %v4802_v4 = vshrl.u32 %v11016_v52, 16 }
 0x49b   : > { %vm2471_vm3 = vc.u32 %v2463_v43, %v2467_v18  ;;  %v2473_v61 = vadd.s32 %v2467_v18, %v2463_v43  ;;  %v2574_v3 = vadd.s32 1, %v5832_v38  ;;  %v2469_v31 = vshll.u32 %v11143_v1, 16 }
 0x49c   : > { %v2491_v58 = vshll.u32 %v11147_v57, 16  ;;  %vm2493_vm1 = vc.u32 %v2485_v45, %v2489_v30  ;;  %v11156_v39 = vadd.s32 %v2489_v30, %v2485_v45  ;;  %vm4407_vm13 = vcmp.eq.s32.totalorder %v10855_v48, 2 }
 0x49d   : > { %v4812_v44 = vadd.s32 %v4811_v42, %v4802_v4  ;;  %v2472_v56 = vsel %vm2471_vm3, 1, %v13044_v9  ;;  %v2488_v15 = vmul.u32 %v2484_v11, %v2460_v14  ;;  %v2494_v40 = vsel %vm2493_vm1, 1, %v13044_v9 }
 0x49e   : > { %vm4403_vm7 = vcmp.lt.s32.totalorder %v10855_v48, 2  ;;  %vm2258_vm15 = vcmp.lt.s32.totalorder %v13414_v7, 0  ;;  %v11163_v51 = vadd.s32 %v4789_v62, %v4780_v8  ;;  %v2466_v38 = vmul.u32 %v2462_v29, %v2460_v14 }
 0x49f   : > { %vm2475_vm12 = vc.u32 %v2473_v61, %v2469_v31  ;;  %vm2497_vm2 = vc.u32 %v11156_v39, %v2491_v58  ;;  %v4756_v10 = vsel %vm4752_vm14, %v4736_v47, %v10921_v33  ;;  %v4758_v11 = vsel %vm4754_vm0, %v10903_v55, %v4757_v24 }
 0x4a0   : > { %v2496_v42 = vadd.s32 %v2494_v40, %v2488_v15  ;;  %vm2575_vm3 = vcmp.gt.s32.totalorder %v2574_v3, 0  ;;  %v13415_v43 = vshll.u32 %v11016_v52, 16  ;;  %v2474_v31 = vadd.s32 %v2472_v56, %v2466_v38 }
 0x4a1   : > { %v2498_v29 = vsel %vm2497_vm2, 1, %v13044_v9  ;;  %v2576_v14 = vsel %vm2575_vm3, %v2574_v3, 0  ;;  %v4553_v8 = vadd.f32 1.0, %v11021_v23  ;;  %v13416_v62 = vand.u32 2147483647, %v13414_v7 }
 0x4a2   : > { %v11177_v18 = vadd.s32 %v11041_v28, %v13415_v43  ;;  %v5872_v55 = vadd.s32 4294967294, %v4672_v22  ;;  %v4816_v47 = vadd.s32 1, %v4812_v44  ;;  %v2476_v24 = vsel %vm2475_vm12, 1, %v13044_v9 }
 0x4a3   : > { %vm11183_vm14 = vcmp.le.f32.partialorder %v13416_v62, 0.7853982  ;;  %v4408_v52 = vxor.u32 2147483648, %v11008_v46  ;;  %v13419_v28 = vsel %vm10784_vm5, 0, %v10976_v17  ;;  %v11197_v23 = vmul.f32 %v11127_v25, %v11127_v25 }
 0x4a4   : > { %v11193_v45 = vand.u32 3, %v13419_v28  ;;  %vm4815_vm0 = vc.u32 %v11163_v51, %v11177_v18  ;;  %v2378_v22 = vxor.u32 2147483648, %v11129_v0  ;;  %v4759_v30 = vsel %vm4753_vm10, %v4756_v10, %v4758_v11 }
 0x4a5   : > { %v2500_v4 = vadd.s32 %v2498_v29, %v2496_v42  ;;  %v2578_v61 = vand.u32 31, %v2576_v14  ;;  %v13420_v32 = vxor.u32 2147483648, %v10983_v12  ;;  %v11210_v3 = vadd.f32 1.0, %v11012_v60 }
 0x4a6   : > { %v2226_v56 = vsub.s32 4, %v10608_v26  ;;  %v2478_v15 = vadd.s32 %v2476_v24, %v2474_v31  ;;  %v11214_v40 = vmul.f32 %v4553_v8, %v10832_v20  ;;  %vm5873_vm5 = vcmp.lt.s32.totalorder %v5872_v55, 0 }
 0x4a7   : > { %v4406_v17 = vsel %vm4404_vm4, %v11008_v46, %v13420_v32  ;;  %v4817_v16 = vsel %vm4815_vm0, %v4816_v47, %v4812_v44  ;;  %v2490_v38 = vshrl.u32 %v11145_v50, 16  ;;  %v4409_v10 = vsel %vm4407_vm13, %v4408_v52, %v10983_v12 }
 0x4a8   : > { %v2238_v11 = vmul.f32 -0.00019511016, %v11197_v23  ;;  %v4813_v46 = vmul.u32 %v10957_v59, %v4759_v30  ;;  %v2468_v60 = vshrl.u32 %v11140_v27, 16  ;;  %v11225_v42 = vsel %vm4403_vm7, %v4406_v17, %v4409_v10 }
 0x4a9   : > { %v2379_v20 = vsel %vm2258_vm15, %v2378_v22, %v11129_v0  ;;  %v2501_v44 = vadd.s32 %v2500_v4, %v2490_v38  ;;  %v11230_v50 = vsub.s32 32, %v2578_v61  ;;  %v4562_v43 = vxor.u32 2147483648, %v11210_v3 }
 0x4aa   : > { %v11233_v12 = vsel %vm5873_vm5, 0, %v5872_v55  ;;  %v11235_v31 = vadd.s32 %v4817_v16, %v4813_v46  ;;  %v2479_v59 = vadd.s32 %v2478_v15, %v2468_v60  ;;  %v4559_v27 = vxor.u32 2147483648, %v11214_v40 }
 0x4ab   : > { %v11241_v48 = vsel %vm2104_vm8, %v2226_v56, %v10608_v26  ;;  %v2231_v29 = vmul.f32 -0.001358992, %v11197_v23  ;;  %v2492_v0 = vshrl.u32 %v11147_v57, 16  ;;  %v2239_v8 = vadd.f32 0.008332121, %v2238_v11 }
 0x4ac   : > { %v11248_v62 = vsel %vm11183_vm14, %v13414_v7, %v2379_v20  ;;  %v2447_v55 = vsel %vm2445_vm6, %v11079_v6, 2102212464  ;;  %v2470_v47 = vshrl.u32 %v11143_v1, 16  ;;  %v4680_v24 = vsub.s32 4294967266, %v11233_v12 }
 0x4ad   : > { %v2426_v26 = vshrl.u32 %v13043_v34, %v11014_v63  ;;  %v2502_v52 = vadd.s32 %v2501_v44, %v2492_v0  ;;  %v2594_v28 = vshrl.u32 %v13195_v41, %v11230_v50  ;;  %v4819_v22 = vadd.s32 536870912, %v11235_v31  ;;  %v13425_v44 = vld [vmem:[#allocation26_spill] sm:$0xff] }
 0x4ae   : > { %v11260_v30 = vadd.s32 %v2479_v59, %v2470_v47  ;;  %v12984_v4 = vand.u32 2147483647, %v11056_v54  ;;  %v2591_v6 = vshrl.u32 %v13134_v19, %v11230_v50  ;;  %vm13421_vm10 = vcmp.lt.s32.totalorder %v11052_v13, 3  ;;  %v13426_v47 = vld [vmem:[#allocation7_spill] sm:$0xff] }
 0x4af   : > { %v2446_v1 = vsel %vm2442_vm11, %v2426_v26, %v11064_v5  ;;  %v2448_v63 = vsel %vm13421_vm10, %v11066_v35, %v2447_v55  ;;  %v11274_v32 = vadd.s32 %v11156_v39, %v2491_v58  ;;  %v2593_v17 = vshll.u32 %v13134_v19, %v2578_v61 }
 0x4b0   : > { %vm4558_vm8 = vcmp.eq.s32.totalorder %v11193_v45, 0  ;;  %v11278_v56 = vshrl.u32 %v2576_v14, 5  ;;  %v2585_v15 = vshrl.u32 %v13137_v2, %v11230_v50  ;;  %v2588_v5 = vshrl.u32 %v13193_v49, %v11230_v50 }
 0x4b1   : > { %13422 = vst [vmem:[#allocation14_spill] sm:$0xff] %v11274_v32  ;;  %v2590_v16 = vshll.u32 %v13193_v49, %v2578_v61  ;;  %v4681_v35 = vadd.s32 127, %v4680_v24  ;;  %v2506_v38 = vadd.s32 1, %v2502_v52  ;;  %v2582_v57 = vshrl.u32 %v13363_v36, %v11230_v50  ;;  %v13427_v24 = vld [vmem:[#allocation23_spill] sm:$0xff] }
 0x4b2   : > { %v2595_v58 = vor.u32 %v2594_v28, %v2593_v17  ;;  %vm4561_vm11 = vcmp.eq.s32.totalorder %v11193_v45, 2  ;;  %vm2505_vm6 = vc.u32 %v11260_v30, %v11274_v32  ;;  %v2584_v39 = vshll.u32 %v13363_v36, %v2578_v61 }
 0x4b3   : > { %v2587_v14 = vshll.u32 %v13137_v2, %v2578_v61  ;;  %v2592_v10 = vor.u32 %v2591_v6, %v2590_v16  ;;  %v4676_v11 = vsub.s32 32, %v11233_v12  ;;  %v11293_v46 = vshrl.u32 %v4819_v22, 30 }
 0x4b4   : > { %vm13424_vm2 = vcmp.lt.s32.totalorder %v11052_v13, 2  ;;  %v2581_v20 = vshll.u32 %v13043_v34, %v2578_v61  ;;  %vm4401_vm12 = vweird.f32 %v13425_v44  ;;  %vm4557_vm4 = vcmp.lt.s32.totalorder %v11193_v45, 2  ;;  %v491_v44 = vpop.f32.mrf.mxu2  ;;  %v11380_v45 = vpop.permute.xlu0 %5568 }
 0x4b5   : > { %13423 = vst [vmem:[#allocation27_spill] sm:$0xff] %v11293_v46  ;;  %v2449_v60 = vsel %vm13424_vm2, %v2446_v1, %v2448_v63  ;;  %v2571_v59 = vand.u32 8388607, %v12984_v4  ;;  %v11302_v0 = vor.u32 %v2585_v15, %v2584_v39  ;;  %v11304_v55 = vor.u32 %v2588_v5, %v2587_v14 }
 0x4b6   : > { %vm2599_vm1 = vcmp.lt.s32.totalorder %v11278_v56, 4  ;;  %v4660_v26 = vadd.s32 %v13427_v24, %v13426_v47  ;;  %v2507_v13 = vsel %vm2505_vm6, %v2506_v38, %v2502_v52  ;;  %v11309_v28 = vor.u32 %v2582_v57, %v2581_v20  ;;  %v13428_v20 = vld [vmem:[#allocation15_spill] sm:$0xff] }
 0x4b7   : > { %v2609_v61 = vsel %vm2599_vm1, %v2595_v58, 1326507024  ;;  %v11315_v22 = vmul.f32 %v11248_v62, %v11248_v62  ;;  %v4682_v6 = vshll.u32 %v4681_v35, 23  ;;  %v2503_v1 = vmul.u32 %v11101_v21, %v2449_v60 }
 0x4b8   : > { %v2605_v63 = vsel %vm2599_vm1, %v2592_v10, 920167782  ;;  %v4678_v17 = vshrl.u32 %v4660_v26, %v4676_v11  ;;  %v4821_v15 = vshll.u32 %v11293_v46, 30  ;;  %vm2596_vm13 = vcmp.lt.s32.totalorder %v11278_v56, 1 }
 0x4b9   : > { %vm2598_vm7 = vcmp.lt.s32.totalorder %v11278_v56, 3  ;;  %v11323_v52 = vadd.s32 %v2507_v13, %v2503_v1  ;;  %v2572_v5 = vor.u32 8388608, %v2571_v59  ;;  %v2608_v16 = vsel %vm2596_vm13, %v11302_v0, %v11304_v55 }
 0x4ba   : > { %v2610_v21 = vsel %vm2598_vm7, %v2592_v10, %v2609_v61  ;;  %v4560_v35 = vsel %vm4558_vm8, %v11210_v3, %v4559_v27  ;;  %v2232_v38 = vadd.f32 0.041655596, %v2231_v29  ;;  %v2604_v57 = vsel %vm2596_vm13, %v11309_v28, %v11302_v0 }
 0x4bb   : > { %v2606_v58 = vsel %vm2598_vm7, %v11304_v55, %v2605_v63  ;;  %v2240_v39 = vmul.f32 %v2239_v8, %v11197_v23  ;;  %v4677_v14 = vshll.u32 %v11070_v53, %v11233_v12  ;;  %v4683_v10 = vor.u32 4788187, %v4682_v6 }
 0x4bc   : > { %vm12994_vm3 = vcmp.lt.s32.totalorder %v11278_v56, 2  ;;  %v4563_v27 = vsel %vm4561_vm11, %v4562_v43, %v11214_v40  ;;  %v2392_v29 = vmul.f32 -0.00019511016, %v11315_v22  ;;  %v11352_v11 = vsub.s32 %v11235_v31, %v4821_v15  ;;  %v13429_v40 = vld [vmem:[#allocation32_spill] sm:$0xff] }
 0x4bd   : > { %v11356_v8 = vsel %vm12994_vm3, %v2608_v16, %v2610_v21  ;;  %v4679_v60 = vor.u32 %v4678_v17, %v4677_v14  ;;  %v2509_v53 = vadd.s32 536870912, %v11323_v52  ;;  %v11361_v12 = vsel %vm12994_vm3, %v2604_v57, %v2606_v58  ;;  %v13432_v16 = vld [vmem:[#allocation30_spill] sm:$0xff] }
 0x4be   : > { %v11363_v3 = vshll.u32 %v2572_v5, 8  ;;  %v5595_v43 = vmul.f32 %v13429_v40, %v13428_v20  ;;  %v4411_v31 = vsel %vm4401_vm12, nan, %v11225_v42  ;;  %v4564_v59 = vsel %vm4557_vm4, %v4560_v35, %v4563_v27 }
 0x4bf   : > { %v2229_v24 = vsel %vm11060_vm9, 0, %v11241_v48  ;;  %v2233_v26 = vmul.f32 %v2232_v38, %v11197_v23  ;;  %v2241_v13 = vadd.f32 -0.16666654, %v2240_v39  ;;  %v4684_v61 = vand.u32 2147483647, %v4683_v10  ;;  %v13435_v38 = vld [vmem:[#allocation36_spill] sm:$0xff] }
 0x4c0   : > { %v12986_v6 = vshrl.u32 %v11356_v8, 16  ;;  %v2385_v1 = vmul.f32 -0.001358992, %v11315_v22  ;;  %v2393_v63 = vadd.f32 0.008332121, %v2392_v29  ;;  %v4824_v17 = vsub.s32 0, %v11352_v11 }
 0x4c1   : > { %v12985_v42 = vshrl.u32 %v11361_v12, 16  ;;  %v4686_v15 = vcvt.s32.f32 %v4679_v60  ;;  %vm4823_vm0 = vcmp.lt.s32.totalorder %v11352_v11, 0  ;;  %v11383_v48 = vshrl.u32 %v2509_v53, 30  ;;  %v13436_v10 = vld [vmem:[#allocation10_spill] sm:$0xff] }
 0x4c2   : > { %v2613_v5 = vand.u32 65535, %v11363_v3  ;;  %v11387_v21 = vadd.f32 %v13432_v16, %v5595_v43  ;;  %v11390_v35 = vmul.f32 %v11380_v45, %v4411_v31  ;;  %vm4555_vm9 = vweird.f32 %v13435_v38  ;;  %v13438_v31 = vld [vmem:[#allocation31_spill] sm:$0xff] }
 0x4c3   : > { %13431 = vst [vmem:[#allocation34_spill] sm:$0xff] %v11383_v48  ;;  %v11393_v57 = vand.u32 3, %v2229_v24  ;;  %v2234_v58 = vadd.f32 -0.4999988, %v2233_v26  ;;  %v4687_v39 = vmul.f32 %v4686_v15, %v4684_v61  ;;  %v11400_v27 = vadd.f32 %v491_v44, %v13436_v10 }
 0x4c4   : > { %13433 = vst [vmem:[#allocation26_spill] sm:$0xff] %v11387_v21  ;;  %v11397_v14 = vmul.u32 %v12986_v6, %v2613_v5  ;;  %v11402_v29 = vsel %vm4555_vm9, nan, %v4564_v59  ;;  %v2242_v60 = vmul.f32 %v2241_v13, %v11197_v23  ;;  %v4825_v53 = vsel %vm4823_vm0, %v4824_v17, %v11352_v11  ;;  %v13442_v13 = vld [vmem:[#allocation18_spill] sm:$0xff] }
 0x4c5   : > { %13434 = vst [vmem:[#allocation7_spill] sm:$0xff] %v11390_v35  ;;  %v11408_v20 = vmul.u32 %v12985_v42, %v2613_v5  ;;  %v2386_v40 = vadd.f32 0.041655596, %v2385_v1  ;;  %v2394_v43 = vmul.f32 %v2393_v63, %v11315_v22  ;;  %v13439_v47 = vand.u32 2147483647, %v13438_v31 }
 0x4c6   : > { %13437 = vst [vmem:[#allocation23_spill] sm:$0xff] %v11400_v27  ;;  %v2511_v59 = vshll.u32 %v11383_v48, 30  ;;  %v2615_v26 = vand.u32 65535, %v11356_v8  ;;  %v2380_v61 = vsub.s32 4, %v13442_v13  ;;  %vm4568_vm10 = vcmp.lt.s32.totalorder %v13438_v31, 0 }
 0x4c7   : > { %vm11413_vm5 = vcmp.le.f32.partialorder %v13439_v47, 0.7853982  ;;  %v2637_v17 = vand.u32 65535, %v11361_v12  ;;  %v4877_v1 = vand.u32 2139095040, %v11400_v27  ;;  %v2235_v63 = vmul.f32 %v2234_v58, %v11197_v23 }
 0x4c8   : > { %v4688_v44 = vxor.u32 2147483648, %v4687_v39  ;;  %v4826_v15 = vclz %v4825_v53  ;;  %v2621_v16 = vshll.u32 %v11397_v14, 16  ;;  %v2243_v38 = vadd.f32 1.0, %v2242_v60 }
 0x4c9   : > { %v2614_v47 = vshrl.u32 %v11363_v3, 16  ;;  %v2643_v4 = vshll.u32 %v11408_v20, 16  ;;  %v4878_v42 = vshrl.u32 %v4877_v1, 23  ;;  %v2387_v6 = vmul.f32 %v2386_v40, %v11315_v22 }
 0x4ca   : > { %v2395_v35 = vadd.f32 -0.16666654, %v2394_v43  ;;  %v11429_v54 = vsub.s32 %v11323_v52, %v2511_v59  ;;  %v2617_v48 = vmul.u32 %v2615_v26, %v2613_v5  ;;  %v2639_v23 = vmul.u32 %v2637_v17, %v2613_v5 }
 0x4cb   : > { %v11431_v21 = vmul.u32 %v2615_v26, %v2614_v47  ;;  %v11433_v58 = vmul.u32 %v2637_v17, %v2614_v47  ;;  %v5877_v53 = vadd.s32 4294967169, %v4878_v42  ;;  %v2236_v46 = vadd.f32 1.0, %v2235_v63 }
 0x4cc   : > { %v4689_v60 = vsel %vm4568_vm10, %v4688_v44, %v4687_v39  ;;  %v5875_v32 = vadd.s32 4294967294, %v4826_v15  ;;  %vm11437_vm8 = vc.u32 %v2617_v48, %v2621_v16  ;;  %vm2248_vm11 = vcmp.eq.s32.totalorder %v11393_v57, 0 }
 0x4cd   : > { %v2627_v52 = vadd.s32 %v2621_v16, %v2617_v48  ;;  %vm2647_vm6 = vc.u32 %v2639_v23, %v2643_v4  ;;  %v11442_v40 = vadd.s32 %v2643_v4, %v2639_v23  ;;  %v4884_v43 = vadd.s32 1, %v5877_v53 }
 0x4ce   : > { %v2244_v5 = vmul.f32 %v2243_v38, %v11127_v25  ;;  %v2388_v59 = vadd.f32 -0.4999988, %v2387_v6  ;;  %v2396_v42 = vmul.f32 %v2395_v35, %v11315_v22  ;;  %v2514_v26 = vsub.s32 0, %v11429_v54 }
 0x4cf   : > { %v11450_v39 = vsel %vm11413_vm5, %v13438_v31, %v4689_v60  ;;  %vm2513_vm2 = vcmp.lt.s32.totalorder %v11429_v54, 0  ;;  %v2623_v48 = vshll.u32 %v11431_v21, 16  ;;  %v2645_v4 = vshll.u32 %v11433_v58, 16 }
 0x4d0   : > { %vm5876_vm12 = vcmp.lt.s32.totalorder %v5875_v32, 0  ;;  %v13445_v17 = vshrl.u32 %v11356_v8, 16  ;;  %v2626_v6 = vsel %vm11437_vm8, 1, %v13044_v9  ;;  %v2648_v35 = vsel %vm2647_vm6, 1, %v13044_v9 }
 0x4d1   : > { %vm2247_vm4 = vcmp.lt.s32.totalorder %v11393_v57, 2  ;;  %vm2629_vm0 = vc.u32 %v2627_v52, %v2623_v48  ;;  %v13446_v63 = vshrl.u32 %v11361_v12, 16  ;;  %vm2651_vm9 = vc.u32 %v11442_v40, %v2645_v4 }
 0x4d2   : > { %v2620_v25 = vmul.u32 %v13445_v17, %v2614_v47  ;;  %vm4885_vm3 = vcmp.gt.s32.totalorder %v4884_v43, 0  ;;  %v2249_v15 = vxor.u32 2147483648, %v2244_v5  ;;  %v2381_v8 = vsel %vm2258_vm15, %v2380_v61, %v13442_v13 }
 0x4d3   : > { %v2642_v44 = vmul.u32 %v13446_v63, %v2614_v47  ;;  %v11472_v16 = vmul.f32 %v11450_v39, %v11450_v39  ;;  %v2515_v38 = vsel %vm2513_vm2, %v2514_v26, %v11429_v54  ;;  %v2389_v23 = vmul.f32 %v2388_v59, %v11315_v22 }
 0x4d4   : > { %v4829_v12 = vsel %vm5876_vm12, 0, %v5875_v32  ;;  %v2628_v47 = vadd.s32 %v2626_v6, %v2620_v25  ;;  %v2397_v60 = vadd.f32 1.0, %v2396_v42  ;;  %v2630_v1 = vsel %vm2629_vm0, 1, %v13044_v9 }
 0x4d5   : > { %v2650_v53 = vadd.s32 %v2648_v35, %v2642_v44  ;;  %v2652_v52 = vsel %vm2651_vm9, 1, %v13044_v9  ;;  %v4886_v48 = vsel %vm4885_vm3, %v4884_v43, 0  ;;  %v11480_v13 = vmul.f32 %v11380_v45, %v11402_v29  ;;  %v13448_v29 = vld [vmem:[#allocation19_spill] sm:$0xff] }
 0x4d6   : > { %vm2251_vm15 = vcmp.eq.s32.totalorder %v11393_v57, 2  ;;  %v2252_v61 = vxor.u32 2147483648, %v2236_v46  ;;  %v2516_v17 = vclz %v2515_v38  ;;  %v2250_v22 = vsel %vm2248_vm11, %v2236_v46, %v2249_v15 }
 0x4d7   : > { %13447 = vst [vmem:[#allocation15_spill] sm:$0xff] %v11480_v13  ;;  %v2383_v32 = vsel %vm11183_vm14, 0, %v2381_v8  ;;  %v4702_v59 = vmul.f32 -0.00019511016, %v11472_v16  ;;  %v4830_v42 = vsub.s32 32, %v4829_v12  ;;  %v4834_v26 = vsub.s32 4294967266, %v4829_v12 }
 0x4d8   : > { %v2632_v25 = vadd.s32 %v2630_v1, %v2628_v47  ;;  %v2654_v43 = vadd.s32 %v2652_v52, %v2650_v53  ;;  %v4888_v6 = vand.u32 31, %v4886_v48  ;;  %v11488_v35 = vadd.f32 1.0, %v2389_v23 }
 0x4d9   : > { %v11491_v45 = vmul.f32 %v2397_v60, %v11248_v62  ;;  %v4690_v63 = vsub.s32 4, %v13448_v29  ;;  %v4814_v46 = vadd.s32 %v11177_v18, %v11163_v51  ;;  %v2253_v44 = vsel %vm2251_vm15, %v2252_v61, %v2244_v5 }
 0x4da   : > { %v5830_v33 = vadd.s32 4294967294, %v2516_v17  ;;  %v2622_v15 = vshrl.u32 %v11397_v14, 16  ;;  %v2644_v8 = vshrl.u32 %v11408_v20, 16  ;;  %v11500_v38 = vsel %vm2247_vm4, %v2250_v22, %v2253_v44 }
 0x4db   : > { %v11502_v23 = vand.u32 3, %v2383_v32  ;;  %v4703_v47 = vadd.f32 0.008332121, %v4702_v59  ;;  %v4832_v62 = vshrl.u32 %v4814_v46, %v4830_v42  ;;  %v4835_v53 = vadd.s32 127, %v4834_v26 }
 0x4dc   : > { %v2633_v60 = vadd.s32 %v2632_v25, %v2622_v15  ;;  %v2655_v1 = vadd.s32 %v2654_v43, %v2644_v8  ;;  %v11504_v52 = vsub.s32 32, %v4888_v6  ;;  %v2403_v51 = vxor.u32 2147483648, %v11491_v45  ;;  %v556_v43 = vpop.f32.mrf.mxu3 }
 0x4dd   : > { %v2406_v18 = vxor.u32 2147483648, %v11488_v35  ;;  %v11511_v14 = vsel %vm4568_vm10, %v4690_v63, %v13448_v29  ;;  %v4831_v57 = vshll.u32 %v11352_v11, %v4829_v12  ;;  %vm5831_vm14 = vcmp.lt.s32.totalorder %v5830_v33, 0 }
 0x4de   : > { %v2601_v20 = vsel %vm2599_vm1, %v11304_v55, 2102212464  ;;  %v2624_v5 = vshrl.u32 %v11431_v21, 16  ;;  %v2646_v61 = vshrl.u32 %v11433_v58, 16  ;;  %v4695_v17 = vmul.f32 -0.001358992, %v11472_v16 }
 0x4df   : > { %v4704_v22 = vmul.f32 %v4703_v47, %v11472_v16  ;;  %v11521_v32 = vor.u32 %v4832_v62, %v4831_v57  ;;  %v2580_v59 = vshrl.u32 %v13043_v34, %v11230_v50  ;;  %v4836_v42 = vshll.u32 %v4835_v53, 23 }
 0x4e0   : > { %v11525_v11 = vadd.s32 %v2633_v60, %v2624_v5  ;;  %v2656_v12 = vadd.s32 %v2655_v1, %v2646_v61  ;;  %v4901_v55 = vshrl.u32 %v13134_v19, %v11504_v52  ;;  %v11529_v26 = vsel %vm5831_vm14, 0, %v5830_v33 }
 0x4e1   : > { %v2600_v21 = vsel %vm2596_vm13, %v2580_v59, %v11309_v28  ;;  %v2602_v25 = vsel %vm2598_vm7, %v11302_v0, %v2601_v20  ;;  %v4904_v50 = vshrl.u32 %v13195_v41, %v11504_v52  ;;  %v11542_v29 = vadd.s32 %v11442_v40, %v2645_v4 }
 0x4e2   : > { %v12996_v63 = vand.u32 2147483647, %v11400_v27  ;;  %v11545_v46 = vshrl.u32 %v4886_v48, 5  ;;  %v4900_v44 = vshll.u32 %v13193_v49, %v4888_v6  ;;  %v4892_v28 = vshrl.u32 %v13363_v36, %v11504_v52 }
 0x4e3   : > { %v4895_v0 = vshrl.u32 %v13137_v2, %v11504_v52  ;;  %v4898_v33 = vshrl.u32 %v13193_v49, %v11504_v52  ;;  %v4903_v58 = vshll.u32 %v13134_v19, %v4888_v6  ;;  %vm2402_vm1 = vcmp.eq.s32.totalorder %v11502_v23, 0 }
 0x4e4   : > { %vm2659_vm13 = vc.u32 %v11525_v11, %v11542_v29  ;;  %v2660_v40 = vadd.s32 1, %v2656_v12  ;;  %v4902_v4 = vor.u32 %v4901_v55, %v4900_v44  ;;  %v11559_v48 = vadd.f32 %v556_v43, %v13436_v10 }
 0x4e5   : > { %v4891_v15 = vshll.u32 %v13043_v34, %v4888_v6  ;;  %v4894_v8 = vshll.u32 %v13363_v36, %v4888_v6  ;;  %v4897_v47 = vshll.u32 %v13137_v2, %v4888_v6  ;;  %v4905_v62 = vor.u32 %v4904_v50, %v4903_v58 }
 0x4e6   : > { %13449 = vst [vmem:[#allocation32_spill] sm:$0xff] %v11559_v48  ;;  %vm2245_vm7 = vweird.f32 %v13400_v37  ;;  %v4837_v53 = vor.u32 4788187, %v4836_v42  ;;  %v2524_v60 = vsub.s32 4294967266, %v11529_v26  ;;  %vm13450_vm3 = vcmp.lt.s32.totalorder %v11278_v56, 2 }
 0x4e7   : > { %v2603_v1 = vsel %vm13450_vm3, %v2600_v21, %v2602_v25  ;;  %v4881_v57 = vand.u32 8388607, %v12996_v63  ;;  %vm2405_vm10 = vcmp.eq.s32.totalorder %v11502_v23, 2  ;;  %v11571_v10 = vor.u32 %v4892_v28, %v4891_v15 }
 0x4e8   : > { %v11573_v20 = vor.u32 %v4895_v0, %v4894_v8  ;;  %v11575_v5 = vor.u32 %v4898_v33, %v4897_v47  ;;  %vm4909_vm8 = vcmp.lt.s32.totalorder %v11545_v46, 4  ;;  %vm2401_vm11 = vcmp.lt.s32.totalorder %v11502_v23, 2  ;;  %v13451_v8 = vld [vmem:[#allocation14_spill] sm:$0xff] }
 0x4e9   : > { %v4696_v6 = vadd.f32 0.041655596, %v4695_v17  ;;  %v2661_v56 = vsel %vm2659_vm13, %v2660_v40, %v2656_v12  ;;  %v4915_v61 = vsel %vm4909_vm8, %v4902_v4, 920167782  ;;  %v5031_v59 = vand.u32 2139095040, %v11559_v48 }
 0x4ea   : > { %v4705_v42 = vadd.f32 -0.16666654, %v4704_v22  ;;  %v4840_v55 = vcvt.s32.f32 %v11521_v32  ;;  %v2657_v21 = vmul.u32 %v11363_v3, %v2603_v1  ;;  %v4919_v25 = vsel %vm4909_vm8, %v4905_v62, 1326507024 }
 0x4eb   : > { %v4838_v50 = vand.u32 2147483647, %v4837_v53  ;;  %v2525_v43 = vadd.s32 127, %v2524_v60  ;;  %vm4906_vm6 = vcmp.lt.s32.totalorder %v11545_v46, 1  ;;  %vm4908_vm2 = vcmp.lt.s32.totalorder %v11545_v46, 3 }
 0x4ec   : > { %v11591_v17 = vadd.s32 %v2661_v56, %v2657_v21  ;;  %v4882_v12 = vor.u32 8388608, %v4881_v57  ;;  %v4914_v22 = vsel %vm4906_vm6, %v11571_v10, %v11573_v20  ;;  %v4916_v3 = vsel %vm4908_vm2, %v11575_v5, %v4915_v61 }
 0x4ed   : > { %vm2399_vm12 = vweird.f32 %v13414_v7  ;;  %v2520_v32 = vsub.s32 32, %v11529_v26  ;;  %v4918_v44 = vsel %vm4906_vm6, %v11573_v20, %v11575_v5  ;;  %v4920_v28 = vsel %vm4908_vm2, %v4902_v4, %v4919_v25  ;;  %v13453_v25 = vld [vmem:[#allocation28_spill] sm:$0xff]  ;;  %v13458_v7 = vld [vmem:[#allocation6_spill] sm:$0xff] }
 0x4ee   : > { %v5032_v0 = vshrl.u32 %v5031_v59, 23  ;;  %v2404_v33 = vsel %vm2402_vm1, %v11488_v35, %v2403_v51  ;;  %v4697_v58 = vmul.f32 %v4696_v6, %v11472_v16  ;;  %v4706_v40 = vmul.f32 %v4705_v42, %v11472_v16 }
 0x4ef   : > { %vm4907_vm4 = vcmp.lt.s32.totalorder %v11545_v46, 2  ;;  %v4841_v15 = vmul.f32 %v4840_v55, %v4838_v50  ;;  %v2504_v47 = vadd.s32 %v13451_v8, %v11260_v30  ;;  %v2526_v62 = vshll.u32 %v2525_v43, 23 }
 0x4f0   : > { %v11620_v4 = vsel %vm4907_vm4, %v4914_v22, %v4916_v3  ;;  %v2255_v53 = vsel %vm2245_vm7, nan, %v11500_v38  ;;  %v2663_v51 = vadd.s32 536870912, %v11591_v17  ;;  %v11628_v60 = vsel %vm4907_vm4, %v4918_v44, %v4920_v28  ;;  %v13457_v3 = vld [vmem:[#allocation27_spill] sm:$0xff] }
 0x4f1   : > { %v11630_v1 = vshll.u32 %v4882_v12, 8  ;;  %v2407_v30 = vsel %vm2405_vm10, %v2406_v18, %v11491_v45  ;;  %v4693_v57 = vsel %vm11413_vm5, 0, %v11511_v14  ;;  %v2522_v37 = vshrl.u32 %v2504_v47, %v2520_v32  ;;  %v13452_v18 = vld [vmem:[#allocation8_spill] sm:$0xff] }
 0x4f2   : > { %v5880_v38 = vadd.s32 4294967169, %v5032_v0  ;;  %v2408_v6 = vsel %vm2401_vm11, %v2404_v33, %v2407_v30  ;;  %v4698_v56 = vadd.f32 -0.4999988, %v4697_v58  ;;  %v4707_v61 = vadd.f32 1.0, %v4706_v40 }
 0x4f3   : > { %v4948_v59 = vshrl.u32 %v11620_v4, 16  ;;  %v4842_v42 = vxor.u32 2147483648, %v4841_v15  ;;  %v2521_v35 = vshll.u32 %v11429_v54, %v11529_v26  ;;  %v2527_v55 = vor.u32 4788187, %v2526_v62 }
 0x4f4   : > { %v4926_v45 = vshrl.u32 %v11628_v60, 16  ;;  %v5596_v21 = vmul.f32 %v13452_v18, %v2255_v53  ;;  %v11647_v24 = vand.u32 3, %v4693_v57  ;;  %v11649_v14 = vshrl.u32 %v2663_v51, 30 }
 0x4f5   : > { %v4923_v23 = vand.u32 65535, %v11630_v1  ;;  %v13454_v50 = vand.u32 2147483647, %v13453_v25  ;;  %vm4722_vm0 = vcmp.lt.s32.totalorder %v13453_v25, 0  ;;  %v2523_v54 = vor.u32 %v2522_v37, %v2521_v35 }
 0x4f6   : > { %v5038_v26 = vadd.s32 1, %v5880_v38  ;;  %v2409_v12 = vsel %vm2399_vm12, nan, %v2408_v6  ;;  %v4699_v22 = vmul.f32 %v4698_v56, %v11472_v16  ;;  %v4844_v32 = vsub.s32 4, %v13457_v3 }
 0x4f7   : > { %vm11654_vm5 = vcmp.le.f32.partialorder %v13454_v50, 0.7853982  ;;  %v11665_v44 = vmul.u32 %v4948_v59, %v4923_v23  ;;  %v4708_v28 = vmul.f32 %v4707_v61, %v11450_v39  ;;  %v4843_v0 = vsel %vm4722_vm0, %v4842_v42, %v4841_v15 }
 0x4f8   : > { %v2528_v33 = vand.u32 2147483647, %v2527_v55  ;;  %v11672_v58 = vmul.u32 %v4926_v45, %v4923_v23  ;;  %v11675_v40 = vadd.f32 %v13458_v7, %v5596_v21  ;;  %vm4712_vm9 = vcmp.eq.s32.totalorder %v11647_v24, 0 }
 0x4f9   : > { %v2665_v16 = vshll.u32 %v11649_v14, 30  ;;  %v4947_v8 = vand.u32 65535, %v11620_v4  ;;  %v5597_v47 = vmul.f32 %v13452_v18, %v2409_v12  ;;  %v2530_v39 = vcvt.s32.f32 %v2523_v54  ;;  %v13461_v18 = vld [vmem:[#allocation24_spill] sm:$0xff] }
 0x4fa   : > { %13459 = vst [vmem:[#allocation33_spill] sm:$0xff] %v11675_v40  ;;  %v4925_v62 = vand.u32 65535, %v11628_v60  ;;  %vm5039_vm15 = vcmp.gt.s32.totalorder %v5038_v26, 0  ;;  %v4700_v15 = vadd.f32 1.0, %v4699_v22  ;;  %v11685_v53 = vsel %vm11654_vm5, %v13453_v25, %v4843_v0 }
 0x4fb   : > { %13460 = vst [vmem:[#allocation30_spill] sm:$0xff] %v11685_v53  ;;  %v4924_v51 = vshrl.u32 %v11630_v1, 16  ;;  %v4953_v30 = vshll.u32 %v11665_v44, 16  ;;  %v4713_v57 = vxor.u32 2147483648, %v4708_v28  ;;  %v4845_v37 = vsel %vm4722_vm0, %v4844_v32, %v13457_v3 }
 0x4fc   : > { %v2531_v38 = vmul.f32 %v2530_v39, %v2528_v33  ;;  %v4931_v6 = vshll.u32 %v11672_v58, 16  ;;  %vm4715_vm14 = vcmp.eq.s32.totalorder %v11647_v24, 2  ;;  %v11695_v56 = vsub.s32 %v11591_v17, %v2665_v16 }
 0x4fd   : > { %v4949_v61 = vmul.u32 %v4947_v8, %v4923_v23  ;;  %v11697_v42 = vmul.u32 %v4947_v8, %v4924_v51  ;;  %v5040_v35 = vsel %vm5039_vm15, %v5038_v26, 0  ;;  %vm4711_vm1 = vcmp.lt.s32.totalorder %v11647_v24, 2  ;;  %v13468_v24 = vld [vmem:[#allocation34_spill] sm:$0xff] }
 0x4fe   : > { %v11702_v55 = vmul.f32 %v11685_v53, %v11685_v53  ;;  %vm2412_vm13 = vcmp.lt.s32.totalorder %v13461_v18, 0  ;;  %v4927_v21 = vmul.u32 %v4925_v62, %v4923_v23  ;;  %v11705_v50 = vmul.u32 %v4925_v62, %v4924_v51 }
 0x4ff   : > { %v4716_v54 = vxor.u32 2147483648, %v4700_v15  ;;  %v4847_v17 = vsel %vm11654_vm5, 0, %v4845_v37  ;;  %vm4957_vm7 = vc.u32 %v4949_v61, %v4953_v30  ;;  %v11709_v12 = vadd.s32 %v4953_v30, %v4949_v61  ;;  %v13462_v37 = vld [vmem:[#allocation26_spill] sm:$0xff] }
 0x500   : > { %v2532_v22 = vxor.u32 2147483648, %v2531_v38  ;;  %vm4935_vm3 = vc.u32 %v4927_v21, %v4931_v6  ;;  %v4937_v26 = vadd.s32 %v4931_v6, %v4927_v21  ;;  %v5042_v3 = vand.u32 31, %v5040_v35 }
 0x501   : > { %v4714_v32 = vsel %vm4712_vm9, %v4700_v15, %v4713_v57  ;;  %v2668_v0 = vsub.s32 0, %v11695_v56  ;;  %v12997_v23 = vshll.u32 %v11697_v42, 16  ;;  %v12995_v33 = vand.u32 2147483647, %v11559_v48 }
 0x502   : > { %v4849_v7 = vmul.f32 -0.001358992, %v11702_v55  ;;  %vm2667_vm10 = vcmp.lt.s32.totalorder %v11695_v56, 0  ;;  %v4933_v43 = vshll.u32 %v11705_v50, 16  ;;  %v4958_v16 = vsel %vm4957_vm7, 1, %v13044_v9 }
 0x503   : > { %v4856_v8 = vmul.f32 -0.00019511016, %v11702_v55  ;;  %v4936_v39 = vsel %vm4935_vm3, 1, %v13044_v9  ;;  %v4952_v62 = vmul.u32 %v4948_v59, %v4924_v51  ;;  %vm4961_vm11 = vc.u32 %v11709_v12, %v12997_v23 }
 0x504   : > { %v2533_v15 = vsel %vm2412_vm13, %v2532_v22, %v2531_v38  ;;  %v4930_v30 = vmul.u32 %v4926_v45, %v4924_v51  ;;  %vm4939_vm12 = vc.u32 %v4937_v26, %v4933_v43  ;;  %v11731_v57 = vsub.s32 32, %v5042_v3 }
 0x505   : > { %v11734_v6 = vadd.f32 %v13462_v37, %v5597_v47  ;;  %v2669_v61 = vsel %vm2667_vm10, %v2668_v0, %v11695_v56  ;;  %v4960_v4 = vadd.s32 %v4958_v16, %v4952_v62  ;;  %v11739_v59 = vand.u32 8388607, %v12995_v33 }
 0x506   : > { %v4717_v21 = vsel %vm4715_vm14, %v4716_v54, %v4708_v28  ;;  %v13464_v38 = vand.u32 2147483647, %v13461_v18  ;;  %v4938_v45 = vadd.s32 %v4936_v39, %v4930_v30  ;;  %v4962_v47 = vsel %vm4961_vm11, 1, %v13044_v9 }
 0x507   : > { %13463 = vst [vmem:[#allocation36_spill] sm:$0xff] %v11734_v6  ;;  %v11752_v51 = vsel %vm4711_vm1, %v4714_v32, %v4717_v21  ;;  %v11754_v22 = vand.u32 3, %v4847_v17  ;;  %v4940_v28 = vsel %vm4939_vm12, 1, %v13044_v9  ;;  %v11762_v54 = vadd.f32 0.041655596, %v4849_v7 }
 0x508   : > { %vm11745_vm5 = vcmp.le.f32.partialorder %v13464_v38, 0.7853982  ;;  %v11764_v0 = vadd.f32 0.008332121, %v4856_v8  ;;  %v2670_v43 = vclz %v2669_v61  ;;  %v5058_v16 = vshrl.u32 %v13195_v41, %v11731_v57 }
 0x509   : > { %13467 = vst [vmem:[#allocation10_spill] sm:$0xff] %v11754_v22  ;;  %v11759_v26 = vsel %vm11745_vm5, %v13461_v18, %v2533_v15  ;;  %v4964_v39 = vadd.s32 %v4962_v47, %v4960_v4  ;;  %v5036_v17 = vor.u32 8388608, %v11739_v59  ;;  %v5055_v62 = vshrl.u32 %v13134_v19, %v11731_v57 }
 0x50a   : > { %v11774_v15 = vmul.f32 %v11759_v26, %v11759_v26  ;;  %v4942_v7 = vadd.s32 %v4940_v28, %v4938_v45  ;;  %v4954_v8 = vshrl.u32 %v11665_v44, 16  ;;  %v5057_v30 = vshll.u32 %v13134_v19, %v5042_v3 }
 0x50b   : > { %v11778_v37 = vshrl.u32 %v5040_v35, 5  ;;  %v5049_v61 = vshrl.u32 %v13137_v2, %v11731_v57  ;;  %v5052_v4 = vshrl.u32 %v13193_v49, %v11731_v57  ;;  %v5054_v59 = vshll.u32 %v13193_v49, %v5042_v3 }
 0x50c   : > { %v5833_v21 = vadd.s32 4294967294, %v2670_v43  ;;  %v4932_v38 = vshrl.u32 %v11672_v58, 16  ;;  %v5046_v45 = vshrl.u32 %v13363_v36, %v11731_v57  ;;  %v5059_v47 = vor.u32 %v5058_v16, %v5057_v30  ;;  %v470_v16 = vpop.f32.mrf.mxu0 }
 0x50d   : > { %v4965_v44 = vadd.s32 %v4964_v39, %v4954_v8  ;;  %v5048_v28 = vshll.u32 %v13363_v36, %v5042_v3  ;;  %v5051_v35 = vshll.u32 %v13137_v2, %v5042_v3  ;;  %v5056_v33 = vor.u32 %v5055_v62, %v5054_v59 }
 0x50e   : > { %v2539_v63 = vmul.f32 -0.001358992, %v11774_v15  ;;  %v2546_v32 = vmul.f32 -0.00019511016, %v11774_v15  ;;  %v4943_v23 = vadd.s32 %v4942_v7, %v4932_v38  ;;  %v5045_v13 = vshll.u32 %v13043_v34, %v5042_v3 }
 0x50f   : > { %v4956_v43 = vshrl.u32 %v11697_v42, 16  ;;  %v11794_v58 = vor.u32 %v5049_v61, %v5048_v28  ;;  %v11796_v25 = vor.u32 %v5052_v4, %v5051_v35  ;;  %vm5063_vm0 = vcmp.lt.s32.totalorder %v11778_v37, 4 }
 0x510   : > { %v4911_v39 = vsel %vm4909_vm8, %v11575_v5, 2102212464  ;;  %v4934_v62 = vshrl.u32 %v11705_v50, 16  ;;  %v11803_v8 = vor.u32 %v5046_v45, %v5045_v13  ;;  %v5073_v3 = vsel %vm5063_vm0, %v5059_v47, 1326507024  ;;  %v13469_v13 = vld [vmem:[#allocation29_spill] sm:$0xff] }
 0x511   : > { %vm5834_vm9 = vcmp.lt.s32.totalorder %v5833_v21, 0  ;;  %v4890_v7 = vshrl.u32 %v13043_v34, %v11504_v52  ;;  %v4966_v30 = vadd.s32 %v4965_v44, %v4956_v43  ;;  %v5069_v61 = vsel %vm5063_vm0, %v5056_v33, 920167782 }
 0x512   : > { %vm4709_vm15 = vweird.f32 %v13438_v31  ;;  %v11812_v4 = vadd.s32 %v4943_v23, %v4934_v62  ;;  %vm5060_vm8 = vcmp.lt.s32.totalorder %v11778_v37, 1  ;;  %vm5062_vm14 = vcmp.lt.s32.totalorder %v11778_v37, 3 }
 0x513   : > { %v11817_v5 = vadd.f32 %v470_v16, %v13469_v13  ;;  %v4910_v50 = vsel %vm4906_vm6, %v4890_v7, %v11571_v10  ;;  %v4912_v52 = vsel %vm4908_vm2, %v11573_v20, %v4911_v39  ;;  %v5072_v23 = vsel %vm5060_vm8, %v11794_v58, %v11796_v25 }
 0x514   : > { %v5074_v59 = vsel %vm5062_vm14, %v5056_v33, %v5073_v3  ;;  %v2673_v38 = vsel %vm5834_vm9, 0, %v5833_v21  ;;  %v13471_v45 = vshll.u32 %v11697_v42, 16  ;;  %v5068_v10 = vsel %vm5060_vm8, %v11803_v8, %v11794_v58 }
 0x515   : > { %13470 = vst [vmem:[#allocation31_spill] sm:$0xff] %v11817_v5  ;;  %v5070_v20 = vsel %vm5062_vm14, %v11796_v25, %v5069_v61  ;;  %v2540_v44 = vadd.f32 0.041655596, %v2539_v63  ;;  %v2547_v28 = vadd.f32 0.008332121, %v2546_v32  ;;  %v4970_v35 = vadd.s32 1, %v4966_v30 }
 0x516   : > { %v11834_v47 = vadd.s32 %v11709_v12, %v13471_v45  ;;  %vm5061_vm6 = vcmp.lt.s32.totalorder %v11778_v37, 2  ;;  %v4913_v42 = vsel %vm4907_vm4, %v4910_v50, %v4912_v52  ;;  %v2721_v33 = vand.u32 2139095040, %v11817_v5 }
 0x517   : > { %v5075_v12 = vsel %vm5061_vm6, %v5072_v23, %v5074_v59  ;;  %v2674_v21 = vsub.s32 32, %v2673_v38  ;;  %v2678_v43 = vsub.s32 4294967266, %v2673_v38  ;;  %v11853_v63 = vsel %vm5061_vm6, %v5068_v10, %v5070_v20 }
 0x518   : > { %vm4969_vm2 = vc.u32 %v11812_v4, %v11834_v47  ;;  %v11855_v32 = vshll.u32 %v5036_v17, 8  ;;  %v4851_v46 = vmul.f32 %v11762_v54, %v11702_v55  ;;  %v4858_v16 = vmul.f32 %v11764_v0, %v11702_v55 }
 0x519   : > { %v13472_v39 = vsub.s32 4, %v13468_v24  ;;  %v2722_v3 = vshrl.u32 %v2721_v33, 23  ;;  %v2541_v7 = vmul.f32 %v2540_v44, %v11774_v15  ;;  %v2658_v61 = vadd.s32 %v11542_v29, %v11525_v11 }
 0x51a   : > { %v4971_v17 = vsel %vm4969_vm2, %v4970_v35, %v4966_v30  ;;  %v5080_v50 = vshrl.u32 %v5075_v12, 16  ;;  %v2548_v52 = vmul.f32 %v2547_v28, %v11774_v15  ;;  %v4967_v54 = vmul.u32 %v11630_v1, %v4913_v42 }
 0x51b   : > { %v2535_v62 = vsel %vm2412_vm13, %v13472_v39, %v13468_v24  ;;  %v12999_v0 = vshrl.u32 %v11853_v63, 16  ;;  %v5835_v23 = vadd.s32 4294967169, %v2722_v3  ;;  %v11875_v59 = vsel %vm4709_vm15, nan, %v11752_v51 }
 0x51c   : > { %v2676_v24 = vshrl.u32 %v2658_v61, %v2674_v21  ;;  %v2679_v45 = vadd.s32 127, %v2678_v43  ;;  %v5077_v10 = vand.u32 65535, %v11855_v32  ;;  %v4852_v20 = vadd.f32 -0.4999988, %v4851_v46 }
 0x51d   : > { %v4859_v11 = vadd.f32 -0.16666654, %v4858_v16  ;;  %v11878_v29 = vadd.s32 %v4971_v17, %v4967_v54  ;;  %v2728_v30 = vadd.s32 1, %v5835_v23  ;;  %v2537_v1 = vsel %vm11745_vm5, 0, %v2535_v62 }
 0x51e   : > { %v2675_v44 = vshll.u32 %v11695_v56, %v2673_v38  ;;  %v5079_v28 = vand.u32 65535, %v5075_v12  ;;  %v11883_v35 = vmul.u32 %v5080_v50, %v5077_v10  ;;  %v2542_v31 = vadd.f32 -0.4999988, %v2541_v7 }
 0x51f   : > { %v2549_v51 = vadd.f32 -0.16666654, %v2548_v52  ;;  %v11887_v42 = vmul.u32 %v12999_v0, %v5077_v10  ;;  %vm2729_vm4 = vcmp.gt.s32.totalorder %v2728_v30, 0  ;;  %v2680_v21 = vshll.u32 %v2679_v45, 23 }
 0x520   : > { %v11889_v33 = vor.u32 %v2676_v24, %v2675_v44  ;;  %v5078_v43 = vshrl.u32 %v11855_v32, 16  ;;  %v2730_v46 = vsel %vm2729_vm4, %v2728_v30, 0  ;;  %v11893_v60 = vmul.f32 %v4852_v20, %v11702_v55 }
 0x521   : > { %v4973_v56 = vadd.s32 536870912, %v11878_v29  ;;  %v5101_v38 = vand.u32 65535, %v11853_v63  ;;  %v2732_v12 = vand.u32 31, %v2730_v46  ;;  %v11898_v16 = vmul.f32 %v4859_v11, %v11702_v55 }
 0x522   : > { %v11900_v39 = vand.u32 3, %v2537_v1  ;;  %v11902_v62 = vmul.u32 %v5079_v28, %v5078_v43  ;;  %v5085_v3 = vshll.u32 %v11883_v35, 16  ;;  %v11906_v7 = vmul.f32 %v2542_v31, %v11774_v15 }
 0x523   : > { %v11909_v61 = vmul.f32 %v2549_v51, %v11774_v15  ;;  %v5107_v17 = vshll.u32 %v11887_v42, 16  ;;  %v11912_v52 = vsub.s32 32, %v2732_v12  ;;  %v11914_v54 = vor.u32 4788187, %v2680_v21  ;;  %v535_v15 = vpop.f32.mrf.mxu1 }
 0x524   : > { %v5081_v23 = vmul.u32 %v5079_v28, %v5077_v10  ;;  %v13000_v24 = vand.u32 2147483647, %v11817_v5  ;;  %v11918_v45 = vshrl.u32 %v4973_v56, 30  ;;  %v5044_v20 = vshrl.u32 %v13043_v34, %v11731_v57 }
 0x525   : > { %v5084_v11 = vmul.u32 %v5080_v50, %v5078_v43  ;;  %v5103_v30 = vmul.u32 %v5101_v38, %v5077_v10  ;;  %v5087_v1 = vshll.u32 %v11902_v62, 16  ;;  %v11923_v31 = vmul.u32 %v5101_v38, %v5078_v43 }
 0x526   : > { %13473 = vst [vmem:[#allocation18_spill] sm:$0xff] %v11918_v45  ;;  %vm5089_vm1 = vc.u32 %v5081_v23, %v5085_v3  ;;  %v5091_v44 = vadd.s32 %v5085_v3, %v5081_v23  ;;  %v2736_v28 = vshrl.u32 %v13363_v36, %v11912_v52  ;;  %v2739_v21 = vshrl.u32 %v13137_v2, %v11912_v52 }
 0x527   : > { %vm11925_vm13 = vc.u32 %v5103_v30, %v5107_v17  ;;  %v2745_v57 = vshrl.u32 %v13134_v19, %v11912_v52  ;;  %v11935_v50 = vadd.s32 %v5107_v17, %v5103_v30  ;;  %v2725_v10 = vand.u32 8388607, %v13000_v24 }
 0x528   : > { %v2735_v56 = vshll.u32 %v13043_v34, %v2732_v12  ;;  %v11941_v38 = vadd.f32 %v535_v15, %v13469_v13  ;;  %v2738_v3 = vshll.u32 %v13363_v36, %v2732_v12  ;;  %v2742_v23 = vshrl.u32 %v13193_v49, %v11912_v52 }
 0x529   : > { %v2744_v55 = vshll.u32 %v13193_v49, %v2732_v12  ;;  %v2748_v0 = vshrl.u32 %v13195_v41, %v11912_v52  ;;  %v5090_v17 = vsel %vm5089_vm1, 1, %v13044_v9  ;;  %v11951_v24 = vshrl.u32 %v2730_v46, 5 }
 0x52a   : > { %v2741_v22 = vshll.u32 %v13137_v2, %v2732_v12  ;;  %v11954_v13 = vor.u32 %v2736_v28, %v2735_v56  ;;  %v11956_v15 = vor.u32 %v2739_v21, %v2738_v3  ;;  %v2747_v53 = vshll.u32 %v13134_v19, %v2732_v12 }
 0x52b   : > { %v2746_v6 = vor.u32 %v2745_v57, %v2744_v55  ;;  %vm5093_vm7 = vc.u32 %v5091_v44, %v5087_v1  ;;  %v5112_v40 = vsel %vm11925_vm13, 1, %v13044_v9  ;;  %v2726_v48 = vor.u32 8388608, %v2725_v10 }
 0x52c   : > { %v2875_v27 = vand.u32 2139095040, %v11941_v38  ;;  %v13476_v46 = vshrl.u32 %v11853_v63, 16  ;;  %v13477_v5 = vshll.u32 %v11923_v31, 16  ;;  %v2743_v28 = vor.u32 %v2742_v23, %v2741_v22 }
 0x52d   : > { %v2749_v21 = vor.u32 %v2748_v0, %v2747_v53  ;;  %v5065_v12 = vsel %vm5063_vm0, %v11796_v25, 2102212464  ;;  %v5092_v55 = vadd.s32 %v5090_v17, %v5084_v11  ;;  %vm2750_vm10 = vcmp.lt.s32.totalorder %v11951_v24, 1 }
 0x52e   : > { %v5106_v30 = vmul.u32 %v13476_v46, %v5078_v43  ;;  %vm5115_vm3 = vc.u32 %v11935_v50, %v13477_v5  ;;  %vm2753_vm11 = vcmp.lt.s32.totalorder %v11951_v24, 4  ;;  %v5094_v1 = vsel %vm5093_vm7, 1, %v13044_v9 }
 0x52f   : > { %v2758_v63 = vsel %vm2750_vm10, %v11954_v13, %v11956_v15  ;;  %v2759_v53 = vsel %vm2753_vm11, %v2746_v6, 920167782  ;;  %v5116_v22 = vsel %vm5115_vm3, 1, %v13044_v9  ;;  %vm2752_vm12 = vcmp.lt.s32.totalorder %v11951_v24, 3 }
 0x530   : > { %v5114_v44 = vadd.s32 %v5112_v40, %v5106_v30  ;;  %v11982_v25 = vshll.u32 %v2726_v48, 8  ;;  %v2876_v5 = vshrl.u32 %v2875_v27, 23  ;;  %vm2751_vm5 = vcmp.lt.s32.totalorder %v11951_v24, 2  ;;  %v13480_v24 = vld [vmem:[#allocation21_spill] sm:$0xff] }
 0x531   : > { %v2760_v40 = vsel %vm2752_vm12, %v2743_v28, %v2759_v53  ;;  %v2762_v0 = vsel %vm2750_vm10, %v11956_v15, %v2743_v28  ;;  %v2763_v43 = vsel %vm2753_vm11, %v2749_v21, 1326507024  ;;  %v2682_v11 = vand.u32 2147483647, %v11914_v54 }
 0x532   : > { %v4975_v51 = vshll.u32 %v11918_v45, 30  ;;  %v2761_v48 = vsel %vm2751_vm5, %v2758_v63, %v2760_v40  ;;  %v2764_v27 = vsel %vm2752_vm12, %v2746_v6, %v2763_v43  ;;  %v5064_v57 = vsel %vm5060_vm8, %v5044_v20, %v11803_v8 }
 0x533   : > { %v5066_v10 = vsel %vm5062_vm14, %v11794_v58, %v5065_v12  ;;  %v5096_v56 = vadd.s32 %v5094_v1, %v5092_v55  ;;  %v2765_v54 = vsel %vm2751_vm5, %v2762_v0, %v2764_v27  ;;  %v5118_v3 = vadd.s32 %v5116_v22, %v5114_v44 }
 0x534   : > { %v2767_v23 = vand.u32 65535, %v11982_v25  ;;  %v2768_v17 = vshrl.u32 %v11982_v25, 16  ;;  %v2791_v30 = vand.u32 65535, %v2761_v48  ;;  %v2769_v46 = vand.u32 65535, %v2765_v54 }
 0x535   : > { %v2770_v6 = vshrl.u32 %v2765_v54, 16  ;;  %v2792_v21 = vshrl.u32 %v2761_v48, 16  ;;  %v5838_v63 = vadd.s32 4294967169, %v2876_v5  ;;  %v13478_v8 = vcvt.s32.f32 %v11889_v33 }
 0x536   : > { %v12013_v58 = vsub.s32 %v11878_v29, %v4975_v51  ;;  %v12017_v12 = vsel %vm5061_vm6, %v5064_v57, %v5066_v10  ;;  %v5086_v55 = vshrl.u32 %v11883_v35, 16  ;;  %v5088_v1 = vshrl.u32 %v11902_v62, 16 }
 0x537   : > { %v12010_v20 = vmul.f32 %v13478_v8, %v2682_v11  ;;  %v5108_v44 = vshrl.u32 %v11887_v42, 16  ;;  %v2772_v53 = vmul.u32 %v2770_v6, %v2767_v23  ;;  %v2773_v22 = vmul.u32 %v2769_v46, %v2768_v17 }
 0x538   : > { %v5097_v5 = vadd.s32 %v5096_v56, %v5086_v55  ;;  %v5110_v33 = vshrl.u32 %v11923_v31, 16  ;;  %v2794_v40 = vmul.u32 %v2792_v21, %v2767_v23  ;;  %v2795_v0 = vmul.u32 %v2791_v30, %v2768_v17 }
 0x539   : > { %v5119_v43 = vadd.s32 %v5118_v3, %v5108_v44  ;;  %v2771_v29 = vmul.u32 %v2769_v46, %v2767_v23  ;;  %v2775_v11 = vshll.u32 %v2772_v53, 16  ;;  %v2882_v51 = vadd.s32 1, %v5838_v63 }
 0x53a   : > { %v2734_v37 = vshrl.u32 %v13043_v34, %v11912_v52  ;;  %v2774_v48 = vmul.u32 %v2770_v6, %v2768_v17  ;;  %v2793_v35 = vmul.u32 %v2791_v30, %v2767_v23  ;;  %v2797_v27 = vshll.u32 %v2794_v40, 16 }
 0x53b   : > { %v2777_v62 = vshll.u32 %v2773_v22, 16  ;;  %vm2779_vm0 = vc.u32 %v2771_v29, %v2775_v11  ;;  %v2781_v42 = vadd.s32 %v2775_v11, %v2771_v29  ;;  %v2796_v57 = vmul.u32 %v2792_v21, %v2768_v17 }
 0x53c   : > { %v2780_v10 = vsel %vm2779_vm0, 1, %v13044_v9  ;;  %v2799_v56 = vshll.u32 %v2795_v0, 16  ;;  %vm2801_vm9 = vc.u32 %v2793_v35, %v2797_v27  ;;  %v2803_v54 = vadd.s32 %v2797_v27, %v2793_v35 }
 0x53d   : > { %v2755_v3 = vsel %vm2753_vm11, %v2743_v28, 2102212464  ;;  %v2782_v46 = vadd.s32 %v2780_v10, %v2774_v48  ;;  %vm2783_vm15 = vc.u32 %v2781_v42, %v2777_v62  ;;  %v2802_v63 = vsel %vm2801_vm9, 1, %v13044_v9 }
 0x53e   : > { %v2754_v52 = vsel %vm2750_vm10, %v2734_v37, %v11954_v13  ;;  %v2784_v23 = vsel %vm2783_vm15, 1, %v13044_v9  ;;  %v2804_v30 = vadd.s32 %v2802_v63, %v2796_v57  ;;  %vm2805_vm8 = vc.u32 %v2803_v54, %v2799_v56 }
 0x53f   : > { %v2776_v17 = vshrl.u32 %v2772_v53, 16  ;;  %v2786_v6 = vadd.s32 %v2784_v23, %v2782_v46  ;;  %v2806_v21 = vsel %vm2805_vm8, 1, %v13044_v9  ;;  %vm2883_vm14 = vcmp.gt.s32.totalorder %v2882_v51, 0 }
 0x540   : > { %v2756_v28 = vsel %vm2752_vm12, %v11956_v15, %v2755_v3  ;;  %v2798_v8 = vshrl.u32 %v2794_v40, 16  ;;  %v2808_v55 = vadd.s32 %v2806_v21, %v2804_v30  ;;  %v2884_v44 = vsel %vm2883_vm14, %v2882_v51, 0 }
 0x541   : > { %v12037_v29 = vadd.s32 %v5097_v5, %v5088_v1  ;;  %v2778_v11 = vshrl.u32 %v2773_v22, 16  ;;  %v2787_v13 = vadd.s32 %v2786_v6, %v2776_v17  ;;  %v2886_v37 = vand.u32 31, %v2884_v44 }
 0x542   : > { %v13479_v48 = vshll.u32 %v11923_v31, 16  ;;  %v5120_v35 = vadd.s32 %v5119_v43, %v5110_v33  ;;  %v2800_v27 = vshrl.u32 %v2795_v0, 16  ;;  %v2809_v62 = vadd.s32 %v2808_v55, %v2798_v8 }
 0x543   : > { %v2757_v42 = vsel %vm2751_vm5, %v2754_v52, %v2756_v28  ;;  %v12046_v15 = vadd.s32 %v2787_v13, %v2778_v11  ;;  %v12048_v40 = vadd.s32 %v2803_v54, %v2799_v56  ;;  %v12050_v1 = vsub.s32 32, %v2886_v37 }
 0x544   : > { %v12042_v53 = vadd.s32 %v11935_v50, %v13479_v48  ;;  %v2551_v22 = vadd.f32 1.0, %v11909_v61  ;;  %v2686_v5 = vxor.u32 2147483648, %v12010_v20  ;;  %v2810_v31 = vadd.s32 %v2809_v62, %v2800_v27 }
 0x545   : > { %v13009_v50 = vand.u32 2147483647, %v11941_v38  ;;  %v4978_v33 = vsub.s32 0, %v12013_v58  ;;  %v5121_v0 = vmul.u32 %v11855_v32, %v12017_v12  ;;  %vm2813_vm2 = vc.u32 %v12046_v15, %v12048_v40 }
 0x546   : > { %vm5123_vm6 = vc.u32 %v12037_v29, %v12042_v53  ;;  %vm2566_vm4 = vcmp.lt.s32.totalorder %v13480_v24, 0  ;;  %v5124_v43 = vadd.s32 1, %v5120_v35  ;;  %v2811_v61 = vmul.u32 %v11982_v25, %v2757_v42 }
 0x547   : > { %v2814_v51 = vadd.s32 1, %v2810_v31  ;;  %v2890_v57 = vshrl.u32 %v13363_v36, %v12050_v1  ;;  %v2893_v10 = vshrl.u32 %v13137_v2, %v12050_v1  ;;  %v2896_v32 = vshrl.u32 %v13193_v49, %v12050_v1 }
 0x548   : > { %v2898_v12 = vshll.u32 %v13193_v49, %v2886_v37  ;;  %v2899_v56 = vshrl.u32 %v13134_v19, %v12050_v1  ;;  %v2879_v3 = vand.u32 8388607, %v13009_v50  ;;  %v12075_v25 = vshrl.u32 %v2884_v44, 5 }
 0x549   : > { %v2815_v54 = vsel %vm2813_vm2, %v2814_v51, %v2810_v31  ;;  %v2889_v46 = vshll.u32 %v13043_v34, %v2886_v37  ;;  %v2892_v52 = vshll.u32 %v13363_v36, %v2886_v37  ;;  %v2895_v23 = vshll.u32 %v13137_v2, %v2886_v37 }
 0x54a   : > { %v2816_v63 = vadd.s32 %v2815_v54, %v2811_v61  ;;  %v2900_v30 = vor.u32 %v2899_v56, %v2898_v12  ;;  %vm4977_vm1 = vcmp.lt.s32.totalorder %v12013_v58, 0  ;;  %v5125_v17 = vsel %vm5123_vm6, %v5124_v43, %v5120_v35 }
 0x54b   : > { %v2901_v6 = vshll.u32 %v13134_v19, %v2886_v37  ;;  %v2902_v21 = vshrl.u32 %v13195_v41, %v12050_v1  ;;  %v13481_v28 = vand.u32 2147483647, %v13480_v24  ;;  %v12093_v44 = vor.u32 %v2890_v57, %v2889_v46 }
 0x54c   : > { %v2817_v55 = vadd.s32 536870912, %v2816_v63  ;;  %v12095_v11 = vor.u32 %v2893_v10, %v2892_v52  ;;  %v12097_v13 = vor.u32 %v2896_v32, %v2895_v23  ;;  %v2688_v48 = vsub.s32 4, %v11649_v14 }
 0x54d   : > { %vm12089_vm13 = vcmp.le.f32.partialorder %v13481_v28, 0.7853982  ;;  %v2880_v35 = vor.u32 8388608, %v2879_v3  ;;  %v2903_v37 = vor.u32 %v2902_v21, %v2901_v6  ;;  %vm2907_vm7 = vcmp.lt.s32.totalorder %v12075_v25, 4 }
 0x54e   : > { %v4979_v27 = vsel %vm4977_vm1, %v4978_v33, %v12013_v58  ;;  %v12102_v62 = vadd.s32 %v5125_v17, %v5121_v0  ;;  %v12104_v42 = vshrl.u32 %v2817_v55, 30  ;;  %v2913_v31 = vsel %vm2907_vm7, %v2900_v30, 920167782 }
 0x54f   : > { %v2544_v43 = vadd.f32 1.0, %v11906_v7  ;;  %v2552_v61 = vmul.f32 %v2551_v22, %v11759_v26  ;;  %vm2904_vm3 = vcmp.lt.s32.totalorder %v12075_v25, 1  ;;  %vm2906_vm10 = vcmp.lt.s32.totalorder %v12075_v25, 3 }
 0x550   : > { %v2687_v51 = vsel %vm2566_vm4, %v2686_v5, %v12010_v20  ;;  %v2819_v33 = vshll.u32 %v12104_v42, 30  ;;  %v2912_v0 = vsel %vm2904_vm3, %v12093_v44, %v12095_v11  ;;  %v2914_v7 = vsel %vm2906_vm10, %v12097_v13, %v2913_v31 }
 0x551   : > { %v4980_v26 = vclz %v4979_v27  ;;  %v2916_v22 = vsel %vm2904_vm3, %v12095_v11, %v12097_v13  ;;  %v2917_v20 = vsel %vm2907_vm7, %v2903_v37, 1326507024  ;;  %v12129_v5 = vshll.u32 %v2880_v35, 8 }
 0x552   : > { %v5127_v57 = vadd.s32 536870912, %v12102_v62  ;;  %v12132_v10 = vsub.s32 %v2816_v63, %v2819_v33  ;;  %vm2905_vm11 = vcmp.lt.s32.totalorder %v12075_v25, 2  ;;  %v2918_v32 = vsel %vm2906_vm10, %v2900_v30, %v2917_v20 }
 0x553   : > { %v2560_v12 = vxor.u32 2147483648, %v2544_v43  ;;  %v12140_v56 = vsel %vm2566_vm4, %v2688_v48, %v11649_v14  ;;  %v2915_v54 = vsel %vm2905_vm11, %v2912_v0, %v2914_v7  ;;  %v2919_v3 = vsel %vm2905_vm11, %v2916_v22, %v2918_v32 }
 0x554   : > { %v2557_v46 = vxor.u32 2147483648, %v2552_v61  ;;  %vm2821_vm12 = vcmp.lt.s32.totalorder %v12132_v10, 0  ;;  %v2822_v63 = vsub.s32 0, %v12132_v10  ;;  %v2923_v52 = vand.u32 65535, %v2919_v3 }
 0x555   : > { %v12151_v23 = vsel %vm12089_vm13, %v13480_v24, %v2687_v51  ;;  %v5878_v30 = vadd.s32 4294967294, %v4980_v26  ;;  %v2921_v14 = vand.u32 65535, %v12129_v5  ;;  %v2924_v17 = vshrl.u32 %v2919_v3, 16 }
 0x556   : > { %13484 = vst [vmem:[#allocation19_spill] sm:$0xff] %v12151_v23  ;;  %v12154_v6 = vshrl.u32 %v5127_v57, 30  ;;  %v2823_v21 = vsel %vm2821_vm12, %v2822_v63, %v12132_v10  ;;  %v2922_v28 = vshrl.u32 %v12129_v5, 16  ;;  %v2946_v55 = vshrl.u32 %v2915_v54, 16 }
 0x557   : > { %vm2556_vm5 = vcmp.eq.s32.totalorder %v11900_v39, 0  ;;  %vm2559_vm0 = vcmp.eq.s32.totalorder %v11900_v39, 2  ;;  %v2824_v48 = vclz %v2823_v21  ;;  %v2926_v35 = vmul.u32 %v2924_v17, %v2921_v14 }
 0x558   : > { %13485 = vst [vmem:[#allocation14_spill] sm:$0xff] %v12154_v6  ;;  %v12160_v37 = vsel %vm2559_vm0, %v2560_v12, %v2552_v61  ;;  %v2927_v31 = vmul.u32 %v2923_v52, %v2922_v28  ;;  %v2945_v51 = vand.u32 65535, %v2915_v54  ;;  %v12167_v33 = vmul.f32 %v12151_v23, %v12151_v23 }
 0x559   : > { %v5836_v0 = vadd.s32 4294967294, %v2824_v48  ;;  %v2925_v7 = vmul.u32 %v2923_v52, %v2921_v14  ;;  %v2929_v26 = vshll.u32 %v2926_v35, 16  ;;  %v12169_v22 = vsel %vm2556_vm5, %v2544_v43, %v2557_v46 }
 0x55a   : > { %vm5879_vm9 = vcmp.lt.s32.totalorder %v5878_v30, 0  ;;  %v5129_v20 = vshll.u32 %v12154_v6, 30  ;;  %v2948_v61 = vmul.u32 %v2946_v55, %v2921_v14  ;;  %v2928_v57 = vmul.u32 %v2924_v17, %v2922_v28  ;;  %v494_v17 = vpop.f32.mrf.mxu2 }
 0x55b   : > { %vm5837_vm15 = vcmp.lt.s32.totalorder %v5836_v0, 0  ;;  %vm2933_vm8 = vc.u32 %v2925_v7, %v2929_v26  ;;  %v2935_v32 = vadd.s32 %v2929_v26, %v2925_v7  ;;  %v2931_v12 = vshll.u32 %v2927_v31, 16 }
 0x55c   : > { %v2934_v54 = vsel %vm2933_vm8, 1, %v13044_v9  ;;  %v2949_v3 = vmul.u32 %v2945_v51, %v2922_v28  ;;  %v2951_v63 = vshll.u32 %v2948_v61, 16  ;;  %v2693_v21 = vmul.f32 -0.001358992, %v12167_v33 }
 0x55d   : > { %v2700_v52 = vmul.f32 -0.00019511016, %v12167_v33  ;;  %v2936_v48 = vadd.s32 %v2934_v54, %v2928_v57  ;;  %v2947_v43 = vmul.u32 %v2945_v51, %v2921_v14  ;;  %v12175_v46 = vsel %vm5879_vm9, 0, %v5878_v30 }
 0x55e   : > { %v12178_v50 = vsub.s32 %v12102_v62, %v5129_v20  ;;  %v12180_v27 = vsel %vm5837_vm15, 0, %v5836_v0  ;;  %vm2937_vm14 = vc.u32 %v2935_v32, %v2931_v12  ;;  %v2930_v7 = vshrl.u32 %v2926_v35, 16  ;;  %v13486_v62 = vld [vmem:[#allocation11_spill] sm:$0xff] }
 0x55f   : > { %v2938_v26 = vsel %vm2937_vm14, 1, %v13044_v9  ;;  %v2950_v6 = vmul.u32 %v2946_v55, %v2922_v28  ;;  %vm2955_vm6 = vc.u32 %v2947_v43, %v2951_v63  ;;  %v2953_v45 = vshll.u32 %v2949_v3, 16 }
 0x560   : > { %v2940_v24 = vadd.s32 %v2938_v26, %v2936_v48  ;;  %v2956_v23 = vsel %vm2955_vm6, 1, %v13044_v9  ;;  %v2957_v57 = vadd.s32 %v2951_v63, %v2947_v43  ;;  %v2701_v14 = vadd.f32 0.008332121, %v2700_v52 }
 0x561   : > { %v2832_v30 = vsub.s32 4294967266, %v12180_v27  ;;  %v2958_v51 = vadd.s32 %v2956_v23, %v2950_v6  ;;  %v12186_v20 = vadd.f32 %v494_v17, %v13486_v62  ;;  %v4988_v0 = vsub.s32 4294967266, %v12175_v46 }
 0x562   : > { %v2909_v35 = vsel %vm2907_vm7, %v12097_v13, 2102212464  ;;  %v2941_v28 = vadd.s32 %v2940_v24, %v2930_v7  ;;  %vm2959_vm2 = vc.u32 %v2957_v57, %v2953_v45  ;;  %vm2555_vm4 = vcmp.lt.s32.totalorder %v11900_v39, 2 }
 0x563   : > { %vm5131_vm1 = vcmp.lt.s32.totalorder %v12178_v50, 0  ;;  %v2888_v55 = vshrl.u32 %v13043_v34, %v12050_v1  ;;  %v2932_v32 = vshrl.u32 %v2927_v31, 16  ;;  %v2960_v23 = vsel %vm2959_vm2, 1, %v13044_v9 }
 0x564   : > { %v5132_v6 = vsub.s32 0, %v12178_v50  ;;  %v2952_v12 = vshrl.u32 %v2948_v61, 16  ;;  %v2962_v54 = vadd.s32 %v2960_v23, %v2958_v51  ;;  %v5185_v63 = vand.u32 2139095040, %v12186_v20 }
 0x565   : > { %v2833_v52 = vadd.s32 127, %v2832_v30  ;;  %v2908_v24 = vsel %vm2904_vm3, %v2888_v55, %v12093_v44  ;;  %v2910_v13 = vsel %vm2906_vm10, %v12095_v11, %v2909_v35  ;;  %v12205_v48 = vadd.s32 %v2941_v28, %v2932_v32 }
 0x566   : > { %v4984_v1 = vsub.s32 32, %v12175_v46  ;;  %v2954_v31 = vshrl.u32 %v2949_v3, 16  ;;  %v2963_v43 = vadd.s32 %v2962_v54, %v2952_v12  ;;  %v5186_v17 = vshrl.u32 %v5185_v63, 23 }
 0x567   : > { %v4968_v61 = vadd.s32 %v11834_v47, %v11812_v4  ;;  %v4989_v7 = vadd.s32 127, %v4988_v0  ;;  %v2828_v26 = vsub.s32 32, %v12180_v27  ;;  %v12211_v30 = vadd.s32 %v2957_v57, %v2953_v45 }
 0x568   : > { %v5133_v44 = vsel %vm5131_vm1, %v5132_v6, %v12178_v50  ;;  %v2911_v11 = vsel %vm2905_vm11, %v2908_v24, %v2910_v13  ;;  %v2964_v51 = vadd.s32 %v2963_v43, %v2954_v31  ;;  %v5883_v35 = vadd.s32 4294967169, %v5186_v17  ;;  %v12234_v13 = vpop.permute.xlu1 %5573 }
 0x569   : > { %vm2553_vm7 = vweird.f32 %v13461_v18  ;;  %v2694_v3 = vadd.f32 0.041655596, %v2693_v21  ;;  %v2812_v4 = vadd.s32 %v12048_v40, %v12046_v15  ;;  %v2834_v47 = vshll.u32 %v2833_v52, 23  ;;  %13487 = vst [vmem:[#allocation8_spill] sm:$0xff] %v12234_v13 }
 0x56a   : > { %vm2967_vm3 = vc.u32 %v12205_v48, %v12211_v30  ;;  %v2702_v45 = vmul.f32 %v2701_v14, %v12167_v33  ;;  %v4986_v57 = vshrl.u32 %v4968_v61, %v4984_v1  ;;  %v2968_v0 = vadd.s32 1, %v2964_v51 }
 0x56b   : > { %v5192_v28 = vadd.s32 1, %v5883_v35  ;;  %v4990_v55 = vshll.u32 %v4989_v7, 23  ;;  %v5134_v25 = vclz %v5133_v44  ;;  %v2830_v32 = vshrl.u32 %v2812_v4, %v2828_v26  ;;  %v559_v44 = vpop.f32.mrf.mxu3 }
 0x56c   : > { %v2965_v23 = vmul.u32 %v12129_v5, %v2911_v11  ;;  %v2562_v21 = vsel %vm2555_vm4, %v12169_v22, %v12160_v37  ;;  %v4985_v15 = vshll.u32 %v12013_v58, %v12175_v46  ;;  %v2969_v40 = vsel %vm2967_vm3, %v2968_v0, %v2964_v51  ;;  %v13492_v0 = vld [vmem:[#allocation31_spill] sm:$0xff] }
 0x56d   : > { %vm5193_vm10 = vcmp.gt.s32.totalorder %v5192_v28, 0  ;;  %v2829_v14 = vshll.u32 %v12132_v10, %v12180_v27  ;;  %v2835_v6 = vor.u32 4788187, %v2834_v47  ;;  %v2695_v63 = vmul.f32 %v2694_v3, %v12167_v33 }
 0x56e   : > { %v2970_v12 = vadd.s32 %v2969_v40, %v2965_v23  ;;  %v5194_v54 = vsel %vm5193_vm10, %v5192_v28, 0  ;;  %v2703_v52 = vadd.f32 -0.16666654, %v2702_v45  ;;  %v4987_v5 = vor.u32 %v4986_v57, %v4985_v15 }
 0x56f   : > { %v5196_v24 = vand.u32 31, %v5194_v54  ;;  %v4991_v39 = vor.u32 4788187, %v4990_v55  ;;  %v5881_v37 = vadd.s32 4294967294, %v5134_v25  ;;  %v2831_v22 = vor.u32 %v2830_v32, %v2829_v14 }
 0x570   : > { %v2971_v1 = vadd.s32 536870912, %v2970_v12  ;;  %v12238_v58 = vmul.f32 %v12234_v13, %v11875_v59  ;;  %v12241_v10 = vadd.f32 1.0, %v11893_v60  ;;  %v13016_v27 = vand.u32 2147483647, %v12186_v20 }
 0x571   : > { %v12244_v46 = vsub.s32 32, %v5196_v24  ;;  %v12247_v31 = vadd.f32 1.0, %v11898_v16  ;;  %v13490_v43 = vsel %vm12089_vm13, 0, %v12140_v56  ;;  %v2836_v61 = vand.u32 2147483647, %v2835_v6 }
 0x572   : > { %13488 = vst [vmem:[#allocation27_spill] sm:$0xff] %v12238_v58  ;;  %v12253_v17 = vand.u32 3, %v13490_v43  ;;  %v12255_v7 = vshrl.u32 %v2971_v1, 30  ;;  %v12259_v59 = vsel %vm2553_vm7, nan, %v2562_v21  ;;  %v12261_v60 = vadd.f32 -0.4999988, %v2695_v63 }
 0x573   : > { %13489 = vst [vmem:[#allocation6_spill] sm:$0xff] %v12241_v10  ;;  %v12264_v26 = vmul.f32 %v2703_v52, %v12167_v33  ;;  %v4994_v16 = vcvt.s32.f32 %v4987_v5  ;;  %v4992_v11 = vand.u32 2147483647, %v4991_v39  ;;  %vm5882_vm11 = vcmp.lt.s32.totalorder %v5881_v37, 0 }
 0x574   : > { %v2838_v8 = vcvt.s32.f32 %v2831_v22  ;;  %v2973_v56 = vshll.u32 %v12255_v7, 30  ;;  %v5189_v51 = vand.u32 8388607, %v13016_v27  ;;  %v5200_v18 = vshrl.u32 %v13363_v36, %v12244_v46 }
 0x575   : > { %v5203_v35 = vshrl.u32 %v13137_v2, %v12244_v46  ;;  %v5209_v3 = vshrl.u32 %v13134_v19, %v12244_v46  ;;  %v5206_v45 = vshrl.u32 %v13193_v49, %v12244_v46  ;;  %v12280_v57 = vadd.f32 %v559_v44, %v13486_v62 }
 0x576   : > { %v2839_v4 = vmul.f32 %v2838_v8, %v2836_v61  ;;  %v12275_v47 = vsub.s32 %v2970_v12, %v2973_v56  ;;  %vm2720_vm13 = vcmp.lt.s32.totalorder %v13492_v0, 0  ;;  %v12283_v28 = vshrl.u32 %v5194_v54, 5 }
 0x577   : > { %13491 = vst [vmem:[#allocation24_spill] sm:$0xff] %v12280_v57  ;;  %v5199_v55 = vshll.u32 %v13043_v34, %v5196_v24  ;;  %v5202_v25 = vshll.u32 %v13363_v36, %v5196_v24  ;;  %v5208_v32 = vshll.u32 %v13193_v49, %v5196_v24  ;;  %v5205_v21 = vshll.u32 %v13137_v2, %v5196_v24 }
 0x578   : > { %vm2975_vm12 = vcmp.lt.s32.totalorder %v12275_v47, 0  ;;  %v2976_v23 = vsub.s32 0, %v12275_v47  ;;  %v5212_v62 = vshrl.u32 %v13195_v41, %v12244_v46  ;;  %v5190_v15 = vor.u32 8388608, %v5189_v51 }
 0x579   : > { %v12293_v40 = vor.u32 %v5200_v18, %v5199_v55  ;;  %v12295_v14 = vor.u32 %v5203_v35, %v5202_v25  ;;  %v5210_v6 = vor.u32 %v5209_v3, %v5208_v32  ;;  %v5207_v54 = vor.u32 %v5206_v45, %v5205_v21 }
 0x57a   : > { %v2977_v12 = vsel %vm2975_vm12, %v2976_v23, %v12275_v47  ;;  %v5211_v63 = vshll.u32 %v13134_v19, %v5196_v24  ;;  %v5339_v52 = vand.u32 2139095040, %v12280_v57  ;;  %v12300_v5 = vmul.f32 %v4994_v16, %v4992_v11 }
 0x57b   : > { %v12303_v39 = vsel %vm5882_vm11, 0, %v5881_v37  ;;  %v13493_v22 = vand.u32 2147483647, %v13492_v0  ;;  %v2978_v43 = vclz %v2977_v12  ;;  %v2840_v61 = vxor.u32 2147483648, %v2839_v4 }
 0x57c   : > { %v5213_v44 = vor.u32 %v5212_v62, %v5211_v63  ;;  %vm5214_vm0 = vcmp.lt.s32.totalorder %v12283_v28, 1  ;;  %vm5217_vm9 = vcmp.lt.s32.totalorder %v12283_v28, 4  ;;  %vm5216_vm15 = vcmp.lt.s32.totalorder %v12283_v28, 3 }
 0x57d   : > { %vm12307_vm5 = vcmp.le.f32.partialorder %v13493_v22, 0.7853982  ;;  %v5839_v24 = vadd.s32 4294967294, %v2978_v43  ;;  %v5222_v37 = vsel %vm5214_vm0, %v12293_v40, %v12295_v14  ;;  %v5223_v16 = vsel %vm5217_vm9, %v5210_v6, 920167782 }
 0x57e   : > { %vm5215_vm8 = vcmp.lt.s32.totalorder %v12283_v28, 2  ;;  %v5224_v11 = vsel %vm5216_vm15, %v5207_v54, %v5223_v16  ;;  %v12323_v8 = vshll.u32 %v5190_v15, 8  ;;  %v5340_v56 = vshrl.u32 %v5339_v52, 23 }
 0x57f   : > { %vm5840_vm14 = vcmp.lt.s32.totalorder %v5839_v24, 0  ;;  %v5225_v35 = vsel %vm5215_vm8, %v5222_v37, %v5224_v11  ;;  %v2841_v3 = vsel %vm2720_vm13, %v2840_v61, %v2839_v4  ;;  %v5226_v55 = vsel %vm5214_vm0, %v12295_v14, %v5207_v54 }
 0x580   : > { %v2981_v45 = vsel %vm5840_vm14, 0, %v5839_v24  ;;  %v5227_v25 = vsel %vm5217_vm9, %v5213_v44, 1326507024  ;;  %v5142_v32 = vsub.s32 4294967266, %v12303_v39  ;;  %v2966_v23 = vadd.s32 %v12211_v30, %v12205_v48 }
 0x581   : > { %v2982_v21 = vsub.s32 32, %v2981_v45  ;;  %v2986_v62 = vsub.s32 4294967266, %v2981_v45  ;;  %v5228_v15 = vsel %vm5216_vm15, %v5210_v6, %v5227_v25  ;;  %v5231_v4 = vand.u32 65535, %v12323_v8 }
 0x582   : > { %v5256_v12 = vshrl.u32 %v5225_v35, 16  ;;  %v5886_v63 = vadd.s32 4294967169, %v5340_v56  ;;  %v12345_v52 = vsel %vm12307_vm5, %v13492_v0, %v2841_v3  ;;  %v5229_v43 = vsel %vm5215_vm8, %v5226_v55, %v5228_v15 }
 0x583   : > { %v2987_v22 = vadd.s32 127, %v2986_v62  ;;  %v5255_v61 = vand.u32 65535, %v5225_v35  ;;  %v5232_v48 = vshrl.u32 %v12323_v8, 16  ;;  %v5233_v30 = vand.u32 65535, %v5229_v43 }
 0x584   : > { %v5234_v44 = vshrl.u32 %v5229_v43, 16  ;;  %v5258_v24 = vmul.u32 %v5256_v12, %v5231_v4  ;;  %v12350_v6 = vadd.s32 127, %v5142_v32  ;;  %v2984_v37 = vshrl.u32 %v2966_v23, %v2982_v21 }
 0x585   : > { %v2988_v16 = vshll.u32 %v2987_v22, 23  ;;  %v12355_v56 = vmul.f32 %v12345_v52, %v12345_v52  ;;  %v5237_v25 = vmul.u32 %v5233_v30, %v5232_v48  ;;  %v5346_v62 = vadd.s32 1, %v5886_v63  ;;  %v13496_v22 = vld [vmem:[#allocation23_spill] sm:$0xff] }
 0x586   : > { %v5236_v3 = vmul.u32 %v5234_v44, %v5231_v4  ;;  %v2983_v35 = vshll.u32 %v12275_v47, %v2981_v45  ;;  %v5259_v15 = vmul.u32 %v5255_v61, %v5232_v48  ;;  %v5261_v27 = vshll.u32 %v5258_v24, 16 }
 0x587   : > { %v2989_v55 = vor.u32 4788187, %v2988_v16  ;;  %v5198_v32 = vshrl.u32 %v13043_v34, %v12244_v46  ;;  %v5235_v43 = vmul.u32 %v5233_v30, %v5231_v4  ;;  %v5257_v21 = vmul.u32 %v5255_v61, %v5231_v4 }
 0x588   : > { %v5239_v23 = vshll.u32 %v5236_v3, 16  ;;  %vm4876_vm6 = vcmp.lt.s32.totalorder %v13496_v22, 0  ;;  %v2985_v11 = vor.u32 %v2984_v37, %v2983_v35  ;;  %v5219_v18 = vsel %vm5217_vm9, %v5207_v54, 2102212464 }
 0x589   : > { %v5238_v51 = vmul.u32 %v5234_v44, %v5232_v48  ;;  %v5260_v13 = vmul.u32 %v5256_v12, %v5232_v48  ;;  %v5241_v63 = vshll.u32 %v5237_v25, 16  ;;  %vm5265_vm4 = vc.u32 %v5257_v21, %v5261_v27 }
 0x58a   : > { %vm5243_vm2 = vc.u32 %v5235_v43, %v5239_v23  ;;  %v5245_v47 = vadd.s32 %v5239_v23, %v5235_v43  ;;  %v2990_v45 = vand.u32 2147483647, %v2989_v55  ;;  %v5263_v58 = vshll.u32 %v5259_v15, 16 }
 0x58b   : > { %v5244_v16 = vsel %vm5243_vm2, 1, %v13044_v9  ;;  %v5266_v46 = vsel %vm5265_vm4, 1, %v13044_v9  ;;  %v5267_v4 = vadd.s32 %v5261_v27, %v5257_v21  ;;  %v2992_v37 = vcvt.s32.f32 %v2985_v11 }
 0x58c   : > { %v5246_v30 = vadd.s32 %v5244_v16, %v5238_v51  ;;  %vm5247_vm1 = vc.u32 %v5245_v47, %v5241_v63  ;;  %v5268_v61 = vadd.s32 %v5266_v46, %v5260_v13  ;;  %v5218_v54 = vsel %vm5214_vm0, %v5198_v32, %v12293_v40 }
 0x58d   : > { %v5248_v12 = vsel %vm5247_vm1, 1, %v13044_v9  ;;  %vm5347_vm7 = vcmp.gt.s32.totalorder %v5346_v62, 0  ;;  %v5240_v48 = vshrl.u32 %v5236_v3, 16  ;;  %vm5269_vm3 = vc.u32 %v5267_v4, %v5263_v58 }
 0x58e   : > { %v5250_v44 = vadd.s32 %v5248_v12, %v5246_v30  ;;  %v5348_v35 = vsel %vm5347_vm7, %v5346_v62, 0  ;;  %v5220_v55 = vsel %vm5216_vm15, %v12295_v14, %v5219_v18  ;;  %v5242_v51 = vshrl.u32 %v5237_v25, 16 }
 0x58f   : > { %v5270_v27 = vsel %vm5269_vm3, 1, %v13044_v9  ;;  %v5350_v13 = vand.u32 31, %v5348_v35  ;;  %v2993_v11 = vmul.f32 %v2992_v37, %v2990_v45  ;;  %v5262_v23 = vshrl.u32 %v5258_v24, 16 }
 0x590   : > { %v5251_v43 = vadd.s32 %v5250_v44, %v5240_v48  ;;  %v5272_v21 = vadd.s32 %v5270_v27, %v5268_v61  ;;  %v5122_v40 = vadd.s32 %v12042_v53, %v12037_v29  ;;  %v2854_v3 = vmul.f32 -0.00019511016, %v12355_v56 }
 0x591   : > { %vm2874_vm10 = vcmp.lt.s32.totalorder %v11941_v38, 0  ;;  %v12377_v62 = vsub.s32 32, %v5350_v13  ;;  %v13497_v14 = vxor.u32 2147483648, %v12300_v5  ;;  %v5264_v32 = vshrl.u32 %v5259_v15, 16 }
 0x592   : > { %v12384_v25 = vadd.s32 %v5251_v43, %v5242_v51  ;;  %v5273_v24 = vadd.s32 %v5272_v21, %v5262_v23  ;;  %v5139_v63 = vshll.u32 %v12178_v50, %v12303_v39  ;;  %v13498_v29 = vsub.s32 32, %v12303_v39 }
 0x593   : > { %v4997_v18 = vsel %vm4876_vm6, %v13497_v14, %v12300_v5  ;;  %v13499_v47 = vand.u32 2147483647, %v11941_v38  ;;  %v5221_v16 = vsel %vm5215_vm8, %v5218_v54, %v5220_v55  ;;  %v12398_v5 = vadd.s32 %v5267_v4, %v5263_v58 }
 0x594   : > { %v5140_v53 = vshrl.u32 %v5122_v40, %v13498_v29  ;;  %v5144_v15 = vshll.u32 %v12350_v6, 23  ;;  %v2994_v46 = vxor.u32 2147483648, %v2993_v11  ;;  %v5274_v30 = vadd.s32 %v5273_v24, %v5264_v32 }
 0x595   : > { %vm12392_vm11 = vcmp.le.f32.partialorder %v13499_v47, 0.7853982  ;;  %v13502_v50 = vand.u32 2147483647, %v12280_v57  ;;  %v2855_v39 = vadd.f32 0.008332121, %v2854_v3  ;;  %vm5277_vm12 = vc.u32 %v12384_v25, %v12398_v5 }
 0x596   : > { %v5357_v37 = vshrl.u32 %v13137_v2, %v12377_v62  ;;  %v5360_v28 = vshrl.u32 %v13193_v49, %v12377_v62  ;;  %v13503_v58 = vand.u32 2147483647, %v13496_v22  ;;  %v5275_v6 = vmul.u32 %v12323_v8, %v5221_v16 }
 0x597   : > { %v5343_v61 = vand.u32 8388607, %v13502_v50  ;;  %v5278_v54 = vadd.s32 1, %v5274_v30  ;;  %v12416_v12 = vshrl.u32 %v5348_v35, 5  ;;  %v5363_v48 = vshrl.u32 %v13134_v19, %v12377_v62 }
 0x598   : > { %vm12411_vm0 = vcmp.le.f32.partialorder %v13503_v58, 0.7853982  ;;  %v5356_v44 = vshll.u32 %v13363_v36, %v5350_v13  ;;  %v5359_v55 = vshll.u32 %v13137_v2, %v5350_v13  ;;  %v5365_v51 = vshll.u32 %v13134_v19, %v5350_v13 }
 0x599   : > { %v5366_v27 = vshrl.u32 %v13195_v41, %v12377_v62  ;;  %v2995_v43 = vsel %vm2874_vm10, %v2994_v46, %v2993_v11  ;;  %v5279_v23 = vsel %vm5277_vm12, %v5278_v54, %v5274_v30  ;;  %v5354_v8 = vshrl.u32 %v13363_v36, %v12377_v62 }
 0x59a   : > { %v5362_v35 = vshll.u32 %v13193_v49, %v5350_v13  ;;  %v5280_v21 = vadd.s32 %v5279_v23, %v5275_v6  ;;  %v12430_v40 = vor.u32 %v5357_v37, %v5356_v44  ;;  %v12432_v3 = vor.u32 %v5360_v28, %v5359_v55 }
 0x59b   : > { %v5367_v2 = vor.u32 %v5366_v27, %v5365_v51  ;;  %v5141_v14 = vor.u32 %v5140_v53, %v5139_v63  ;;  %v5145_v19 = vor.u32 4788187, %v5144_v15  ;;  %v5344_v32 = vor.u32 8388608, %v5343_v61 }
 0x59c   : > { %v5364_v24 = vor.u32 %v5363_v48, %v5362_v35  ;;  %v2847_v41 = vmul.f32 -0.001358992, %v12355_v56  ;;  %v5281_v29 = vadd.s32 536870912, %v5280_v21  ;;  %v5353_v11 = vshll.u32 %v13043_v34, %v5350_v13 }
 0x59d   : > { %vm5371_vm9 = vcmp.lt.s32.totalorder %v12416_v12, 4  ;;  %v2856_v36 = vmul.f32 %v2855_v39, %v12355_v56  ;;  %v12441_v49 = vsel %vm12392_vm11, %v11941_v38, %v2995_v43  ;;  %vm5368_vm15 = vcmp.lt.s32.totalorder %v12416_v12, 1 }
 0x59e   : > { %v5381_v63 = vsel %vm5371_vm9, %v5367_v2, 1326507024  ;;  %v12446_v53 = vshrl.u32 %v5281_v29, 30  ;;  %v12448_v47 = vor.u32 %v5354_v8, %v5353_v11  ;;  %vm5370_vm8 = vcmp.lt.s32.totalorder %v12416_v12, 3 }
 0x59f   : > { %v5380_v13 = vsel %vm5368_vm15, %v12430_v40, %v12432_v3  ;;  %v2705_v16 = vadd.f32 1.0, %v12264_v26  ;;  %v5377_v15 = vsel %vm5371_vm9, %v5364_v24, 920167782  ;;  %v5382_v46 = vsel %vm5370_vm8, %v5364_v24, %v5381_v63 }
 0x5a0   : > { %v12460_v30 = vshll.u32 %v5344_v32, 8  ;;  %v12465_v50 = vsel %vm12411_vm0, %v13496_v22, %v4997_v18  ;;  %v2848_v61 = vadd.f32 0.041655596, %v2847_v41  ;;  %v5283_v39 = vshll.u32 %v12446_v53, 30  ;;  %v13506_v32 = vld [vmem:[#allocation19_spill] sm:$0xff] }
 0x5a1   : > { %vm5369_vm14 = vcmp.lt.s32.totalorder %v12416_v12, 2  ;;  %v5148_v37 = vcvt.s32.f32 %v5141_v14  ;;  %v2857_v26 = vadd.f32 -0.16666654, %v2856_v36  ;;  %v12471_v28 = vmul.f32 %v12441_v49, %v12441_v49  ;;  %v13528_v12 = vld [vmem:[#allocation24_spill] sm:$0xff] }
 0x5a2   : > { %v5383_v58 = vsel %vm5369_vm14, %v5380_v13, %v5382_v46  ;;  %v5146_v6 = vand.u32 2147483647, %v5145_v19  ;;  %v5284_v54 = vsub.s32 %v5280_v21, %v5283_v39  ;;  %v5376_v18 = vsel %vm5368_vm15, %v12448_v47, %v12430_v40 }
 0x5a3   : > { %v5378_v48 = vsel %vm5370_vm8, %v12432_v3, %v5377_v15  ;;  %v2842_v44 = vsub.s32 4, %v12104_v42  ;;  %v5385_v55 = vand.u32 65535, %v12460_v30  ;;  %v5387_v51 = vand.u32 65535, %v5383_v58 }
 0x5a4   : > { %v5388_v27 = vshrl.u32 %v5383_v58, 16  ;;  %v2849_v43 = vmul.f32 %v2848_v61, %v12355_v56  ;;  %vm5285_vm2 = vcmp.lt.s32.totalorder %v5284_v54, 0  ;;  %v5286_v23 = vsub.s32 0, %v5284_v54 }
 0x5a5   : > { %v5386_v8 = vshrl.u32 %v12460_v30, 16  ;;  %v2858_v35 = vmul.f32 %v2857_v26, %v12355_v56  ;;  %v3008_v21 = vmul.f32 -0.00019511016, %v12471_v28  ;;  %v5379_v2 = vsel %vm5369_vm14, %v5376_v18, %v5378_v48 }
 0x5a6   : > { %v5390_v14 = vmul.u32 %v5388_v27, %v5385_v55  ;;  %v12492_v19 = vmul.f32 %v12261_v60, %v12167_v33  ;;  %v12495_v24 = vmul.f32 %v2705_v16, %v13506_v32  ;;  %v5287_v41 = vsel %vm5285_vm2, %v5286_v23, %v5284_v54 }
 0x5a7   : > { %v5391_v29 = vmul.u32 %v5387_v51, %v5386_v8  ;;  %v12499_v11 = vmul.f32 %v12465_v50, %v12465_v50  ;;  %v12501_v36 = vmul.f32 %v5148_v37, %v5146_v6  ;;  %v12506_v63 = vsel %vm2720_vm13, %v2842_v44, %v12104_v42 }
 0x5a8   : > { %v5288_v13 = vclz %v5287_v41  ;;  %v2850_v15 = vadd.f32 -0.4999988, %v2849_v43  ;;  %v5389_v33 = vmul.u32 %v5387_v51, %v5385_v55  ;;  %v5393_v60 = vshll.u32 %v5390_v14, 16 }
 0x5a9   : > { %v5409_v46 = vand.u32 65535, %v5379_v2  ;;  %v12508_v16 = vadd.f32 1.0, %v2858_v35  ;;  %v3009_v61 = vadd.f32 0.008332121, %v3008_v21  ;;  %v5410_v26 = vshrl.u32 %v5379_v2, 16 }
 0x5aa   : > { %v5884_v39 = vadd.s32 4294967294, %v5288_v13  ;;  %v5392_v58 = vmul.u32 %v5388_v27, %v5386_v8  ;;  %v5395_v18 = vshll.u32 %v5391_v29, 16  ;;  %vm5397_vm4 = vc.u32 %v5389_v33, %v5393_v60 }
 0x5ab   : > { %v5399_v37 = vadd.s32 %v5393_v60, %v5389_v33  ;;  %v3001_v6 = vmul.f32 -0.001358992, %v12471_v28  ;;  %v5398_v42 = vsel %vm5397_vm4, 1, %v13044_v9  ;;  %v5412_v48 = vmul.u32 %v5410_v26, %v5385_v55 }
 0x5ac   : > { %vm5885_vm1 = vcmp.lt.s32.totalorder %v5884_v39, 0  ;;  %v5400_v43 = vadd.s32 %v5398_v42, %v5392_v58  ;;  %v5413_v51 = vmul.u32 %v5409_v46, %v5386_v8  ;;  %v3010_v23 = vmul.f32 %v3009_v61, %v12471_v28 }
 0x5ad   : > { %v5291_v44 = vsel %vm5885_vm1, 0, %v5884_v39  ;;  %vm5401_vm13 = vc.u32 %v5399_v37, %v5395_v18  ;;  %v5276_v35 = vadd.s32 %v12398_v5, %v12384_v25  ;;  %v5394_v2 = vshrl.u32 %v5390_v14, 16 }
 0x5ae   : > { %v5292_v21 = vsub.s32 32, %v5291_v44  ;;  %v5296_v27 = vsub.s32 4294967266, %v5291_v44  ;;  %v5402_v32 = vsel %vm5401_vm13, 1, %v13044_v9  ;;  %v5411_v41 = vmul.u32 %v5409_v46, %v5385_v55 }
 0x5af   : > { %v5415_v13 = vshll.u32 %v5412_v48, 16  ;;  %v5293_v33 = vshll.u32 %v5284_v54, %v5291_v44  ;;  %v5404_v10 = vadd.s32 %v5402_v32, %v5400_v43  ;;  %v5414_v39 = vmul.u32 %v5410_v26, %v5386_v8  ;;  %v13507_v44 = vld [vmem:[#allocation32_spill] sm:$0xff] }
 0x5b0   : > { %v5294_v60 = vshrl.u32 %v5276_v35, %v5292_v21  ;;  %v5297_v57 = vadd.s32 127, %v5296_v27  ;;  %v5417_v58 = vshll.u32 %v5413_v51, 16  ;;  %v5352_v5 = vshrl.u32 %v13043_v34, %v12377_v62 }
 0x5b1   : > { %vm5419_vm7 = vc.u32 %v5411_v41, %v5415_v13  ;;  %v5421_v18 = vadd.s32 %v5415_v13, %v5411_v41  ;;  %v5405_v42 = vadd.s32 %v5404_v10, %v5394_v2  ;;  %v5373_v55 = vsel %vm5371_vm9, %v12432_v3, 2102212464 }
 0x5b2   : > { %v5295_v37 = vor.u32 %v5294_v60, %v5293_v33  ;;  %v5298_v61 = vshll.u32 %v5297_v57, 23  ;;  %v5420_v25 = vsel %vm5419_vm7, 1, %v13044_v9  ;;  %v3002_v14 = vadd.f32 0.041655596, %v3001_v6 }
 0x5b3   : > { %v5422_v54 = vadd.s32 %v5420_v25, %v5414_v39  ;;  %vm5423_vm3 = vc.u32 %v5421_v18, %v5417_v58  ;;  %v5396_v8 = vshrl.u32 %v5391_v29, 16  ;;  %vm5030_vm12 = vcmp.lt.s32.totalorder %v13507_v44, 0 }
 0x5b4   : > { %v5299_v46 = vor.u32 4788187, %v5298_v61  ;;  %v5424_v26 = vsel %vm5423_vm3, 1, %v13044_v9  ;;  %v3011_v57 = vadd.f32 -0.16666654, %v3010_v23  ;;  %v5372_v10 = vsel %vm5368_vm15, %v5352_v5, %v12448_v47  ;;  %v13514_v5 = vld [vmem:[#allocation17_spill] sm:$0xff] }
 0x5b5   : > { %v5416_v43 = vshrl.u32 %v5412_v48, 16  ;;  %v5426_v34 = vadd.s32 %v5424_v26, %v5422_v54  ;;  %v5302_v35 = vcvt.s32.f32 %v5295_v37  ;;  %v5374_v3 = vsel %vm5370_vm8, %v12430_v40, %v5373_v55 }
 0x5b6   : > { %v5300_v62 = vand.u32 2147483647, %v5299_v46  ;;  %v12530_v6 = vadd.s32 %v5405_v42, %v5396_v8  ;;  %v2845_v9 = vsel %vm12307_vm5, 0, %v12506_v63  ;;  %v2851_v29 = vmul.f32 %v2850_v15, %v12355_v56 }
 0x5b7   : > { %v5418_v23 = vshrl.u32 %v5413_v51, 16  ;;  %v5427_v21 = vadd.s32 %v5426_v34, %v5416_v43  ;;  %v5010_v47 = vmul.f32 -0.00019511016, %v12499_v11  ;;  %v13508_v48 = vand.u32 2147483647, %v13507_v44 }
 0x5b8   : > { %v3003_v40 = vmul.f32 %v3002_v14, %v12471_v28  ;;  %v5303_v2 = vmul.f32 %v5302_v35, %v5300_v62  ;;  %v12544_v32 = vadd.s32 %v5421_v18, %v5417_v58  ;;  %v5150_v1 = vxor.u32 2147483648, %v12501_v36 }
 0x5b9   : > { %vm12539_vm9 = vcmp.le.f32.partialorder %v13508_v48, 0.7853982  ;;  %v2860_v56 = vmul.f32 %v12508_v16, %v12345_v52  ;;  %v5375_v63 = vsel %vm5369_vm14, %v5372_v10, %v5374_v3  ;;  %v5428_v15 = vadd.s32 %v5427_v21, %v5418_v23 }
 0x5ba   : > { %v2862_v51 = vand.u32 3, %v2845_v9  ;;  %v3012_v41 = vmul.f32 %v3011_v57, %v12471_v28  ;;  %v5304_v13 = vxor.u32 2147483648, %v5303_v2  ;;  %vm5431_vm5 = vc.u32 %v12530_v6, %v12544_v32 }
 0x5bb   : > { %v2852_v33 = vadd.f32 1.0, %v2851_v29  ;;  %v2996_v60 = vsub.s32 4, %v12255_v7  ;;  %vm5184_vm15 = vcmp.lt.s32.totalorder %v12186_v20, 0  ;;  %v5432_v39 = vadd.s32 1, %v5428_v15 }
 0x5bc   : > { %v3004_v58 = vadd.f32 -0.4999988, %v3003_v40  ;;  %v13511_v52 = vand.u32 2147483647, %v12186_v20  ;;  %v5305_v16 = vsel %vm5184_vm15, %v5304_v13, %v5303_v2  ;;  %v5429_v18 = vmul.u32 %v12460_v30, %v5375_v63  ;;  %v13515_v40 = vld [vmem:[#allocation33_spill] sm:$0xff] }
 0x5bd   : > { %v5011_v37 = vadd.f32 0.008332121, %v5010_v47  ;;  %v2865_v61 = vxor.u32 2147483648, %v2860_v56  ;;  %v5433_v25 = vsel %vm5431_vm5, %v5432_v39, %v5428_v15  ;;  %v5598_v55 = vmul.f32 %v13514_v5, %v12259_v59  ;;  %v13517_v15 = vld [vmem:[#allocation21_spill] sm:$0xff] }
 0x5be   : > { %vm12558_vm8 = vcmp.le.f32.partialorder %v13511_v52, 0.7853982  ;;  %vm2710_vm14 = vcmp.eq.s32.totalorder %v12253_v17, 0  ;;  %v5151_v54 = vsel %vm5030_vm12, %v5150_v1, %v12501_v36  ;;  %v3013_v14 = vadd.f32 1.0, %v3012_v41  ;;  %v13516_v1 = vld [vmem:[#allocation18_spill] sm:$0xff] }
 0x5bf   : > { %v12568_v42 = vsel %vm12558_vm8, %v12186_v20, %v5305_v16  ;;  %v5434_v46 = vadd.s32 %v5433_v25, %v5429_v18  ;;  %v5003_v30 = vmul.f32 -0.001358992, %v12499_v11  ;;  %v2868_v8 = vxor.u32 2147483648, %v2852_v33  ;;  %v13518_v25 = vld [vmem:[#allocation12_spill] sm:$0xff] }
 0x5c0   : > { %v2997_v26 = vsel %vm2874_vm10, %v2996_v60, %v12255_v7  ;;  %v12582_v57 = vmul.f32 %v12568_v42, %v12568_v42  ;;  %v2698_v59 = vadd.f32 1.0, %v12492_v19  ;;  %vm2713_vm2 = vcmp.eq.s32.totalorder %v12253_v17, 2 }
 0x5c1   : > { %vm2864_vm4 = vcmp.eq.s32.totalorder %v2862_v51, 0  ;;  %v3005_v36 = vmul.f32 %v3004_v58, %v12471_v28  ;;  %v5435_v10 = vadd.s32 536870912, %v5434_v46  ;;  %v2711_v43 = vxor.u32 2147483648, %v12495_v24 }
 0x5c2   : > { %v5012_v34 = vmul.f32 %v5011_v37, %v12499_v11  ;;  %v12592_v7 = vsel %vm12539_vm9, %v13507_v44, %v5151_v54  ;;  %v2866_v62 = vsel %vm2864_vm4, %v2852_v33, %v2865_v61  ;;  %vm2709_vm10 = vcmp.lt.s32.totalorder %v12253_v17, 2 }
 0x5c3   : > { %vm2867_vm1 = vcmp.eq.s32.totalorder %v2862_v51, 2  ;;  %v2999_v19 = vsel %vm12392_vm11, 0, %v2997_v26  ;;  %v3014_v35 = vmul.f32 %v3013_v14, %v12441_v49  ;;  %v12598_v28 = vshrl.u32 %v5435_v10, 30 }
 0x5c4   : > { %v5004_v3 = vadd.f32 0.041655596, %v5003_v30  ;;  %vm2863_vm13 = vcmp.lt.s32.totalorder %v2862_v51, 2  ;;  %v2869_v9 = vsel %vm2867_vm1, %v2868_v8, %v2860_v56  ;;  %v5318_v29 = vmul.f32 -0.00019511016, %v12582_v57 }
 0x5c5   : > { %v12603_v23 = vmul.f32 %v12592_v7, %v12592_v7  ;;  %v2870_v21 = vsel %vm2863_vm13, %v2866_v62, %v2869_v9  ;;  %v3006_v47 = vadd.f32 1.0, %v3005_v36  ;;  %v5437_v48 = vshll.u32 %v12598_v28, 30  ;;  %v13519_v36 = vld [vmem:[#allocation30_spill] sm:$0xff] }
 0x5c6   : > { %v5623_v45 = vadd.f32 %v13515_v40, %v5598_v55  ;;  %v2714_v2 = vxor.u32 2147483648, %v2698_v59  ;;  %v4998_v49 = vsub.s32 4, %v13516_v1  ;;  %v3016_v63 = vand.u32 3, %v2999_v19 }
 0x5c7   : > { %vm2707_vm11 = vweird.f32 %v13517_v15  ;;  %v5013_v51 = vadd.f32 -0.16666654, %v5012_v34  ;;  %vm2861_vm7 = vweird.f32 %v13492_v0  ;;  %v3019_v56 = vxor.u32 2147483648, %v3014_v35 }
 0x5c8   : > { %v5438_v41 = vsub.s32 %v5434_v46, %v5437_v48  ;;  %v2712_v13 = vsel %vm2710_vm14, %v2698_v59, %v2711_v43  ;;  %v5005_v33 = vmul.f32 %v5004_v3, %v12499_v11  ;;  %v2871_v60 = vsel %vm2861_vm7, nan, %v2870_v21 }
 0x5c9   : > { %v5319_v39 = vadd.f32 0.008332121, %v5318_v29  ;;  %v5164_v58 = vmul.f32 -0.00019511016, %v12603_v23  ;;  %v3022_v52 = vxor.u32 2147483648, %v3006_v47  ;;  %v2715_v18 = vsel %vm2713_vm2, %v2714_v2, %v12495_v24 }
 0x5ca   : > { %vm5439_vm3 = vcmp.lt.s32.totalorder %v5438_v41, 0  ;;  %v5440_v16 = vsub.s32 0, %v5438_v41  ;;  %v4999_v0 = vsel %vm4876_vm6, %v4998_v49, %v13516_v1  ;;  %vm3018_vm5 = vcmp.eq.s32.totalorder %v3016_v63, 0 }
 0x5cb   : > { %v5311_v37 = vmul.f32 -0.001358992, %v12582_v57  ;;  %v5014_v61 = vmul.f32 %v5013_v51, %v12499_v11  ;;  %v5600_v55 = vmul.f32 %v13518_v25, %v2871_v60  ;;  %v3020_v54 = vsel %vm3018_vm5, %v3006_v47, %v3019_v56 }
 0x5cc   : > { %v5441_v14 = vsel %vm5439_vm3, %v5440_v16, %v5438_v41  ;;  %v2716_v46 = vsel %vm2709_vm10, %v2712_v13, %v2715_v18  ;;  %vm3021_vm14 = vcmp.eq.s32.totalorder %v3016_v63, 2  ;;  %v5320_v30 = vmul.f32 %v5319_v39, %v12582_v57  ;;  %v13521_v16 = vld [vmem:[#allocation36_spill] sm:$0xff] }
 0x5cd   : > { %v5442_v24 = vclz %v5441_v14  ;;  %v5006_v8 = vadd.f32 -0.4999988, %v5005_v33  ;;  %v5165_v26 = vadd.f32 0.008332121, %v5164_v58  ;;  %vm3017_vm2 = vcmp.lt.s32.totalorder %v3016_v63, 2  ;;  %v13520_v63 = vld [vmem:[#allocation16_spill] sm:$0xff] }
 0x5ce   : > { %v3023_v59 = vsel %vm3021_vm14, %v3022_v52, %v3014_v35  ;;  %v12628_v10 = vmul.f32 %v12247_v31, %v13519_v36  ;;  %v5312_v34 = vadd.f32 0.041655596, %v5311_v37  ;;  %v5001_v19 = vsel %vm12411_vm0, 0, %v4999_v0  ;;  %v13522_v0 = vld [vmem:[#allocation14_spill] sm:$0xff] }
 0x5cf   : > { %v3024_v43 = vsel %vm3017_vm2, %v3020_v54, %v3023_v59  ;;  %v5887_v62 = vadd.s32 4294967294, %v5442_v24  ;;  %v5015_v17 = vadd.f32 1.0, %v5014_v61  ;;  %v5157_v3 = vmul.f32 -0.001358992, %v12603_v23  ;;  %v13523_v61 = vld [vmem:[#allocation25_spill] sm:$0xff]  ;;  %v13525_v54 = vld [vmem:[#allocation6_spill] sm:$0xff] }
 0x5d0   : > { %v5624_v9 = vadd.f32 %v5623_v45, %v5600_v55  ;;  %v2717_v29 = vsel %vm2707_vm11, nan, %v2716_v46  ;;  %vm3015_vm6 = vweird.f32 %v11941_v38  ;;  %v5321_v35 = vadd.f32 -0.16666654, %v5320_v30 }
 0x5d1   : > { %vm5888_vm4 = vcmp.lt.s32.totalorder %v5887_v62, 0  ;;  %v5007_v31 = vmul.f32 %v5006_v8, %v12499_v11  ;;  %v5166_v21 = vmul.f32 %v5165_v26, %v12603_v23  ;;  %v3025_v47 = vsel %vm3015_vm6, nan, %v3024_v43 }
 0x5d2   : > { %v5445_v48 = vsel %vm5888_vm4, 0, %v5887_v62  ;;  %v5313_v4 = vmul.f32 %v5312_v34, %v12582_v57  ;;  %v5430_v40 = vadd.s32 %v12544_v32, %v12530_v6  ;;  %v5599_v1 = vmul.f32 %v13514_v5, %v2717_v29 }
 0x5d3   : > { %v5446_v2 = vsub.s32 32, %v5445_v48  ;;  %v5450_v45 = vsub.s32 4294967266, %v5445_v48  ;;  %v5016_v49 = vmul.f32 %v5015_v17, %v12465_v50  ;;  %v5158_v38 = vadd.f32 0.041655596, %v5157_v3  ;;  %v13526_v3 = vld [vmem:[#allocation35_spill] sm:$0xff] }
 0x5d4   : > { %v5625_v15 = vadd.f32 %v5624_v9, %v13520_v63  ;;  %v5322_v11 = vmul.f32 %v5321_v35, %v12582_v57  ;;  %v5447_v51 = vshll.u32 %v5438_v41, %v5445_v48  ;;  %v5018_v33 = vand.u32 3, %v5001_v19  ;;  %v13524_v41 = vld [vmem:[#allocation10_spill] sm:$0xff] }
 0x5d5   : > { %v5448_v56 = vshrl.u32 %v5430_v40, %v5446_v2  ;;  %v5451_v13 = vadd.s32 127, %v5450_v45  ;;  %v5167_v60 = vadd.f32 -0.16666654, %v5166_v21  ;;  %v5601_v39 = vmul.f32 %v13518_v25, %v3025_v47  ;;  %v13527_v21 = vld [vmem:[#allocation22_spill] sm:$0xff] }
 0x5d6   : > { %v5306_v6 = vsub.s32 4, %v12446_v53  ;;  %v5008_v32 = vadd.f32 1.0, %v5007_v31  ;;  %v5314_v58 = vadd.f32 -0.4999988, %v5313_v4  ;;  %v5644_v50 = vadd.f32 %v13521_v16, %v5599_v1 }
 0x5d7   : > { %v5449_v52 = vor.u32 %v5448_v56, %v5447_v51  ;;  %v5452_v5 = vshll.u32 %v5451_v13, 23  ;;  %v5021_v18 = vxor.u32 2147483648, %v5016_v49  ;;  %v5152_v37 = vsub.s32 4, %v13522_v0  ;;  %v13533_v13 = vld [vmem:[#allocation9_spill] sm:$0xff] }
 0x5d8   : > { %v5626_v55 = vadd.f32 %v5625_v15, %v13523_v61  ;;  %vm4869_vm0 = vcmp.eq.s32.totalorder %v13524_v41, 2  ;;  %v4870_v14 = vxor.u32 2147483648, %v13525_v54  ;;  %v5159_v46 = vmul.f32 %v5158_v38, %v12603_v23  ;;  %v13529_v38 = vld [vmem:[#allocation37_spill] sm:$0xff] }
 0x5d9   : > { %v5323_v25 = vadd.f32 1.0, %v5322_v11  ;;  %v5453_v30 = vor.u32 4788187, %v5452_v5  ;;  %vm4866_vm10 = vcmp.eq.s32.totalorder %v13524_v41, 0  ;;  %vm5020_vm1 = vcmp.eq.s32.totalorder %v5018_v33, 0 }
 0x5da   : > { %v5168_v24 = vmul.f32 %v5167_v60, %v12603_v23  ;;  %v5645_v8 = vadd.f32 %v5644_v50, %v5601_v39  ;;  %v5307_v26 = vsel %vm5184_vm15, %v5306_v6, %v12446_v53  ;;  %v5024_v59 = vxor.u32 2147483648, %v5008_v32 }
 0x5db   : > { %v5315_v36 = vmul.f32 %v5314_v58, %v12582_v57  ;;  %v5454_v43 = vand.u32 2147483647, %v5453_v30  ;;  %v5456_v34 = vcvt.s32.f32 %v5449_v52  ;;  %v4867_v62 = vxor.u32 2147483648, %v12628_v10  ;;  %v13537_v30 = vld [vmem:[#allocation27_spill] sm:$0xff] }
 0x5dc   : > { %v5022_v19 = vsel %vm5020_vm1, %v5008_v32, %v5021_v18  ;;  %v5153_v17 = vsel %vm5030_vm12, %v5152_v37, %v13522_v0  ;;  %v5627_v9 = vadd.f32 %v5626_v55, %v13526_v3  ;;  %v5160_v29 = vadd.f32 -0.4999988, %v5159_v46  ;;  %v13535_v0 = vld [vmem:[#allocation20_spill] sm:$0xff] }
 0x5dd   : > { %v5309_v35 = vsel %vm12558_vm8, 0, %v5307_v26  ;;  %v5324_v53 = vmul.f32 %v5323_v25, %v12568_v42  ;;  %v5457_v31 = vmul.f32 %v5456_v34, %v5454_v43  ;;  %vm5019_vm15 = vcmp.lt.s32.totalorder %v5018_v33, 2 }
 0x5de   : > { %vm5023_vm13 = vcmp.eq.s32.totalorder %v5018_v33, 2  ;;  %v5169_v57 = vadd.f32 1.0, %v5168_v24  ;;  %v5646_v47 = vadd.f32 %v5645_v8, %v13527_v21  ;;  %vm4865_vm11 = vcmp.lt.s32.totalorder %v13524_v41, 2  ;;  %v5579_v8 = vpop.permute.xlu2 %5578 }
 0x5df   : > { %v5025_v48 = vsel %vm5023_vm13, %v5024_v59, %v5016_v49  ;;  %v5155_v4 = vsel %vm12539_vm9, 0, %v5153_v17  ;;  %v5316_v40 = vadd.f32 1.0, %v5315_v36  ;;  %v5458_v2 = vxor.u32 2147483648, %v5457_v31 }
 0x5e0   : > { %v5026_v45 = vsel %vm5019_vm15, %v5022_v19, %v5025_v48  ;;  %v5326_v1 = vand.u32 3, %v5309_v35  ;;  %vm5338_vm12 = vcmp.lt.s32.totalorder %v13528_v12, 0  ;;  %v5628_v42 = vadd.f32 %v5627_v9, %v13529_v38  ;;  %v13539_v48 = vld [vmem:[#allocation15_spill] sm:$0xff] }
 0x5e1   : > { %v5161_v63 = vmul.f32 %v5160_v29, %v12603_v23  ;;  %v5329_v15 = vxor.u32 2147483648, %v5324_v53  ;;  %v13530_v11 = vand.u32 2147483647, %v13528_v12  ;;  %v5459_v27 = vsel %vm5338_vm12, %v5458_v2, %v5457_v31 }
 0x5e2   : > { %v4871_v49 = vsel %vm4869_vm0, %v4870_v14, %v12628_v10  ;;  %v5170_v56 = vmul.f32 %v5169_v57, %v12592_v7  ;;  %v5647_v33 = vadd.f32 %v5646_v47, %v13533_v13  ;;  %v4868_v60 = vsel %vm4866_vm10, %v13525_v54, %v4867_v62  ;;  %v13534_v10 = vld [vmem:[#allocation7_spill] sm:$0xff]  ;;  %v13536_v14 = vld [vmem:[#allocation28_spill] sm:$0xff]  ;;  %v13538_v62 = vld [vmem:[#allocation13_spill] sm:$0xff] }
 0x5e3   : > { %vm12676_vm8 = vcmp.le.f32.partialorder %v13530_v11, 0.7853982  ;;  %vm5017_vm9 = vweird.f32 %v13496_v22  ;;  %v5332_v39 = vxor.u32 2147483648, %v5316_v40  ;;  %v5172_v58 = vand.u32 3, %v5155_v4 }
 0x5e4   : > { %v5462_v23 = vsel %vm12676_vm8, %v13528_v12, %v5459_v27  ;;  %v5027_v32 = vsel %vm5017_vm9, nan, %v5026_v45  ;;  %vm5328_vm7 = vcmp.eq.s32.totalorder %v5326_v1, 0  ;;  %v5629_v52 = vadd.f32 %v5628_v42, %v13534_v10  ;;  %v13540_v45 = vld [vmem:[#allocation8_spill] sm:$0xff] }
 0x5e5   : > { %v5464_v6 = vmul.f32 %v5462_v23, %v5462_v23  ;;  %v5162_v7 = vadd.f32 1.0, %v5161_v63  ;;  %v5330_v5 = vsel %vm5328_vm7, %v5316_v40, %v5329_v15  ;;  %v5175_v18 = vxor.u32 2147483648, %v5170_v56 }
 0x5e6   : > { %v5648_v37 = vadd.f32 %v5647_v33, %v13535_v0  ;;  %vm5331_vm3 = vcmp.eq.s32.totalorder %v5326_v1, 2  ;;  %v5460_v61 = vsub.s32 4, %v12598_v28  ;;  %vm5327_vm5 = vcmp.lt.s32.totalorder %v5326_v1, 2 }
 0x5e7   : > { %v5465_v16 = vmul.f32 -0.001358992, %v5464_v6  ;;  %v5472_v50 = vmul.f32 -0.00019511016, %v5464_v6  ;;  %v5333_v55 = vsel %vm5331_vm3, %v5332_v39, %v5324_v53  ;;  %vm4863_vm14 = vweird.f32 %v13536_v14  ;;  %v5584_v53 = vpop.permute.xlu0 %5583 }
 0x5e8   : > { %v4872_v46 = vsel %vm4865_vm11, %v4868_v60, %v4871_v49  ;;  %v5334_v25 = vsel %vm5327_vm5, %v5330_v5, %v5333_v55  ;;  %v5630_v24 = vadd.f32 %v5629_v52, %v13537_v30  ;;  %vm5174_vm2 = vcmp.eq.s32.totalorder %v5172_v58, 0 }
 0x5e9   : > { %v5466_v22 = vadd.f32 0.041655596, %v5465_v16  ;;  %v5473_v54 = vadd.f32 0.008332121, %v5472_v50  ;;  %v5178_v26 = vxor.u32 2147483648, %v5162_v7  ;;  %v5614_v43 = vmul.f32 %v5579_v8, %v5027_v32 }
 0x5ea   : > { %vm5325_vm6 = vweird.f32 %v12186_v20  ;;  %v5461_v34 = vsel %vm5338_vm12, %v5460_v61, %v12598_v28  ;;  %v5649_v19 = vadd.f32 %v5648_v37, %v13538_v62  ;;  %v5176_v17 = vsel %vm5174_vm2, %v5162_v7, %v5175_v18 }
 0x5eb   : > { %v5467_v59 = vmul.f32 %v5466_v22, %v5464_v6  ;;  %v5474_v36 = vmul.f32 %v5473_v54, %v5464_v6  ;;  %v5335_v41 = vsel %vm5325_vm6, nan, %v5334_v25  ;;  %v4873_v29 = vsel %vm4863_vm14, nan, %v4872_v46 }
 0x5ec   : > { %vm5173_vm4 = vcmp.lt.s32.totalorder %v5172_v58, 2  ;;  %vm5177_vm0 = vcmp.eq.s32.totalorder %v5172_v58, 2  ;;  %v5631_v35 = vadd.f32 %v5630_v24, %v5614_v43  ;;  %v5463_v20 = vsel %vm12676_vm8, 0, %v5461_v34 }
 0x5ed   : > { %v5468_v3 = vadd.f32 -0.4999988, %v5467_v59  ;;  %v5475_v9 = vadd.f32 -0.16666654, %v5474_v36  ;;  %v5179_v31 = vsel %vm5177_vm0, %v5178_v26, %v5170_v56  ;;  %v5616_v47 = vmul.f32 %v5584_v53, %v5335_v41 }
 0x5ee   : > { %v5180_v28 = vsel %vm5173_vm4, %v5176_v17, %v5179_v31  ;;  %v5650_v4 = vadd.f32 %v5649_v19, %v13539_v48  ;;  %v5613_v1 = vmul.f32 %v13540_v45, %v4873_v29  ;;  %vm5171_vm10 = vweird.f32 %v13507_v44 }
 0x5ef   : > { %v5469_v57 = vmul.f32 %v5468_v3, %v5464_v6  ;;  %v5476_v21 = vmul.f32 %v5475_v9, %v5464_v6  ;;  %v5480_v38 = vand.u32 3, %v5463_v20  ;;  %v5632_v42 = vadd.f32 %v5631_v35, %v5616_v47 }
 0x5f0   : > { %v5181_v63 = vsel %vm5171_vm10, nan, %v5180_v28  ;;  %v5651_v27 = vadd.f32 %v5650_v4, %v5613_v1  ;;  %vm5479_vm11 = vweird.f32 %v13528_v12  ;;  %v5666_v18 = vlaneseq }
 0x5f1   : > { %v5470_v40 = vadd.f32 1.0, %v5469_v57  ;;  %v5477_v2 = vadd.f32 1.0, %v5476_v21  ;;  %v5615_v49 = vmul.f32 %v5579_v8, %v5181_v63  ;;  %vm5482_vm1 = vcmp.eq.s32.totalorder %v5480_v38, 0 }
 0x5f2   : > { %vm5485_vm15 = vcmp.eq.s32.totalorder %v5480_v38, 2  ;;  %v5633_v56 = vrot.slane %v5632_v42, 4  ;;  %vm5481_vm13 = vcmp.lt.s32.totalorder %v5480_v38, 2  ;;  %vm5663_vm12 = vcmask 1040384  }
 0x5f3   : > { %v5478_v15 = vmul.f32 %v5477_v2, %v5462_v23  ;;  %v5486_v11 = vxor.u32 2147483648, %v5470_v40  ;;  %v5652_v44 = vadd.f32 %v5651_v27, %v5615_v49  ;;  %vm5668_vm8 = vcmp.lt.s32.totalorder %v5666_v18, 256 }
 0x5f4   : > { %v5634_v32 = vadd.f32 %v5633_v56, %v5632_v42 }
 0x5f5   : > { %v5483_v51 = vxor.u32 2147483648, %v5478_v15  ;;  %v5487_v33 = vsel %vm5485_vm15, %v5486_v11, %v5478_v15 }
 0x5f6   : > { %v5635_v58 = vrot.slane %v5634_v32, 2 }
 0x5f7   : > { %v5484_v13 = vsel %vm5482_vm1, %v5470_v40, %v5483_v51 }
 0x5f8   : > { %v5488_v60 = vsel %vm5481_vm13, %v5484_v13, %v5487_v33  ;;  %v5636_v7 = vadd.f32 %v5635_v58, %v5634_v32 }
 0x5f9   : > { %v5489_v39 = vsel %vm5479_vm11, nan, %v5488_v60 }
 0x5fa   : > { %v5617_v6 = vmul.f32 %v5584_v53, %v5489_v39  ;;  %v5637_v12 = vrot.slane %v5636_v7, 1 }
 0x5fc   : > { %v5653_v23 = vadd.f32 %v5652_v44, %v5617_v6  ;;  %v5638_v37 = vadd.f32 %v5637_v12, %v5636_v7 }
 0x5fe   : > { %v5654_v10 = vrot.slane %v5653_v23, 4 }
 0x600   : > { %v5655_v52 = vadd.f32 %v5654_v10, %v5653_v23 }
 0x602   : > { %v5656_v5 = vrot.slane %v5655_v52, 2 }
 0x604   : > { %v5657_v16 = vadd.f32 %v5656_v5, %v5655_v52 }
 0x606   : > { %v5658_v50 = vrot.slane %v5657_v16, 1 }
 0x608   : > { %v5659_v0 = vadd.f32 %v5658_v50, %v5657_v16 }
 0x60a   : > { %v5662_v61 = vrot.slane %v5659_v0, 7 }
 0x60c   : > { %v5664_v55 = vsel %vm5663_vm12, %v5638_v37, %v5662_v61 }
 0x60d   : > { %5670 = vst.msk [vmem:[%s248_s12] sm:$0x3] %vm5668_vm8, %v5664_v55 }
 0x60e   : > { %5974 = shalt.err (!%p5971_p5)
}
 0x60f   : > { %5898 = dma.vmem_to_hbm [thread:$0]  (%p6086_p6), %s5685_s13, 32, %s5687_s14, %s5672_s22  }
 0x610 PF: > { %s5698_s6 = sand.u32 1, %s5997_s18   ;;  %p5901_p7 = pnand %p5754_p9, %p6090_p8 }
 0x611   : > { %s5699_s7 = scalar_lea.sflag [#allocation4], %s5698_s6 }
 0x612   : > { %p5902_p10 = pneg %p5901_p7 }
 0x614   : > { %5992 = dma.done.wait (%p5902_p10), %s5699_s7, 32  }
 0x615   : > { %5994 = vsyncadd (%p5902_p10), %s5699_s7, 4294967264  ;;  %p15_p11 = scmp.ge.s32.totalorder %s6071_s24, 4   ;;  %s13541_s18 = smov %s6001_s19 }
 0x616   : > { %s13542_s19 = smov %s6005_s20  ;;  %s13543_s20 = smov %s6084_s27 }
 0x617   : > { %s13544_s21 = smov %s6071_s24  ;;  %17 = sbr.rel (!%p15_p11) target bundleno = 3 (0x3), region = 103 }
 0x61c   :  { %5705 = vsyncpa [#allocation4], 1 }
 0x61d   :  { %5707 = vsyncpa [#allocation4 + $0x1], 1 }

</bundles_post_ra>
